<compile_context>
chip_gen: v7x
topology: tpu7x:2x2x1
jax: 0.10.0
libtpu: 0.0.40
codegen_flags: <defaults>
</compile_context>

<pallas_src>
import functools

import jax
import jax.numpy as jnp
from jax.experimental import pallas as pl
from jax.experimental.pallas import tpu as pltpu

# ----------------------------- configuration --------------------------------
N = 2            # batch
C = 8            # cell channels (C_prev_prev = C_prev = C)
L = 128          # sequence length
NL = N * L       # lane-packed length (one (8, 256) slab per state)
STEPS = 2
MULTIPLIER = 2
EPS = 1e-5

PRIMITIVES = ['none', 'max_pool_3', 'avg_pool_3', 'skip_connect',
              'sep_conv_3', 'sep_conv_5', 'dil_conv_3', 'dil_conv_5']
PRIM_IDX = {p: i for i, p in enumerate(PRIMITIVES)}

# packed depthwise-tap columns: [s3_dw1 | s3_dw2 | s5_dw1 | s5_dw2 | d3_dw | d5_dw]
_DW_COLS = dict(s3_dw1=0, s3_dw2=3, s5_dw1=6, s5_dw2=11, d3_dw=16, d5_dw=19)

# tap offsets (z[t] = x[t + o]) for Conv1d(K, stride=1, padding=pad, dilation=dil):
# o_j = j*dil - pad
_OFF_K3 = (-1, 0, 1)                 # K=3, dil=1, pad=1
_OFF_K5 = (-2, -1, 0, 1, 2)          # K=5, dil=1, pad=2
_OFF_D3 = (-2, 0, 2)                 # K=3, dil=2, pad=2
_OFF_D5 = (-4, -2, 0, 2, 4)          # K=5, dil=2, pad=4
_ALL_OFFSETS = (-4, -2, -1, 1, 2, 4)  # nonzero union over all convs + pools


# ------------------------------ fused kernel ----------------------------------
def cell_kernel(w_ref, s0_ref, s1_ref, pre_ref, dw_ref, pw1_ref, pw2_ref, o_ref,
                *, state_idxs, w_pos):
    """Fused cell forward: 2x ReLUConvBN preprocess + all MixedOps + sums + concat."""
    # ---- shared position bookkeeping (computed once, reused by every edge) ----
    lane = jax.lax.broadcasted_iota(jnp.int32, (C, L), 1)
    pos_in = jnp.concatenate([lane] * N, axis=-1)              # pos within each sample
    valid = {}
    for o in _ALL_OFFSETS:
        valid[o] = (pos_in < (L - o)) if o > 0 else (pos_in >= (-o))
    # AvgPool1d(3, pad=1, count_include_pad=False) divisor depends only on position.
    cnt = (1.0 + (pos_in >= 1).astype(jnp.float32)
           + (pos_in < (L - 1)).astype(jnp.float32))
    inv_cnt = 1.0 / cnt

    def shift(y, o, fill):
        """z[:, t] = y[:, t+o] if 0 <= t+o < L (per sample) else fill."""
        if o == 0:
            return y
        rolled = pltpu.roll(y, shift=(-o) % NL, axis=1)
        return jnp.where(valid[o], rolled, fill)

    def batchnorm(y):
        """Training-mode BatchNorm1d(affine=False) over (N, L) per channel."""
        mean = jnp.sum(y, axis=-1, keepdims=True) * (1.0 / NL)
        d = y - mean
        var = jnp.sum(d * d, axis=-1, keepdims=True) * (1.0 / NL)
        return d * jax.lax.rsqrt(var + EPS)

    def depthwise(shifted, taps, base, offsets):
        """Depthwise Conv1d(groups=C): sum_j taps[:, base+j] * shifted[o_j]."""
        acc = None
        for j, o in enumerate(offsets):
            term = taps[:, base + j:base + j + 1] * shifted[o]      # (C,1)*(C,NL)
            acc = term if acc is None else acc + term
        return acc

    def mixed_op(x, e):
        """MixedOp.forward: sum_k w[e,k] * op_k(x) on a lane-packed (C, N*L) state."""
        taps = dw_ref[e]                                            # (C, 24)
        wgt = lambda name: w_ref[e, PRIM_IDX[name]]                 # scalar from SMEM

        # --- stage 1: shared shifted copies of ReLU(x) for all four conv ops ---
        r = jnp.maximum(x, 0.0)
        sh = {0: r}
        for o in _ALL_OFFSETS:
            sh[o] = shift(r, o, 0.0)
        h_s3 = depthwise(sh, taps, _DW_COLS['s3_dw1'], _OFF_K3)
        h_s5 = depthwise(sh, taps, _DW_COLS['s5_dw1'], _OFF_K5)
        h_d3 = depthwise(sh, taps, _DW_COLS['d3_dw'], _OFF_D3)
        h_d5 = depthwise(sh, taps, _DW_COLS['d5_dw'], _OFF_D5)
        # fused 1x1 pointwise convs (block-diagonal weight), then per-op BN
        h = jnp.concatenate([h_s3, h_s5, h_d3, h_d5], axis=0)       # (4C, NL)
        p = jnp.dot(pw1_ref[e], h, preferred_element_type=jnp.float32)
        y_s3 = batchnorm(p[0 * C:1 * C])
        y_s5 = batchnorm(p[1 * C:2 * C])
        dil3 = batchnorm(p[2 * C:3 * C])                            # dil_conv_3 output
        dil5 = batchnorm(p[3 * C:4 * C])                            # dil_conv_5 output

        # --- stage 2 of the two separable convs ---
        r3 = jnp.maximum(y_s3, 0.0)
        r5 = jnp.maximum(y_s5, 0.0)
        sh3 = {0: r3}
        for o in _OFF_K3:
            if o != 0:
                sh3[o] = shift(r3, o, 0.0)
        sh5 = {0: r5}
        for o in _OFF_K5:
            if o != 0:
                sh5[o] = shift(r5, o, 0.0)
        g_s3 = depthwise(sh3, taps, _DW_COLS['s3_dw2'], _OFF_K3)
        g_s5 = depthwise(sh5, taps, _DW_COLS['s5_dw2'], _OFF_K5)
        g = jnp.concatenate([g_s3, g_s5], axis=0)                   # (2C, NL)
        q = jnp.dot(pw2_ref[e], g, preferred_element_type=jnp.float32)
        sep3 = batchnorm(q[0:C])
        sep5 = batchnorm(q[C:2 * C])

        # --- pools: share the rolled copies of x (different pad fills) ---
        roll_m1 = pltpu.roll(x, shift=1, axis=1)        # supplies x[t-1] taps
        roll_p1 = pltpu.roll(x, shift=NL - 1, axis=1)   # supplies x[t+1] taps
        x_m1_inf = jnp.where(valid[-1], roll_m1, -jnp.inf)
        x_p1_inf = jnp.where(valid[1], roll_p1, -jnp.inf)
        maxp = batchnorm(jnp.maximum(jnp.maximum(x_m1_inf, x), x_p1_inf))
        x_m1 = jnp.where(valid[-1], roll_m1, 0.0)
        x_p1 = jnp.where(valid[1], roll_p1, 0.0)
        avgp = batchnorm((x_m1 + x + x_p1) * inv_cnt)

        # 'none' (Zero) contributes w*0 exactly -> omitted (mathematically exact).
        # skip_connect is Identity (p == 0 -> no dropout).
        return (wgt('skip_connect') * x
                + wgt('max_pool_3') * maxp
                + wgt('avg_pool_3') * avgp
                + wgt('sep_conv_3') * sep3
                + wgt('sep_conv_5') * sep5
                + wgt('dil_conv_3') * dil3
                + wgt('dil_conv_5') * dil5)

    # ---- preprocess: ReLUConvBN(C, C, 1, 1, 0, affine=False) on s0 and s1, fused ----
    x0 = jnp.concatenate([s0_ref[n] for n in range(N)], axis=-1)    # (C, NL) lane-packed
    x1 = jnp.concatenate([s1_ref[n] for n in range(N)], axis=-1)
    rr = jnp.concatenate([jnp.maximum(x0, 0.0), jnp.maximum(x1, 0.0)], axis=0)  # (2C, NL)
    pp = jnp.dot(pre_ref[...], rr, preferred_element_type=jnp.float32)
    states = [batchnorm(pp[0:C]), batchnorm(pp[C:2 * C])]

    # ---- DAG: each new state = sum of MixedOps over its kept predecessors ----
    for i in range(STEPS):
        s = None
        for j, h_idx in enumerate(state_idxs[i]):
            out = mixed_op(states[h_idx], w_pos[i] + j)
            s = out if s is None else s + out
        states.append(s)

    # ---- channel concat of the last MULTIPLIER states, unpacked to (N, 2C, L) ----
    for m in range(MULTIPLIER):
        st = states[len(states) - MULTIPLIER + m]
        for n in range(N):
            o_ref[n, m * C:(m + 1) * C, :] = st[:, n * L:(n + 1) * L]


# ------------------------------ wrappers --------------------------------------
_VMEM = functools.partial(pl.BlockSpec, memory_space=pltpu.MemorySpace.VMEM)
_SMEM = functools.partial(pl.BlockSpec, memory_space=pltpu.MemorySpace.SMEM)


def cell_forward(s0, s1, weights, packed, *, state_idxs, w_pos):
    """s0, s1: (N, C, L) NCL like PyTorch; weights: (num_edges, num_prims)."""
    kernel = functools.partial(cell_kernel, state_idxs=state_idxs, w_pos=w_pos)
    return pl.pallas_call(
        kernel,
        out_shape=jax.ShapeDtypeStruct((N, MULTIPLIER * C, L), jnp.float32),
        in_specs=[_SMEM(),                      # arch weights (num_edges, 8)
                  _VMEM(), _VMEM(),             # s0, s1
                  _VMEM(),                      # fused preprocess weight (2C, 2C)
                  _VMEM(),                      # packed depthwise taps (E, C, 24)
                  _VMEM(),                      # block-diag stage-1 pw (E, 4C, 4C)
                  _VMEM()],                     # block-diag stage-2 pw (E, 2C, 2C)
        out_specs=_VMEM(),
    )(weights, s0, s1, packed['pre'], packed['dw'], packed['pw1'], packed['pw2'])


def pack_params(params):
    """One-time host-side packing of per-edge weights into the fused kernel layout."""
    block_diag = jax.scipy.linalg.block_diag
    pre = block_diag(params['pre0_w'], params['pre1_w'])                  # (2C, 2C)
    dw = jnp.stack([jnp.concatenate(
        [ep['s3_dw1'], ep['s3_dw2'], ep['s5_dw1'], ep['s5_dw2'],
         ep['d3_dw'], ep['d5_dw']], axis=-1) for ep in params['edges']])  # (E, C, 24)
    pw1 = jnp.stack([block_diag(ep['s3_pw1'], ep['s5_pw1'], ep['d3_pw'], ep['d5_pw'])
                     for ep in params['edges']])                          # (E, 4C, 4C)
    pw2 = jnp.stack([block_diag(ep['s3_pw2'], ep['s5_pw2'])
                     for ep in params['edges']])                          # (E, 2C, 2C)
    return dict(pre=pre, dw=dw, pw1=pw1, pw2=pw2)


# ---------------- cell connectivity helpers (reconstructed) -------------------
def get_state_ind(steps, switches):
    idxs, sc = [], 0
    for i in range(steps):
        keep = []
        for j in range(2 + i):
            if any(switches[sc]):
                keep.append(j)
            sc += 1
        idxs.append(keep)
    return idxs


def get_w_pos(steps, switches):
    pos, sc, kept = [], 0, 0
    for i in range(steps):
        pos.append(kept)
        for j in range(2 + i):
            if any(switches[sc]):
                kept += 1
            sc += 1
    return pos


# ------------------------------ parameter init ---------------------------------
def init_edge_params(key):
    ks = jax.random.split(key, 12)
    f = lambda k, shape: jax.random.normal(k, shape, jnp.float32) * 0.3
    return dict(
        s3_dw1=f(ks[0], (C, 3)), s3_pw1=f(ks[1], (C, C)),
        s3_dw2=f(ks[2], (C, 3)), s3_pw2=f(ks[3], (C, C)),
        s5_dw1=f(ks[4], (C, 5)), s5_pw1=f(ks[5], (C, C)),
        s5_dw2=f(ks[6], (C, 5)), s5_pw2=f(ks[7], (C, C)),
        d3_dw=f(ks[8], (C, 3)), d3_pw=f(ks[9], (C, C)),
        d5_dw=f(ks[10], (C, 5)), d5_pw=f(ks[11], (C, C)),
    )


if __name__ == "__main__":
    key = jax.random.PRNGKey(0)
    k0, k1, kw, kp0, kp1, ke = jax.random.split(key, 6)

    n_edge_slots = sum(2 + i for i in range(STEPS))          # 5 for steps=2
    switches = [[True] * len(PRIMITIVES) for _ in range(n_edge_slots)]
    state_idxs = get_state_ind(STEPS, switches)
    w_pos = get_w_pos(STEPS, switches)
    num_edges = sum(len(s) for s in state_idxs)              # all kept -> 5

    s0 = jax.random.normal(k0, (N, C, L), jnp.float32)
    s1 = jax.random.normal(k1, (N, C, L), jnp.float32)
    weights = jax.nn.softmax(
        jax.random.normal(kw, (num_edges, len(PRIMITIVES)), jnp.float32), axis=-1)

    edge_keys = jax.random.split(ke, num_edges)
    params = dict(
        pre0_w=jax.random.normal(kp0, (C, C), jnp.float32) * 0.3,
        pre1_w=jax.random.normal(kp1, (C, C), jnp.float32) * 0.3,
        edges=[init_edge_params(edge_keys[e]) for e in range(num_edges)],
    )
    packed = pack_params(params)                             # one-time packing

    fwd = jax.jit(functools.partial(cell_forward,
                                    state_idxs=state_idxs, w_pos=w_pos))
    out = fwd(s0, s1, weights, packed)
    out = jax.block_until_ready(out)

    assert out.shape == (N, MULTIPLIER * C, L), out.shape
    assert bool(jnp.isfinite(out).all())
    print("KERNEL_OK")
</pallas_src>

<mosaic_0001>
module attributes {stable_mosaic.version = 11 : i64} {
  func.func @cell_kernel(%arg0: memref<5x8xf32, #tpu.memory_space<smem>>, %arg1: memref<2x8x128xf32, #tpu.memory_space<vmem>>, %arg2: memref<2x8x128xf32, #tpu.memory_space<vmem>>, %arg3: memref<16x16xf32, #tpu.memory_space<vmem>>, %arg4: memref<5x8x24xf32, #tpu.memory_space<vmem>>, %arg5: memref<5x32x32xf32, #tpu.memory_space<vmem>>, %arg6: memref<5x16x16xf32, #tpu.memory_space<vmem>>, %arg7: memref<2x16x128xf32, #tpu.memory_space<vmem>>) attributes {dimension_semantics = [], scalar_prefetch = 0 : i64, scratch_operands = 0 : i64, tpu.core_type = #tpu.core_type<tc>} {
    %0 = tpu.iota {dimensions = array<i32: 1>} : vector<8x128xi32>
    %1 = tpu.concatenate %0, %0 in 1 : vector<8x128xi32>, vector<8x128xi32> -> vector<8x256xi32>
    %c4_i32 = arith.constant 4 : i32
    %2 = vector.broadcast %c4_i32 : i32 to vector<8x256xi32>
    %3 = arith.cmpi sge, %1, %2 : vector<8x256xi32>
    %c2_i32 = arith.constant 2 : i32
    %4 = vector.broadcast %c2_i32 : i32 to vector<8x256xi32>
    %5 = arith.cmpi sge, %1, %4 : vector<8x256xi32>
    %c1_i32 = arith.constant 1 : i32
    %6 = vector.broadcast %c1_i32 : i32 to vector<8x256xi32>
    %7 = arith.cmpi sge, %1, %6 : vector<8x256xi32>
    %c127_i32 = arith.constant 127 : i32
    %8 = vector.broadcast %c127_i32 : i32 to vector<8x256xi32>
    %9 = arith.cmpi slt, %1, %8 : vector<8x256xi32>
    %c126_i32 = arith.constant 126 : i32
    %10 = vector.broadcast %c126_i32 : i32 to vector<8x256xi32>
    %11 = arith.cmpi slt, %1, %10 : vector<8x256xi32>
    %c124_i32 = arith.constant 124 : i32
    %12 = vector.broadcast %c124_i32 : i32 to vector<8x256xi32>
    %13 = arith.cmpi slt, %1, %12 : vector<8x256xi32>
    %c1_i32_0 = arith.constant 1 : i32
    %14 = vector.broadcast %c1_i32_0 : i32 to vector<8x256xi32>
    %15 = arith.cmpi sge, %1, %14 : vector<8x256xi32>
    %16 = arith.extui %15 : vector<8x256xi1> to vector<8x256xi32>
    %17 = arith.sitofp %16 : vector<8x256xi32> to vector<8x256xf32>
    %cst = arith.constant 1.000000e+00 : f32
    %18 = vector.broadcast %cst : f32 to vector<8x256xf32>
    %19 = arith.addf %18, %17 : vector<8x256xf32>
    %c127_i32_1 = arith.constant 127 : i32
    %20 = vector.broadcast %c127_i32_1 : i32 to vector<8x256xi32>
    %21 = arith.cmpi slt, %1, %20 : vector<8x256xi32>
    %22 = arith.extui %21 : vector<8x256xi1> to vector<8x256xi32>
    %23 = arith.sitofp %22 : vector<8x256xi32> to vector<8x256xf32>
    %24 = arith.addf %19, %23 : vector<8x256xf32>
    %cst_2 = arith.constant 1.000000e+00 : f32
    %25 = vector.broadcast %cst_2 : f32 to vector<8x256xf32>
    %26 = arith.divf %25, %24 : vector<8x256xf32>
    %c0 = arith.constant 0 : index
    %c0_3 = arith.constant 0 : index
    %c0_4 = arith.constant 0 : index
    %27 = vector.load %arg1[%c0, %c0_3, %c0_4] : memref<2x8x128xf32, #tpu.memory_space<vmem>>, vector<1x8x128xf32>
    %28 = vector.shape_cast %27 : vector<1x8x128xf32> to vector<8x128xf32>
    %c1 = arith.constant 1 : index
    %c0_5 = arith.constant 0 : index
    %c0_6 = arith.constant 0 : index
    %29 = vector.load %arg1[%c1, %c0_5, %c0_6] : memref<2x8x128xf32, #tpu.memory_space<vmem>>, vector<1x8x128xf32>
    %30 = vector.shape_cast %29 : vector<1x8x128xf32> to vector<8x128xf32>
    %31 = tpu.concatenate %28, %30 in 1 : vector<8x128xf32>, vector<8x128xf32> -> vector<8x256xf32>
    %c0_7 = arith.constant 0 : index
    %c0_8 = arith.constant 0 : index
    %c0_9 = arith.constant 0 : index
    %32 = vector.load %arg2[%c0_7, %c0_8, %c0_9] : memref<2x8x128xf32, #tpu.memory_space<vmem>>, vector<1x8x128xf32>
    %33 = vector.shape_cast %32 : vector<1x8x128xf32> to vector<8x128xf32>
    %c1_10 = arith.constant 1 : index
    %c0_11 = arith.constant 0 : index
    %c0_12 = arith.constant 0 : index
    %34 = vector.load %arg2[%c1_10, %c0_11, %c0_12] : memref<2x8x128xf32, #tpu.memory_space<vmem>>, vector<1x8x128xf32>
    %35 = vector.shape_cast %34 : vector<1x8x128xf32> to vector<8x128xf32>
    %36 = tpu.concatenate %33, %35 in 1 : vector<8x128xf32>, vector<8x128xf32> -> vector<8x256xf32>
    %cst_13 = arith.constant 0.000000e+00 : f32
    %37 = vector.broadcast %cst_13 : f32 to vector<8x256xf32>
    %38 = arith.maximumf %31, %37 : vector<8x256xf32>
    %cst_14 = arith.constant 0.000000e+00 : f32
    %39 = vector.broadcast %cst_14 : f32 to vector<8x256xf32>
    %40 = arith.maximumf %36, %39 : vector<8x256xf32>
    %41 = tpu.concatenate %38, %40 in 0 : vector<8x256xf32>, vector<8x256xf32> -> vector<16x256xf32>
    %c0_15 = arith.constant 0 : index
    %c0_16 = arith.constant 0 : index
    %42 = vector.load %arg3[%c0_15, %c0_16] : memref<16x16xf32, #tpu.memory_space<vmem>>, vector<16x16xf32>
    %cst_17 = arith.constant dense<0.000000e+00> : vector<16x256xf32>
    %43 = tpu.matmul %42, %41, %cst_17 {dimension_numbers = #tpu.dot_dimension_numbers<[1], [0], [0], [1], [0, 0, 1, 1], [], []>} : vector<16x16xf32>, vector<16x256xf32>, vector<16x256xf32> -> vector<16x256xf32>
    %44 = vector.extract_strided_slice %43 {offsets = [0, 0], sizes = [8, 256], strides = [1, 1]} : vector<16x256xf32> to vector<8x256xf32>
    %cst_18 = arith.constant dense<0.000000e+00> : vector<8xf32>
    %45 = vector.multi_reduction <add>, %44, %cst_18 [1] : vector<8x256xf32> to vector<8xf32>
    %46 = vector.shape_cast %45 : vector<8xf32> to vector<8x1xf32>
    %cst_19 = arith.constant 3.906250e-03 : f32
    %47 = vector.broadcast %cst_19 : f32 to vector<8x1xf32>
    %48 = arith.mulf %46, %47 : vector<8x1xf32>
    %49 = vector.broadcast %48 : vector<8x1xf32> to vector<8x256xf32>
    %50 = arith.subf %44, %49 : vector<8x256xf32>
    %51 = arith.mulf %50, %50 : vector<8x256xf32>
    %cst_20 = arith.constant dense<0.000000e+00> : vector<8xf32>
    %52 = vector.multi_reduction <add>, %51, %cst_20 [1] : vector<8x256xf32> to vector<8xf32>
    %53 = vector.shape_cast %52 : vector<8xf32> to vector<8x1xf32>
    %cst_21 = arith.constant 3.906250e-03 : f32
    %54 = vector.broadcast %cst_21 : f32 to vector<8x1xf32>
    %55 = arith.mulf %53, %54 : vector<8x1xf32>
    %cst_22 = arith.constant 9.99999974E-6 : f32
    %56 = vector.broadcast %cst_22 : f32 to vector<8x1xf32>
    %57 = arith.addf %55, %56 : vector<8x1xf32>
    %58 = math.rsqrt %57 : vector<8x1xf32>
    %59 = vector.broadcast %58 : vector<8x1xf32> to vector<8x256xf32>
    %60 = arith.mulf %50, %59 : vector<8x256xf32>
    %61 = vector.extract_strided_slice %43 {offsets = [8, 0], sizes = [8, 256], strides = [1, 1]} : vector<16x256xf32> to vector<8x256xf32>
    %cst_23 = arith.constant dense<0.000000e+00> : vector<8xf32>
    %62 = vector.multi_reduction <add>, %61, %cst_23 [1] : vector<8x256xf32> to vector<8xf32>
    %63 = vector.shape_cast %62 : vector<8xf32> to vector<8x1xf32>
    %cst_24 = arith.constant 3.906250e-03 : f32
    %64 = vector.broadcast %cst_24 : f32 to vector<8x1xf32>
    %65 = arith.mulf %63, %64 : vector<8x1xf32>
    %66 = vector.broadcast %65 : vector<8x1xf32> to vector<8x256xf32>
    %67 = arith.subf %61, %66 : vector<8x256xf32>
    %68 = arith.mulf %67, %67 : vector<8x256xf32>
    %cst_25 = arith.constant dense<0.000000e+00> : vector<8xf32>
    %69 = vector.multi_reduction <add>, %68, %cst_25 [1] : vector<8x256xf32> to vector<8xf32>
    %70 = vector.shape_cast %69 : vector<8xf32> to vector<8x1xf32>
    %cst_26 = arith.constant 3.906250e-03 : f32
    %71 = vector.broadcast %cst_26 : f32 to vector<8x1xf32>
    %72 = arith.mulf %70, %71 : vector<8x1xf32>
    %cst_27 = arith.constant 9.99999974E-6 : f32
    %73 = vector.broadcast %cst_27 : f32 to vector<8x1xf32>
    %74 = arith.addf %72, %73 : vector<8x1xf32>
    %75 = math.rsqrt %74 : vector<8x1xf32>
    %76 = vector.broadcast %75 : vector<8x1xf32> to vector<8x256xf32>
    %77 = arith.mulf %67, %76 : vector<8x256xf32>
    %c0_28 = arith.constant 0 : index
    %c0_29 = arith.constant 0 : index
    %c0_30 = arith.constant 0 : index
    %78 = vector.load %arg4[%c0_28, %c0_29, %c0_30] : memref<5x8x24xf32, #tpu.memory_space<vmem>>, vector<1x8x24xf32>
    %79 = vector.shape_cast %78 : vector<1x8x24xf32> to vector<8x24xf32>
    %cst_31 = arith.constant 0.000000e+00 : f32
    %80 = vector.broadcast %cst_31 : f32 to vector<8x256xf32>
    %81 = arith.maximumf %60, %80 : vector<8x256xf32>
    %c4_i32_32 = arith.constant 4 : i32
    %82 = tpu.dynamic_rotate %81 by %c4_i32_32 dim 1 : vector<8x256xf32>, i32 -> vector<8x256xf32>
    %cst_33 = arith.constant 0.000000e+00 : f32
    %83 = vector.broadcast %cst_33 : f32 to vector<8x256xf32>
    %84 = arith.select %3, %82, %83 : vector<8x256xi1>, vector<8x256xf32>
    %c2_i32_34 = arith.constant 2 : i32
    %85 = tpu.dynamic_rotate %81 by %c2_i32_34 dim 1 : vector<8x256xf32>, i32 -> vector<8x256xf32>
    %cst_35 = arith.constant 0.000000e+00 : f32
    %86 = vector.broadcast %cst_35 : f32 to vector<8x256xf32>
    %87 = arith.select %5, %85, %86 : vector<8x256xi1>, vector<8x256xf32>
    %c1_i32_36 = arith.constant 1 : i32
    %88 = tpu.dynamic_rotate %81 by %c1_i32_36 dim 1 : vector<8x256xf32>, i32 -> vector<8x256xf32>
    %cst_37 = arith.constant 0.000000e+00 : f32
    %89 = vector.broadcast %cst_37 : f32 to vector<8x256xf32>
    %90 = arith.select %7, %88, %89 : vector<8x256xi1>, vector<8x256xf32>
    %c255_i32 = arith.constant 255 : i32
    %91 = tpu.dynamic_rotate %81 by %c255_i32 dim 1 : vector<8x256xf32>, i32 -> vector<8x256xf32>
    %cst_38 = arith.constant 0.000000e+00 : f32
    %92 = vector.broadcast %cst_38 : f32 to vector<8x256xf32>
    %93 = arith.select %9, %91, %92 : vector<8x256xi1>, vector<8x256xf32>
    %c254_i32 = arith.constant 254 : i32
    %94 = tpu.dynamic_rotate %81 by %c254_i32 dim 1 : vector<8x256xf32>, i32 -> vector<8x256xf32>
    %cst_39 = arith.constant 0.000000e+00 : f32
    %95 = vector.broadcast %cst_39 : f32 to vector<8x256xf32>
    %96 = arith.select %11, %94, %95 : vector<8x256xi1>, vector<8x256xf32>
    %c252_i32 = arith.constant 252 : i32
    %97 = tpu.dynamic_rotate %81 by %c252_i32 dim 1 : vector<8x256xf32>, i32 -> vector<8x256xf32>
    %cst_40 = arith.constant 0.000000e+00 : f32
    %98 = vector.broadcast %cst_40 : f32 to vector<8x256xf32>
    %99 = arith.select %13, %97, %98 : vector<8x256xi1>, vector<8x256xf32>
    %100 = vector.extract_strided_slice %79 {offsets = [0, 0], sizes = [8, 1], strides = [1, 1]} : vector<8x24xf32> to vector<8x1xf32>
    %101 = vector.broadcast %100 : vector<8x1xf32> to vector<8x256xf32>
    %102 = arith.mulf %101, %90 : vector<8x256xf32>
    %103 = vector.extract_strided_slice %79 {offsets = [0, 1], sizes = [8, 1], strides = [1, 1]} : vector<8x24xf32> to vector<8x1xf32>
    %104 = vector.broadcast %103 : vector<8x1xf32> to vector<8x256xf32>
    %105 = arith.mulf %104, %81 : vector<8x256xf32>
    %106 = arith.addf %102, %105 : vector<8x256xf32>
    %107 = vector.extract_strided_slice %79 {offsets = [0, 2], sizes = [8, 1], strides = [1, 1]} : vector<8x24xf32> to vector<8x1xf32>
    %108 = vector.broadcast %107 : vector<8x1xf32> to vector<8x256xf32>
    %109 = arith.mulf %108, %93 : vector<8x256xf32>
    %110 = arith.addf %106, %109 : vector<8x256xf32>
    %111 = vector.extract_strided_slice %79 {offsets = [0, 6], sizes = [8, 1], strides = [1, 1]} : vector<8x24xf32> to vector<8x1xf32>
    %112 = vector.broadcast %111 : vector<8x1xf32> to vector<8x256xf32>
    %113 = arith.mulf %112, %87 : vector<8x256xf32>
    %114 = vector.extract_strided_slice %79 {offsets = [0, 7], sizes = [8, 1], strides = [1, 1]} : vector<8x24xf32> to vector<8x1xf32>
    %115 = vector.broadcast %114 : vector<8x1xf32> to vector<8x256xf32>
    %116 = arith.mulf %115, %90 : vector<8x256xf32>
    %117 = arith.addf %113, %116 : vector<8x256xf32>
    %118 = vector.extract_strided_slice %79 {offsets = [0, 8], sizes = [8, 1], strides = [1, 1]} : vector<8x24xf32> to vector<8x1xf32>
    %119 = vector.broadcast %118 : vector<8x1xf32> to vector<8x256xf32>
    %120 = arith.mulf %119, %81 : vector<8x256xf32>
    %121 = arith.addf %117, %120 : vector<8x256xf32>
    %122 = vector.extract_strided_slice %79 {offsets = [0, 9], sizes = [8, 1], strides = [1, 1]} : vector<8x24xf32> to vector<8x1xf32>
    %123 = vector.broadcast %122 : vector<8x1xf32> to vector<8x256xf32>
    %124 = arith.mulf %123, %93 : vector<8x256xf32>
    %125 = arith.addf %121, %124 : vector<8x256xf32>
    %126 = vector.extract_strided_slice %79 {offsets = [0, 10], sizes = [8, 1], strides = [1, 1]} : vector<8x24xf32> to vector<8x1xf32>
    %127 = vector.broadcast %126 : vector<8x1xf32> to vector<8x256xf32>
    %128 = arith.mulf %127, %96 : vector<8x256xf32>
    %129 = arith.addf %125, %128 : vector<8x256xf32>
    %130 = vector.extract_strided_slice %79 {offsets = [0, 16], sizes = [8, 1], strides = [1, 1]} : vector<8x24xf32> to vector<8x1xf32>
    %131 = vector.broadcast %130 : vector<8x1xf32> to vector<8x256xf32>
    %132 = arith.mulf %131, %87 : vector<8x256xf32>
    %133 = vector.extract_strided_slice %79 {offsets = [0, 17], sizes = [8, 1], strides = [1, 1]} : vector<8x24xf32> to vector<8x1xf32>
    %134 = vector.broadcast %133 : vector<8x1xf32> to vector<8x256xf32>
    %135 = arith.mulf %134, %81 : vector<8x256xf32>
    %136 = arith.addf %132, %135 : vector<8x256xf32>
    %137 = vector.extract_strided_slice %79 {offsets = [0, 18], sizes = [8, 1], strides = [1, 1]} : vector<8x24xf32> to vector<8x1xf32>
    %138 = vector.broadcast %137 : vector<8x1xf32> to vector<8x256xf32>
    %139 = arith.mulf %138, %96 : vector<8x256xf32>
    %140 = arith.addf %136, %139 : vector<8x256xf32>
    %141 = vector.extract_strided_slice %79 {offsets = [0, 19], sizes = [8, 1], strides = [1, 1]} : vector<8x24xf32> to vector<8x1xf32>
    %142 = vector.broadcast %141 : vector<8x1xf32> to vector<8x256xf32>
    %143 = arith.mulf %142, %84 : vector<8x256xf32>
    %144 = vector.extract_strided_slice %79 {offsets = [0, 20], sizes = [8, 1], strides = [1, 1]} : vector<8x24xf32> to vector<8x1xf32>
    %145 = vector.broadcast %144 : vector<8x1xf32> to vector<8x256xf32>
    %146 = arith.mulf %145, %87 : vector<8x256xf32>
    %147 = arith.addf %143, %146 : vector<8x256xf32>
    %148 = vector.extract_strided_slice %79 {offsets = [0, 21], sizes = [8, 1], strides = [1, 1]} : vector<8x24xf32> to vector<8x1xf32>
    %149 = vector.broadcast %148 : vector<8x1xf32> to vector<8x256xf32>
    %150 = arith.mulf %149, %81 : vector<8x256xf32>
    %151 = arith.addf %147, %150 : vector<8x256xf32>
    %152 = vector.extract_strided_slice %79 {offsets = [0, 22], sizes = [8, 1], strides = [1, 1]} : vector<8x24xf32> to vector<8x1xf32>
    %153 = vector.broadcast %152 : vector<8x1xf32> to vector<8x256xf32>
    %154 = arith.mulf %153, %96 : vector<8x256xf32>
    %155 = arith.addf %151, %154 : vector<8x256xf32>
    %156 = vector.extract_strided_slice %79 {offsets = [0, 23], sizes = [8, 1], strides = [1, 1]} : vector<8x24xf32> to vector<8x1xf32>
    %157 = vector.broadcast %156 : vector<8x1xf32> to vector<8x256xf32>
    %158 = arith.mulf %157, %99 : vector<8x256xf32>
    %159 = arith.addf %155, %158 : vector<8x256xf32>
    %160 = tpu.concatenate %110, %129, %140, %159 in 0 : vector<8x256xf32>, vector<8x256xf32>, vector<8x256xf32>, vector<8x256xf32> -> vector<32x256xf32>
    %c0_41 = arith.constant 0 : index
    %c0_42 = arith.constant 0 : index
    %c0_43 = arith.constant 0 : index
    %161 = vector.load %arg5[%c0_41, %c0_42, %c0_43] : memref<5x32x32xf32, #tpu.memory_space<vmem>>, vector<1x32x32xf32>
    %162 = vector.shape_cast %161 : vector<1x32x32xf32> to vector<32x32xf32>
    %cst_44 = arith.constant dense<0.000000e+00> : vector<32x256xf32>
    %163 = tpu.matmul %162, %160, %cst_44 {dimension_numbers = #tpu.dot_dimension_numbers<[1], [0], [0], [1], [0, 0, 1, 1], [], []>} : vector<32x32xf32>, vector<32x256xf32>, vector<32x256xf32> -> vector<32x256xf32>
    %164 = vector.extract_strided_slice %163 {offsets = [0, 0], sizes = [8, 256], strides = [1, 1]} : vector<32x256xf32> to vector<8x256xf32>
    %cst_45 = arith.constant dense<0.000000e+00> : vector<8xf32>
    %165 = vector.multi_reduction <add>, %164, %cst_45 [1] : vector<8x256xf32> to vector<8xf32>
    %166 = vector.shape_cast %165 : vector<8xf32> to vector<8x1xf32>
    %cst_46 = arith.constant 3.906250e-03 : f32
    %167 = vector.broadcast %cst_46 : f32 to vector<8x1xf32>
    %168 = arith.mulf %166, %167 : vector<8x1xf32>
    %169 = vector.broadcast %168 : vector<8x1xf32> to vector<8x256xf32>
    %170 = arith.subf %164, %169 : vector<8x256xf32>
    %171 = arith.mulf %170, %170 : vector<8x256xf32>
    %cst_47 = arith.constant dense<0.000000e+00> : vector<8xf32>
    %172 = vector.multi_reduction <add>, %171, %cst_47 [1] : vector<8x256xf32> to vector<8xf32>
    %173 = vector.shape_cast %172 : vector<8xf32> to vector<8x1xf32>
    %cst_48 = arith.constant 3.906250e-03 : f32
    %174 = vector.broadcast %cst_48 : f32 to vector<8x1xf32>
    %175 = arith.mulf %173, %174 : vector<8x1xf32>
    %cst_49 = arith.constant 9.99999974E-6 : f32
    %176 = vector.broadcast %cst_49 : f32 to vector<8x1xf32>
    %177 = arith.addf %175, %176 : vector<8x1xf32>
    %178 = math.rsqrt %177 : vector<8x1xf32>
    %179 = vector.broadcast %178 : vector<8x1xf32> to vector<8x256xf32>
    %180 = arith.mulf %170, %179 : vector<8x256xf32>
    %181 = vector.extract_strided_slice %163 {offsets = [8, 0], sizes = [8, 256], strides = [1, 1]} : vector<32x256xf32> to vector<8x256xf32>
    %cst_50 = arith.constant dense<0.000000e+00> : vector<8xf32>
    %182 = vector.multi_reduction <add>, %181, %cst_50 [1] : vector<8x256xf32> to vector<8xf32>
    %183 = vector.shape_cast %182 : vector<8xf32> to vector<8x1xf32>
    %cst_51 = arith.constant 3.906250e-03 : f32
    %184 = vector.broadcast %cst_51 : f32 to vector<8x1xf32>
    %185 = arith.mulf %183, %184 : vector<8x1xf32>
    %186 = vector.broadcast %185 : vector<8x1xf32> to vector<8x256xf32>
    %187 = arith.subf %181, %186 : vector<8x256xf32>
    %188 = arith.mulf %187, %187 : vector<8x256xf32>
    %cst_52 = arith.constant dense<0.000000e+00> : vector<8xf32>
    %189 = vector.multi_reduction <add>, %188, %cst_52 [1] : vector<8x256xf32> to vector<8xf32>
    %190 = vector.shape_cast %189 : vector<8xf32> to vector<8x1xf32>
    %cst_53 = arith.constant 3.906250e-03 : f32
    %191 = vector.broadcast %cst_53 : f32 to vector<8x1xf32>
    %192 = arith.mulf %190, %191 : vector<8x1xf32>
    %cst_54 = arith.constant 9.99999974E-6 : f32
    %193 = vector.broadcast %cst_54 : f32 to vector<8x1xf32>
    %194 = arith.addf %192, %193 : vector<8x1xf32>
    %195 = math.rsqrt %194 : vector<8x1xf32>
    %196 = vector.broadcast %195 : vector<8x1xf32> to vector<8x256xf32>
    %197 = arith.mulf %187, %196 : vector<8x256xf32>
    %198 = vector.extract_strided_slice %163 {offsets = [16, 0], sizes = [8, 256], strides = [1, 1]} : vector<32x256xf32> to vector<8x256xf32>
    %cst_55 = arith.constant dense<0.000000e+00> : vector<8xf32>
    %199 = vector.multi_reduction <add>, %198, %cst_55 [1] : vector<8x256xf32> to vector<8xf32>
    %200 = vector.shape_cast %199 : vector<8xf32> to vector<8x1xf32>
    %cst_56 = arith.constant 3.906250e-03 : f32
    %201 = vector.broadcast %cst_56 : f32 to vector<8x1xf32>
    %202 = arith.mulf %200, %201 : vector<8x1xf32>
    %203 = vector.broadcast %202 : vector<8x1xf32> to vector<8x256xf32>
    %204 = arith.subf %198, %203 : vector<8x256xf32>
    %205 = arith.mulf %204, %204 : vector<8x256xf32>
    %cst_57 = arith.constant dense<0.000000e+00> : vector<8xf32>
    %206 = vector.multi_reduction <add>, %205, %cst_57 [1] : vector<8x256xf32> to vector<8xf32>
    %207 = vector.shape_cast %206 : vector<8xf32> to vector<8x1xf32>
    %cst_58 = arith.constant 3.906250e-03 : f32
    %208 = vector.broadcast %cst_58 : f32 to vector<8x1xf32>
    %209 = arith.mulf %207, %208 : vector<8x1xf32>
    %cst_59 = arith.constant 9.99999974E-6 : f32
    %210 = vector.broadcast %cst_59 : f32 to vector<8x1xf32>
    %211 = arith.addf %209, %210 : vector<8x1xf32>
    %212 = math.rsqrt %211 : vector<8x1xf32>
    %213 = vector.broadcast %212 : vector<8x1xf32> to vector<8x256xf32>
    %214 = arith.mulf %204, %213 : vector<8x256xf32>
    %215 = vector.extract_strided_slice %163 {offsets = [24, 0], sizes = [8, 256], strides = [1, 1]} : vector<32x256xf32> to vector<8x256xf32>
    %cst_60 = arith.constant dense<0.000000e+00> : vector<8xf32>
    %216 = vector.multi_reduction <add>, %215, %cst_60 [1] : vector<8x256xf32> to vector<8xf32>
    %217 = vector.shape_cast %216 : vector<8xf32> to vector<8x1xf32>
    %cst_61 = arith.constant 3.906250e-03 : f32
    %218 = vector.broadcast %cst_61 : f32 to vector<8x1xf32>
    %219 = arith.mulf %217, %218 : vector<8x1xf32>
    %220 = vector.broadcast %219 : vector<8x1xf32> to vector<8x256xf32>
    %221 = arith.subf %215, %220 : vector<8x256xf32>
    %222 = arith.mulf %221, %221 : vector<8x256xf32>
    %cst_62 = arith.constant dense<0.000000e+00> : vector<8xf32>
    %223 = vector.multi_reduction <add>, %222, %cst_62 [1] : vector<8x256xf32> to vector<8xf32>
    %224 = vector.shape_cast %223 : vector<8xf32> to vector<8x1xf32>
    %cst_63 = arith.constant 3.906250e-03 : f32
    %225 = vector.broadcast %cst_63 : f32 to vector<8x1xf32>
    %226 = arith.mulf %224, %225 : vector<8x1xf32>
    %cst_64 = arith.constant 9.99999974E-6 : f32
    %227 = vector.broadcast %cst_64 : f32 to vector<8x1xf32>
    %228 = arith.addf %226, %227 : vector<8x1xf32>
    %229 = math.rsqrt %228 : vector<8x1xf32>
    %230 = vector.broadcast %229 : vector<8x1xf32> to vector<8x256xf32>
    %231 = arith.mulf %221, %230 : vector<8x256xf32>
    %cst_65 = arith.constant 0.000000e+00 : f32
    %232 = vector.broadcast %cst_65 : f32 to vector<8x256xf32>
    %233 = arith.maximumf %180, %232 : vector<8x256xf32>
    %cst_66 = arith.constant 0.000000e+00 : f32
    %234 = vector.broadcast %cst_66 : f32 to vector<8x256xf32>
    %235 = arith.maximumf %197, %234 : vector<8x256xf32>
    %c1_i32_67 = arith.constant 1 : i32
    %236 = tpu.dynamic_rotate %233 by %c1_i32_67 dim 1 : vector<8x256xf32>, i32 -> vector<8x256xf32>
    %cst_68 = arith.constant 0.000000e+00 : f32
    %237 = vector.broadcast %cst_68 : f32 to vector<8x256xf32>
    %238 = arith.select %7, %236, %237 : vector<8x256xi1>, vector<8x256xf32>
    %c255_i32_69 = arith.constant 255 : i32
    %239 = tpu.dynamic_rotate %233 by %c255_i32_69 dim 1 : vector<8x256xf32>, i32 -> vector<8x256xf32>
    %cst_70 = arith.constant 0.000000e+00 : f32
    %240 = vector.broadcast %cst_70 : f32 to vector<8x256xf32>
    %241 = arith.select %9, %239, %240 : vector<8x256xi1>, vector<8x256xf32>
    %c2_i32_71 = arith.constant 2 : i32
    %242 = tpu.dynamic_rotate %235 by %c2_i32_71 dim 1 : vector<8x256xf32>, i32 -> vector<8x256xf32>
    %cst_72 = arith.constant 0.000000e+00 : f32
    %243 = vector.broadcast %cst_72 : f32 to vector<8x256xf32>
    %244 = arith.select %5, %242, %243 : vector<8x256xi1>, vector<8x256xf32>
    %c1_i32_73 = arith.constant 1 : i32
    %245 = tpu.dynamic_rotate %235 by %c1_i32_73 dim 1 : vector<8x256xf32>, i32 -> vector<8x256xf32>
    %cst_74 = arith.constant 0.000000e+00 : f32
    %246 = vector.broadcast %cst_74 : f32 to vector<8x256xf32>
    %247 = arith.select %7, %245, %246 : vector<8x256xi1>, vector<8x256xf32>
    %c255_i32_75 = arith.constant 255 : i32
    %248 = tpu.dynamic_rotate %235 by %c255_i32_75 dim 1 : vector<8x256xf32>, i32 -> vector<8x256xf32>
    %cst_76 = arith.constant 0.000000e+00 : f32
    %249 = vector.broadcast %cst_76 : f32 to vector<8x256xf32>
    %250 = arith.select %9, %248, %249 : vector<8x256xi1>, vector<8x256xf32>
    %c254_i32_77 = arith.constant 254 : i32
    %251 = tpu.dynamic_rotate %235 by %c254_i32_77 dim 1 : vector<8x256xf32>, i32 -> vector<8x256xf32>
    %cst_78 = arith.constant 0.000000e+00 : f32
    %252 = vector.broadcast %cst_78 : f32 to vector<8x256xf32>
    %253 = arith.select %11, %251, %252 : vector<8x256xi1>, vector<8x256xf32>
    %254 = vector.extract_strided_slice %79 {offsets = [0, 3], sizes = [8, 1], strides = [1, 1]} : vector<8x24xf32> to vector<8x1xf32>
    %255 = vector.broadcast %254 : vector<8x1xf32> to vector<8x256xf32>
    %256 = arith.mulf %255, %238 : vector<8x256xf32>
    %257 = vector.extract_strided_slice %79 {offsets = [0, 4], sizes = [8, 1], strides = [1, 1]} : vector<8x24xf32> to vector<8x1xf32>
    %258 = vector.broadcast %257 : vector<8x1xf32> to vector<8x256xf32>
    %259 = arith.mulf %258, %233 : vector<8x256xf32>
    %260 = arith.addf %256, %259 : vector<8x256xf32>
    %261 = vector.extract_strided_slice %79 {offsets = [0, 5], sizes = [8, 1], strides = [1, 1]} : vector<8x24xf32> to vector<8x1xf32>
    %262 = vector.broadcast %261 : vector<8x1xf32> to vector<8x256xf32>
    %263 = arith.mulf %262, %241 : vector<8x256xf32>
    %264 = arith.addf %260, %263 : vector<8x256xf32>
    %265 = vector.extract_strided_slice %79 {offsets = [0, 11], sizes = [8, 1], strides = [1, 1]} : vector<8x24xf32> to vector<8x1xf32>
    %266 = vector.broadcast %265 : vector<8x1xf32> to vector<8x256xf32>
    %267 = arith.mulf %266, %244 : vector<8x256xf32>
    %268 = vector.extract_strided_slice %79 {offsets = [0, 12], sizes = [8, 1], strides = [1, 1]} : vector<8x24xf32> to vector<8x1xf32>
    %269 = vector.broadcast %268 : vector<8x1xf32> to vector<8x256xf32>
    %270 = arith.mulf %269, %247 : vector<8x256xf32>
    %271 = arith.addf %267, %270 : vector<8x256xf32>
    %272 = vector.extract_strided_slice %79 {offsets = [0, 13], sizes = [8, 1], strides = [1, 1]} : vector<8x24xf32> to vector<8x1xf32>
    %273 = vector.broadcast %272 : vector<8x1xf32> to vector<8x256xf32>
    %274 = arith.mulf %273, %235 : vector<8x256xf32>
    %275 = arith.addf %271, %274 : vector<8x256xf32>
    %276 = vector.extract_strided_slice %79 {offsets = [0, 14], sizes = [8, 1], strides = [1, 1]} : vector<8x24xf32> to vector<8x1xf32>
    %277 = vector.broadcast %276 : vector<8x1xf32> to vector<8x256xf32>
    %278 = arith.mulf %277, %250 : vector<8x256xf32>
    %279 = arith.addf %275, %278 : vector<8x256xf32>
    %280 = vector.extract_strided_slice %79 {offsets = [0, 15], sizes = [8, 1], strides = [1, 1]} : vector<8x24xf32> to vector<8x1xf32>
    %281 = vector.broadcast %280 : vector<8x1xf32> to vector<8x256xf32>
    %282 = arith.mulf %281, %253 : vector<8x256xf32>
    %283 = arith.addf %279, %282 : vector<8x256xf32>
    %284 = tpu.concatenate %264, %283 in 0 : vector<8x256xf32>, vector<8x256xf32> -> vector<16x256xf32>
    %c0_79 = arith.constant 0 : index
    %c0_80 = arith.constant 0 : index
    %c0_81 = arith.constant 0 : index
    %285 = vector.load %arg6[%c0_79, %c0_80, %c0_81] : memref<5x16x16xf32, #tpu.memory_space<vmem>>, vector<1x16x16xf32>
    %286 = vector.shape_cast %285 : vector<1x16x16xf32> to vector<16x16xf32>
    %cst_82 = arith.constant dense<0.000000e+00> : vector<16x256xf32>
    %287 = tpu.matmul %286, %284, %cst_82 {dimension_numbers = #tpu.dot_dimension_numbers<[1], [0], [0], [1], [0, 0, 1, 1], [], []>} : vector<16x16xf32>, vector<16x256xf32>, vector<16x256xf32> -> vector<16x256xf32>
    %288 = vector.extract_strided_slice %287 {offsets = [0, 0], sizes = [8, 256], strides = [1, 1]} : vector<16x256xf32> to vector<8x256xf32>
    %cst_83 = arith.constant dense<0.000000e+00> : vector<8xf32>
    %289 = vector.multi_reduction <add>, %288, %cst_83 [1] : vector<8x256xf32> to vector<8xf32>
    %290 = vector.shape_cast %289 : vector<8xf32> to vector<8x1xf32>
    %cst_84 = arith.constant 3.906250e-03 : f32
    %291 = vector.broadcast %cst_84 : f32 to vector<8x1xf32>
    %292 = arith.mulf %290, %291 : vector<8x1xf32>
    %293 = vector.broadcast %292 : vector<8x1xf32> to vector<8x256xf32>
    %294 = arith.subf %288, %293 : vector<8x256xf32>
    %295 = arith.mulf %294, %294 : vector<8x256xf32>
    %cst_85 = arith.constant dense<0.000000e+00> : vector<8xf32>
    %296 = vector.multi_reduction <add>, %295, %cst_85 [1] : vector<8x256xf32> to vector<8xf32>
    %297 = vector.shape_cast %296 : vector<8xf32> to vector<8x1xf32>
    %cst_86 = arith.constant 3.906250e-03 : f32
    %298 = vector.broadcast %cst_86 : f32 to vector<8x1xf32>
    %299 = arith.mulf %297, %298 : vector<8x1xf32>
    %cst_87 = arith.constant 9.99999974E-6 : f32
    %300 = vector.broadcast %cst_87 : f32 to vector<8x1xf32>
    %301 = arith.addf %299, %300 : vector<8x1xf32>
    %302 = math.rsqrt %301 : vector<8x1xf32>
    %303 = vector.broadcast %302 : vector<8x1xf32> to vector<8x256xf32>
    %304 = arith.mulf %294, %303 : vector<8x256xf32>
    %305 = vector.extract_strided_slice %287 {offsets = [8, 0], sizes = [8, 256], strides = [1, 1]} : vector<16x256xf32> to vector<8x256xf32>
    %cst_88 = arith.constant dense<0.000000e+00> : vector<8xf32>
    %306 = vector.multi_reduction <add>, %305, %cst_88 [1] : vector<8x256xf32> to vector<8xf32>
    %307 = vector.shape_cast %306 : vector<8xf32> to vector<8x1xf32>
    %cst_89 = arith.constant 3.906250e-03 : f32
    %308 = vector.broadcast %cst_89 : f32 to vector<8x1xf32>
    %309 = arith.mulf %307, %308 : vector<8x1xf32>
    %310 = vector.broadcast %309 : vector<8x1xf32> to vector<8x256xf32>
    %311 = arith.subf %305, %310 : vector<8x256xf32>
    %312 = arith.mulf %311, %311 : vector<8x256xf32>
    %cst_90 = arith.constant dense<0.000000e+00> : vector<8xf32>
    %313 = vector.multi_reduction <add>, %312, %cst_90 [1] : vector<8x256xf32> to vector<8xf32>
    %314 = vector.shape_cast %313 : vector<8xf32> to vector<8x1xf32>
    %cst_91 = arith.constant 3.906250e-03 : f32
    %315 = vector.broadcast %cst_91 : f32 to vector<8x1xf32>
    %316 = arith.mulf %314, %315 : vector<8x1xf32>
    %cst_92 = arith.constant 9.99999974E-6 : f32
    %317 = vector.broadcast %cst_92 : f32 to vector<8x1xf32>
    %318 = arith.addf %316, %317 : vector<8x1xf32>
    %319 = math.rsqrt %318 : vector<8x1xf32>
    %320 = vector.broadcast %319 : vector<8x1xf32> to vector<8x256xf32>
    %321 = arith.mulf %311, %320 : vector<8x256xf32>
    %c1_i32_93 = arith.constant 1 : i32
    %322 = tpu.dynamic_rotate %60 by %c1_i32_93 dim 1 : vector<8x256xf32>, i32 -> vector<8x256xf32>
    %c255_i32_94 = arith.constant 255 : i32
    %323 = tpu.dynamic_rotate %60 by %c255_i32_94 dim 1 : vector<8x256xf32>, i32 -> vector<8x256xf32>
    %cst_95 = arith.constant 0xFF800000 : f32
    %324 = vector.broadcast %cst_95 : f32 to vector<8x256xf32>
    %325 = arith.select %7, %322, %324 : vector<8x256xi1>, vector<8x256xf32>
    %cst_96 = arith.constant 0xFF800000 : f32
    %326 = vector.broadcast %cst_96 : f32 to vector<8x256xf32>
    %327 = arith.select %9, %323, %326 : vector<8x256xi1>, vector<8x256xf32>
    %328 = arith.maximumf %325, %60 : vector<8x256xf32>
    %329 = arith.maximumf %328, %327 : vector<8x256xf32>
    %cst_97 = arith.constant dense<0.000000e+00> : vector<8xf32>
    %330 = vector.multi_reduction <add>, %329, %cst_97 [1] : vector<8x256xf32> to vector<8xf32>
    %331 = vector.shape_cast %330 : vector<8xf32> to vector<8x1xf32>
    %cst_98 = arith.constant 3.906250e-03 : f32
    %332 = vector.broadcast %cst_98 : f32 to vector<8x1xf32>
    %333 = arith.mulf %331, %332 : vector<8x1xf32>
    %334 = vector.broadcast %333 : vector<8x1xf32> to vector<8x256xf32>
    %335 = arith.subf %329, %334 : vector<8x256xf32>
    %336 = arith.mulf %335, %335 : vector<8x256xf32>
    %cst_99 = arith.constant dense<0.000000e+00> : vector<8xf32>
    %337 = vector.multi_reduction <add>, %336, %cst_99 [1] : vector<8x256xf32> to vector<8xf32>
    %338 = vector.shape_cast %337 : vector<8xf32> to vector<8x1xf32>
    %cst_100 = arith.constant 3.906250e-03 : f32
    %339 = vector.broadcast %cst_100 : f32 to vector<8x1xf32>
    %340 = arith.mulf %338, %339 : vector<8x1xf32>
    %cst_101 = arith.constant 9.99999974E-6 : f32
    %341 = vector.broadcast %cst_101 : f32 to vector<8x1xf32>
    %342 = arith.addf %340, %341 : vector<8x1xf32>
    %343 = math.rsqrt %342 : vector<8x1xf32>
    %344 = vector.broadcast %343 : vector<8x1xf32> to vector<8x256xf32>
    %345 = arith.mulf %335, %344 : vector<8x256xf32>
    %cst_102 = arith.constant 0.000000e+00 : f32
    %346 = vector.broadcast %cst_102 : f32 to vector<8x256xf32>
    %347 = arith.select %7, %322, %346 : vector<8x256xi1>, vector<8x256xf32>
    %cst_103 = arith.constant 0.000000e+00 : f32
    %348 = vector.broadcast %cst_103 : f32 to vector<8x256xf32>
    %349 = arith.select %9, %323, %348 : vector<8x256xi1>, vector<8x256xf32>
    %350 = arith.addf %347, %60 : vector<8x256xf32>
    %351 = arith.addf %350, %349 : vector<8x256xf32>
    %352 = arith.mulf %351, %26 : vector<8x256xf32>
    %cst_104 = arith.constant dense<0.000000e+00> : vector<8xf32>
    %353 = vector.multi_reduction <add>, %352, %cst_104 [1] : vector<8x256xf32> to vector<8xf32>
    %354 = vector.shape_cast %353 : vector<8xf32> to vector<8x1xf32>
    %cst_105 = arith.constant 3.906250e-03 : f32
    %355 = vector.broadcast %cst_105 : f32 to vector<8x1xf32>
    %356 = arith.mulf %354, %355 : vector<8x1xf32>
    %357 = vector.broadcast %356 : vector<8x1xf32> to vector<8x256xf32>
    %358 = arith.subf %352, %357 : vector<8x256xf32>
    %359 = arith.mulf %358, %358 : vector<8x256xf32>
    %cst_106 = arith.constant dense<0.000000e+00> : vector<8xf32>
    %360 = vector.multi_reduction <add>, %359, %cst_106 [1] : vector<8x256xf32> to vector<8xf32>
    %361 = vector.shape_cast %360 : vector<8xf32> to vector<8x1xf32>
    %cst_107 = arith.constant 3.906250e-03 : f32
    %362 = vector.broadcast %cst_107 : f32 to vector<8x1xf32>
    %363 = arith.mulf %361, %362 : vector<8x1xf32>
    %cst_108 = arith.constant 9.99999974E-6 : f32
    %364 = vector.broadcast %cst_108 : f32 to vector<8x1xf32>
    %365 = arith.addf %363, %364 : vector<8x1xf32>
    %366 = math.rsqrt %365 : vector<8x1xf32>
    %367 = vector.broadcast %366 : vector<8x1xf32> to vector<8x256xf32>
    %368 = arith.mulf %358, %367 : vector<8x256xf32>
    %c0_109 = arith.constant 0 : index
    %c3 = arith.constant 3 : index
    %369 = memref.load %arg0[%c0_109, %c3] : memref<5x8xf32, #tpu.memory_space<smem>>
    %370 = vector.broadcast %369 : f32 to vector<8x256xf32>
    %371 = arith.mulf %370, %60 : vector<8x256xf32>
    %c0_110 = arith.constant 0 : index
    %c1_111 = arith.constant 1 : index
    %372 = memref.load %arg0[%c0_110, %c1_111] : memref<5x8xf32, #tpu.memory_space<smem>>
    %373 = vector.broadcast %372 : f32 to vector<8x256xf32>
    %374 = arith.mulf %373, %345 : vector<8x256xf32>
    %375 = arith.addf %371, %374 : vector<8x256xf32>
    %c0_112 = arith.constant 0 : index
    %c2 = arith.constant 2 : index
    %376 = memref.load %arg0[%c0_112, %c2] : memref<5x8xf32, #tpu.memory_space<smem>>
    %377 = vector.broadcast %376 : f32 to vector<8x256xf32>
    %378 = arith.mulf %377, %368 : vector<8x256xf32>
    %379 = arith.addf %375, %378 : vector<8x256xf32>
    %c0_113 = arith.constant 0 : index
    %c4 = arith.constant 4 : index
    %380 = memref.load %arg0[%c0_113, %c4] : memref<5x8xf32, #tpu.memory_space<smem>>
    %381 = vector.broadcast %380 : f32 to vector<8x256xf32>
    %382 = arith.mulf %381, %304 : vector<8x256xf32>
    %383 = arith.addf %379, %382 : vector<8x256xf32>
    %c0_114 = arith.constant 0 : index
    %c5 = arith.constant 5 : index
    %384 = memref.load %arg0[%c0_114, %c5] : memref<5x8xf32, #tpu.memory_space<smem>>
    %385 = vector.broadcast %384 : f32 to vector<8x256xf32>
    %386 = arith.mulf %385, %321 : vector<8x256xf32>
    %387 = arith.addf %383, %386 : vector<8x256xf32>
    %c0_115 = arith.constant 0 : index
    %c6 = arith.constant 6 : index
    %388 = memref.load %arg0[%c0_115, %c6] : memref<5x8xf32, #tpu.memory_space<smem>>
    %389 = vector.broadcast %388 : f32 to vector<8x256xf32>
    %390 = arith.mulf %389, %214 : vector<8x256xf32>
    %391 = arith.addf %387, %390 : vector<8x256xf32>
    %c0_116 = arith.constant 0 : index
    %c7 = arith.constant 7 : index
    %392 = memref.load %arg0[%c0_116, %c7] : memref<5x8xf32, #tpu.memory_space<smem>>
    %393 = vector.broadcast %392 : f32 to vector<8x256xf32>
    %394 = arith.mulf %393, %231 : vector<8x256xf32>
    %395 = arith.addf %391, %394 : vector<8x256xf32>
    %c1_117 = arith.constant 1 : index
    %c0_118 = arith.constant 0 : index
    %c0_119 = arith.constant 0 : index
    %396 = vector.load %arg4[%c1_117, %c0_118, %c0_119] : memref<5x8x24xf32, #tpu.memory_space<vmem>>, vector<1x8x24xf32>
    %397 = vector.shape_cast %396 : vector<1x8x24xf32> to vector<8x24xf32>
    %cst_120 = arith.constant 0.000000e+00 : f32
    %398 = vector.broadcast %cst_120 : f32 to vector<8x256xf32>
    %399 = arith.maximumf %77, %398 : vector<8x256xf32>
    %c4_i32_121 = arith.constant 4 : i32
    %400 = tpu.dynamic_rotate %399 by %c4_i32_121 dim 1 : vector<8x256xf32>, i32 -> vector<8x256xf32>
    %cst_122 = arith.constant 0.000000e+00 : f32
    %401 = vector.broadcast %cst_122 : f32 to vector<8x256xf32>
    %402 = arith.select %3, %400, %401 : vector<8x256xi1>, vector<8x256xf32>
    %c2_i32_123 = arith.constant 2 : i32
    %403 = tpu.dynamic_rotate %399 by %c2_i32_123 dim 1 : vector<8x256xf32>, i32 -> vector<8x256xf32>
    %cst_124 = arith.constant 0.000000e+00 : f32
    %404 = vector.broadcast %cst_124 : f32 to vector<8x256xf32>
    %405 = arith.select %5, %403, %404 : vector<8x256xi1>, vector<8x256xf32>
    %c1_i32_125 = arith.constant 1 : i32
    %406 = tpu.dynamic_rotate %399 by %c1_i32_125 dim 1 : vector<8x256xf32>, i32 -> vector<8x256xf32>
    %cst_126 = arith.constant 0.000000e+00 : f32
    %407 = vector.broadcast %cst_126 : f32 to vector<8x256xf32>
    %408 = arith.select %7, %406, %407 : vector<8x256xi1>, vector<8x256xf32>
    %c255_i32_127 = arith.constant 255 : i32
    %409 = tpu.dynamic_rotate %399 by %c255_i32_127 dim 1 : vector<8x256xf32>, i32 -> vector<8x256xf32>
    %cst_128 = arith.constant 0.000000e+00 : f32
    %410 = vector.broadcast %cst_128 : f32 to vector<8x256xf32>
    %411 = arith.select %9, %409, %410 : vector<8x256xi1>, vector<8x256xf32>
    %c254_i32_129 = arith.constant 254 : i32
    %412 = tpu.dynamic_rotate %399 by %c254_i32_129 dim 1 : vector<8x256xf32>, i32 -> vector<8x256xf32>
    %cst_130 = arith.constant 0.000000e+00 : f32
    %413 = vector.broadcast %cst_130 : f32 to vector<8x256xf32>
    %414 = arith.select %11, %412, %413 : vector<8x256xi1>, vector<8x256xf32>
    %c252_i32_131 = arith.constant 252 : i32
    %415 = tpu.dynamic_rotate %399 by %c252_i32_131 dim 1 : vector<8x256xf32>, i32 -> vector<8x256xf32>
    %cst_132 = arith.constant 0.000000e+00 : f32
    %416 = vector.broadcast %cst_132 : f32 to vector<8x256xf32>
    %417 = arith.select %13, %415, %416 : vector<8x256xi1>, vector<8x256xf32>
    %418 = vector.extract_strided_slice %397 {offsets = [0, 0], sizes = [8, 1], strides = [1, 1]} : vector<8x24xf32> to vector<8x1xf32>
    %419 = vector.broadcast %418 : vector<8x1xf32> to vector<8x256xf32>
    %420 = arith.mulf %419, %408 : vector<8x256xf32>
    %421 = vector.extract_strided_slice %397 {offsets = [0, 1], sizes = [8, 1], strides = [1, 1]} : vector<8x24xf32> to vector<8x1xf32>
    %422 = vector.broadcast %421 : vector<8x1xf32> to vector<8x256xf32>
    %423 = arith.mulf %422, %399 : vector<8x256xf32>
    %424 = arith.addf %420, %423 : vector<8x256xf32>
    %425 = vector.extract_strided_slice %397 {offsets = [0, 2], sizes = [8, 1], strides = [1, 1]} : vector<8x24xf32> to vector<8x1xf32>
    %426 = vector.broadcast %425 : vector<8x1xf32> to vector<8x256xf32>
    %427 = arith.mulf %426, %411 : vector<8x256xf32>
    %428 = arith.addf %424, %427 : vector<8x256xf32>
    %429 = vector.extract_strided_slice %397 {offsets = [0, 6], sizes = [8, 1], strides = [1, 1]} : vector<8x24xf32> to vector<8x1xf32>
    %430 = vector.broadcast %429 : vector<8x1xf32> to vector<8x256xf32>
    %431 = arith.mulf %430, %405 : vector<8x256xf32>
    %432 = vector.extract_strided_slice %397 {offsets = [0, 7], sizes = [8, 1], strides = [1, 1]} : vector<8x24xf32> to vector<8x1xf32>
    %433 = vector.broadcast %432 : vector<8x1xf32> to vector<8x256xf32>
    %434 = arith.mulf %433, %408 : vector<8x256xf32>
    %435 = arith.addf %431, %434 : vector<8x256xf32>
    %436 = vector.extract_strided_slice %397 {offsets = [0, 8], sizes = [8, 1], strides = [1, 1]} : vector<8x24xf32> to vector<8x1xf32>
    %437 = vector.broadcast %436 : vector<8x1xf32> to vector<8x256xf32>
    %438 = arith.mulf %437, %399 : vector<8x256xf32>
    %439 = arith.addf %435, %438 : vector<8x256xf32>
    %440 = vector.extract_strided_slice %397 {offsets = [0, 9], sizes = [8, 1], strides = [1, 1]} : vector<8x24xf32> to vector<8x1xf32>
    %441 = vector.broadcast %440 : vector<8x1xf32> to vector<8x256xf32>
    %442 = arith.mulf %441, %411 : vector<8x256xf32>
    %443 = arith.addf %439, %442 : vector<8x256xf32>
    %444 = vector.extract_strided_slice %397 {offsets = [0, 10], sizes = [8, 1], strides = [1, 1]} : vector<8x24xf32> to vector<8x1xf32>
    %445 = vector.broadcast %444 : vector<8x1xf32> to vector<8x256xf32>
    %446 = arith.mulf %445, %414 : vector<8x256xf32>
    %447 = arith.addf %443, %446 : vector<8x256xf32>
    %448 = vector.extract_strided_slice %397 {offsets = [0, 16], sizes = [8, 1], strides = [1, 1]} : vector<8x24xf32> to vector<8x1xf32>
    %449 = vector.broadcast %448 : vector<8x1xf32> to vector<8x256xf32>
    %450 = arith.mulf %449, %405 : vector<8x256xf32>
    %451 = vector.extract_strided_slice %397 {offsets = [0, 17], sizes = [8, 1], strides = [1, 1]} : vector<8x24xf32> to vector<8x1xf32>
    %452 = vector.broadcast %451 : vector<8x1xf32> to vector<8x256xf32>
    %453 = arith.mulf %452, %399 : vector<8x256xf32>
    %454 = arith.addf %450, %453 : vector<8x256xf32>
    %455 = vector.extract_strided_slice %397 {offsets = [0, 18], sizes = [8, 1], strides = [1, 1]} : vector<8x24xf32> to vector<8x1xf32>
    %456 = vector.broadcast %455 : vector<8x1xf32> to vector<8x256xf32>
    %457 = arith.mulf %456, %414 : vector<8x256xf32>
    %458 = arith.addf %454, %457 : vector<8x256xf32>
    %459 = vector.extract_strided_slice %397 {offsets = [0, 19], sizes = [8, 1], strides = [1, 1]} : vector<8x24xf32> to vector<8x1xf32>
    %460 = vector.broadcast %459 : vector<8x1xf32> to vector<8x256xf32>
    %461 = arith.mulf %460, %402 : vector<8x256xf32>
    %462 = vector.extract_strided_slice %397 {offsets = [0, 20], sizes = [8, 1], strides = [1, 1]} : vector<8x24xf32> to vector<8x1xf32>
    %463 = vector.broadcast %462 : vector<8x1xf32> to vector<8x256xf32>
    %464 = arith.mulf %463, %405 : vector<8x256xf32>
    %465 = arith.addf %461, %464 : vector<8x256xf32>
    %466 = vector.extract_strided_slice %397 {offsets = [0, 21], sizes = [8, 1], strides = [1, 1]} : vector<8x24xf32> to vector<8x1xf32>
    %467 = vector.broadcast %466 : vector<8x1xf32> to vector<8x256xf32>
    %468 = arith.mulf %467, %399 : vector<8x256xf32>
    %469 = arith.addf %465, %468 : vector<8x256xf32>
    %470 = vector.extract_strided_slice %397 {offsets = [0, 22], sizes = [8, 1], strides = [1, 1]} : vector<8x24xf32> to vector<8x1xf32>
    %471 = vector.broadcast %470 : vector<8x1xf32> to vector<8x256xf32>
    %472 = arith.mulf %471, %414 : vector<8x256xf32>
    %473 = arith.addf %469, %472 : vector<8x256xf32>
    %474 = vector.extract_strided_slice %397 {offsets = [0, 23], sizes = [8, 1], strides = [1, 1]} : vector<8x24xf32> to vector<8x1xf32>
    %475 = vector.broadcast %474 : vector<8x1xf32> to vector<8x256xf32>
    %476 = arith.mulf %475, %417 : vector<8x256xf32>
    %477 = arith.addf %473, %476 : vector<8x256xf32>
    %478 = tpu.concatenate %428, %447, %458, %477 in 0 : vector<8x256xf32>, vector<8x256xf32>, vector<8x256xf32>, vector<8x256xf32> -> vector<32x256xf32>
    %c1_133 = arith.constant 1 : index
    %c0_134 = arith.constant 0 : index
    %c0_135 = arith.constant 0 : index
    %479 = vector.load %arg5[%c1_133, %c0_134, %c0_135] : memref<5x32x32xf32, #tpu.memory_space<vmem>>, vector<1x32x32xf32>
    %480 = vector.shape_cast %479 : vector<1x32x32xf32> to vector<32x32xf32>
    %cst_136 = arith.constant dense<0.000000e+00> : vector<32x256xf32>
    %481 = tpu.matmul %480, %478, %cst_136 {dimension_numbers = #tpu.dot_dimension_numbers<[1], [0], [0], [1], [0, 0, 1, 1], [], []>} : vector<32x32xf32>, vector<32x256xf32>, vector<32x256xf32> -> vector<32x256xf32>
    %482 = vector.extract_strided_slice %481 {offsets = [0, 0], sizes = [8, 256], strides = [1, 1]} : vector<32x256xf32> to vector<8x256xf32>
    %cst_137 = arith.constant dense<0.000000e+00> : vector<8xf32>
    %483 = vector.multi_reduction <add>, %482, %cst_137 [1] : vector<8x256xf32> to vector<8xf32>
    %484 = vector.shape_cast %483 : vector<8xf32> to vector<8x1xf32>
    %cst_138 = arith.constant 3.906250e-03 : f32
    %485 = vector.broadcast %cst_138 : f32 to vector<8x1xf32>
    %486 = arith.mulf %484, %485 : vector<8x1xf32>
    %487 = vector.broadcast %486 : vector<8x1xf32> to vector<8x256xf32>
    %488 = arith.subf %482, %487 : vector<8x256xf32>
    %489 = arith.mulf %488, %488 : vector<8x256xf32>
    %cst_139 = arith.constant dense<0.000000e+00> : vector<8xf32>
    %490 = vector.multi_reduction <add>, %489, %cst_139 [1] : vector<8x256xf32> to vector<8xf32>
    %491 = vector.shape_cast %490 : vector<8xf32> to vector<8x1xf32>
    %cst_140 = arith.constant 3.906250e-03 : f32
    %492 = vector.broadcast %cst_140 : f32 to vector<8x1xf32>
    %493 = arith.mulf %491, %492 : vector<8x1xf32>
    %cst_141 = arith.constant 9.99999974E-6 : f32
    %494 = vector.broadcast %cst_141 : f32 to vector<8x1xf32>
    %495 = arith.addf %493, %494 : vector<8x1xf32>
    %496 = math.rsqrt %495 : vector<8x1xf32>
    %497 = vector.broadcast %496 : vector<8x1xf32> to vector<8x256xf32>
    %498 = arith.mulf %488, %497 : vector<8x256xf32>
    %499 = vector.extract_strided_slice %481 {offsets = [8, 0], sizes = [8, 256], strides = [1, 1]} : vector<32x256xf32> to vector<8x256xf32>
    %cst_142 = arith.constant dense<0.000000e+00> : vector<8xf32>
    %500 = vector.multi_reduction <add>, %499, %cst_142 [1] : vector<8x256xf32> to vector<8xf32>
    %501 = vector.shape_cast %500 : vector<8xf32> to vector<8x1xf32>
    %cst_143 = arith.constant 3.906250e-03 : f32
    %502 = vector.broadcast %cst_143 : f32 to vector<8x1xf32>
    %503 = arith.mulf %501, %502 : vector<8x1xf32>
    %504 = vector.broadcast %503 : vector<8x1xf32> to vector<8x256xf32>
    %505 = arith.subf %499, %504 : vector<8x256xf32>
    %506 = arith.mulf %505, %505 : vector<8x256xf32>
    %cst_144 = arith.constant dense<0.000000e+00> : vector<8xf32>
    %507 = vector.multi_reduction <add>, %506, %cst_144 [1] : vector<8x256xf32> to vector<8xf32>
    %508 = vector.shape_cast %507 : vector<8xf32> to vector<8x1xf32>
    %cst_145 = arith.constant 3.906250e-03 : f32
    %509 = vector.broadcast %cst_145 : f32 to vector<8x1xf32>
    %510 = arith.mulf %508, %509 : vector<8x1xf32>
    %cst_146 = arith.constant 9.99999974E-6 : f32
    %511 = vector.broadcast %cst_146 : f32 to vector<8x1xf32>
    %512 = arith.addf %510, %511 : vector<8x1xf32>
    %513 = math.rsqrt %512 : vector<8x1xf32>
    %514 = vector.broadcast %513 : vector<8x1xf32> to vector<8x256xf32>
    %515 = arith.mulf %505, %514 : vector<8x256xf32>
    %516 = vector.extract_strided_slice %481 {offsets = [16, 0], sizes = [8, 256], strides = [1, 1]} : vector<32x256xf32> to vector<8x256xf32>
    %cst_147 = arith.constant dense<0.000000e+00> : vector<8xf32>
    %517 = vector.multi_reduction <add>, %516, %cst_147 [1] : vector<8x256xf32> to vector<8xf32>
    %518 = vector.shape_cast %517 : vector<8xf32> to vector<8x1xf32>
    %cst_148 = arith.constant 3.906250e-03 : f32
    %519 = vector.broadcast %cst_148 : f32 to vector<8x1xf32>
    %520 = arith.mulf %518, %519 : vector<8x1xf32>
    %521 = vector.broadcast %520 : vector<8x1xf32> to vector<8x256xf32>
    %522 = arith.subf %516, %521 : vector<8x256xf32>
    %523 = arith.mulf %522, %522 : vector<8x256xf32>
    %cst_149 = arith.constant dense<0.000000e+00> : vector<8xf32>
    %524 = vector.multi_reduction <add>, %523, %cst_149 [1] : vector<8x256xf32> to vector<8xf32>
    %525 = vector.shape_cast %524 : vector<8xf32> to vector<8x1xf32>
    %cst_150 = arith.constant 3.906250e-03 : f32
    %526 = vector.broadcast %cst_150 : f32 to vector<8x1xf32>
    %527 = arith.mulf %525, %526 : vector<8x1xf32>
    %cst_151 = arith.constant 9.99999974E-6 : f32
    %528 = vector.broadcast %cst_151 : f32 to vector<8x1xf32>
    %529 = arith.addf %527, %528 : vector<8x1xf32>
    %530 = math.rsqrt %529 : vector<8x1xf32>
    %531 = vector.broadcast %530 : vector<8x1xf32> to vector<8x256xf32>
    %532 = arith.mulf %522, %531 : vector<8x256xf32>
    %533 = vector.extract_strided_slice %481 {offsets = [24, 0], sizes = [8, 256], strides = [1, 1]} : vector<32x256xf32> to vector<8x256xf32>
    %cst_152 = arith.constant dense<0.000000e+00> : vector<8xf32>
    %534 = vector.multi_reduction <add>, %533, %cst_152 [1] : vector<8x256xf32> to vector<8xf32>
    %535 = vector.shape_cast %534 : vector<8xf32> to vector<8x1xf32>
    %cst_153 = arith.constant 3.906250e-03 : f32
    %536 = vector.broadcast %cst_153 : f32 to vector<8x1xf32>
    %537 = arith.mulf %535, %536 : vector<8x1xf32>
    %538 = vector.broadcast %537 : vector<8x1xf32> to vector<8x256xf32>
    %539 = arith.subf %533, %538 : vector<8x256xf32>
    %540 = arith.mulf %539, %539 : vector<8x256xf32>
    %cst_154 = arith.constant dense<0.000000e+00> : vector<8xf32>
    %541 = vector.multi_reduction <add>, %540, %cst_154 [1] : vector<8x256xf32> to vector<8xf32>
    %542 = vector.shape_cast %541 : vector<8xf32> to vector<8x1xf32>
    %cst_155 = arith.constant 3.906250e-03 : f32
    %543 = vector.broadcast %cst_155 : f32 to vector<8x1xf32>
    %544 = arith.mulf %542, %543 : vector<8x1xf32>
    %cst_156 = arith.constant 9.99999974E-6 : f32
    %545 = vector.broadcast %cst_156 : f32 to vector<8x1xf32>
    %546 = arith.addf %544, %545 : vector<8x1xf32>
    %547 = math.rsqrt %546 : vector<8x1xf32>
    %548 = vector.broadcast %547 : vector<8x1xf32> to vector<8x256xf32>
    %549 = arith.mulf %539, %548 : vector<8x256xf32>
    %cst_157 = arith.constant 0.000000e+00 : f32
    %550 = vector.broadcast %cst_157 : f32 to vector<8x256xf32>
    %551 = arith.maximumf %498, %550 : vector<8x256xf32>
    %cst_158 = arith.constant 0.000000e+00 : f32
    %552 = vector.broadcast %cst_158 : f32 to vector<8x256xf32>
    %553 = arith.maximumf %515, %552 : vector<8x256xf32>
    %c1_i32_159 = arith.constant 1 : i32
    %554 = tpu.dynamic_rotate %551 by %c1_i32_159 dim 1 : vector<8x256xf32>, i32 -> vector<8x256xf32>
    %cst_160 = arith.constant 0.000000e+00 : f32
    %555 = vector.broadcast %cst_160 : f32 to vector<8x256xf32>
    %556 = arith.select %7, %554, %555 : vector<8x256xi1>, vector<8x256xf32>
    %c255_i32_161 = arith.constant 255 : i32
    %557 = tpu.dynamic_rotate %551 by %c255_i32_161 dim 1 : vector<8x256xf32>, i32 -> vector<8x256xf32>
    %cst_162 = arith.constant 0.000000e+00 : f32
    %558 = vector.broadcast %cst_162 : f32 to vector<8x256xf32>
    %559 = arith.select %9, %557, %558 : vector<8x256xi1>, vector<8x256xf32>
    %c2_i32_163 = arith.constant 2 : i32
    %560 = tpu.dynamic_rotate %553 by %c2_i32_163 dim 1 : vector<8x256xf32>, i32 -> vector<8x256xf32>
    %cst_164 = arith.constant 0.000000e+00 : f32
    %561 = vector.broadcast %cst_164 : f32 to vector<8x256xf32>
    %562 = arith.select %5, %560, %561 : vector<8x256xi1>, vector<8x256xf32>
    %c1_i32_165 = arith.constant 1 : i32
    %563 = tpu.dynamic_rotate %553 by %c1_i32_165 dim 1 : vector<8x256xf32>, i32 -> vector<8x256xf32>
    %cst_166 = arith.constant 0.000000e+00 : f32
    %564 = vector.broadcast %cst_166 : f32 to vector<8x256xf32>
    %565 = arith.select %7, %563, %564 : vector<8x256xi1>, vector<8x256xf32>
    %c255_i32_167 = arith.constant 255 : i32
    %566 = tpu.dynamic_rotate %553 by %c255_i32_167 dim 1 : vector<8x256xf32>, i32 -> vector<8x256xf32>
    %cst_168 = arith.constant 0.000000e+00 : f32
    %567 = vector.broadcast %cst_168 : f32 to vector<8x256xf32>
    %568 = arith.select %9, %566, %567 : vector<8x256xi1>, vector<8x256xf32>
    %c254_i32_169 = arith.constant 254 : i32
    %569 = tpu.dynamic_rotate %553 by %c254_i32_169 dim 1 : vector<8x256xf32>, i32 -> vector<8x256xf32>
    %cst_170 = arith.constant 0.000000e+00 : f32
    %570 = vector.broadcast %cst_170 : f32 to vector<8x256xf32>
    %571 = arith.select %11, %569, %570 : vector<8x256xi1>, vector<8x256xf32>
    %572 = vector.extract_strided_slice %397 {offsets = [0, 3], sizes = [8, 1], strides = [1, 1]} : vector<8x24xf32> to vector<8x1xf32>
    %573 = vector.broadcast %572 : vector<8x1xf32> to vector<8x256xf32>
    %574 = arith.mulf %573, %556 : vector<8x256xf32>
    %575 = vector.extract_strided_slice %397 {offsets = [0, 4], sizes = [8, 1], strides = [1, 1]} : vector<8x24xf32> to vector<8x1xf32>
    %576 = vector.broadcast %575 : vector<8x1xf32> to vector<8x256xf32>
    %577 = arith.mulf %576, %551 : vector<8x256xf32>
    %578 = arith.addf %574, %577 : vector<8x256xf32>
    %579 = vector.extract_strided_slice %397 {offsets = [0, 5], sizes = [8, 1], strides = [1, 1]} : vector<8x24xf32> to vector<8x1xf32>
    %580 = vector.broadcast %579 : vector<8x1xf32> to vector<8x256xf32>
    %581 = arith.mulf %580, %559 : vector<8x256xf32>
    %582 = arith.addf %578, %581 : vector<8x256xf32>
    %583 = vector.extract_strided_slice %397 {offsets = [0, 11], sizes = [8, 1], strides = [1, 1]} : vector<8x24xf32> to vector<8x1xf32>
    %584 = vector.broadcast %583 : vector<8x1xf32> to vector<8x256xf32>
    %585 = arith.mulf %584, %562 : vector<8x256xf32>
    %586 = vector.extract_strided_slice %397 {offsets = [0, 12], sizes = [8, 1], strides = [1, 1]} : vector<8x24xf32> to vector<8x1xf32>
    %587 = vector.broadcast %586 : vector<8x1xf32> to vector<8x256xf32>
    %588 = arith.mulf %587, %565 : vector<8x256xf32>
    %589 = arith.addf %585, %588 : vector<8x256xf32>
    %590 = vector.extract_strided_slice %397 {offsets = [0, 13], sizes = [8, 1], strides = [1, 1]} : vector<8x24xf32> to vector<8x1xf32>
    %591 = vector.broadcast %590 : vector<8x1xf32> to vector<8x256xf32>
    %592 = arith.mulf %591, %553 : vector<8x256xf32>
    %593 = arith.addf %589, %592 : vector<8x256xf32>
    %594 = vector.extract_strided_slice %397 {offsets = [0, 14], sizes = [8, 1], strides = [1, 1]} : vector<8x24xf32> to vector<8x1xf32>
    %595 = vector.broadcast %594 : vector<8x1xf32> to vector<8x256xf32>
    %596 = arith.mulf %595, %568 : vector<8x256xf32>
    %597 = arith.addf %593, %596 : vector<8x256xf32>
    %598 = vector.extract_strided_slice %397 {offsets = [0, 15], sizes = [8, 1], strides = [1, 1]} : vector<8x24xf32> to vector<8x1xf32>
    %599 = vector.broadcast %598 : vector<8x1xf32> to vector<8x256xf32>
    %600 = arith.mulf %599, %571 : vector<8x256xf32>
    %601 = arith.addf %597, %600 : vector<8x256xf32>
    %602 = tpu.concatenate %582, %601 in 0 : vector<8x256xf32>, vector<8x256xf32> -> vector<16x256xf32>
    %c1_171 = arith.constant 1 : index
    %c0_172 = arith.constant 0 : index
    %c0_173 = arith.constant 0 : index
    %603 = vector.load %arg6[%c1_171, %c0_172, %c0_173] : memref<5x16x16xf32, #tpu.memory_space<vmem>>, vector<1x16x16xf32>
    %604 = vector.shape_cast %603 : vector<1x16x16xf32> to vector<16x16xf32>
    %cst_174 = arith.constant dense<0.000000e+00> : vector<16x256xf32>
    %605 = tpu.matmul %604, %602, %cst_174 {dimension_numbers = #tpu.dot_dimension_numbers<[1], [0], [0], [1], [0, 0, 1, 1], [], []>} : vector<16x16xf32>, vector<16x256xf32>, vector<16x256xf32> -> vector<16x256xf32>
    %606 = vector.extract_strided_slice %605 {offsets = [0, 0], sizes = [8, 256], strides = [1, 1]} : vector<16x256xf32> to vector<8x256xf32>
    %cst_175 = arith.constant dense<0.000000e+00> : vector<8xf32>
    %607 = vector.multi_reduction <add>, %606, %cst_175 [1] : vector<8x256xf32> to vector<8xf32>
    %608 = vector.shape_cast %607 : vector<8xf32> to vector<8x1xf32>
    %cst_176 = arith.constant 3.906250e-03 : f32
    %609 = vector.broadcast %cst_176 : f32 to vector<8x1xf32>
    %610 = arith.mulf %608, %609 : vector<8x1xf32>
    %611 = vector.broadcast %610 : vector<8x1xf32> to vector<8x256xf32>
    %612 = arith.subf %606, %611 : vector<8x256xf32>
    %613 = arith.mulf %612, %612 : vector<8x256xf32>
    %cst_177 = arith.constant dense<0.000000e+00> : vector<8xf32>
    %614 = vector.multi_reduction <add>, %613, %cst_177 [1] : vector<8x256xf32> to vector<8xf32>
    %615 = vector.shape_cast %614 : vector<8xf32> to vector<8x1xf32>
    %cst_178 = arith.constant 3.906250e-03 : f32
    %616 = vector.broadcast %cst_178 : f32 to vector<8x1xf32>
    %617 = arith.mulf %615, %616 : vector<8x1xf32>
    %cst_179 = arith.constant 9.99999974E-6 : f32
    %618 = vector.broadcast %cst_179 : f32 to vector<8x1xf32>
    %619 = arith.addf %617, %618 : vector<8x1xf32>
    %620 = math.rsqrt %619 : vector<8x1xf32>
    %621 = vector.broadcast %620 : vector<8x1xf32> to vector<8x256xf32>
    %622 = arith.mulf %612, %621 : vector<8x256xf32>
    %623 = vector.extract_strided_slice %605 {offsets = [8, 0], sizes = [8, 256], strides = [1, 1]} : vector<16x256xf32> to vector<8x256xf32>
    %cst_180 = arith.constant dense<0.000000e+00> : vector<8xf32>
    %624 = vector.multi_reduction <add>, %623, %cst_180 [1] : vector<8x256xf32> to vector<8xf32>
    %625 = vector.shape_cast %624 : vector<8xf32> to vector<8x1xf32>
    %cst_181 = arith.constant 3.906250e-03 : f32
    %626 = vector.broadcast %cst_181 : f32 to vector<8x1xf32>
    %627 = arith.mulf %625, %626 : vector<8x1xf32>
    %628 = vector.broadcast %627 : vector<8x1xf32> to vector<8x256xf32>
    %629 = arith.subf %623, %628 : vector<8x256xf32>
    %630 = arith.mulf %629, %629 : vector<8x256xf32>
    %cst_182 = arith.constant dense<0.000000e+00> : vector<8xf32>
    %631 = vector.multi_reduction <add>, %630, %cst_182 [1] : vector<8x256xf32> to vector<8xf32>
    %632 = vector.shape_cast %631 : vector<8xf32> to vector<8x1xf32>
    %cst_183 = arith.constant 3.906250e-03 : f32
    %633 = vector.broadcast %cst_183 : f32 to vector<8x1xf32>
    %634 = arith.mulf %632, %633 : vector<8x1xf32>
    %cst_184 = arith.constant 9.99999974E-6 : f32
    %635 = vector.broadcast %cst_184 : f32 to vector<8x1xf32>
    %636 = arith.addf %634, %635 : vector<8x1xf32>
    %637 = math.rsqrt %636 : vector<8x1xf32>
    %638 = vector.broadcast %637 : vector<8x1xf32> to vector<8x256xf32>
    %639 = arith.mulf %629, %638 : vector<8x256xf32>
    %c1_i32_185 = arith.constant 1 : i32
    %640 = tpu.dynamic_rotate %77 by %c1_i32_185 dim 1 : vector<8x256xf32>, i32 -> vector<8x256xf32>
    %c255_i32_186 = arith.constant 255 : i32
    %641 = tpu.dynamic_rotate %77 by %c255_i32_186 dim 1 : vector<8x256xf32>, i32 -> vector<8x256xf32>
    %cst_187 = arith.constant 0xFF800000 : f32
    %642 = vector.broadcast %cst_187 : f32 to vector<8x256xf32>
    %643 = arith.select %7, %640, %642 : vector<8x256xi1>, vector<8x256xf32>
    %cst_188 = arith.constant 0xFF800000 : f32
    %644 = vector.broadcast %cst_188 : f32 to vector<8x256xf32>
    %645 = arith.select %9, %641, %644 : vector<8x256xi1>, vector<8x256xf32>
    %646 = arith.maximumf %643, %77 : vector<8x256xf32>
    %647 = arith.maximumf %646, %645 : vector<8x256xf32>
    %cst_189 = arith.constant dense<0.000000e+00> : vector<8xf32>
    %648 = vector.multi_reduction <add>, %647, %cst_189 [1] : vector<8x256xf32> to vector<8xf32>
    %649 = vector.shape_cast %648 : vector<8xf32> to vector<8x1xf32>
    %cst_190 = arith.constant 3.906250e-03 : f32
    %650 = vector.broadcast %cst_190 : f32 to vector<8x1xf32>
    %651 = arith.mulf %649, %650 : vector<8x1xf32>
    %652 = vector.broadcast %651 : vector<8x1xf32> to vector<8x256xf32>
    %653 = arith.subf %647, %652 : vector<8x256xf32>
    %654 = arith.mulf %653, %653 : vector<8x256xf32>
    %cst_191 = arith.constant dense<0.000000e+00> : vector<8xf32>
    %655 = vector.multi_reduction <add>, %654, %cst_191 [1] : vector<8x256xf32> to vector<8xf32>
    %656 = vector.shape_cast %655 : vector<8xf32> to vector<8x1xf32>
    %cst_192 = arith.constant 3.906250e-03 : f32
    %657 = vector.broadcast %cst_192 : f32 to vector<8x1xf32>
    %658 = arith.mulf %656, %657 : vector<8x1xf32>
    %cst_193 = arith.constant 9.99999974E-6 : f32
    %659 = vector.broadcast %cst_193 : f32 to vector<8x1xf32>
    %660 = arith.addf %658, %659 : vector<8x1xf32>
    %661 = math.rsqrt %660 : vector<8x1xf32>
    %662 = vector.broadcast %661 : vector<8x1xf32> to vector<8x256xf32>
    %663 = arith.mulf %653, %662 : vector<8x256xf32>
    %cst_194 = arith.constant 0.000000e+00 : f32
    %664 = vector.broadcast %cst_194 : f32 to vector<8x256xf32>
    %665 = arith.select %7, %640, %664 : vector<8x256xi1>, vector<8x256xf32>
    %cst_195 = arith.constant 0.000000e+00 : f32
    %666 = vector.broadcast %cst_195 : f32 to vector<8x256xf32>
    %667 = arith.select %9, %641, %666 : vector<8x256xi1>, vector<8x256xf32>
    %668 = arith.addf %665, %77 : vector<8x256xf32>
    %669 = arith.addf %668, %667 : vector<8x256xf32>
    %670 = arith.mulf %669, %26 : vector<8x256xf32>
    %cst_196 = arith.constant dense<0.000000e+00> : vector<8xf32>
    %671 = vector.multi_reduction <add>, %670, %cst_196 [1] : vector<8x256xf32> to vector<8xf32>
    %672 = vector.shape_cast %671 : vector<8xf32> to vector<8x1xf32>
    %cst_197 = arith.constant 3.906250e-03 : f32
    %673 = vector.broadcast %cst_197 : f32 to vector<8x1xf32>
    %674 = arith.mulf %672, %673 : vector<8x1xf32>
    %675 = vector.broadcast %674 : vector<8x1xf32> to vector<8x256xf32>
    %676 = arith.subf %670, %675 : vector<8x256xf32>
    %677 = arith.mulf %676, %676 : vector<8x256xf32>
    %cst_198 = arith.constant dense<0.000000e+00> : vector<8xf32>
    %678 = vector.multi_reduction <add>, %677, %cst_198 [1] : vector<8x256xf32> to vector<8xf32>
    %679 = vector.shape_cast %678 : vector<8xf32> to vector<8x1xf32>
    %cst_199 = arith.constant 3.906250e-03 : f32
    %680 = vector.broadcast %cst_199 : f32 to vector<8x1xf32>
    %681 = arith.mulf %679, %680 : vector<8x1xf32>
    %cst_200 = arith.constant 9.99999974E-6 : f32
    %682 = vector.broadcast %cst_200 : f32 to vector<8x1xf32>
    %683 = arith.addf %681, %682 : vector<8x1xf32>
    %684 = math.rsqrt %683 : vector<8x1xf32>
    %685 = vector.broadcast %684 : vector<8x1xf32> to vector<8x256xf32>
    %686 = arith.mulf %676, %685 : vector<8x256xf32>
    %c1_201 = arith.constant 1 : index
    %c3_202 = arith.constant 3 : index
    %687 = memref.load %arg0[%c1_201, %c3_202] : memref<5x8xf32, #tpu.memory_space<smem>>
    %688 = vector.broadcast %687 : f32 to vector<8x256xf32>
    %689 = arith.mulf %688, %77 : vector<8x256xf32>
    %c1_203 = arith.constant 1 : index
    %c1_204 = arith.constant 1 : index
    %690 = memref.load %arg0[%c1_203, %c1_204] : memref<5x8xf32, #tpu.memory_space<smem>>
    %691 = vector.broadcast %690 : f32 to vector<8x256xf32>
    %692 = arith.mulf %691, %663 : vector<8x256xf32>
    %693 = arith.addf %689, %692 : vector<8x256xf32>
    %c1_205 = arith.constant 1 : index
    %c2_206 = arith.constant 2 : index
    %694 = memref.load %arg0[%c1_205, %c2_206] : memref<5x8xf32, #tpu.memory_space<smem>>
    %695 = vector.broadcast %694 : f32 to vector<8x256xf32>
    %696 = arith.mulf %695, %686 : vector<8x256xf32>
    %697 = arith.addf %693, %696 : vector<8x256xf32>
    %c1_207 = arith.constant 1 : index
    %c4_208 = arith.constant 4 : index
    %698 = memref.load %arg0[%c1_207, %c4_208] : memref<5x8xf32, #tpu.memory_space<smem>>
    %699 = vector.broadcast %698 : f32 to vector<8x256xf32>
    %700 = arith.mulf %699, %622 : vector<8x256xf32>
    %701 = arith.addf %697, %700 : vector<8x256xf32>
    %c1_209 = arith.constant 1 : index
    %c5_210 = arith.constant 5 : index
    %702 = memref.load %arg0[%c1_209, %c5_210] : memref<5x8xf32, #tpu.memory_space<smem>>
    %703 = vector.broadcast %702 : f32 to vector<8x256xf32>
    %704 = arith.mulf %703, %639 : vector<8x256xf32>
    %705 = arith.addf %701, %704 : vector<8x256xf32>
    %c1_211 = arith.constant 1 : index
    %c6_212 = arith.constant 6 : index
    %706 = memref.load %arg0[%c1_211, %c6_212] : memref<5x8xf32, #tpu.memory_space<smem>>
    %707 = vector.broadcast %706 : f32 to vector<8x256xf32>
    %708 = arith.mulf %707, %532 : vector<8x256xf32>
    %709 = arith.addf %705, %708 : vector<8x256xf32>
    %c1_213 = arith.constant 1 : index
    %c7_214 = arith.constant 7 : index
    %710 = memref.load %arg0[%c1_213, %c7_214] : memref<5x8xf32, #tpu.memory_space<smem>>
    %711 = vector.broadcast %710 : f32 to vector<8x256xf32>
    %712 = arith.mulf %711, %549 : vector<8x256xf32>
    %713 = arith.addf %709, %712 : vector<8x256xf32>
    %714 = arith.addf %395, %713 : vector<8x256xf32>
    %c2_215 = arith.constant 2 : index
    %c0_216 = arith.constant 0 : index
    %c0_217 = arith.constant 0 : index
    %715 = vector.load %arg4[%c2_215, %c0_216, %c0_217] : memref<5x8x24xf32, #tpu.memory_space<vmem>>, vector<1x8x24xf32>
    %716 = vector.shape_cast %715 : vector<1x8x24xf32> to vector<8x24xf32>
    %cst_218 = arith.constant 0.000000e+00 : f32
    %717 = vector.broadcast %cst_218 : f32 to vector<8x256xf32>
    %718 = arith.maximumf %60, %717 : vector<8x256xf32>
    %c4_i32_219 = arith.constant 4 : i32
    %719 = tpu.dynamic_rotate %718 by %c4_i32_219 dim 1 : vector<8x256xf32>, i32 -> vector<8x256xf32>
    %cst_220 = arith.constant 0.000000e+00 : f32
    %720 = vector.broadcast %cst_220 : f32 to vector<8x256xf32>
    %721 = arith.select %3, %719, %720 : vector<8x256xi1>, vector<8x256xf32>
    %c2_i32_221 = arith.constant 2 : i32
    %722 = tpu.dynamic_rotate %718 by %c2_i32_221 dim 1 : vector<8x256xf32>, i32 -> vector<8x256xf32>
    %cst_222 = arith.constant 0.000000e+00 : f32
    %723 = vector.broadcast %cst_222 : f32 to vector<8x256xf32>
    %724 = arith.select %5, %722, %723 : vector<8x256xi1>, vector<8x256xf32>
    %c1_i32_223 = arith.constant 1 : i32
    %725 = tpu.dynamic_rotate %718 by %c1_i32_223 dim 1 : vector<8x256xf32>, i32 -> vector<8x256xf32>
    %cst_224 = arith.constant 0.000000e+00 : f32
    %726 = vector.broadcast %cst_224 : f32 to vector<8x256xf32>
    %727 = arith.select %7, %725, %726 : vector<8x256xi1>, vector<8x256xf32>
    %c255_i32_225 = arith.constant 255 : i32
    %728 = tpu.dynamic_rotate %718 by %c255_i32_225 dim 1 : vector<8x256xf32>, i32 -> vector<8x256xf32>
    %cst_226 = arith.constant 0.000000e+00 : f32
    %729 = vector.broadcast %cst_226 : f32 to vector<8x256xf32>
    %730 = arith.select %9, %728, %729 : vector<8x256xi1>, vector<8x256xf32>
    %c254_i32_227 = arith.constant 254 : i32
    %731 = tpu.dynamic_rotate %718 by %c254_i32_227 dim 1 : vector<8x256xf32>, i32 -> vector<8x256xf32>
    %cst_228 = arith.constant 0.000000e+00 : f32
    %732 = vector.broadcast %cst_228 : f32 to vector<8x256xf32>
    %733 = arith.select %11, %731, %732 : vector<8x256xi1>, vector<8x256xf32>
    %c252_i32_229 = arith.constant 252 : i32
    %734 = tpu.dynamic_rotate %718 by %c252_i32_229 dim 1 : vector<8x256xf32>, i32 -> vector<8x256xf32>
    %cst_230 = arith.constant 0.000000e+00 : f32
    %735 = vector.broadcast %cst_230 : f32 to vector<8x256xf32>
    %736 = arith.select %13, %734, %735 : vector<8x256xi1>, vector<8x256xf32>
    %737 = vector.extract_strided_slice %716 {offsets = [0, 0], sizes = [8, 1], strides = [1, 1]} : vector<8x24xf32> to vector<8x1xf32>
    %738 = vector.broadcast %737 : vector<8x1xf32> to vector<8x256xf32>
    %739 = arith.mulf %738, %727 : vector<8x256xf32>
    %740 = vector.extract_strided_slice %716 {offsets = [0, 1], sizes = [8, 1], strides = [1, 1]} : vector<8x24xf32> to vector<8x1xf32>
    %741 = vector.broadcast %740 : vector<8x1xf32> to vector<8x256xf32>
    %742 = arith.mulf %741, %718 : vector<8x256xf32>
    %743 = arith.addf %739, %742 : vector<8x256xf32>
    %744 = vector.extract_strided_slice %716 {offsets = [0, 2], sizes = [8, 1], strides = [1, 1]} : vector<8x24xf32> to vector<8x1xf32>
    %745 = vector.broadcast %744 : vector<8x1xf32> to vector<8x256xf32>
    %746 = arith.mulf %745, %730 : vector<8x256xf32>
    %747 = arith.addf %743, %746 : vector<8x256xf32>
    %748 = vector.extract_strided_slice %716 {offsets = [0, 6], sizes = [8, 1], strides = [1, 1]} : vector<8x24xf32> to vector<8x1xf32>
    %749 = vector.broadcast %748 : vector<8x1xf32> to vector<8x256xf32>
    %750 = arith.mulf %749, %724 : vector<8x256xf32>
    %751 = vector.extract_strided_slice %716 {offsets = [0, 7], sizes = [8, 1], strides = [1, 1]} : vector<8x24xf32> to vector<8x1xf32>
    %752 = vector.broadcast %751 : vector<8x1xf32> to vector<8x256xf32>
    %753 = arith.mulf %752, %727 : vector<8x256xf32>
    %754 = arith.addf %750, %753 : vector<8x256xf32>
    %755 = vector.extract_strided_slice %716 {offsets = [0, 8], sizes = [8, 1], strides = [1, 1]} : vector<8x24xf32> to vector<8x1xf32>
    %756 = vector.broadcast %755 : vector<8x1xf32> to vector<8x256xf32>
    %757 = arith.mulf %756, %718 : vector<8x256xf32>
    %758 = arith.addf %754, %757 : vector<8x256xf32>
    %759 = vector.extract_strided_slice %716 {offsets = [0, 9], sizes = [8, 1], strides = [1, 1]} : vector<8x24xf32> to vector<8x1xf32>
    %760 = vector.broadcast %759 : vector<8x1xf32> to vector<8x256xf32>
    %761 = arith.mulf %760, %730 : vector<8x256xf32>
    %762 = arith.addf %758, %761 : vector<8x256xf32>
    %763 = vector.extract_strided_slice %716 {offsets = [0, 10], sizes = [8, 1], strides = [1, 1]} : vector<8x24xf32> to vector<8x1xf32>
    %764 = vector.broadcast %763 : vector<8x1xf32> to vector<8x256xf32>
    %765 = arith.mulf %764, %733 : vector<8x256xf32>
    %766 = arith.addf %762, %765 : vector<8x256xf32>
    %767 = vector.extract_strided_slice %716 {offsets = [0, 16], sizes = [8, 1], strides = [1, 1]} : vector<8x24xf32> to vector<8x1xf32>
    %768 = vector.broadcast %767 : vector<8x1xf32> to vector<8x256xf32>
    %769 = arith.mulf %768, %724 : vector<8x256xf32>
    %770 = vector.extract_strided_slice %716 {offsets = [0, 17], sizes = [8, 1], strides = [1, 1]} : vector<8x24xf32> to vector<8x1xf32>
    %771 = vector.broadcast %770 : vector<8x1xf32> to vector<8x256xf32>
    %772 = arith.mulf %771, %718 : vector<8x256xf32>
    %773 = arith.addf %769, %772 : vector<8x256xf32>
    %774 = vector.extract_strided_slice %716 {offsets = [0, 18], sizes = [8, 1], strides = [1, 1]} : vector<8x24xf32> to vector<8x1xf32>
    %775 = vector.broadcast %774 : vector<8x1xf32> to vector<8x256xf32>
    %776 = arith.mulf %775, %733 : vector<8x256xf32>
    %777 = arith.addf %773, %776 : vector<8x256xf32>
    %778 = vector.extract_strided_slice %716 {offsets = [0, 19], sizes = [8, 1], strides = [1, 1]} : vector<8x24xf32> to vector<8x1xf32>
    %779 = vector.broadcast %778 : vector<8x1xf32> to vector<8x256xf32>
    %780 = arith.mulf %779, %721 : vector<8x256xf32>
    %781 = vector.extract_strided_slice %716 {offsets = [0, 20], sizes = [8, 1], strides = [1, 1]} : vector<8x24xf32> to vector<8x1xf32>
    %782 = vector.broadcast %781 : vector<8x1xf32> to vector<8x256xf32>
    %783 = arith.mulf %782, %724 : vector<8x256xf32>
    %784 = arith.addf %780, %783 : vector<8x256xf32>
    %785 = vector.extract_strided_slice %716 {offsets = [0, 21], sizes = [8, 1], strides = [1, 1]} : vector<8x24xf32> to vector<8x1xf32>
    %786 = vector.broadcast %785 : vector<8x1xf32> to vector<8x256xf32>
    %787 = arith.mulf %786, %718 : vector<8x256xf32>
    %788 = arith.addf %784, %787 : vector<8x256xf32>
    %789 = vector.extract_strided_slice %716 {offsets = [0, 22], sizes = [8, 1], strides = [1, 1]} : vector<8x24xf32> to vector<8x1xf32>
    %790 = vector.broadcast %789 : vector<8x1xf32> to vector<8x256xf32>
    %791 = arith.mulf %790, %733 : vector<8x256xf32>
    %792 = arith.addf %788, %791 : vector<8x256xf32>
    %793 = vector.extract_strided_slice %716 {offsets = [0, 23], sizes = [8, 1], strides = [1, 1]} : vector<8x24xf32> to vector<8x1xf32>
    %794 = vector.broadcast %793 : vector<8x1xf32> to vector<8x256xf32>
    %795 = arith.mulf %794, %736 : vector<8x256xf32>
    %796 = arith.addf %792, %795 : vector<8x256xf32>
    %797 = tpu.concatenate %747, %766, %777, %796 in 0 : vector<8x256xf32>, vector<8x256xf32>, vector<8x256xf32>, vector<8x256xf32> -> vector<32x256xf32>
    %c2_231 = arith.constant 2 : index
    %c0_232 = arith.constant 0 : index
    %c0_233 = arith.constant 0 : index
    %798 = vector.load %arg5[%c2_231, %c0_232, %c0_233] : memref<5x32x32xf32, #tpu.memory_space<vmem>>, vector<1x32x32xf32>
    %799 = vector.shape_cast %798 : vector<1x32x32xf32> to vector<32x32xf32>
    %cst_234 = arith.constant dense<0.000000e+00> : vector<32x256xf32>
    %800 = tpu.matmul %799, %797, %cst_234 {dimension_numbers = #tpu.dot_dimension_numbers<[1], [0], [0], [1], [0, 0, 1, 1], [], []>} : vector<32x32xf32>, vector<32x256xf32>, vector<32x256xf32> -> vector<32x256xf32>
    %801 = vector.extract_strided_slice %800 {offsets = [0, 0], sizes = [8, 256], strides = [1, 1]} : vector<32x256xf32> to vector<8x256xf32>
    %cst_235 = arith.constant dense<0.000000e+00> : vector<8xf32>
    %802 = vector.multi_reduction <add>, %801, %cst_235 [1] : vector<8x256xf32> to vector<8xf32>
    %803 = vector.shape_cast %802 : vector<8xf32> to vector<8x1xf32>
    %cst_236 = arith.constant 3.906250e-03 : f32
    %804 = vector.broadcast %cst_236 : f32 to vector<8x1xf32>
    %805 = arith.mulf %803, %804 : vector<8x1xf32>
    %806 = vector.broadcast %805 : vector<8x1xf32> to vector<8x256xf32>
    %807 = arith.subf %801, %806 : vector<8x256xf32>
    %808 = arith.mulf %807, %807 : vector<8x256xf32>
    %cst_237 = arith.constant dense<0.000000e+00> : vector<8xf32>
    %809 = vector.multi_reduction <add>, %808, %cst_237 [1] : vector<8x256xf32> to vector<8xf32>
    %810 = vector.shape_cast %809 : vector<8xf32> to vector<8x1xf32>
    %cst_238 = arith.constant 3.906250e-03 : f32
    %811 = vector.broadcast %cst_238 : f32 to vector<8x1xf32>
    %812 = arith.mulf %810, %811 : vector<8x1xf32>
    %cst_239 = arith.constant 9.99999974E-6 : f32
    %813 = vector.broadcast %cst_239 : f32 to vector<8x1xf32>
    %814 = arith.addf %812, %813 : vector<8x1xf32>
    %815 = math.rsqrt %814 : vector<8x1xf32>
    %816 = vector.broadcast %815 : vector<8x1xf32> to vector<8x256xf32>
    %817 = arith.mulf %807, %816 : vector<8x256xf32>
    %818 = vector.extract_strided_slice %800 {offsets = [8, 0], sizes = [8, 256], strides = [1, 1]} : vector<32x256xf32> to vector<8x256xf32>
    %cst_240 = arith.constant dense<0.000000e+00> : vector<8xf32>
    %819 = vector.multi_reduction <add>, %818, %cst_240 [1] : vector<8x256xf32> to vector<8xf32>
    %820 = vector.shape_cast %819 : vector<8xf32> to vector<8x1xf32>
    %cst_241 = arith.constant 3.906250e-03 : f32
    %821 = vector.broadcast %cst_241 : f32 to vector<8x1xf32>
    %822 = arith.mulf %820, %821 : vector<8x1xf32>
    %823 = vector.broadcast %822 : vector<8x1xf32> to vector<8x256xf32>
    %824 = arith.subf %818, %823 : vector<8x256xf32>
    %825 = arith.mulf %824, %824 : vector<8x256xf32>
    %cst_242 = arith.constant dense<0.000000e+00> : vector<8xf32>
    %826 = vector.multi_reduction <add>, %825, %cst_242 [1] : vector<8x256xf32> to vector<8xf32>
    %827 = vector.shape_cast %826 : vector<8xf32> to vector<8x1xf32>
    %cst_243 = arith.constant 3.906250e-03 : f32
    %828 = vector.broadcast %cst_243 : f32 to vector<8x1xf32>
    %829 = arith.mulf %827, %828 : vector<8x1xf32>
    %cst_244 = arith.constant 9.99999974E-6 : f32
    %830 = vector.broadcast %cst_244 : f32 to vector<8x1xf32>
    %831 = arith.addf %829, %830 : vector<8x1xf32>
    %832 = math.rsqrt %831 : vector<8x1xf32>
    %833 = vector.broadcast %832 : vector<8x1xf32> to vector<8x256xf32>
    %834 = arith.mulf %824, %833 : vector<8x256xf32>
    %835 = vector.extract_strided_slice %800 {offsets = [16, 0], sizes = [8, 256], strides = [1, 1]} : vector<32x256xf32> to vector<8x256xf32>
    %cst_245 = arith.constant dense<0.000000e+00> : vector<8xf32>
    %836 = vector.multi_reduction <add>, %835, %cst_245 [1] : vector<8x256xf32> to vector<8xf32>
    %837 = vector.shape_cast %836 : vector<8xf32> to vector<8x1xf32>
    %cst_246 = arith.constant 3.906250e-03 : f32
    %838 = vector.broadcast %cst_246 : f32 to vector<8x1xf32>
    %839 = arith.mulf %837, %838 : vector<8x1xf32>
    %840 = vector.broadcast %839 : vector<8x1xf32> to vector<8x256xf32>
    %841 = arith.subf %835, %840 : vector<8x256xf32>
    %842 = arith.mulf %841, %841 : vector<8x256xf32>
    %cst_247 = arith.constant dense<0.000000e+00> : vector<8xf32>
    %843 = vector.multi_reduction <add>, %842, %cst_247 [1] : vector<8x256xf32> to vector<8xf32>
    %844 = vector.shape_cast %843 : vector<8xf32> to vector<8x1xf32>
    %cst_248 = arith.constant 3.906250e-03 : f32
    %845 = vector.broadcast %cst_248 : f32 to vector<8x1xf32>
    %846 = arith.mulf %844, %845 : vector<8x1xf32>
    %cst_249 = arith.constant 9.99999974E-6 : f32
    %847 = vector.broadcast %cst_249 : f32 to vector<8x1xf32>
    %848 = arith.addf %846, %847 : vector<8x1xf32>
    %849 = math.rsqrt %848 : vector<8x1xf32>
    %850 = vector.broadcast %849 : vector<8x1xf32> to vector<8x256xf32>
    %851 = arith.mulf %841, %850 : vector<8x256xf32>
    %852 = vector.extract_strided_slice %800 {offsets = [24, 0], sizes = [8, 256], strides = [1, 1]} : vector<32x256xf32> to vector<8x256xf32>
    %cst_250 = arith.constant dense<0.000000e+00> : vector<8xf32>
    %853 = vector.multi_reduction <add>, %852, %cst_250 [1] : vector<8x256xf32> to vector<8xf32>
    %854 = vector.shape_cast %853 : vector<8xf32> to vector<8x1xf32>
    %cst_251 = arith.constant 3.906250e-03 : f32
    %855 = vector.broadcast %cst_251 : f32 to vector<8x1xf32>
    %856 = arith.mulf %854, %855 : vector<8x1xf32>
    %857 = vector.broadcast %856 : vector<8x1xf32> to vector<8x256xf32>
    %858 = arith.subf %852, %857 : vector<8x256xf32>
    %859 = arith.mulf %858, %858 : vector<8x256xf32>
    %cst_252 = arith.constant dense<0.000000e+00> : vector<8xf32>
    %860 = vector.multi_reduction <add>, %859, %cst_252 [1] : vector<8x256xf32> to vector<8xf32>
    %861 = vector.shape_cast %860 : vector<8xf32> to vector<8x1xf32>
    %cst_253 = arith.constant 3.906250e-03 : f32
    %862 = vector.broadcast %cst_253 : f32 to vector<8x1xf32>
    %863 = arith.mulf %861, %862 : vector<8x1xf32>
    %cst_254 = arith.constant 9.99999974E-6 : f32
    %864 = vector.broadcast %cst_254 : f32 to vector<8x1xf32>
    %865 = arith.addf %863, %864 : vector<8x1xf32>
    %866 = math.rsqrt %865 : vector<8x1xf32>
    %867 = vector.broadcast %866 : vector<8x1xf32> to vector<8x256xf32>
    %868 = arith.mulf %858, %867 : vector<8x256xf32>
    %cst_255 = arith.constant 0.000000e+00 : f32
    %869 = vector.broadcast %cst_255 : f32 to vector<8x256xf32>
    %870 = arith.maximumf %817, %869 : vector<8x256xf32>
    %cst_256 = arith.constant 0.000000e+00 : f32
    %871 = vector.broadcast %cst_256 : f32 to vector<8x256xf32>
    %872 = arith.maximumf %834, %871 : vector<8x256xf32>
    %c1_i32_257 = arith.constant 1 : i32
    %873 = tpu.dynamic_rotate %870 by %c1_i32_257 dim 1 : vector<8x256xf32>, i32 -> vector<8x256xf32>
    %cst_258 = arith.constant 0.000000e+00 : f32
    %874 = vector.broadcast %cst_258 : f32 to vector<8x256xf32>
    %875 = arith.select %7, %873, %874 : vector<8x256xi1>, vector<8x256xf32>
    %c255_i32_259 = arith.constant 255 : i32
    %876 = tpu.dynamic_rotate %870 by %c255_i32_259 dim 1 : vector<8x256xf32>, i32 -> vector<8x256xf32>
    %cst_260 = arith.constant 0.000000e+00 : f32
    %877 = vector.broadcast %cst_260 : f32 to vector<8x256xf32>
    %878 = arith.select %9, %876, %877 : vector<8x256xi1>, vector<8x256xf32>
    %c2_i32_261 = arith.constant 2 : i32
    %879 = tpu.dynamic_rotate %872 by %c2_i32_261 dim 1 : vector<8x256xf32>, i32 -> vector<8x256xf32>
    %cst_262 = arith.constant 0.000000e+00 : f32
    %880 = vector.broadcast %cst_262 : f32 to vector<8x256xf32>
    %881 = arith.select %5, %879, %880 : vector<8x256xi1>, vector<8x256xf32>
    %c1_i32_263 = arith.constant 1 : i32
    %882 = tpu.dynamic_rotate %872 by %c1_i32_263 dim 1 : vector<8x256xf32>, i32 -> vector<8x256xf32>
    %cst_264 = arith.constant 0.000000e+00 : f32
    %883 = vector.broadcast %cst_264 : f32 to vector<8x256xf32>
    %884 = arith.select %7, %882, %883 : vector<8x256xi1>, vector<8x256xf32>
    %c255_i32_265 = arith.constant 255 : i32
    %885 = tpu.dynamic_rotate %872 by %c255_i32_265 dim 1 : vector<8x256xf32>, i32 -> vector<8x256xf32>
    %cst_266 = arith.constant 0.000000e+00 : f32
    %886 = vector.broadcast %cst_266 : f32 to vector<8x256xf32>
    %887 = arith.select %9, %885, %886 : vector<8x256xi1>, vector<8x256xf32>
    %c254_i32_267 = arith.constant 254 : i32
    %888 = tpu.dynamic_rotate %872 by %c254_i32_267 dim 1 : vector<8x256xf32>, i32 -> vector<8x256xf32>
    %cst_268 = arith.constant 0.000000e+00 : f32
    %889 = vector.broadcast %cst_268 : f32 to vector<8x256xf32>
    %890 = arith.select %11, %888, %889 : vector<8x256xi1>, vector<8x256xf32>
    %891 = vector.extract_strided_slice %716 {offsets = [0, 3], sizes = [8, 1], strides = [1, 1]} : vector<8x24xf32> to vector<8x1xf32>
    %892 = vector.broadcast %891 : vector<8x1xf32> to vector<8x256xf32>
    %893 = arith.mulf %892, %875 : vector<8x256xf32>
    %894 = vector.extract_strided_slice %716 {offsets = [0, 4], sizes = [8, 1], strides = [1, 1]} : vector<8x24xf32> to vector<8x1xf32>
    %895 = vector.broadcast %894 : vector<8x1xf32> to vector<8x256xf32>
    %896 = arith.mulf %895, %870 : vector<8x256xf32>
    %897 = arith.addf %893, %896 : vector<8x256xf32>
    %898 = vector.extract_strided_slice %716 {offsets = [0, 5], sizes = [8, 1], strides = [1, 1]} : vector<8x24xf32> to vector<8x1xf32>
    %899 = vector.broadcast %898 : vector<8x1xf32> to vector<8x256xf32>
    %900 = arith.mulf %899, %878 : vector<8x256xf32>
    %901 = arith.addf %897, %900 : vector<8x256xf32>
    %902 = vector.extract_strided_slice %716 {offsets = [0, 11], sizes = [8, 1], strides = [1, 1]} : vector<8x24xf32> to vector<8x1xf32>
    %903 = vector.broadcast %902 : vector<8x1xf32> to vector<8x256xf32>
    %904 = arith.mulf %903, %881 : vector<8x256xf32>
    %905 = vector.extract_strided_slice %716 {offsets = [0, 12], sizes = [8, 1], strides = [1, 1]} : vector<8x24xf32> to vector<8x1xf32>
    %906 = vector.broadcast %905 : vector<8x1xf32> to vector<8x256xf32>
    %907 = arith.mulf %906, %884 : vector<8x256xf32>
    %908 = arith.addf %904, %907 : vector<8x256xf32>
    %909 = vector.extract_strided_slice %716 {offsets = [0, 13], sizes = [8, 1], strides = [1, 1]} : vector<8x24xf32> to vector<8x1xf32>
    %910 = vector.broadcast %909 : vector<8x1xf32> to vector<8x256xf32>
    %911 = arith.mulf %910, %872 : vector<8x256xf32>
    %912 = arith.addf %908, %911 : vector<8x256xf32>
    %913 = vector.extract_strided_slice %716 {offsets = [0, 14], sizes = [8, 1], strides = [1, 1]} : vector<8x24xf32> to vector<8x1xf32>
    %914 = vector.broadcast %913 : vector<8x1xf32> to vector<8x256xf32>
    %915 = arith.mulf %914, %887 : vector<8x256xf32>
    %916 = arith.addf %912, %915 : vector<8x256xf32>
    %917 = vector.extract_strided_slice %716 {offsets = [0, 15], sizes = [8, 1], strides = [1, 1]} : vector<8x24xf32> to vector<8x1xf32>
    %918 = vector.broadcast %917 : vector<8x1xf32> to vector<8x256xf32>
    %919 = arith.mulf %918, %890 : vector<8x256xf32>
    %920 = arith.addf %916, %919 : vector<8x256xf32>
    %921 = tpu.concatenate %901, %920 in 0 : vector<8x256xf32>, vector<8x256xf32> -> vector<16x256xf32>
    %c2_269 = arith.constant 2 : index
    %c0_270 = arith.constant 0 : index
    %c0_271 = arith.constant 0 : index
    %922 = vector.load %arg6[%c2_269, %c0_270, %c0_271] : memref<5x16x16xf32, #tpu.memory_space<vmem>>, vector<1x16x16xf32>
    %923 = vector.shape_cast %922 : vector<1x16x16xf32> to vector<16x16xf32>
    %cst_272 = arith.constant dense<0.000000e+00> : vector<16x256xf32>
    %924 = tpu.matmul %923, %921, %cst_272 {dimension_numbers = #tpu.dot_dimension_numbers<[1], [0], [0], [1], [0, 0, 1, 1], [], []>} : vector<16x16xf32>, vector<16x256xf32>, vector<16x256xf32> -> vector<16x256xf32>
    %925 = vector.extract_strided_slice %924 {offsets = [0, 0], sizes = [8, 256], strides = [1, 1]} : vector<16x256xf32> to vector<8x256xf32>
    %cst_273 = arith.constant dense<0.000000e+00> : vector<8xf32>
    %926 = vector.multi_reduction <add>, %925, %cst_273 [1] : vector<8x256xf32> to vector<8xf32>
    %927 = vector.shape_cast %926 : vector<8xf32> to vector<8x1xf32>
    %cst_274 = arith.constant 3.906250e-03 : f32
    %928 = vector.broadcast %cst_274 : f32 to vector<8x1xf32>
    %929 = arith.mulf %927, %928 : vector<8x1xf32>
    %930 = vector.broadcast %929 : vector<8x1xf32> to vector<8x256xf32>
    %931 = arith.subf %925, %930 : vector<8x256xf32>
    %932 = arith.mulf %931, %931 : vector<8x256xf32>
    %cst_275 = arith.constant dense<0.000000e+00> : vector<8xf32>
    %933 = vector.multi_reduction <add>, %932, %cst_275 [1] : vector<8x256xf32> to vector<8xf32>
    %934 = vector.shape_cast %933 : vector<8xf32> to vector<8x1xf32>
    %cst_276 = arith.constant 3.906250e-03 : f32
    %935 = vector.broadcast %cst_276 : f32 to vector<8x1xf32>
    %936 = arith.mulf %934, %935 : vector<8x1xf32>
    %cst_277 = arith.constant 9.99999974E-6 : f32
    %937 = vector.broadcast %cst_277 : f32 to vector<8x1xf32>
    %938 = arith.addf %936, %937 : vector<8x1xf32>
    %939 = math.rsqrt %938 : vector<8x1xf32>
    %940 = vector.broadcast %939 : vector<8x1xf32> to vector<8x256xf32>
    %941 = arith.mulf %931, %940 : vector<8x256xf32>
    %942 = vector.extract_strided_slice %924 {offsets = [8, 0], sizes = [8, 256], strides = [1, 1]} : vector<16x256xf32> to vector<8x256xf32>
    %cst_278 = arith.constant dense<0.000000e+00> : vector<8xf32>
    %943 = vector.multi_reduction <add>, %942, %cst_278 [1] : vector<8x256xf32> to vector<8xf32>
    %944 = vector.shape_cast %943 : vector<8xf32> to vector<8x1xf32>
    %cst_279 = arith.constant 3.906250e-03 : f32
    %945 = vector.broadcast %cst_279 : f32 to vector<8x1xf32>
    %946 = arith.mulf %944, %945 : vector<8x1xf32>
    %947 = vector.broadcast %946 : vector<8x1xf32> to vector<8x256xf32>
    %948 = arith.subf %942, %947 : vector<8x256xf32>
    %949 = arith.mulf %948, %948 : vector<8x256xf32>
    %cst_280 = arith.constant dense<0.000000e+00> : vector<8xf32>
    %950 = vector.multi_reduction <add>, %949, %cst_280 [1] : vector<8x256xf32> to vector<8xf32>
    %951 = vector.shape_cast %950 : vector<8xf32> to vector<8x1xf32>
    %cst_281 = arith.constant 3.906250e-03 : f32
    %952 = vector.broadcast %cst_281 : f32 to vector<8x1xf32>
    %953 = arith.mulf %951, %952 : vector<8x1xf32>
    %cst_282 = arith.constant 9.99999974E-6 : f32
    %954 = vector.broadcast %cst_282 : f32 to vector<8x1xf32>
    %955 = arith.addf %953, %954 : vector<8x1xf32>
    %956 = math.rsqrt %955 : vector<8x1xf32>
    %957 = vector.broadcast %956 : vector<8x1xf32> to vector<8x256xf32>
    %958 = arith.mulf %948, %957 : vector<8x256xf32>
    %c1_i32_283 = arith.constant 1 : i32
    %959 = tpu.dynamic_rotate %60 by %c1_i32_283 dim 1 : vector<8x256xf32>, i32 -> vector<8x256xf32>
    %c255_i32_284 = arith.constant 255 : i32
    %960 = tpu.dynamic_rotate %60 by %c255_i32_284 dim 1 : vector<8x256xf32>, i32 -> vector<8x256xf32>
    %cst_285 = arith.constant 0xFF800000 : f32
    %961 = vector.broadcast %cst_285 : f32 to vector<8x256xf32>
    %962 = arith.select %7, %959, %961 : vector<8x256xi1>, vector<8x256xf32>
    %cst_286 = arith.constant 0xFF800000 : f32
    %963 = vector.broadcast %cst_286 : f32 to vector<8x256xf32>
    %964 = arith.select %9, %960, %963 : vector<8x256xi1>, vector<8x256xf32>
    %965 = arith.maximumf %962, %60 : vector<8x256xf32>
    %966 = arith.maximumf %965, %964 : vector<8x256xf32>
    %cst_287 = arith.constant dense<0.000000e+00> : vector<8xf32>
    %967 = vector.multi_reduction <add>, %966, %cst_287 [1] : vector<8x256xf32> to vector<8xf32>
    %968 = vector.shape_cast %967 : vector<8xf32> to vector<8x1xf32>
    %cst_288 = arith.constant 3.906250e-03 : f32
    %969 = vector.broadcast %cst_288 : f32 to vector<8x1xf32>
    %970 = arith.mulf %968, %969 : vector<8x1xf32>
    %971 = vector.broadcast %970 : vector<8x1xf32> to vector<8x256xf32>
    %972 = arith.subf %966, %971 : vector<8x256xf32>
    %973 = arith.mulf %972, %972 : vector<8x256xf32>
    %cst_289 = arith.constant dense<0.000000e+00> : vector<8xf32>
    %974 = vector.multi_reduction <add>, %973, %cst_289 [1] : vector<8x256xf32> to vector<8xf32>
    %975 = vector.shape_cast %974 : vector<8xf32> to vector<8x1xf32>
    %cst_290 = arith.constant 3.906250e-03 : f32
    %976 = vector.broadcast %cst_290 : f32 to vector<8x1xf32>
    %977 = arith.mulf %975, %976 : vector<8x1xf32>
    %cst_291 = arith.constant 9.99999974E-6 : f32
    %978 = vector.broadcast %cst_291 : f32 to vector<8x1xf32>
    %979 = arith.addf %977, %978 : vector<8x1xf32>
    %980 = math.rsqrt %979 : vector<8x1xf32>
    %981 = vector.broadcast %980 : vector<8x1xf32> to vector<8x256xf32>
    %982 = arith.mulf %972, %981 : vector<8x256xf32>
    %cst_292 = arith.constant 0.000000e+00 : f32
    %983 = vector.broadcast %cst_292 : f32 to vector<8x256xf32>
    %984 = arith.select %7, %959, %983 : vector<8x256xi1>, vector<8x256xf32>
    %cst_293 = arith.constant 0.000000e+00 : f32
    %985 = vector.broadcast %cst_293 : f32 to vector<8x256xf32>
    %986 = arith.select %9, %960, %985 : vector<8x256xi1>, vector<8x256xf32>
    %987 = arith.addf %984, %60 : vector<8x256xf32>
    %988 = arith.addf %987, %986 : vector<8x256xf32>
    %989 = arith.mulf %988, %26 : vector<8x256xf32>
    %cst_294 = arith.constant dense<0.000000e+00> : vector<8xf32>
    %990 = vector.multi_reduction <add>, %989, %cst_294 [1] : vector<8x256xf32> to vector<8xf32>
    %991 = vector.shape_cast %990 : vector<8xf32> to vector<8x1xf32>
    %cst_295 = arith.constant 3.906250e-03 : f32
    %992 = vector.broadcast %cst_295 : f32 to vector<8x1xf32>
    %993 = arith.mulf %991, %992 : vector<8x1xf32>
    %994 = vector.broadcast %993 : vector<8x1xf32> to vector<8x256xf32>
    %995 = arith.subf %989, %994 : vector<8x256xf32>
    %996 = arith.mulf %995, %995 : vector<8x256xf32>
    %cst_296 = arith.constant dense<0.000000e+00> : vector<8xf32>
    %997 = vector.multi_reduction <add>, %996, %cst_296 [1] : vector<8x256xf32> to vector<8xf32>
    %998 = vector.shape_cast %997 : vector<8xf32> to vector<8x1xf32>
    %cst_297 = arith.constant 3.906250e-03 : f32
    %999 = vector.broadcast %cst_297 : f32 to vector<8x1xf32>
    %1000 = arith.mulf %998, %999 : vector<8x1xf32>
    %cst_298 = arith.constant 9.99999974E-6 : f32
    %1001 = vector.broadcast %cst_298 : f32 to vector<8x1xf32>
    %1002 = arith.addf %1000, %1001 : vector<8x1xf32>
    %1003 = math.rsqrt %1002 : vector<8x1xf32>
    %1004 = vector.broadcast %1003 : vector<8x1xf32> to vector<8x256xf32>
    %1005 = arith.mulf %995, %1004 : vector<8x256xf32>
    %c2_299 = arith.constant 2 : index
    %c3_300 = arith.constant 3 : index
    %1006 = memref.load %arg0[%c2_299, %c3_300] : memref<5x8xf32, #tpu.memory_space<smem>>
    %1007 = vector.broadcast %1006 : f32 to vector<8x256xf32>
    %1008 = arith.mulf %1007, %60 : vector<8x256xf32>
    %c2_301 = arith.constant 2 : index
    %c1_302 = arith.constant 1 : index
    %1009 = memref.load %arg0[%c2_301, %c1_302] : memref<5x8xf32, #tpu.memory_space<smem>>
    %1010 = vector.broadcast %1009 : f32 to vector<8x256xf32>
    %1011 = arith.mulf %1010, %982 : vector<8x256xf32>
    %1012 = arith.addf %1008, %1011 : vector<8x256xf32>
    %c2_303 = arith.constant 2 : index
    %c2_304 = arith.constant 2 : index
    %1013 = memref.load %arg0[%c2_303, %c2_304] : memref<5x8xf32, #tpu.memory_space<smem>>
    %1014 = vector.broadcast %1013 : f32 to vector<8x256xf32>
    %1015 = arith.mulf %1014, %1005 : vector<8x256xf32>
    %1016 = arith.addf %1012, %1015 : vector<8x256xf32>
    %c2_305 = arith.constant 2 : index
    %c4_306 = arith.constant 4 : index
    %1017 = memref.load %arg0[%c2_305, %c4_306] : memref<5x8xf32, #tpu.memory_space<smem>>
    %1018 = vector.broadcast %1017 : f32 to vector<8x256xf32>
    %1019 = arith.mulf %1018, %941 : vector<8x256xf32>
    %1020 = arith.addf %1016, %1019 : vector<8x256xf32>
    %c2_307 = arith.constant 2 : index
    %c5_308 = arith.constant 5 : index
    %1021 = memref.load %arg0[%c2_307, %c5_308] : memref<5x8xf32, #tpu.memory_space<smem>>
    %1022 = vector.broadcast %1021 : f32 to vector<8x256xf32>
    %1023 = arith.mulf %1022, %958 : vector<8x256xf32>
    %1024 = arith.addf %1020, %1023 : vector<8x256xf32>
    %c2_309 = arith.constant 2 : index
    %c6_310 = arith.constant 6 : index
    %1025 = memref.load %arg0[%c2_309, %c6_310] : memref<5x8xf32, #tpu.memory_space<smem>>
    %1026 = vector.broadcast %1025 : f32 to vector<8x256xf32>
    %1027 = arith.mulf %1026, %851 : vector<8x256xf32>
    %1028 = arith.addf %1024, %1027 : vector<8x256xf32>
    %c2_311 = arith.constant 2 : index
    %c7_312 = arith.constant 7 : index
    %1029 = memref.load %arg0[%c2_311, %c7_312] : memref<5x8xf32, #tpu.memory_space<smem>>
    %1030 = vector.broadcast %1029 : f32 to vector<8x256xf32>
    %1031 = arith.mulf %1030, %868 : vector<8x256xf32>
    %1032 = arith.addf %1028, %1031 : vector<8x256xf32>
    %c3_313 = arith.constant 3 : index
    %c0_314 = arith.constant 0 : index
    %c0_315 = arith.constant 0 : index
    %1033 = vector.load %arg4[%c3_313, %c0_314, %c0_315] : memref<5x8x24xf32, #tpu.memory_space<vmem>>, vector<1x8x24xf32>
    %1034 = vector.shape_cast %1033 : vector<1x8x24xf32> to vector<8x24xf32>
    %cst_316 = arith.constant 0.000000e+00 : f32
    %1035 = vector.broadcast %cst_316 : f32 to vector<8x256xf32>
    %1036 = arith.maximumf %77, %1035 : vector<8x256xf32>
    %c4_i32_317 = arith.constant 4 : i32
    %1037 = tpu.dynamic_rotate %1036 by %c4_i32_317 dim 1 : vector<8x256xf32>, i32 -> vector<8x256xf32>
    %cst_318 = arith.constant 0.000000e+00 : f32
    %1038 = vector.broadcast %cst_318 : f32 to vector<8x256xf32>
    %1039 = arith.select %3, %1037, %1038 : vector<8x256xi1>, vector<8x256xf32>
    %c2_i32_319 = arith.constant 2 : i32
    %1040 = tpu.dynamic_rotate %1036 by %c2_i32_319 dim 1 : vector<8x256xf32>, i32 -> vector<8x256xf32>
    %cst_320 = arith.constant 0.000000e+00 : f32
    %1041 = vector.broadcast %cst_320 : f32 to vector<8x256xf32>
    %1042 = arith.select %5, %1040, %1041 : vector<8x256xi1>, vector<8x256xf32>
    %c1_i32_321 = arith.constant 1 : i32
    %1043 = tpu.dynamic_rotate %1036 by %c1_i32_321 dim 1 : vector<8x256xf32>, i32 -> vector<8x256xf32>
    %cst_322 = arith.constant 0.000000e+00 : f32
    %1044 = vector.broadcast %cst_322 : f32 to vector<8x256xf32>
    %1045 = arith.select %7, %1043, %1044 : vector<8x256xi1>, vector<8x256xf32>
    %c255_i32_323 = arith.constant 255 : i32
    %1046 = tpu.dynamic_rotate %1036 by %c255_i32_323 dim 1 : vector<8x256xf32>, i32 -> vector<8x256xf32>
    %cst_324 = arith.constant 0.000000e+00 : f32
    %1047 = vector.broadcast %cst_324 : f32 to vector<8x256xf32>
    %1048 = arith.select %9, %1046, %1047 : vector<8x256xi1>, vector<8x256xf32>
    %c254_i32_325 = arith.constant 254 : i32
    %1049 = tpu.dynamic_rotate %1036 by %c254_i32_325 dim 1 : vector<8x256xf32>, i32 -> vector<8x256xf32>
    %cst_326 = arith.constant 0.000000e+00 : f32
    %1050 = vector.broadcast %cst_326 : f32 to vector<8x256xf32>
    %1051 = arith.select %11, %1049, %1050 : vector<8x256xi1>, vector<8x256xf32>
    %c252_i32_327 = arith.constant 252 : i32
    %1052 = tpu.dynamic_rotate %1036 by %c252_i32_327 dim 1 : vector<8x256xf32>, i32 -> vector<8x256xf32>
    %cst_328 = arith.constant 0.000000e+00 : f32
    %1053 = vector.broadcast %cst_328 : f32 to vector<8x256xf32>
    %1054 = arith.select %13, %1052, %1053 : vector<8x256xi1>, vector<8x256xf32>
    %1055 = vector.extract_strided_slice %1034 {offsets = [0, 0], sizes = [8, 1], strides = [1, 1]} : vector<8x24xf32> to vector<8x1xf32>
    %1056 = vector.broadcast %1055 : vector<8x1xf32> to vector<8x256xf32>
    %1057 = arith.mulf %1056, %1045 : vector<8x256xf32>
    %1058 = vector.extract_strided_slice %1034 {offsets = [0, 1], sizes = [8, 1], strides = [1, 1]} : vector<8x24xf32> to vector<8x1xf32>
    %1059 = vector.broadcast %1058 : vector<8x1xf32> to vector<8x256xf32>
    %1060 = arith.mulf %1059, %1036 : vector<8x256xf32>
    %1061 = arith.addf %1057, %1060 : vector<8x256xf32>
    %1062 = vector.extract_strided_slice %1034 {offsets = [0, 2], sizes = [8, 1], strides = [1, 1]} : vector<8x24xf32> to vector<8x1xf32>
    %1063 = vector.broadcast %1062 : vector<8x1xf32> to vector<8x256xf32>
    %1064 = arith.mulf %1063, %1048 : vector<8x256xf32>
    %1065 = arith.addf %1061, %1064 : vector<8x256xf32>
    %1066 = vector.extract_strided_slice %1034 {offsets = [0, 6], sizes = [8, 1], strides = [1, 1]} : vector<8x24xf32> to vector<8x1xf32>
    %1067 = vector.broadcast %1066 : vector<8x1xf32> to vector<8x256xf32>
    %1068 = arith.mulf %1067, %1042 : vector<8x256xf32>
    %1069 = vector.extract_strided_slice %1034 {offsets = [0, 7], sizes = [8, 1], strides = [1, 1]} : vector<8x24xf32> to vector<8x1xf32>
    %1070 = vector.broadcast %1069 : vector<8x1xf32> to vector<8x256xf32>
    %1071 = arith.mulf %1070, %1045 : vector<8x256xf32>
    %1072 = arith.addf %1068, %1071 : vector<8x256xf32>
    %1073 = vector.extract_strided_slice %1034 {offsets = [0, 8], sizes = [8, 1], strides = [1, 1]} : vector<8x24xf32> to vector<8x1xf32>
    %1074 = vector.broadcast %1073 : vector<8x1xf32> to vector<8x256xf32>
    %1075 = arith.mulf %1074, %1036 : vector<8x256xf32>
    %1076 = arith.addf %1072, %1075 : vector<8x256xf32>
    %1077 = vector.extract_strided_slice %1034 {offsets = [0, 9], sizes = [8, 1], strides = [1, 1]} : vector<8x24xf32> to vector<8x1xf32>
    %1078 = vector.broadcast %1077 : vector<8x1xf32> to vector<8x256xf32>
    %1079 = arith.mulf %1078, %1048 : vector<8x256xf32>
    %1080 = arith.addf %1076, %1079 : vector<8x256xf32>
    %1081 = vector.extract_strided_slice %1034 {offsets = [0, 10], sizes = [8, 1], strides = [1, 1]} : vector<8x24xf32> to vector<8x1xf32>
    %1082 = vector.broadcast %1081 : vector<8x1xf32> to vector<8x256xf32>
    %1083 = arith.mulf %1082, %1051 : vector<8x256xf32>
    %1084 = arith.addf %1080, %1083 : vector<8x256xf32>
    %1085 = vector.extract_strided_slice %1034 {offsets = [0, 16], sizes = [8, 1], strides = [1, 1]} : vector<8x24xf32> to vector<8x1xf32>
    %1086 = vector.broadcast %1085 : vector<8x1xf32> to vector<8x256xf32>
    %1087 = arith.mulf %1086, %1042 : vector<8x256xf32>
    %1088 = vector.extract_strided_slice %1034 {offsets = [0, 17], sizes = [8, 1], strides = [1, 1]} : vector<8x24xf32> to vector<8x1xf32>
    %1089 = vector.broadcast %1088 : vector<8x1xf32> to vector<8x256xf32>
    %1090 = arith.mulf %1089, %1036 : vector<8x256xf32>
    %1091 = arith.addf %1087, %1090 : vector<8x256xf32>
    %1092 = vector.extract_strided_slice %1034 {offsets = [0, 18], sizes = [8, 1], strides = [1, 1]} : vector<8x24xf32> to vector<8x1xf32>
    %1093 = vector.broadcast %1092 : vector<8x1xf32> to vector<8x256xf32>
    %1094 = arith.mulf %1093, %1051 : vector<8x256xf32>
    %1095 = arith.addf %1091, %1094 : vector<8x256xf32>
    %1096 = vector.extract_strided_slice %1034 {offsets = [0, 19], sizes = [8, 1], strides = [1, 1]} : vector<8x24xf32> to vector<8x1xf32>
    %1097 = vector.broadcast %1096 : vector<8x1xf32> to vector<8x256xf32>
    %1098 = arith.mulf %1097, %1039 : vector<8x256xf32>
    %1099 = vector.extract_strided_slice %1034 {offsets = [0, 20], sizes = [8, 1], strides = [1, 1]} : vector<8x24xf32> to vector<8x1xf32>
    %1100 = vector.broadcast %1099 : vector<8x1xf32> to vector<8x256xf32>
    %1101 = arith.mulf %1100, %1042 : vector<8x256xf32>
    %1102 = arith.addf %1098, %1101 : vector<8x256xf32>
    %1103 = vector.extract_strided_slice %1034 {offsets = [0, 21], sizes = [8, 1], strides = [1, 1]} : vector<8x24xf32> to vector<8x1xf32>
    %1104 = vector.broadcast %1103 : vector<8x1xf32> to vector<8x256xf32>
    %1105 = arith.mulf %1104, %1036 : vector<8x256xf32>
    %1106 = arith.addf %1102, %1105 : vector<8x256xf32>
    %1107 = vector.extract_strided_slice %1034 {offsets = [0, 22], sizes = [8, 1], strides = [1, 1]} : vector<8x24xf32> to vector<8x1xf32>
    %1108 = vector.broadcast %1107 : vector<8x1xf32> to vector<8x256xf32>
    %1109 = arith.mulf %1108, %1051 : vector<8x256xf32>
    %1110 = arith.addf %1106, %1109 : vector<8x256xf32>
    %1111 = vector.extract_strided_slice %1034 {offsets = [0, 23], sizes = [8, 1], strides = [1, 1]} : vector<8x24xf32> to vector<8x1xf32>
    %1112 = vector.broadcast %1111 : vector<8x1xf32> to vector<8x256xf32>
    %1113 = arith.mulf %1112, %1054 : vector<8x256xf32>
    %1114 = arith.addf %1110, %1113 : vector<8x256xf32>
    %1115 = tpu.concatenate %1065, %1084, %1095, %1114 in 0 : vector<8x256xf32>, vector<8x256xf32>, vector<8x256xf32>, vector<8x256xf32> -> vector<32x256xf32>
    %c3_329 = arith.constant 3 : index
    %c0_330 = arith.constant 0 : index
    %c0_331 = arith.constant 0 : index
    %1116 = vector.load %arg5[%c3_329, %c0_330, %c0_331] : memref<5x32x32xf32, #tpu.memory_space<vmem>>, vector<1x32x32xf32>
    %1117 = vector.shape_cast %1116 : vector<1x32x32xf32> to vector<32x32xf32>
    %cst_332 = arith.constant dense<0.000000e+00> : vector<32x256xf32>
    %1118 = tpu.matmul %1117, %1115, %cst_332 {dimension_numbers = #tpu.dot_dimension_numbers<[1], [0], [0], [1], [0, 0, 1, 1], [], []>} : vector<32x32xf32>, vector<32x256xf32>, vector<32x256xf32> -> vector<32x256xf32>
    %1119 = vector.extract_strided_slice %1118 {offsets = [0, 0], sizes = [8, 256], strides = [1, 1]} : vector<32x256xf32> to vector<8x256xf32>
    %cst_333 = arith.constant dense<0.000000e+00> : vector<8xf32>
    %1120 = vector.multi_reduction <add>, %1119, %cst_333 [1] : vector<8x256xf32> to vector<8xf32>
    %1121 = vector.shape_cast %1120 : vector<8xf32> to vector<8x1xf32>
    %cst_334 = arith.constant 3.906250e-03 : f32
    %1122 = vector.broadcast %cst_334 : f32 to vector<8x1xf32>
    %1123 = arith.mulf %1121, %1122 : vector<8x1xf32>
    %1124 = vector.broadcast %1123 : vector<8x1xf32> to vector<8x256xf32>
    %1125 = arith.subf %1119, %1124 : vector<8x256xf32>
    %1126 = arith.mulf %1125, %1125 : vector<8x256xf32>
    %cst_335 = arith.constant dense<0.000000e+00> : vector<8xf32>
    %1127 = vector.multi_reduction <add>, %1126, %cst_335 [1] : vector<8x256xf32> to vector<8xf32>
    %1128 = vector.shape_cast %1127 : vector<8xf32> to vector<8x1xf32>
    %cst_336 = arith.constant 3.906250e-03 : f32
    %1129 = vector.broadcast %cst_336 : f32 to vector<8x1xf32>
    %1130 = arith.mulf %1128, %1129 : vector<8x1xf32>
    %cst_337 = arith.constant 9.99999974E-6 : f32
    %1131 = vector.broadcast %cst_337 : f32 to vector<8x1xf32>
    %1132 = arith.addf %1130, %1131 : vector<8x1xf32>
    %1133 = math.rsqrt %1132 : vector<8x1xf32>
    %1134 = vector.broadcast %1133 : vector<8x1xf32> to vector<8x256xf32>
    %1135 = arith.mulf %1125, %1134 : vector<8x256xf32>
    %1136 = vector.extract_strided_slice %1118 {offsets = [8, 0], sizes = [8, 256], strides = [1, 1]} : vector<32x256xf32> to vector<8x256xf32>
    %cst_338 = arith.constant dense<0.000000e+00> : vector<8xf32>
    %1137 = vector.multi_reduction <add>, %1136, %cst_338 [1] : vector<8x256xf32> to vector<8xf32>
    %1138 = vector.shape_cast %1137 : vector<8xf32> to vector<8x1xf32>
    %cst_339 = arith.constant 3.906250e-03 : f32
    %1139 = vector.broadcast %cst_339 : f32 to vector<8x1xf32>
    %1140 = arith.mulf %1138, %1139 : vector<8x1xf32>
    %1141 = vector.broadcast %1140 : vector<8x1xf32> to vector<8x256xf32>
    %1142 = arith.subf %1136, %1141 : vector<8x256xf32>
    %1143 = arith.mulf %1142, %1142 : vector<8x256xf32>
    %cst_340 = arith.constant dense<0.000000e+00> : vector<8xf32>
    %1144 = vector.multi_reduction <add>, %1143, %cst_340 [1] : vector<8x256xf32> to vector<8xf32>
    %1145 = vector.shape_cast %1144 : vector<8xf32> to vector<8x1xf32>
    %cst_341 = arith.constant 3.906250e-03 : f32
    %1146 = vector.broadcast %cst_341 : f32 to vector<8x1xf32>
    %1147 = arith.mulf %1145, %1146 : vector<8x1xf32>
    %cst_342 = arith.constant 9.99999974E-6 : f32
    %1148 = vector.broadcast %cst_342 : f32 to vector<8x1xf32>
    %1149 = arith.addf %1147, %1148 : vector<8x1xf32>
    %1150 = math.rsqrt %1149 : vector<8x1xf32>
    %1151 = vector.broadcast %1150 : vector<8x1xf32> to vector<8x256xf32>
    %1152 = arith.mulf %1142, %1151 : vector<8x256xf32>
    %1153 = vector.extract_strided_slice %1118 {offsets = [16, 0], sizes = [8, 256], strides = [1, 1]} : vector<32x256xf32> to vector<8x256xf32>
    %cst_343 = arith.constant dense<0.000000e+00> : vector<8xf32>
    %1154 = vector.multi_reduction <add>, %1153, %cst_343 [1] : vector<8x256xf32> to vector<8xf32>
    %1155 = vector.shape_cast %1154 : vector<8xf32> to vector<8x1xf32>
    %cst_344 = arith.constant 3.906250e-03 : f32
    %1156 = vector.broadcast %cst_344 : f32 to vector<8x1xf32>
    %1157 = arith.mulf %1155, %1156 : vector<8x1xf32>
    %1158 = vector.broadcast %1157 : vector<8x1xf32> to vector<8x256xf32>
    %1159 = arith.subf %1153, %1158 : vector<8x256xf32>
    %1160 = arith.mulf %1159, %1159 : vector<8x256xf32>
    %cst_345 = arith.constant dense<0.000000e+00> : vector<8xf32>
    %1161 = vector.multi_reduction <add>, %1160, %cst_345 [1] : vector<8x256xf32> to vector<8xf32>
    %1162 = vector.shape_cast %1161 : vector<8xf32> to vector<8x1xf32>
    %cst_346 = arith.constant 3.906250e-03 : f32
    %1163 = vector.broadcast %cst_346 : f32 to vector<8x1xf32>
    %1164 = arith.mulf %1162, %1163 : vector<8x1xf32>
    %cst_347 = arith.constant 9.99999974E-6 : f32
    %1165 = vector.broadcast %cst_347 : f32 to vector<8x1xf32>
    %1166 = arith.addf %1164, %1165 : vector<8x1xf32>
    %1167 = math.rsqrt %1166 : vector<8x1xf32>
    %1168 = vector.broadcast %1167 : vector<8x1xf32> to vector<8x256xf32>
    %1169 = arith.mulf %1159, %1168 : vector<8x256xf32>
    %1170 = vector.extract_strided_slice %1118 {offsets = [24, 0], sizes = [8, 256], strides = [1, 1]} : vector<32x256xf32> to vector<8x256xf32>
    %cst_348 = arith.constant dense<0.000000e+00> : vector<8xf32>
    %1171 = vector.multi_reduction <add>, %1170, %cst_348 [1] : vector<8x256xf32> to vector<8xf32>
    %1172 = vector.shape_cast %1171 : vector<8xf32> to vector<8x1xf32>
    %cst_349 = arith.constant 3.906250e-03 : f32
    %1173 = vector.broadcast %cst_349 : f32 to vector<8x1xf32>
    %1174 = arith.mulf %1172, %1173 : vector<8x1xf32>
    %1175 = vector.broadcast %1174 : vector<8x1xf32> to vector<8x256xf32>
    %1176 = arith.subf %1170, %1175 : vector<8x256xf32>
    %1177 = arith.mulf %1176, %1176 : vector<8x256xf32>
    %cst_350 = arith.constant dense<0.000000e+00> : vector<8xf32>
    %1178 = vector.multi_reduction <add>, %1177, %cst_350 [1] : vector<8x256xf32> to vector<8xf32>
    %1179 = vector.shape_cast %1178 : vector<8xf32> to vector<8x1xf32>
    %cst_351 = arith.constant 3.906250e-03 : f32
    %1180 = vector.broadcast %cst_351 : f32 to vector<8x1xf32>
    %1181 = arith.mulf %1179, %1180 : vector<8x1xf32>
    %cst_352 = arith.constant 9.99999974E-6 : f32
    %1182 = vector.broadcast %cst_352 : f32 to vector<8x1xf32>
    %1183 = arith.addf %1181, %1182 : vector<8x1xf32>
    %1184 = math.rsqrt %1183 : vector<8x1xf32>
    %1185 = vector.broadcast %1184 : vector<8x1xf32> to vector<8x256xf32>
    %1186 = arith.mulf %1176, %1185 : vector<8x256xf32>
    %cst_353 = arith.constant 0.000000e+00 : f32
    %1187 = vector.broadcast %cst_353 : f32 to vector<8x256xf32>
    %1188 = arith.maximumf %1135, %1187 : vector<8x256xf32>
    %cst_354 = arith.constant 0.000000e+00 : f32
    %1189 = vector.broadcast %cst_354 : f32 to vector<8x256xf32>
    %1190 = arith.maximumf %1152, %1189 : vector<8x256xf32>
    %c1_i32_355 = arith.constant 1 : i32
    %1191 = tpu.dynamic_rotate %1188 by %c1_i32_355 dim 1 : vector<8x256xf32>, i32 -> vector<8x256xf32>
    %cst_356 = arith.constant 0.000000e+00 : f32
    %1192 = vector.broadcast %cst_356 : f32 to vector<8x256xf32>
    %1193 = arith.select %7, %1191, %1192 : vector<8x256xi1>, vector<8x256xf32>
    %c255_i32_357 = arith.constant 255 : i32
    %1194 = tpu.dynamic_rotate %1188 by %c255_i32_357 dim 1 : vector<8x256xf32>, i32 -> vector<8x256xf32>
    %cst_358 = arith.constant 0.000000e+00 : f32
    %1195 = vector.broadcast %cst_358 : f32 to vector<8x256xf32>
    %1196 = arith.select %9, %1194, %1195 : vector<8x256xi1>, vector<8x256xf32>
    %c2_i32_359 = arith.constant 2 : i32
    %1197 = tpu.dynamic_rotate %1190 by %c2_i32_359 dim 1 : vector<8x256xf32>, i32 -> vector<8x256xf32>
    %cst_360 = arith.constant 0.000000e+00 : f32
    %1198 = vector.broadcast %cst_360 : f32 to vector<8x256xf32>
    %1199 = arith.select %5, %1197, %1198 : vector<8x256xi1>, vector<8x256xf32>
    %c1_i32_361 = arith.constant 1 : i32
    %1200 = tpu.dynamic_rotate %1190 by %c1_i32_361 dim 1 : vector<8x256xf32>, i32 -> vector<8x256xf32>
    %cst_362 = arith.constant 0.000000e+00 : f32
    %1201 = vector.broadcast %cst_362 : f32 to vector<8x256xf32>
    %1202 = arith.select %7, %1200, %1201 : vector<8x256xi1>, vector<8x256xf32>
    %c255_i32_363 = arith.constant 255 : i32
    %1203 = tpu.dynamic_rotate %1190 by %c255_i32_363 dim 1 : vector<8x256xf32>, i32 -> vector<8x256xf32>
    %cst_364 = arith.constant 0.000000e+00 : f32
    %1204 = vector.broadcast %cst_364 : f32 to vector<8x256xf32>
    %1205 = arith.select %9, %1203, %1204 : vector<8x256xi1>, vector<8x256xf32>
    %c254_i32_365 = arith.constant 254 : i32
    %1206 = tpu.dynamic_rotate %1190 by %c254_i32_365 dim 1 : vector<8x256xf32>, i32 -> vector<8x256xf32>
    %cst_366 = arith.constant 0.000000e+00 : f32
    %1207 = vector.broadcast %cst_366 : f32 to vector<8x256xf32>
    %1208 = arith.select %11, %1206, %1207 : vector<8x256xi1>, vector<8x256xf32>
    %1209 = vector.extract_strided_slice %1034 {offsets = [0, 3], sizes = [8, 1], strides = [1, 1]} : vector<8x24xf32> to vector<8x1xf32>
    %1210 = vector.broadcast %1209 : vector<8x1xf32> to vector<8x256xf32>
    %1211 = arith.mulf %1210, %1193 : vector<8x256xf32>
    %1212 = vector.extract_strided_slice %1034 {offsets = [0, 4], sizes = [8, 1], strides = [1, 1]} : vector<8x24xf32> to vector<8x1xf32>
    %1213 = vector.broadcast %1212 : vector<8x1xf32> to vector<8x256xf32>
    %1214 = arith.mulf %1213, %1188 : vector<8x256xf32>
    %1215 = arith.addf %1211, %1214 : vector<8x256xf32>
    %1216 = vector.extract_strided_slice %1034 {offsets = [0, 5], sizes = [8, 1], strides = [1, 1]} : vector<8x24xf32> to vector<8x1xf32>
    %1217 = vector.broadcast %1216 : vector<8x1xf32> to vector<8x256xf32>
    %1218 = arith.mulf %1217, %1196 : vector<8x256xf32>
    %1219 = arith.addf %1215, %1218 : vector<8x256xf32>
    %1220 = vector.extract_strided_slice %1034 {offsets = [0, 11], sizes = [8, 1], strides = [1, 1]} : vector<8x24xf32> to vector<8x1xf32>
    %1221 = vector.broadcast %1220 : vector<8x1xf32> to vector<8x256xf32>
    %1222 = arith.mulf %1221, %1199 : vector<8x256xf32>
    %1223 = vector.extract_strided_slice %1034 {offsets = [0, 12], sizes = [8, 1], strides = [1, 1]} : vector<8x24xf32> to vector<8x1xf32>
    %1224 = vector.broadcast %1223 : vector<8x1xf32> to vector<8x256xf32>
    %1225 = arith.mulf %1224, %1202 : vector<8x256xf32>
    %1226 = arith.addf %1222, %1225 : vector<8x256xf32>
    %1227 = vector.extract_strided_slice %1034 {offsets = [0, 13], sizes = [8, 1], strides = [1, 1]} : vector<8x24xf32> to vector<8x1xf32>
    %1228 = vector.broadcast %1227 : vector<8x1xf32> to vector<8x256xf32>
    %1229 = arith.mulf %1228, %1190 : vector<8x256xf32>
    %1230 = arith.addf %1226, %1229 : vector<8x256xf32>
    %1231 = vector.extract_strided_slice %1034 {offsets = [0, 14], sizes = [8, 1], strides = [1, 1]} : vector<8x24xf32> to vector<8x1xf32>
    %1232 = vector.broadcast %1231 : vector<8x1xf32> to vector<8x256xf32>
    %1233 = arith.mulf %1232, %1205 : vector<8x256xf32>
    %1234 = arith.addf %1230, %1233 : vector<8x256xf32>
    %1235 = vector.extract_strided_slice %1034 {offsets = [0, 15], sizes = [8, 1], strides = [1, 1]} : vector<8x24xf32> to vector<8x1xf32>
    %1236 = vector.broadcast %1235 : vector<8x1xf32> to vector<8x256xf32>
    %1237 = arith.mulf %1236, %1208 : vector<8x256xf32>
    %1238 = arith.addf %1234, %1237 : vector<8x256xf32>
    %1239 = tpu.concatenate %1219, %1238 in 0 : vector<8x256xf32>, vector<8x256xf32> -> vector<16x256xf32>
    %c3_367 = arith.constant 3 : index
    %c0_368 = arith.constant 0 : index
    %c0_369 = arith.constant 0 : index
    %1240 = vector.load %arg6[%c3_367, %c0_368, %c0_369] : memref<5x16x16xf32, #tpu.memory_space<vmem>>, vector<1x16x16xf32>
    %1241 = vector.shape_cast %1240 : vector<1x16x16xf32> to vector<16x16xf32>
    %cst_370 = arith.constant dense<0.000000e+00> : vector<16x256xf32>
    %1242 = tpu.matmul %1241, %1239, %cst_370 {dimension_numbers = #tpu.dot_dimension_numbers<[1], [0], [0], [1], [0, 0, 1, 1], [], []>} : vector<16x16xf32>, vector<16x256xf32>, vector<16x256xf32> -> vector<16x256xf32>
    %1243 = vector.extract_strided_slice %1242 {offsets = [0, 0], sizes = [8, 256], strides = [1, 1]} : vector<16x256xf32> to vector<8x256xf32>
    %cst_371 = arith.constant dense<0.000000e+00> : vector<8xf32>
    %1244 = vector.multi_reduction <add>, %1243, %cst_371 [1] : vector<8x256xf32> to vector<8xf32>
    %1245 = vector.shape_cast %1244 : vector<8xf32> to vector<8x1xf32>
    %cst_372 = arith.constant 3.906250e-03 : f32
    %1246 = vector.broadcast %cst_372 : f32 to vector<8x1xf32>
    %1247 = arith.mulf %1245, %1246 : vector<8x1xf32>
    %1248 = vector.broadcast %1247 : vector<8x1xf32> to vector<8x256xf32>
    %1249 = arith.subf %1243, %1248 : vector<8x256xf32>
    %1250 = arith.mulf %1249, %1249 : vector<8x256xf32>
    %cst_373 = arith.constant dense<0.000000e+00> : vector<8xf32>
    %1251 = vector.multi_reduction <add>, %1250, %cst_373 [1] : vector<8x256xf32> to vector<8xf32>
    %1252 = vector.shape_cast %1251 : vector<8xf32> to vector<8x1xf32>
    %cst_374 = arith.constant 3.906250e-03 : f32
    %1253 = vector.broadcast %cst_374 : f32 to vector<8x1xf32>
    %1254 = arith.mulf %1252, %1253 : vector<8x1xf32>
    %cst_375 = arith.constant 9.99999974E-6 : f32
    %1255 = vector.broadcast %cst_375 : f32 to vector<8x1xf32>
    %1256 = arith.addf %1254, %1255 : vector<8x1xf32>
    %1257 = math.rsqrt %1256 : vector<8x1xf32>
    %1258 = vector.broadcast %1257 : vector<8x1xf32> to vector<8x256xf32>
    %1259 = arith.mulf %1249, %1258 : vector<8x256xf32>
    %1260 = vector.extract_strided_slice %1242 {offsets = [8, 0], sizes = [8, 256], strides = [1, 1]} : vector<16x256xf32> to vector<8x256xf32>
    %cst_376 = arith.constant dense<0.000000e+00> : vector<8xf32>
    %1261 = vector.multi_reduction <add>, %1260, %cst_376 [1] : vector<8x256xf32> to vector<8xf32>
    %1262 = vector.shape_cast %1261 : vector<8xf32> to vector<8x1xf32>
    %cst_377 = arith.constant 3.906250e-03 : f32
    %1263 = vector.broadcast %cst_377 : f32 to vector<8x1xf32>
    %1264 = arith.mulf %1262, %1263 : vector<8x1xf32>
    %1265 = vector.broadcast %1264 : vector<8x1xf32> to vector<8x256xf32>
    %1266 = arith.subf %1260, %1265 : vector<8x256xf32>
    %1267 = arith.mulf %1266, %1266 : vector<8x256xf32>
    %cst_378 = arith.constant dense<0.000000e+00> : vector<8xf32>
    %1268 = vector.multi_reduction <add>, %1267, %cst_378 [1] : vector<8x256xf32> to vector<8xf32>
    %1269 = vector.shape_cast %1268 : vector<8xf32> to vector<8x1xf32>
    %cst_379 = arith.constant 3.906250e-03 : f32
    %1270 = vector.broadcast %cst_379 : f32 to vector<8x1xf32>
    %1271 = arith.mulf %1269, %1270 : vector<8x1xf32>
    %cst_380 = arith.constant 9.99999974E-6 : f32
    %1272 = vector.broadcast %cst_380 : f32 to vector<8x1xf32>
    %1273 = arith.addf %1271, %1272 : vector<8x1xf32>
    %1274 = math.rsqrt %1273 : vector<8x1xf32>
    %1275 = vector.broadcast %1274 : vector<8x1xf32> to vector<8x256xf32>
    %1276 = arith.mulf %1266, %1275 : vector<8x256xf32>
    %c1_i32_381 = arith.constant 1 : i32
    %1277 = tpu.dynamic_rotate %77 by %c1_i32_381 dim 1 : vector<8x256xf32>, i32 -> vector<8x256xf32>
    %c255_i32_382 = arith.constant 255 : i32
    %1278 = tpu.dynamic_rotate %77 by %c255_i32_382 dim 1 : vector<8x256xf32>, i32 -> vector<8x256xf32>
    %cst_383 = arith.constant 0xFF800000 : f32
    %1279 = vector.broadcast %cst_383 : f32 to vector<8x256xf32>
    %1280 = arith.select %7, %1277, %1279 : vector<8x256xi1>, vector<8x256xf32>
    %cst_384 = arith.constant 0xFF800000 : f32
    %1281 = vector.broadcast %cst_384 : f32 to vector<8x256xf32>
    %1282 = arith.select %9, %1278, %1281 : vector<8x256xi1>, vector<8x256xf32>
    %1283 = arith.maximumf %1280, %77 : vector<8x256xf32>
    %1284 = arith.maximumf %1283, %1282 : vector<8x256xf32>
    %cst_385 = arith.constant dense<0.000000e+00> : vector<8xf32>
    %1285 = vector.multi_reduction <add>, %1284, %cst_385 [1] : vector<8x256xf32> to vector<8xf32>
    %1286 = vector.shape_cast %1285 : vector<8xf32> to vector<8x1xf32>
    %cst_386 = arith.constant 3.906250e-03 : f32
    %1287 = vector.broadcast %cst_386 : f32 to vector<8x1xf32>
    %1288 = arith.mulf %1286, %1287 : vector<8x1xf32>
    %1289 = vector.broadcast %1288 : vector<8x1xf32> to vector<8x256xf32>
    %1290 = arith.subf %1284, %1289 : vector<8x256xf32>
    %1291 = arith.mulf %1290, %1290 : vector<8x256xf32>
    %cst_387 = arith.constant dense<0.000000e+00> : vector<8xf32>
    %1292 = vector.multi_reduction <add>, %1291, %cst_387 [1] : vector<8x256xf32> to vector<8xf32>
    %1293 = vector.shape_cast %1292 : vector<8xf32> to vector<8x1xf32>
    %cst_388 = arith.constant 3.906250e-03 : f32
    %1294 = vector.broadcast %cst_388 : f32 to vector<8x1xf32>
    %1295 = arith.mulf %1293, %1294 : vector<8x1xf32>
    %cst_389 = arith.constant 9.99999974E-6 : f32
    %1296 = vector.broadcast %cst_389 : f32 to vector<8x1xf32>
    %1297 = arith.addf %1295, %1296 : vector<8x1xf32>
    %1298 = math.rsqrt %1297 : vector<8x1xf32>
    %1299 = vector.broadcast %1298 : vector<8x1xf32> to vector<8x256xf32>
    %1300 = arith.mulf %1290, %1299 : vector<8x256xf32>
    %cst_390 = arith.constant 0.000000e+00 : f32
    %1301 = vector.broadcast %cst_390 : f32 to vector<8x256xf32>
    %1302 = arith.select %7, %1277, %1301 : vector<8x256xi1>, vector<8x256xf32>
    %cst_391 = arith.constant 0.000000e+00 : f32
    %1303 = vector.broadcast %cst_391 : f32 to vector<8x256xf32>
    %1304 = arith.select %9, %1278, %1303 : vector<8x256xi1>, vector<8x256xf32>
    %1305 = arith.addf %1302, %77 : vector<8x256xf32>
    %1306 = arith.addf %1305, %1304 : vector<8x256xf32>
    %1307 = arith.mulf %1306, %26 : vector<8x256xf32>
    %cst_392 = arith.constant dense<0.000000e+00> : vector<8xf32>
    %1308 = vector.multi_reduction <add>, %1307, %cst_392 [1] : vector<8x256xf32> to vector<8xf32>
    %1309 = vector.shape_cast %1308 : vector<8xf32> to vector<8x1xf32>
    %cst_393 = arith.constant 3.906250e-03 : f32
    %1310 = vector.broadcast %cst_393 : f32 to vector<8x1xf32>
    %1311 = arith.mulf %1309, %1310 : vector<8x1xf32>
    %1312 = vector.broadcast %1311 : vector<8x1xf32> to vector<8x256xf32>
    %1313 = arith.subf %1307, %1312 : vector<8x256xf32>
    %1314 = arith.mulf %1313, %1313 : vector<8x256xf32>
    %cst_394 = arith.constant dense<0.000000e+00> : vector<8xf32>
    %1315 = vector.multi_reduction <add>, %1314, %cst_394 [1] : vector<8x256xf32> to vector<8xf32>
    %1316 = vector.shape_cast %1315 : vector<8xf32> to vector<8x1xf32>
    %cst_395 = arith.constant 3.906250e-03 : f32
    %1317 = vector.broadcast %cst_395 : f32 to vector<8x1xf32>
    %1318 = arith.mulf %1316, %1317 : vector<8x1xf32>
    %cst_396 = arith.constant 9.99999974E-6 : f32
    %1319 = vector.broadcast %cst_396 : f32 to vector<8x1xf32>
    %1320 = arith.addf %1318, %1319 : vector<8x1xf32>
    %1321 = math.rsqrt %1320 : vector<8x1xf32>
    %1322 = vector.broadcast %1321 : vector<8x1xf32> to vector<8x256xf32>
    %1323 = arith.mulf %1313, %1322 : vector<8x256xf32>
    %c3_397 = arith.constant 3 : index
    %c3_398 = arith.constant 3 : index
    %1324 = memref.load %arg0[%c3_397, %c3_398] : memref<5x8xf32, #tpu.memory_space<smem>>
    %1325 = vector.broadcast %1324 : f32 to vector<8x256xf32>
    %1326 = arith.mulf %1325, %77 : vector<8x256xf32>
    %c3_399 = arith.constant 3 : index
    %c1_400 = arith.constant 1 : index
    %1327 = memref.load %arg0[%c3_399, %c1_400] : memref<5x8xf32, #tpu.memory_space<smem>>
    %1328 = vector.broadcast %1327 : f32 to vector<8x256xf32>
    %1329 = arith.mulf %1328, %1300 : vector<8x256xf32>
    %1330 = arith.addf %1326, %1329 : vector<8x256xf32>
    %c3_401 = arith.constant 3 : index
    %c2_402 = arith.constant 2 : index
    %1331 = memref.load %arg0[%c3_401, %c2_402] : memref<5x8xf32, #tpu.memory_space<smem>>
    %1332 = vector.broadcast %1331 : f32 to vector<8x256xf32>
    %1333 = arith.mulf %1332, %1323 : vector<8x256xf32>
    %1334 = arith.addf %1330, %1333 : vector<8x256xf32>
    %c3_403 = arith.constant 3 : index
    %c4_404 = arith.constant 4 : index
    %1335 = memref.load %arg0[%c3_403, %c4_404] : memref<5x8xf32, #tpu.memory_space<smem>>
    %1336 = vector.broadcast %1335 : f32 to vector<8x256xf32>
    %1337 = arith.mulf %1336, %1259 : vector<8x256xf32>
    %1338 = arith.addf %1334, %1337 : vector<8x256xf32>
    %c3_405 = arith.constant 3 : index
    %c5_406 = arith.constant 5 : index
    %1339 = memref.load %arg0[%c3_405, %c5_406] : memref<5x8xf32, #tpu.memory_space<smem>>
    %1340 = vector.broadcast %1339 : f32 to vector<8x256xf32>
    %1341 = arith.mulf %1340, %1276 : vector<8x256xf32>
    %1342 = arith.addf %1338, %1341 : vector<8x256xf32>
    %c3_407 = arith.constant 3 : index
    %c6_408 = arith.constant 6 : index
    %1343 = memref.load %arg0[%c3_407, %c6_408] : memref<5x8xf32, #tpu.memory_space<smem>>
    %1344 = vector.broadcast %1343 : f32 to vector<8x256xf32>
    %1345 = arith.mulf %1344, %1169 : vector<8x256xf32>
    %1346 = arith.addf %1342, %1345 : vector<8x256xf32>
    %c3_409 = arith.constant 3 : index
    %c7_410 = arith.constant 7 : index
    %1347 = memref.load %arg0[%c3_409, %c7_410] : memref<5x8xf32, #tpu.memory_space<smem>>
    %1348 = vector.broadcast %1347 : f32 to vector<8x256xf32>
    %1349 = arith.mulf %1348, %1186 : vector<8x256xf32>
    %1350 = arith.addf %1346, %1349 : vector<8x256xf32>
    %1351 = arith.addf %1032, %1350 : vector<8x256xf32>
    %c4_411 = arith.constant 4 : index
    %c0_412 = arith.constant 0 : index
    %c0_413 = arith.constant 0 : index
    %1352 = vector.load %arg4[%c4_411, %c0_412, %c0_413] : memref<5x8x24xf32, #tpu.memory_space<vmem>>, vector<1x8x24xf32>
    %1353 = vector.shape_cast %1352 : vector<1x8x24xf32> to vector<8x24xf32>
    %cst_414 = arith.constant 0.000000e+00 : f32
    %1354 = vector.broadcast %cst_414 : f32 to vector<8x256xf32>
    %1355 = arith.maximumf %714, %1354 : vector<8x256xf32>
    %c4_i32_415 = arith.constant 4 : i32
    %1356 = tpu.dynamic_rotate %1355 by %c4_i32_415 dim 1 : vector<8x256xf32>, i32 -> vector<8x256xf32>
    %cst_416 = arith.constant 0.000000e+00 : f32
    %1357 = vector.broadcast %cst_416 : f32 to vector<8x256xf32>
    %1358 = arith.select %3, %1356, %1357 : vector<8x256xi1>, vector<8x256xf32>
    %c2_i32_417 = arith.constant 2 : i32
    %1359 = tpu.dynamic_rotate %1355 by %c2_i32_417 dim 1 : vector<8x256xf32>, i32 -> vector<8x256xf32>
    %cst_418 = arith.constant 0.000000e+00 : f32
    %1360 = vector.broadcast %cst_418 : f32 to vector<8x256xf32>
    %1361 = arith.select %5, %1359, %1360 : vector<8x256xi1>, vector<8x256xf32>
    %c1_i32_419 = arith.constant 1 : i32
    %1362 = tpu.dynamic_rotate %1355 by %c1_i32_419 dim 1 : vector<8x256xf32>, i32 -> vector<8x256xf32>
    %cst_420 = arith.constant 0.000000e+00 : f32
    %1363 = vector.broadcast %cst_420 : f32 to vector<8x256xf32>
    %1364 = arith.select %7, %1362, %1363 : vector<8x256xi1>, vector<8x256xf32>
    %c255_i32_421 = arith.constant 255 : i32
    %1365 = tpu.dynamic_rotate %1355 by %c255_i32_421 dim 1 : vector<8x256xf32>, i32 -> vector<8x256xf32>
    %cst_422 = arith.constant 0.000000e+00 : f32
    %1366 = vector.broadcast %cst_422 : f32 to vector<8x256xf32>
    %1367 = arith.select %9, %1365, %1366 : vector<8x256xi1>, vector<8x256xf32>
    %c254_i32_423 = arith.constant 254 : i32
    %1368 = tpu.dynamic_rotate %1355 by %c254_i32_423 dim 1 : vector<8x256xf32>, i32 -> vector<8x256xf32>
    %cst_424 = arith.constant 0.000000e+00 : f32
    %1369 = vector.broadcast %cst_424 : f32 to vector<8x256xf32>
    %1370 = arith.select %11, %1368, %1369 : vector<8x256xi1>, vector<8x256xf32>
    %c252_i32_425 = arith.constant 252 : i32
    %1371 = tpu.dynamic_rotate %1355 by %c252_i32_425 dim 1 : vector<8x256xf32>, i32 -> vector<8x256xf32>
    %cst_426 = arith.constant 0.000000e+00 : f32
    %1372 = vector.broadcast %cst_426 : f32 to vector<8x256xf32>
    %1373 = arith.select %13, %1371, %1372 : vector<8x256xi1>, vector<8x256xf32>
    %1374 = vector.extract_strided_slice %1353 {offsets = [0, 0], sizes = [8, 1], strides = [1, 1]} : vector<8x24xf32> to vector<8x1xf32>
    %1375 = vector.broadcast %1374 : vector<8x1xf32> to vector<8x256xf32>
    %1376 = arith.mulf %1375, %1364 : vector<8x256xf32>
    %1377 = vector.extract_strided_slice %1353 {offsets = [0, 1], sizes = [8, 1], strides = [1, 1]} : vector<8x24xf32> to vector<8x1xf32>
    %1378 = vector.broadcast %1377 : vector<8x1xf32> to vector<8x256xf32>
    %1379 = arith.mulf %1378, %1355 : vector<8x256xf32>
    %1380 = arith.addf %1376, %1379 : vector<8x256xf32>
    %1381 = vector.extract_strided_slice %1353 {offsets = [0, 2], sizes = [8, 1], strides = [1, 1]} : vector<8x24xf32> to vector<8x1xf32>
    %1382 = vector.broadcast %1381 : vector<8x1xf32> to vector<8x256xf32>
    %1383 = arith.mulf %1382, %1367 : vector<8x256xf32>
    %1384 = arith.addf %1380, %1383 : vector<8x256xf32>
    %1385 = vector.extract_strided_slice %1353 {offsets = [0, 6], sizes = [8, 1], strides = [1, 1]} : vector<8x24xf32> to vector<8x1xf32>
    %1386 = vector.broadcast %1385 : vector<8x1xf32> to vector<8x256xf32>
    %1387 = arith.mulf %1386, %1361 : vector<8x256xf32>
    %1388 = vector.extract_strided_slice %1353 {offsets = [0, 7], sizes = [8, 1], strides = [1, 1]} : vector<8x24xf32> to vector<8x1xf32>
    %1389 = vector.broadcast %1388 : vector<8x1xf32> to vector<8x256xf32>
    %1390 = arith.mulf %1389, %1364 : vector<8x256xf32>
    %1391 = arith.addf %1387, %1390 : vector<8x256xf32>
    %1392 = vector.extract_strided_slice %1353 {offsets = [0, 8], sizes = [8, 1], strides = [1, 1]} : vector<8x24xf32> to vector<8x1xf32>
    %1393 = vector.broadcast %1392 : vector<8x1xf32> to vector<8x256xf32>
    %1394 = arith.mulf %1393, %1355 : vector<8x256xf32>
    %1395 = arith.addf %1391, %1394 : vector<8x256xf32>
    %1396 = vector.extract_strided_slice %1353 {offsets = [0, 9], sizes = [8, 1], strides = [1, 1]} : vector<8x24xf32> to vector<8x1xf32>
    %1397 = vector.broadcast %1396 : vector<8x1xf32> to vector<8x256xf32>
    %1398 = arith.mulf %1397, %1367 : vector<8x256xf32>
    %1399 = arith.addf %1395, %1398 : vector<8x256xf32>
    %1400 = vector.extract_strided_slice %1353 {offsets = [0, 10], sizes = [8, 1], strides = [1, 1]} : vector<8x24xf32> to vector<8x1xf32>
    %1401 = vector.broadcast %1400 : vector<8x1xf32> to vector<8x256xf32>
    %1402 = arith.mulf %1401, %1370 : vector<8x256xf32>
    %1403 = arith.addf %1399, %1402 : vector<8x256xf32>
    %1404 = vector.extract_strided_slice %1353 {offsets = [0, 16], sizes = [8, 1], strides = [1, 1]} : vector<8x24xf32> to vector<8x1xf32>
    %1405 = vector.broadcast %1404 : vector<8x1xf32> to vector<8x256xf32>
    %1406 = arith.mulf %1405, %1361 : vector<8x256xf32>
    %1407 = vector.extract_strided_slice %1353 {offsets = [0, 17], sizes = [8, 1], strides = [1, 1]} : vector<8x24xf32> to vector<8x1xf32>
    %1408 = vector.broadcast %1407 : vector<8x1xf32> to vector<8x256xf32>
    %1409 = arith.mulf %1408, %1355 : vector<8x256xf32>
    %1410 = arith.addf %1406, %1409 : vector<8x256xf32>
    %1411 = vector.extract_strided_slice %1353 {offsets = [0, 18], sizes = [8, 1], strides = [1, 1]} : vector<8x24xf32> to vector<8x1xf32>
    %1412 = vector.broadcast %1411 : vector<8x1xf32> to vector<8x256xf32>
    %1413 = arith.mulf %1412, %1370 : vector<8x256xf32>
    %1414 = arith.addf %1410, %1413 : vector<8x256xf32>
    %1415 = vector.extract_strided_slice %1353 {offsets = [0, 19], sizes = [8, 1], strides = [1, 1]} : vector<8x24xf32> to vector<8x1xf32>
    %1416 = vector.broadcast %1415 : vector<8x1xf32> to vector<8x256xf32>
    %1417 = arith.mulf %1416, %1358 : vector<8x256xf32>
    %1418 = vector.extract_strided_slice %1353 {offsets = [0, 20], sizes = [8, 1], strides = [1, 1]} : vector<8x24xf32> to vector<8x1xf32>
    %1419 = vector.broadcast %1418 : vector<8x1xf32> to vector<8x256xf32>
    %1420 = arith.mulf %1419, %1361 : vector<8x256xf32>
    %1421 = arith.addf %1417, %1420 : vector<8x256xf32>
    %1422 = vector.extract_strided_slice %1353 {offsets = [0, 21], sizes = [8, 1], strides = [1, 1]} : vector<8x24xf32> to vector<8x1xf32>
    %1423 = vector.broadcast %1422 : vector<8x1xf32> to vector<8x256xf32>
    %1424 = arith.mulf %1423, %1355 : vector<8x256xf32>
    %1425 = arith.addf %1421, %1424 : vector<8x256xf32>
    %1426 = vector.extract_strided_slice %1353 {offsets = [0, 22], sizes = [8, 1], strides = [1, 1]} : vector<8x24xf32> to vector<8x1xf32>
    %1427 = vector.broadcast %1426 : vector<8x1xf32> to vector<8x256xf32>
    %1428 = arith.mulf %1427, %1370 : vector<8x256xf32>
    %1429 = arith.addf %1425, %1428 : vector<8x256xf32>
    %1430 = vector.extract_strided_slice %1353 {offsets = [0, 23], sizes = [8, 1], strides = [1, 1]} : vector<8x24xf32> to vector<8x1xf32>
    %1431 = vector.broadcast %1430 : vector<8x1xf32> to vector<8x256xf32>
    %1432 = arith.mulf %1431, %1373 : vector<8x256xf32>
    %1433 = arith.addf %1429, %1432 : vector<8x256xf32>
    %1434 = tpu.concatenate %1384, %1403, %1414, %1433 in 0 : vector<8x256xf32>, vector<8x256xf32>, vector<8x256xf32>, vector<8x256xf32> -> vector<32x256xf32>
    %c4_427 = arith.constant 4 : index
    %c0_428 = arith.constant 0 : index
    %c0_429 = arith.constant 0 : index
    %1435 = vector.load %arg5[%c4_427, %c0_428, %c0_429] : memref<5x32x32xf32, #tpu.memory_space<vmem>>, vector<1x32x32xf32>
    %1436 = vector.shape_cast %1435 : vector<1x32x32xf32> to vector<32x32xf32>
    %cst_430 = arith.constant dense<0.000000e+00> : vector<32x256xf32>
    %1437 = tpu.matmul %1436, %1434, %cst_430 {dimension_numbers = #tpu.dot_dimension_numbers<[1], [0], [0], [1], [0, 0, 1, 1], [], []>} : vector<32x32xf32>, vector<32x256xf32>, vector<32x256xf32> -> vector<32x256xf32>
    %1438 = vector.extract_strided_slice %1437 {offsets = [0, 0], sizes = [8, 256], strides = [1, 1]} : vector<32x256xf32> to vector<8x256xf32>
    %cst_431 = arith.constant dense<0.000000e+00> : vector<8xf32>
    %1439 = vector.multi_reduction <add>, %1438, %cst_431 [1] : vector<8x256xf32> to vector<8xf32>
    %1440 = vector.shape_cast %1439 : vector<8xf32> to vector<8x1xf32>
    %cst_432 = arith.constant 3.906250e-03 : f32
    %1441 = vector.broadcast %cst_432 : f32 to vector<8x1xf32>
    %1442 = arith.mulf %1440, %1441 : vector<8x1xf32>
    %1443 = vector.broadcast %1442 : vector<8x1xf32> to vector<8x256xf32>
    %1444 = arith.subf %1438, %1443 : vector<8x256xf32>
    %1445 = arith.mulf %1444, %1444 : vector<8x256xf32>
    %cst_433 = arith.constant dense<0.000000e+00> : vector<8xf32>
    %1446 = vector.multi_reduction <add>, %1445, %cst_433 [1] : vector<8x256xf32> to vector<8xf32>
    %1447 = vector.shape_cast %1446 : vector<8xf32> to vector<8x1xf32>
    %cst_434 = arith.constant 3.906250e-03 : f32
    %1448 = vector.broadcast %cst_434 : f32 to vector<8x1xf32>
    %1449 = arith.mulf %1447, %1448 : vector<8x1xf32>
    %cst_435 = arith.constant 9.99999974E-6 : f32
    %1450 = vector.broadcast %cst_435 : f32 to vector<8x1xf32>
    %1451 = arith.addf %1449, %1450 : vector<8x1xf32>
    %1452 = math.rsqrt %1451 : vector<8x1xf32>
    %1453 = vector.broadcast %1452 : vector<8x1xf32> to vector<8x256xf32>
    %1454 = arith.mulf %1444, %1453 : vector<8x256xf32>
    %1455 = vector.extract_strided_slice %1437 {offsets = [8, 0], sizes = [8, 256], strides = [1, 1]} : vector<32x256xf32> to vector<8x256xf32>
    %cst_436 = arith.constant dense<0.000000e+00> : vector<8xf32>
    %1456 = vector.multi_reduction <add>, %1455, %cst_436 [1] : vector<8x256xf32> to vector<8xf32>
    %1457 = vector.shape_cast %1456 : vector<8xf32> to vector<8x1xf32>
    %cst_437 = arith.constant 3.906250e-03 : f32
    %1458 = vector.broadcast %cst_437 : f32 to vector<8x1xf32>
    %1459 = arith.mulf %1457, %1458 : vector<8x1xf32>
    %1460 = vector.broadcast %1459 : vector<8x1xf32> to vector<8x256xf32>
    %1461 = arith.subf %1455, %1460 : vector<8x256xf32>
    %1462 = arith.mulf %1461, %1461 : vector<8x256xf32>
    %cst_438 = arith.constant dense<0.000000e+00> : vector<8xf32>
    %1463 = vector.multi_reduction <add>, %1462, %cst_438 [1] : vector<8x256xf32> to vector<8xf32>
    %1464 = vector.shape_cast %1463 : vector<8xf32> to vector<8x1xf32>
    %cst_439 = arith.constant 3.906250e-03 : f32
    %1465 = vector.broadcast %cst_439 : f32 to vector<8x1xf32>
    %1466 = arith.mulf %1464, %1465 : vector<8x1xf32>
    %cst_440 = arith.constant 9.99999974E-6 : f32
    %1467 = vector.broadcast %cst_440 : f32 to vector<8x1xf32>
    %1468 = arith.addf %1466, %1467 : vector<8x1xf32>
    %1469 = math.rsqrt %1468 : vector<8x1xf32>
    %1470 = vector.broadcast %1469 : vector<8x1xf32> to vector<8x256xf32>
    %1471 = arith.mulf %1461, %1470 : vector<8x256xf32>
    %1472 = vector.extract_strided_slice %1437 {offsets = [16, 0], sizes = [8, 256], strides = [1, 1]} : vector<32x256xf32> to vector<8x256xf32>
    %cst_441 = arith.constant dense<0.000000e+00> : vector<8xf32>
    %1473 = vector.multi_reduction <add>, %1472, %cst_441 [1] : vector<8x256xf32> to vector<8xf32>
    %1474 = vector.shape_cast %1473 : vector<8xf32> to vector<8x1xf32>
    %cst_442 = arith.constant 3.906250e-03 : f32
    %1475 = vector.broadcast %cst_442 : f32 to vector<8x1xf32>
    %1476 = arith.mulf %1474, %1475 : vector<8x1xf32>
    %1477 = vector.broadcast %1476 : vector<8x1xf32> to vector<8x256xf32>
    %1478 = arith.subf %1472, %1477 : vector<8x256xf32>
    %1479 = arith.mulf %1478, %1478 : vector<8x256xf32>
    %cst_443 = arith.constant dense<0.000000e+00> : vector<8xf32>
    %1480 = vector.multi_reduction <add>, %1479, %cst_443 [1] : vector<8x256xf32> to vector<8xf32>
    %1481 = vector.shape_cast %1480 : vector<8xf32> to vector<8x1xf32>
    %cst_444 = arith.constant 3.906250e-03 : f32
    %1482 = vector.broadcast %cst_444 : f32 to vector<8x1xf32>
    %1483 = arith.mulf %1481, %1482 : vector<8x1xf32>
    %cst_445 = arith.constant 9.99999974E-6 : f32
    %1484 = vector.broadcast %cst_445 : f32 to vector<8x1xf32>
    %1485 = arith.addf %1483, %1484 : vector<8x1xf32>
    %1486 = math.rsqrt %1485 : vector<8x1xf32>
    %1487 = vector.broadcast %1486 : vector<8x1xf32> to vector<8x256xf32>
    %1488 = arith.mulf %1478, %1487 : vector<8x256xf32>
    %1489 = vector.extract_strided_slice %1437 {offsets = [24, 0], sizes = [8, 256], strides = [1, 1]} : vector<32x256xf32> to vector<8x256xf32>
    %cst_446 = arith.constant dense<0.000000e+00> : vector<8xf32>
    %1490 = vector.multi_reduction <add>, %1489, %cst_446 [1] : vector<8x256xf32> to vector<8xf32>
    %1491 = vector.shape_cast %1490 : vector<8xf32> to vector<8x1xf32>
    %cst_447 = arith.constant 3.906250e-03 : f32
    %1492 = vector.broadcast %cst_447 : f32 to vector<8x1xf32>
    %1493 = arith.mulf %1491, %1492 : vector<8x1xf32>
    %1494 = vector.broadcast %1493 : vector<8x1xf32> to vector<8x256xf32>
    %1495 = arith.subf %1489, %1494 : vector<8x256xf32>
    %1496 = arith.mulf %1495, %1495 : vector<8x256xf32>
    %cst_448 = arith.constant dense<0.000000e+00> : vector<8xf32>
    %1497 = vector.multi_reduction <add>, %1496, %cst_448 [1] : vector<8x256xf32> to vector<8xf32>
    %1498 = vector.shape_cast %1497 : vector<8xf32> to vector<8x1xf32>
    %cst_449 = arith.constant 3.906250e-03 : f32
    %1499 = vector.broadcast %cst_449 : f32 to vector<8x1xf32>
    %1500 = arith.mulf %1498, %1499 : vector<8x1xf32>
    %cst_450 = arith.constant 9.99999974E-6 : f32
    %1501 = vector.broadcast %cst_450 : f32 to vector<8x1xf32>
    %1502 = arith.addf %1500, %1501 : vector<8x1xf32>
    %1503 = math.rsqrt %1502 : vector<8x1xf32>
    %1504 = vector.broadcast %1503 : vector<8x1xf32> to vector<8x256xf32>
    %1505 = arith.mulf %1495, %1504 : vector<8x256xf32>
    %cst_451 = arith.constant 0.000000e+00 : f32
    %1506 = vector.broadcast %cst_451 : f32 to vector<8x256xf32>
    %1507 = arith.maximumf %1454, %1506 : vector<8x256xf32>
    %cst_452 = arith.constant 0.000000e+00 : f32
    %1508 = vector.broadcast %cst_452 : f32 to vector<8x256xf32>
    %1509 = arith.maximumf %1471, %1508 : vector<8x256xf32>
    %c1_i32_453 = arith.constant 1 : i32
    %1510 = tpu.dynamic_rotate %1507 by %c1_i32_453 dim 1 : vector<8x256xf32>, i32 -> vector<8x256xf32>
    %cst_454 = arith.constant 0.000000e+00 : f32
    %1511 = vector.broadcast %cst_454 : f32 to vector<8x256xf32>
    %1512 = arith.select %7, %1510, %1511 : vector<8x256xi1>, vector<8x256xf32>
    %c255_i32_455 = arith.constant 255 : i32
    %1513 = tpu.dynamic_rotate %1507 by %c255_i32_455 dim 1 : vector<8x256xf32>, i32 -> vector<8x256xf32>
    %cst_456 = arith.constant 0.000000e+00 : f32
    %1514 = vector.broadcast %cst_456 : f32 to vector<8x256xf32>
    %1515 = arith.select %9, %1513, %1514 : vector<8x256xi1>, vector<8x256xf32>
    %c2_i32_457 = arith.constant 2 : i32
    %1516 = tpu.dynamic_rotate %1509 by %c2_i32_457 dim 1 : vector<8x256xf32>, i32 -> vector<8x256xf32>
    %cst_458 = arith.constant 0.000000e+00 : f32
    %1517 = vector.broadcast %cst_458 : f32 to vector<8x256xf32>
    %1518 = arith.select %5, %1516, %1517 : vector<8x256xi1>, vector<8x256xf32>
    %c1_i32_459 = arith.constant 1 : i32
    %1519 = tpu.dynamic_rotate %1509 by %c1_i32_459 dim 1 : vector<8x256xf32>, i32 -> vector<8x256xf32>
    %cst_460 = arith.constant 0.000000e+00 : f32
    %1520 = vector.broadcast %cst_460 : f32 to vector<8x256xf32>
    %1521 = arith.select %7, %1519, %1520 : vector<8x256xi1>, vector<8x256xf32>
    %c255_i32_461 = arith.constant 255 : i32
    %1522 = tpu.dynamic_rotate %1509 by %c255_i32_461 dim 1 : vector<8x256xf32>, i32 -> vector<8x256xf32>
    %cst_462 = arith.constant 0.000000e+00 : f32
    %1523 = vector.broadcast %cst_462 : f32 to vector<8x256xf32>
    %1524 = arith.select %9, %1522, %1523 : vector<8x256xi1>, vector<8x256xf32>
    %c254_i32_463 = arith.constant 254 : i32
    %1525 = tpu.dynamic_rotate %1509 by %c254_i32_463 dim 1 : vector<8x256xf32>, i32 -> vector<8x256xf32>
    %cst_464 = arith.constant 0.000000e+00 : f32
    %1526 = vector.broadcast %cst_464 : f32 to vector<8x256xf32>
    %1527 = arith.select %11, %1525, %1526 : vector<8x256xi1>, vector<8x256xf32>
    %1528 = vector.extract_strided_slice %1353 {offsets = [0, 3], sizes = [8, 1], strides = [1, 1]} : vector<8x24xf32> to vector<8x1xf32>
    %1529 = vector.broadcast %1528 : vector<8x1xf32> to vector<8x256xf32>
    %1530 = arith.mulf %1529, %1512 : vector<8x256xf32>
    %1531 = vector.extract_strided_slice %1353 {offsets = [0, 4], sizes = [8, 1], strides = [1, 1]} : vector<8x24xf32> to vector<8x1xf32>
    %1532 = vector.broadcast %1531 : vector<8x1xf32> to vector<8x256xf32>
    %1533 = arith.mulf %1532, %1507 : vector<8x256xf32>
    %1534 = arith.addf %1530, %1533 : vector<8x256xf32>
    %1535 = vector.extract_strided_slice %1353 {offsets = [0, 5], sizes = [8, 1], strides = [1, 1]} : vector<8x24xf32> to vector<8x1xf32>
    %1536 = vector.broadcast %1535 : vector<8x1xf32> to vector<8x256xf32>
    %1537 = arith.mulf %1536, %1515 : vector<8x256xf32>
    %1538 = arith.addf %1534, %1537 : vector<8x256xf32>
    %1539 = vector.extract_strided_slice %1353 {offsets = [0, 11], sizes = [8, 1], strides = [1, 1]} : vector<8x24xf32> to vector<8x1xf32>
    %1540 = vector.broadcast %1539 : vector<8x1xf32> to vector<8x256xf32>
    %1541 = arith.mulf %1540, %1518 : vector<8x256xf32>
    %1542 = vector.extract_strided_slice %1353 {offsets = [0, 12], sizes = [8, 1], strides = [1, 1]} : vector<8x24xf32> to vector<8x1xf32>
    %1543 = vector.broadcast %1542 : vector<8x1xf32> to vector<8x256xf32>
    %1544 = arith.mulf %1543, %1521 : vector<8x256xf32>
    %1545 = arith.addf %1541, %1544 : vector<8x256xf32>
    %1546 = vector.extract_strided_slice %1353 {offsets = [0, 13], sizes = [8, 1], strides = [1, 1]} : vector<8x24xf32> to vector<8x1xf32>
    %1547 = vector.broadcast %1546 : vector<8x1xf32> to vector<8x256xf32>
    %1548 = arith.mulf %1547, %1509 : vector<8x256xf32>
    %1549 = arith.addf %1545, %1548 : vector<8x256xf32>
    %1550 = vector.extract_strided_slice %1353 {offsets = [0, 14], sizes = [8, 1], strides = [1, 1]} : vector<8x24xf32> to vector<8x1xf32>
    %1551 = vector.broadcast %1550 : vector<8x1xf32> to vector<8x256xf32>
    %1552 = arith.mulf %1551, %1524 : vector<8x256xf32>
    %1553 = arith.addf %1549, %1552 : vector<8x256xf32>
    %1554 = vector.extract_strided_slice %1353 {offsets = [0, 15], sizes = [8, 1], strides = [1, 1]} : vector<8x24xf32> to vector<8x1xf32>
    %1555 = vector.broadcast %1554 : vector<8x1xf32> to vector<8x256xf32>
    %1556 = arith.mulf %1555, %1527 : vector<8x256xf32>
    %1557 = arith.addf %1553, %1556 : vector<8x256xf32>
    %1558 = tpu.concatenate %1538, %1557 in 0 : vector<8x256xf32>, vector<8x256xf32> -> vector<16x256xf32>
    %c4_465 = arith.constant 4 : index
    %c0_466 = arith.constant 0 : index
    %c0_467 = arith.constant 0 : index
    %1559 = vector.load %arg6[%c4_465, %c0_466, %c0_467] : memref<5x16x16xf32, #tpu.memory_space<vmem>>, vector<1x16x16xf32>
    %1560 = vector.shape_cast %1559 : vector<1x16x16xf32> to vector<16x16xf32>
    %cst_468 = arith.constant dense<0.000000e+00> : vector<16x256xf32>
    %1561 = tpu.matmul %1560, %1558, %cst_468 {dimension_numbers = #tpu.dot_dimension_numbers<[1], [0], [0], [1], [0, 0, 1, 1], [], []>} : vector<16x16xf32>, vector<16x256xf32>, vector<16x256xf32> -> vector<16x256xf32>
    %1562 = vector.extract_strided_slice %1561 {offsets = [0, 0], sizes = [8, 256], strides = [1, 1]} : vector<16x256xf32> to vector<8x256xf32>
    %cst_469 = arith.constant dense<0.000000e+00> : vector<8xf32>
    %1563 = vector.multi_reduction <add>, %1562, %cst_469 [1] : vector<8x256xf32> to vector<8xf32>
    %1564 = vector.shape_cast %1563 : vector<8xf32> to vector<8x1xf32>
    %cst_470 = arith.constant 3.906250e-03 : f32
    %1565 = vector.broadcast %cst_470 : f32 to vector<8x1xf32>
    %1566 = arith.mulf %1564, %1565 : vector<8x1xf32>
    %1567 = vector.broadcast %1566 : vector<8x1xf32> to vector<8x256xf32>
    %1568 = arith.subf %1562, %1567 : vector<8x256xf32>
    %1569 = arith.mulf %1568, %1568 : vector<8x256xf32>
    %cst_471 = arith.constant dense<0.000000e+00> : vector<8xf32>
    %1570 = vector.multi_reduction <add>, %1569, %cst_471 [1] : vector<8x256xf32> to vector<8xf32>
    %1571 = vector.shape_cast %1570 : vector<8xf32> to vector<8x1xf32>
    %cst_472 = arith.constant 3.906250e-03 : f32
    %1572 = vector.broadcast %cst_472 : f32 to vector<8x1xf32>
    %1573 = arith.mulf %1571, %1572 : vector<8x1xf32>
    %cst_473 = arith.constant 9.99999974E-6 : f32
    %1574 = vector.broadcast %cst_473 : f32 to vector<8x1xf32>
    %1575 = arith.addf %1573, %1574 : vector<8x1xf32>
    %1576 = math.rsqrt %1575 : vector<8x1xf32>
    %1577 = vector.broadcast %1576 : vector<8x1xf32> to vector<8x256xf32>
    %1578 = arith.mulf %1568, %1577 : vector<8x256xf32>
    %1579 = vector.extract_strided_slice %1561 {offsets = [8, 0], sizes = [8, 256], strides = [1, 1]} : vector<16x256xf32> to vector<8x256xf32>
    %cst_474 = arith.constant dense<0.000000e+00> : vector<8xf32>
    %1580 = vector.multi_reduction <add>, %1579, %cst_474 [1] : vector<8x256xf32> to vector<8xf32>
    %1581 = vector.shape_cast %1580 : vector<8xf32> to vector<8x1xf32>
    %cst_475 = arith.constant 3.906250e-03 : f32
    %1582 = vector.broadcast %cst_475 : f32 to vector<8x1xf32>
    %1583 = arith.mulf %1581, %1582 : vector<8x1xf32>
    %1584 = vector.broadcast %1583 : vector<8x1xf32> to vector<8x256xf32>
    %1585 = arith.subf %1579, %1584 : vector<8x256xf32>
    %1586 = arith.mulf %1585, %1585 : vector<8x256xf32>
    %cst_476 = arith.constant dense<0.000000e+00> : vector<8xf32>
    %1587 = vector.multi_reduction <add>, %1586, %cst_476 [1] : vector<8x256xf32> to vector<8xf32>
    %1588 = vector.shape_cast %1587 : vector<8xf32> to vector<8x1xf32>
    %cst_477 = arith.constant 3.906250e-03 : f32
    %1589 = vector.broadcast %cst_477 : f32 to vector<8x1xf32>
    %1590 = arith.mulf %1588, %1589 : vector<8x1xf32>
    %cst_478 = arith.constant 9.99999974E-6 : f32
    %1591 = vector.broadcast %cst_478 : f32 to vector<8x1xf32>
    %1592 = arith.addf %1590, %1591 : vector<8x1xf32>
    %1593 = math.rsqrt %1592 : vector<8x1xf32>
    %1594 = vector.broadcast %1593 : vector<8x1xf32> to vector<8x256xf32>
    %1595 = arith.mulf %1585, %1594 : vector<8x256xf32>
    %c1_i32_479 = arith.constant 1 : i32
    %1596 = tpu.dynamic_rotate %714 by %c1_i32_479 dim 1 : vector<8x256xf32>, i32 -> vector<8x256xf32>
    %c255_i32_480 = arith.constant 255 : i32
    %1597 = tpu.dynamic_rotate %714 by %c255_i32_480 dim 1 : vector<8x256xf32>, i32 -> vector<8x256xf32>
    %cst_481 = arith.constant 0xFF800000 : f32
    %1598 = vector.broadcast %cst_481 : f32 to vector<8x256xf32>
    %1599 = arith.select %7, %1596, %1598 : vector<8x256xi1>, vector<8x256xf32>
    %cst_482 = arith.constant 0xFF800000 : f32
    %1600 = vector.broadcast %cst_482 : f32 to vector<8x256xf32>
    %1601 = arith.select %9, %1597, %1600 : vector<8x256xi1>, vector<8x256xf32>
    %1602 = arith.maximumf %1599, %714 : vector<8x256xf32>
    %1603 = arith.maximumf %1602, %1601 : vector<8x256xf32>
    %cst_483 = arith.constant dense<0.000000e+00> : vector<8xf32>
    %1604 = vector.multi_reduction <add>, %1603, %cst_483 [1] : vector<8x256xf32> to vector<8xf32>
    %1605 = vector.shape_cast %1604 : vector<8xf32> to vector<8x1xf32>
    %cst_484 = arith.constant 3.906250e-03 : f32
    %1606 = vector.broadcast %cst_484 : f32 to vector<8x1xf32>
    %1607 = arith.mulf %1605, %1606 : vector<8x1xf32>
    %1608 = vector.broadcast %1607 : vector<8x1xf32> to vector<8x256xf32>
    %1609 = arith.subf %1603, %1608 : vector<8x256xf32>
    %1610 = arith.mulf %1609, %1609 : vector<8x256xf32>
    %cst_485 = arith.constant dense<0.000000e+00> : vector<8xf32>
    %1611 = vector.multi_reduction <add>, %1610, %cst_485 [1] : vector<8x256xf32> to vector<8xf32>
    %1612 = vector.shape_cast %1611 : vector<8xf32> to vector<8x1xf32>
    %cst_486 = arith.constant 3.906250e-03 : f32
    %1613 = vector.broadcast %cst_486 : f32 to vector<8x1xf32>
    %1614 = arith.mulf %1612, %1613 : vector<8x1xf32>
    %cst_487 = arith.constant 9.99999974E-6 : f32
    %1615 = vector.broadcast %cst_487 : f32 to vector<8x1xf32>
    %1616 = arith.addf %1614, %1615 : vector<8x1xf32>
    %1617 = math.rsqrt %1616 : vector<8x1xf32>
    %1618 = vector.broadcast %1617 : vector<8x1xf32> to vector<8x256xf32>
    %1619 = arith.mulf %1609, %1618 : vector<8x256xf32>
    %cst_488 = arith.constant 0.000000e+00 : f32
    %1620 = vector.broadcast %cst_488 : f32 to vector<8x256xf32>
    %1621 = arith.select %7, %1596, %1620 : vector<8x256xi1>, vector<8x256xf32>
    %cst_489 = arith.constant 0.000000e+00 : f32
    %1622 = vector.broadcast %cst_489 : f32 to vector<8x256xf32>
    %1623 = arith.select %9, %1597, %1622 : vector<8x256xi1>, vector<8x256xf32>
    %1624 = arith.addf %1621, %714 : vector<8x256xf32>
    %1625 = arith.addf %1624, %1623 : vector<8x256xf32>
    %1626 = arith.mulf %1625, %26 : vector<8x256xf32>
    %cst_490 = arith.constant dense<0.000000e+00> : vector<8xf32>
    %1627 = vector.multi_reduction <add>, %1626, %cst_490 [1] : vector<8x256xf32> to vector<8xf32>
    %1628 = vector.shape_cast %1627 : vector<8xf32> to vector<8x1xf32>
    %cst_491 = arith.constant 3.906250e-03 : f32
    %1629 = vector.broadcast %cst_491 : f32 to vector<8x1xf32>
    %1630 = arith.mulf %1628, %1629 : vector<8x1xf32>
    %1631 = vector.broadcast %1630 : vector<8x1xf32> to vector<8x256xf32>
    %1632 = arith.subf %1626, %1631 : vector<8x256xf32>
    %1633 = arith.mulf %1632, %1632 : vector<8x256xf32>
    %cst_492 = arith.constant dense<0.000000e+00> : vector<8xf32>
    %1634 = vector.multi_reduction <add>, %1633, %cst_492 [1] : vector<8x256xf32> to vector<8xf32>
    %1635 = vector.shape_cast %1634 : vector<8xf32> to vector<8x1xf32>
    %cst_493 = arith.constant 3.906250e-03 : f32
    %1636 = vector.broadcast %cst_493 : f32 to vector<8x1xf32>
    %1637 = arith.mulf %1635, %1636 : vector<8x1xf32>
    %cst_494 = arith.constant 9.99999974E-6 : f32
    %1638 = vector.broadcast %cst_494 : f32 to vector<8x1xf32>
    %1639 = arith.addf %1637, %1638 : vector<8x1xf32>
    %1640 = math.rsqrt %1639 : vector<8x1xf32>
    %1641 = vector.broadcast %1640 : vector<8x1xf32> to vector<8x256xf32>
    %1642 = arith.mulf %1632, %1641 : vector<8x256xf32>
    %c4_495 = arith.constant 4 : index
    %c3_496 = arith.constant 3 : index
    %1643 = memref.load %arg0[%c4_495, %c3_496] : memref<5x8xf32, #tpu.memory_space<smem>>
    %1644 = vector.broadcast %1643 : f32 to vector<8x256xf32>
    %1645 = arith.mulf %1644, %714 : vector<8x256xf32>
    %c4_497 = arith.constant 4 : index
    %c1_498 = arith.constant 1 : index
    %1646 = memref.load %arg0[%c4_497, %c1_498] : memref<5x8xf32, #tpu.memory_space<smem>>
    %1647 = vector.broadcast %1646 : f32 to vector<8x256xf32>
    %1648 = arith.mulf %1647, %1619 : vector<8x256xf32>
    %1649 = arith.addf %1645, %1648 : vector<8x256xf32>
    %c4_499 = arith.constant 4 : index
    %c2_500 = arith.constant 2 : index
    %1650 = memref.load %arg0[%c4_499, %c2_500] : memref<5x8xf32, #tpu.memory_space<smem>>
    %1651 = vector.broadcast %1650 : f32 to vector<8x256xf32>
    %1652 = arith.mulf %1651, %1642 : vector<8x256xf32>
    %1653 = arith.addf %1649, %1652 : vector<8x256xf32>
    %c4_501 = arith.constant 4 : index
    %c4_502 = arith.constant 4 : index
    %1654 = memref.load %arg0[%c4_501, %c4_502] : memref<5x8xf32, #tpu.memory_space<smem>>
    %1655 = vector.broadcast %1654 : f32 to vector<8x256xf32>
    %1656 = arith.mulf %1655, %1578 : vector<8x256xf32>
    %1657 = arith.addf %1653, %1656 : vector<8x256xf32>
    %c4_503 = arith.constant 4 : index
    %c5_504 = arith.constant 5 : index
    %1658 = memref.load %arg0[%c4_503, %c5_504] : memref<5x8xf32, #tpu.memory_space<smem>>
    %1659 = vector.broadcast %1658 : f32 to vector<8x256xf32>
    %1660 = arith.mulf %1659, %1595 : vector<8x256xf32>
    %1661 = arith.addf %1657, %1660 : vector<8x256xf32>
    %c4_505 = arith.constant 4 : index
    %c6_506 = arith.constant 6 : index
    %1662 = memref.load %arg0[%c4_505, %c6_506] : memref<5x8xf32, #tpu.memory_space<smem>>
    %1663 = vector.broadcast %1662 : f32 to vector<8x256xf32>
    %1664 = arith.mulf %1663, %1488 : vector<8x256xf32>
    %1665 = arith.addf %1661, %1664 : vector<8x256xf32>
    %c4_507 = arith.constant 4 : index
    %c7_508 = arith.constant 7 : index
    %1666 = memref.load %arg0[%c4_507, %c7_508] : memref<5x8xf32, #tpu.memory_space<smem>>
    %1667 = vector.broadcast %1666 : f32 to vector<8x256xf32>
    %1668 = arith.mulf %1667, %1505 : vector<8x256xf32>
    %1669 = arith.addf %1665, %1668 : vector<8x256xf32>
    %1670 = arith.addf %1351, %1669 : vector<8x256xf32>
    %1671 = vector.extract_strided_slice %714 {offsets = [0, 0], sizes = [8, 128], strides = [1, 1]} : vector<8x256xf32> to vector<8x128xf32>
    %c0_509 = arith.constant 0 : index
    %c0_510 = arith.constant 0 : index
    %c0_511 = arith.constant 0 : index
    %1672 = vector.load %arg7[%c0_509, %c0_510, %c0_511] : memref<2x16x128xf32, #tpu.memory_space<vmem>>, vector<1x8x128xf32>
    %1673 = vector.shape_cast %1672 : vector<1x8x128xf32> to vector<8x128xf32>
    %1674 = vector.shape_cast %1671 : vector<8x128xf32> to vector<1x8x128xf32>
    tpu.vector_store %arg7[%c0_509, %c0_510, %c0_511], %1674 {strides = array<i32>} : memref<2x16x128xf32, #tpu.memory_space<vmem>>, vector<1x8x128xf32>,
    %1675 = vector.extract_strided_slice %714 {offsets = [0, 128], sizes = [8, 128], strides = [1, 1]} : vector<8x256xf32> to vector<8x128xf32>
    %c1_512 = arith.constant 1 : index
    %c0_513 = arith.constant 0 : index
    %c0_514 = arith.constant 0 : index
    %1676 = vector.load %arg7[%c1_512, %c0_513, %c0_514] : memref<2x16x128xf32, #tpu.memory_space<vmem>>, vector<1x8x128xf32>
    %1677 = vector.shape_cast %1676 : vector<1x8x128xf32> to vector<8x128xf32>
    %1678 = vector.shape_cast %1675 : vector<8x128xf32> to vector<1x8x128xf32>
    tpu.vector_store %arg7[%c1_512, %c0_513, %c0_514], %1678 {strides = array<i32>} : memref<2x16x128xf32, #tpu.memory_space<vmem>>, vector<1x8x128xf32>,
    %1679 = vector.extract_strided_slice %1670 {offsets = [0, 0], sizes = [8, 128], strides = [1, 1]} : vector<8x256xf32> to vector<8x128xf32>
    %c0_515 = arith.constant 0 : index
    %c8 = arith.constant 8 : index
    %c0_516 = arith.constant 0 : index
    %1680 = vector.load %arg7[%c0_515, %c8, %c0_516] : memref<2x16x128xf32, #tpu.memory_space<vmem>>, vector<1x8x128xf32>
    %1681 = vector.shape_cast %1680 : vector<1x8x128xf32> to vector<8x128xf32>
    %1682 = vector.shape_cast %1679 : vector<8x128xf32> to vector<1x8x128xf32>
    tpu.vector_store %arg7[%c0_515, %c8, %c0_516], %1682 {strides = array<i32>} : memref<2x16x128xf32, #tpu.memory_space<vmem>>, vector<1x8x128xf32>,
    %1683 = vector.extract_strided_slice %1670 {offsets = [0, 128], sizes = [8, 128], strides = [1, 1]} : vector<8x256xf32> to vector<8x128xf32>
    %c1_517 = arith.constant 1 : index
    %c8_518 = arith.constant 8 : index
    %c0_519 = arith.constant 0 : index
    %1684 = vector.load %arg7[%c1_517, %c8_518, %c0_519] : memref<2x16x128xf32, #tpu.memory_space<vmem>>, vector<1x8x128xf32>
    %1685 = vector.shape_cast %1684 : vector<1x8x128xf32> to vector<8x128xf32>
    %1686 = vector.shape_cast %1683 : vector<8x128xf32> to vector<1x8x128xf32>
    tpu.vector_store %arg7[%c1_517, %c8_518, %c0_519], %1686 {strides = array<i32>} : memref<2x16x128xf32, #tpu.memory_space<vmem>>, vector<1x8x128xf32>,
    return
  }
}

</mosaic_0001>

<bundles_post_ra>
// kernel: cell_forward.1
= control target key start
LH: loop header
LB: loop body
LE: loop exit
PB: predicated region body
PF: predicated region fallthrough
CT: control target
= control target key end

     0   :  { %12 = vsyncpa [#allocation5], 0  ;;  %s6599_s0 = inlined_call_operand.hbm [shape: f32[5,8], index: 0, kind: input, shape index: {}]   ;;  %s6600_s1 = inlined_call_operand.hbm [shape: f32[2,8,128], index: 1, kind: input, shape index: {}]   ;;  %s6601_s2 = inlined_call_operand.hbm [shape: f32[2,8,128], index: 2, kind: input, shape index: {}]   ;;  %s6602_s3 = inlined_call_operand.hbm [shape: f32[16,16], index: 3, kind: input, shape index: {}]   ;;  %s6603_s4 = inlined_call_operand.hbm [shape: f32[5,8,24], index: 4, kind: input, shape index: {}]   ;;  %s6604_s5 = inlined_call_operand.hbm [shape: f32[5,32,32], index: 5, kind: input, shape index: {}]   ;;  %s6605_s6 = inlined_call_operand.hbm [shape: f32[5,16,16], index: 6, kind: input, shape index: {}]   ;;  %s6606_s7 = inlined_call_operand.hbm [shape: f32[2,16,128], index: 7, kind: output, shape index: {}]  }
   0x1   :  { %13 = vsyncpa [#allocation3], 0 }
   0x2   :  { %14 = vsyncpa [#allocation8], 0 }
   0x3   :  { %15 = vsyncpa [#allocation11], 0 }
   0x4   :  { %16 = vsyncpa [#allocation14], 0 }
   0x5   :  { %17 = vsyncpa [#allocation4], 0  ;;  %s3998_s24 = smov [#allocation7]   ;;  %s3999_s26 = smov [#allocation10]  }
   0x6   :  { %s43_s25 = sshll.u32 %s3998_s24, 4  ;;  %s67_s27 = sshll.u32 %s3999_s26, 4  ;;  %s44_s25 = int_to_ptr.vmem [resolvable:$true] %s43_s25  ;;  %s4079_s27 = int_to_ptr.vmem [resolvable:$true] %s67_s27 }
   0x7   :  { %s3822_s30 = scalar_lea.hbm %s6601_s2, 256 }
   0x8   :  { %p3823_p0 = scmp.ne.s32.totalorder %s6601_s2, %s3822_s30  ;;  %p3826_p1 = scmp.lt.u32.totalorder %s3822_s30, %s6601_s2 }
   0xa   :  { %p3828_p2 = pnand %p3826_p1, %p3823_p0 }
   0xc   :  { %3831 = shalt.err (!%p3828_p2)
}
   0xd   :  { %s3832_s12 = scalar_lea.vmem %s44_s25, 256  ;;  %p3837_p4 = scmp.lt.s32.totalorder %s44_s25, %s44_s25 }
   0xe   :  { %p3833_p3 = scmp.ne.s32.totalorder %s44_s25, %s3832_s12  ;;  %p3838_p5 = scmp.lt.s32.totalorder %s3832_s12, %s3832_s12 }
  0x10   :  { %p3839_p6 = por %p3838_p5, %p3837_p4 }
  0x12   :  { %p3840_p7 = pnand %p3839_p6, %p3833_p3 }
  0x14   :  { %3843 = shalt.err (!%p3840_p7)
}
  0x15   :  { %s4000_s13 = smov 128   ;;  %s4001_s14 = smov 8  }
  0x16   :  { %49 = dma.hbm_to_vmem [thread:$0]  %s6601_s2, 256, %s44_s25, [#allocation8], %s4000_s13, %s4000_s13, %s4001_s14  }
  0x17   :  { %s3844_s19 = scalar_lea.hbm %s6603_s4, 640 }
  0x18   :  { %p3845_p8 = scmp.ne.s32.totalorder %s6603_s4, %s3844_s19  ;;  %p3848_p9 = scmp.lt.u32.totalorder %s3844_s19, %s6603_s4 }
  0x1a   :  { %p3850_p10 = pnand %p3848_p9, %p3845_p8 }
  0x1c   :  { %3853 = shalt.err (!%p3850_p10)
}
  0x1d   :  { %s3854_s24 = scalar_lea.vmem %s4079_s27, 640  ;;  %p3859_p12 = scmp.lt.s32.totalorder %s4079_s27, %s4079_s27 }
  0x1e   :  { %p3855_p11 = scmp.ne.s32.totalorder %s4079_s27, %s3854_s24  ;;  %p3860_p13 = scmp.lt.s32.totalorder %s3854_s24, %s3854_s24 }
  0x20   :  { %p3861_p0 = por %p3860_p13, %p3859_p12 }
  0x22   :  { %p3862_p1 = pnand %p3861_p0, %p3855_p11 }
  0x24   :  { %3865 = shalt.err (!%p3862_p1)
}
  0x25   :  { %73 = dma.hbm_to_vmem [thread:$0]  %s6603_s4, 640, %s4079_s27, [#allocation11], %s4000_s13, %s4000_s13, %s4001_s14  }
  0x26   :  { %s3866_s29 = scalar_lea.hbm %s6599_s0, 128 }
  0x27   :  { %p3867_p2 = scmp.ne.s32.totalorder %s6599_s0, %s3866_s29  ;;  %p3870_p3 = scmp.lt.u32.totalorder %s3866_s29, %s6599_s0 }
  0x29   :  { %p3872_p4 = pnand %p3870_p3, %p3867_p2 }
  0x2b   :  { %3875 = shalt.err (!%p3872_p4)
}
  0x2c   :  { %s4002_s11 = smov [#allocation2]   ;;  %s4003_s4 = smov [#allocation6]  }
  0x2d   :  { %25 = dma.hbm_to_smem %s6599_s0, 128, %s4002_s11, [#allocation5]  }
  0x2e   :  { %s31_s27 = sshll.u32 %s4003_s4, 4  ;;  %s4004_s16 = smov [#allocation9]   ;;  %s32_s27 = int_to_ptr.vmem [resolvable:$true] %s31_s27 }
  0x2f   :  { %s55_s17 = sshll.u32 %s4004_s16, 4  ;;  %s3876_s20 = scalar_lea.hbm %s6600_s1, 256  ;;  %s56_s17 = int_to_ptr.vmem [resolvable:$true] %s55_s17 }
  0x30   :  { %p3877_p5 = scmp.ne.s32.totalorder %s6600_s1, %s3876_s20  ;;  %p3880_p6 = scmp.lt.u32.totalorder %s3876_s20, %s6600_s1 }
  0x32   :  { %p3882_p7 = pnand %p3880_p6, %p3877_p5 }
  0x34   :  { %3885 = shalt.err (!%p3882_p7)
}
  0x35   :  { %s3886_s0 = scalar_lea.vmem %s32_s27, 256  ;;  %p3891_p9 = scmp.lt.s32.totalorder %s32_s27, %s32_s27 }
  0x36   :  { %p3887_p8 = scmp.ne.s32.totalorder %s32_s27, %s3886_s0  ;;  %p3892_p10 = scmp.lt.s32.totalorder %s3886_s0, %s3886_s0 }
  0x38   :  { %p3893_p11 = por %p3892_p10, %p3891_p9 }
  0x3a   :  { %p3894_p12 = pnand %p3893_p11, %p3887_p8 }
  0x3c   :  { %3897 = shalt.err (!%p3894_p12)
}
  0x3d   :  { %37 = dma.hbm_to_vmem [thread:$0]  %s6600_s1, 256, %s32_s27, [#allocation3], %s4000_s13, %s4000_s13, %s4001_s14  }
  0x3e   :  { %s3898_s29 = scalar_lea.hbm %s6602_s3, 256 }
  0x3f   :  { %p3899_p13 = scmp.ne.s32.totalorder %s6602_s3, %s3898_s29  ;;  %p3902_p0 = scmp.lt.u32.totalorder %s3898_s29, %s6602_s3 }
  0x41   :  { %p3904_p1 = pnand %p3902_p0, %p3899_p13 }
  0x43   :  { %3907 = shalt.err (!%p3904_p1)
}
  0x44   :  { %s3908_s11 = scalar_lea.vmem %s56_s17, 256  ;;  %p3913_p3 = scmp.lt.s32.totalorder %s56_s17, %s56_s17 }
  0x45   :  { %p3909_p2 = scmp.ne.s32.totalorder %s56_s17, %s3908_s11  ;;  %p3914_p4 = scmp.lt.s32.totalorder %s3908_s11, %s3908_s11 }
  0x47   :  { %p3915_p5 = por %p3914_p4, %p3913_p3 }
  0x49   :  { %p3916_p6 = pnand %p3915_p5, %p3909_p2 }
  0x4b   :  { %3919 = shalt.err (!%p3916_p6)
}
  0x4c   :  { %61 = dma.hbm_to_vmem [thread:$0]  %s6602_s3, 256, %s56_s17, [#allocation8], %s4000_s13, %s4000_s13, %s4001_s14  }
  0x4d   :  { %s4005_s15 = smov [#allocation12]   ;;  %s4006_s27 = smov [#allocation13]  }
  0x4e   :  { %s79_s4 = sshll.u32 %s4005_s15, 4  ;;  %s91_s16 = sshll.u32 %s4006_s27, 4  ;;  %s80_s4 = int_to_ptr.vmem [resolvable:$true] %s79_s4  ;;  %s92_s16 = int_to_ptr.vmem [resolvable:$true] %s91_s16 }
  0x4f   :  { %s3920_s20 = scalar_lea.hbm %s6604_s5, 2560 }
  0x50   :  { %p3921_p7 = scmp.ne.s32.totalorder %s6604_s5, %s3920_s20  ;;  %p3924_p8 = scmp.lt.u32.totalorder %s3920_s20, %s6604_s5 }
  0x52   :  { %p3926_p9 = pnand %p3924_p8, %p3921_p7 }
  0x54   :  { %3929 = shalt.err (!%p3926_p9)
}
  0x55   :  { %s3930_s3 = scalar_lea.vmem %s80_s4, 2560  ;;  %p3935_p11 = scmp.lt.s32.totalorder %s80_s4, %s80_s4 }
  0x56   :  { %p3931_p10 = scmp.ne.s32.totalorder %s80_s4, %s3930_s3  ;;  %p3936_p12 = scmp.lt.s32.totalorder %s3930_s3, %s3930_s3 }
  0x58   :  { %p3937_p13 = por %p3936_p12, %p3935_p11 }
  0x5a   :  { %p3938_p0 = pnand %p3937_p13, %p3931_p10 }
  0x5c   :  { %3941 = shalt.err (!%p3938_p0)
}
  0x5d   :  { %85 = dma.hbm_to_vmem [thread:$0]  %s6604_s5, 2560, %s80_s4, [#allocation11], %s4000_s13, %s4000_s13, %s4001_s14  }
  0x5e   :  { %s3942_s26 = scalar_lea.hbm %s6605_s6, 1280 }
  0x5f   :  { %p3943_p1 = scmp.ne.s32.totalorder %s6605_s6, %s3942_s26  ;;  %p3946_p2 = scmp.lt.u32.totalorder %s3942_s26, %s6605_s6 }
  0x61   :  { %p3948_p3 = pnand %p3946_p2, %p3943_p1 }
  0x63   :  { %3951 = shalt.err (!%p3948_p3)
}
  0x64   :  { %s3952_s9 = scalar_lea.vmem %s92_s16, 1280  ;;  %p3957_p5 = scmp.lt.s32.totalorder %s92_s16, %s92_s16 }
  0x65   :  { %p3953_p4 = scmp.ne.s32.totalorder %s92_s16, %s3952_s9  ;;  %p3958_p6 = scmp.lt.s32.totalorder %s3952_s9, %s3952_s9 }
  0x67   :  { %p3959_p7 = por %p3958_p6, %p3957_p5 }
  0x69   :  { %p3960_p8 = pnand %p3959_p7, %p3953_p4 }
  0x6b   :  { %3963 = shalt.err (!%p3960_p8)
}
  0x6c   :  { %97 = dma.hbm_to_vmem [thread:$0]  %s6605_s6, 1280, %s92_s16, [#allocation14], %s4000_s13, %s4000_s13, %s4001_s14  }
  0x6d   :  { %3986 = dma.done.wait [#allocation5], 128  }
  0x6e   :  { %3987 = vsyncadd [#allocation5], 4294967168 }
  0x6f   :  { %3988 = dma.done.wait [#allocation3], 256  }
  0x70   :  { %3989 = vsyncadd [#allocation3], 4294967040 }
  0x71   :  { %3990 = dma.done.wait [#allocation8], 512  }
  0x72   :  { %3991 = vsyncadd [#allocation8], 4294966784 }
  0x73   :  { %3992 = dma.done.wait [#allocation11], 3200  }
  0x74   :  { %3993 = vsyncadd [#allocation11], 4294964096 }
  0x75   :  { %3994 = dma.done.wait [#allocation14], 1280  }
  0x76   :  { %3995 = vsyncadd [#allocation14], 4294966016 }
  0x77   :  { %119 = sfence }
  0x78   :  { %v138_v0 = vld [vmem:[#allocation6 + $0x8] sm:$0xff]  ;;  %v141_v1 = vld [vmem:[#allocation7 + $0x8] sm:$0xff]  ;;  %v136_v2 = vld [vmem:[#allocation6] sm:$0xff]  ;;  %v6655_v7 = vmov 0.0   ;;  %vm148_vm0 = vcmask 130048   ;;  %v6607_v13 = vmov 6  }
  0x79   :  { %v143_v3 = vmax.f32 %v138_v0, 0.0  ;;  %v145_v4 = vmax.f32 %v141_v1, 0.0  ;;  %v139_v5 = vld [vmem:[#allocation7] sm:$0xff]  ;;  %v142_v6 = vmax.f32 %v136_v2, 0.0  ;;  %219 = vmatprep.mubr.f32.mxu0 %v6655_v7  ;;  %520 = vmatprep.mubr.f32.mxu1 %v6655_v7  ;;  %v146_v11 = vld [vmem:[#allocation9] sm:$0xff]  ;;  %v6645_v14 = vmov 7  }
  0x7a   :  { %v144_v8 = vmax.f32 %v139_v5, 0.0  ;;  %v4192_v12 = vld [vmem:[#allocation10] sm:$0xff]  ;;  %3622 = vset.pattern.permute.xlu1 %v6607_v13  ;;  %v6651_v18 = vmov 0   ;;  %v6639_v19 = vmov 1   ;;  %v6637_v20 = vmov 9   ;;  %v147_v27 = vld [vmem:[#allocation9 + $0x8] sm:$0xff] }
  0x7b   :  { %v3517_v9 = vpack.c.bf16 %v145_v4, %v143_v3  ;;  %342 = vperm.xlu1 %3622, %v4192_v12   ;;  %v6641_v21 = vmov 8   ;;  %v6649_v22 = vmov 19   ;;  %v6635_v23 = vmov 20   ;;  %s4024_s6 = smov 127   ;;  %s4025_s11 = smov 2  }
  0x7c   :  { %v3519_v10 = vpack.c.bf16 %v144_v8, %v142_v6  ;;  %3624 = vset.pattern.permute.xlu0 %v6641_v21  ;;  %v6633_v24 = vmov 2   ;;  %v6647_v25 = vmov 10   ;;  %v6629_v26 = vmov 16   ;;  %s4026_s1 = smov 126   ;;  %s4027_s12 = smov 124  }
  0x7d   :  { %3518 = vmatprep.subr.bf16.mxu0 %v3517_v9  ;;  %v6623_v28 = vmov 17   ;;  %v6619_v36 = vmov 23   ;;  %v6631_v37 = vmov 21   ;;  %v6621_v38 = vmov 22   ;;  %s4028_s15 = smov 1   ;;  %s4029_s4 = smov 4  }
  0x7e   :  { %3520 = vmatpush1.bf16.msra.mxu0 %v3519_v10  ;;  %v6627_v39 = vmov 18   ;;  %v6617_v54 = vmov 12   ;;  %v6615_v55 = vmov 13   ;;  %v6613_v57 = vmov 3   ;;  %s5689_s27 = sld [smem:[#allocation2 + $0x3]]  ;;  %s5693_s18 = sld [smem:[#allocation2 + $0x101]] }
  0x7f   :  { %3623 = vset.pattern.permute.xlu1 %v6645_v14  ;;  %v6611_v59 = vmov 4   ;;  %v6609_v61 = vmov 14   ;;  %v120_v6 = vlaneseq  ;;  %vm443_vm10 = vcmask 261120   ;;  %s5691_s16 = sld [smem:[#allocation2 + $0x103]]  ;;  %s5695_s19 = sld [smem:[#allocation2 + $0x181]] }
  0x80   :  { %348 = vperm.xlu1 %3623, %v4192_v12   ;;  %s5697_s20 = sld [smem:[#allocation2 + $0x102]]  ;;  %s5699_s21 = sld [smem:[#allocation2 + $0x83]] }
  0x81   :  { %3450 = vmatmul.mubr.msk.f32.vlgmr.msra.gmra.mrb[0].mxu0 %vm148_vm0, %v146_v11  ;;  %v4295_v10 = vand.u32 127, %v120_v6  ;;  %s5701_s22 = sld [smem:[#allocation2 + $0x183]]  ;;  %s5716_s23 = sld [smem:[#allocation2 + $0x182]] }
  0x82   :  { %225 = vmatprep.mubr.f32.mxu0 %v6655_v7  ;;  %s5718_s24 = sld [smem:[#allocation2 + $0x1]]  ;;  %s5740_s17 = sld [smem:[#allocation2 + $0x2]] }
  0x83   :  { %vm280_vm1 = vcmp.lt.s32.totalorder %v4295_v10, 2  ;;  %vm289_vm2 = vcmp.lt.s32.totalorder %v4295_v10, 1  ;;  %vm123_vm3 = vcmp.ge.s32.totalorder %v4295_v10, 2  ;;  %vm124_vm4 = vcmp.ge.s32.totalorder %v4295_v10, 1  ;;  %s5723_s3 = sld [smem:[#allocation2 + $0x81]]  ;;  %s5742_s0 = sld [smem:[#allocation2 + $0x82]] }
  0x84   :  { %3625 = vset.pattern.permute.xlu1 %v6651_v18  ;;  %vm271_vm5 = vcmp.lt.s32.totalorder %v4295_v10, 4  ;;  %vm122_vm6 = vcmp.ge.s32.totalorder %v4295_v10, 4  ;;  %vm125_vm7 = vcmp.lt.s32.totalorder %v4295_v10, 127  ;;  %vm126_vm8 = vcmp.lt.s32.totalorder %v4295_v10, 126  ;;  %s5744_s2 = sld [smem:[#allocation2 + $0x4]]  ;;  %s5750_s26 = sld [smem:[#allocation2 + $0x5]] }
  0x85   :  { %320 = vperm.xlu1 %3625, %v4192_v12   ;;  %3451 = vmatmul.mubr.msk.f32.gmra.mrb[2].mxu0 %vm148_vm0, %v147_v27  ;;  %vm127_vm9 = vcmp.lt.s32.totalorder %v4295_v10, 124  ;;  %s5746_s25 = sld [smem:[#allocation2 + $0x84]]  ;;  %s5752_s28 = sld [smem:[#allocation2 + $0x85]]  ;;  %v3202_v10 = vld [vmem:[#allocation13 + $0x48] sm:$0xff] }
  0x86   :  { %793 = vmatprep.mubr.f32.mxu0 %v6655_v7  ;;  %s5781_s29 = sld [smem:[#allocation2 + $0x6]]  ;;  %s5788_s8 = sld [smem:[#allocation2 + $0x7]] }
  0x87   :  { %s5783_s30 = sld [smem:[#allocation2 + $0x86]]  ;;  %s5790_s9 = sld [smem:[#allocation2 + $0x87]] }
  0x88   :  { %s6507_s5 = sld [smem:[#allocation2 + $0x104]] }
  0x89   :  { %3626 = vset.pattern.permute.xlu1 %v6639_v19  ;;  %s6509_s10 = sld [smem:[#allocation2 + $0x184]] }
  0x8a   :  { %326 = vperm.xlu1 %3626, %v4192_v12  }
  0x8e   :  { %3627 = vset.pattern.permute.xlu1 %v6637_v20 }
  0x8f   :  { %364 = vperm.xlu1 %3627, %v4192_v12  }
  0x93   :  { %3628 = vset.pattern.permute.xlu1 %v6649_v22 }
  0x94   :  { %402 = vperm.xlu1 %3628, %v4192_v12  }
  0x98   :  { %3629 = vset.pattern.permute.xlu1 %v6635_v23 }
  0x99   :  { %408 = vperm.xlu1 %3629, %v4192_v12  }
  0x9d   :  { %3630 = vset.pattern.permute.xlu1 %v6633_v24 }
  0x9e   :  { %334 = vperm.xlu1 %3630, %v4192_v12  }
  0xa2   :  { %3631 = vset.pattern.permute.xlu1 %v6647_v25 }
  0xa3   :  { %372 = vperm.xlu1 %3631, %v4192_v12  }
  0xa7   :  { %3633 = vset.pattern.permute.xlu1 %v6629_v26 }
  0xa8   :  { %380 = vperm.xlu1 %3633, %v4192_v12  }
  0xac   :  { %3634 = vset.pattern.permute.xlu1 %v6623_v28 }
  0xad   :  { %386 = vperm.xlu1 %3634, %v4192_v12  }
  0xb1   :  { %3637 = vset.pattern.permute.xlu1 %v6619_v36 }
  0xb2   :  { %432 = vperm.xlu1 %3637, %v4192_v12  }
  0xb6   :  { %3638 = vset.pattern.permute.xlu1 %v6617_v54 }
  0xfa   :  { %v4268_v51 = vpop.permute.xlu1 %342 }
  0xff   :  { %v4270_v52 = vpop.permute.xlu1 %348 }
 0x104   :  { %v4272_v53 = vpop.permute.xlu1 %320 }
 0x109   :  { %v327_v56 = vpop.permute.xlu1 %326 }
 0x10e   :  { %v4280_v58 = vpop.permute.xlu1 %364 }
 0x113   :  { %v403_v60 = vpop.permute.xlu1 %402 }
 0x118   :  { %v409_v62 = vpop.permute.xlu1 %408 }
 0x11d   :  { %v4287_v63 = vpop.permute.xlu1 %334 }
 0x122   :  { %v4289_v0 = vpop.permute.xlu1 %372 }
 0x127   :  { %v4291_v1 = vpop.permute.xlu1 %380 }
 0x12c   :  { %v387_v2 = vpop.permute.xlu1 %386 }
 0x131   :  { %v4293_v3 = vpop.permute.xlu1 %432 }
 0x154   :  { %v221_v15 = vpop.f32.mrb[0].mxu0 }
 0x155   :  { %v223_v16 = vpop.f32.mrb[1].mxu0 }
 0x156   :  { %v232_v17 = vadd.f32 %v223_v16, %v221_v15 }
 0x158   :  { %233 = vadd.xlane.f32.xlu0 %v232_v17  ;;  %v4262_v48 = vpop.f32.mrb[2].mxu0 }
 0x159   :  { %v4264_v49 = vpop.f32.mrb[3].mxu0 }
 0x15a   :  { %v248_v50 = vadd.f32 %v4264_v49, %v4262_v48 }
 0x1e5   :  { %v234_v29 = vpop.xlane.xlu0 %233 }
 0x1e6   :  { %v235_v30 = vmul.f32 0.00390625, %v234_v29 }
 0x1e8   :  { %v236_v31 = vsub.f32 %v221_v15, %v235_v30  ;;  %v237_v32 = vsub.f32 %v223_v16, %v235_v30 }
 0x1ea   :  { %v238_v33 = vmul.f32 %v236_v31, %v236_v31  ;;  %v239_v34 = vmul.f32 %v237_v32, %v237_v32 }
 0x1ec   :  { %v240_v35 = vadd.f32 %v239_v34, %v238_v33 }
 0x1ee   :  { %241 = vadd.xlane.f32.xlu0 %v240_v35 }
 0x204   :  { %356 = vperm.xlu0 %3624, %v4192_v12  }
 0x208   :  { %3632 = vset.pattern.permute.xlu0 %v6631_v37 }
 0x209   :  { %416 = vperm.xlu0 %3632, %v4192_v12  }
 0x20d   :  { %3635 = vset.pattern.permute.xlu0 %v6621_v38 }
 0x20e   :  { %424 = vperm.xlu0 %3635, %v4192_v12  }
 0x212   :  { %3636 = vset.pattern.permute.xlu0 %v6627_v39 }
 0x213   :  { %394 = vperm.xlu0 %3636, %v4192_v12  }
 0x27b   :  { %v242_v40 = vpop.xlane.xlu0 %241 }
 0x27c   :  { %v243_v41 = vmul.f32 0.00390625, %v242_v40 }
 0x27e   :  { %v244_v42 = vadd.f32 1e-05, %v243_v41 }
 0x280   :  { %3741 = vrsqrt.f32 %v244_v42 }
 0x283   :  { %v357_v4 = vpop.permute.xlu0 %356 }
 0x288   :  { %v417_v8 = vpop.permute.xlu0 %416 }
 0x28a   :  { %v3742_v43 = vpop.eup %3741 }
 0x28b   :  { %v4228_v44 = vmul.f32 %v3742_v43, %v236_v31  ;;  %v4230_v45 = vmul.f32 %v3742_v43, %v237_v32 }
 0x28d   :  { %6747 = vst [vmem:[#allocation22_spill] sm:$0xff] %v4228_v44  ;;  %6748 = vst [vmem:[#allocation23_spill] sm:$0xff] %v4230_v45  ;;  %v4233_v46 = vmax.f32 %v4228_v44, 0.0  ;;  %v4240_v47 = vmax.f32 %v4230_v45, 0.0  ;;  %v4297_v11 = vpop.permute.xlu0 %424 }
 0x28f   :  { %6749 = vst [vmem:[#allocation24_spill] sm:$0xff] %v4233_v46  ;;  %294 = vrot.lane.b32.xlu0 %v4233_v46, %s4024_s6  ;;  %276 = vrot.lane.b32.xlu1 %v4233_v46, %s4025_s11  ;;  %6750 = vst [vmem:[#allocation25_spill] sm:$0xff] %v4240_v47  ;;  %v359_v32 = vmul.f32 %v357_v4, %v4233_v46  ;;  %v360_v34 = vmul.f32 %v357_v4, %v4240_v47 }
 0x290   :  { %v4316_v35 = vmul.f32 %v387_v2, %v4233_v46  ;;  %v390_v42 = vmul.f32 %v387_v2, %v4240_v47  ;;  %v419_v4 = vmul.f32 %v417_v8, %v4233_v46  ;;  %v330_v6 = vmul.f32 %v327_v56, %v4240_v47 }
 0x292   :  { %v4301_v17 = vpop.permute.xlu0 %394 }
 0x293   :  { %304 = vrot.lane.b32.xlu0 %v4240_v47, %s4026_s1  ;;  %278 = vrot.lane.b32.xlu1 %v4240_v47, %s4025_s11 }
 0x297   :  { %312 = vrot.lane.b32.xlu0 %v4240_v47, %s4027_s12  ;;  %285 = vrot.lane.b32.xlu1 %v4233_v46, %s4028_s15 }
 0x29b   :  { %287 = vrot.lane.b32.xlu1 %v4240_v47, %s4028_s15 }
 0x29f   :  { %267 = vrot.lane.b32.xlu1 %v4233_v46, %s4029_s4 }
 0x2a3   :  { %269 = vrot.lane.b32.xlu1 %v4240_v47, %s4029_s4 }
 0x2a7   :  { %296 = vrot.lane.b32.xlu1 %v4240_v47, %s4024_s6 }
 0x2ab   :  { %302 = vrot.lane.b32.xlu1 %v4233_v46, %s4026_s1 }
 0x2af   :  { %310 = vrot.lane.b32.xlu1 %v4233_v46, %s4027_s12 }
 0x2b3   :  { %690 = vperm.xlu1 %3638, %v4192_v12  }
 0x2b6   :  { %249 = vadd.xlane.f32.xlu0 %v248_v50 }
 0x2b7   :  { %3639 = vset.pattern.permute.xlu1 %v6615_v55 }
 0x2b8   :  { %698 = vperm.xlu1 %3639, %v4192_v12  }
 0x2bc   :  { %3640 = vset.pattern.permute.xlu1 %v6613_v57 }
 0x2bd   :  { %662 = vperm.xlu1 %3640, %v4192_v12  }
 0x2c1   :  { %3641 = vset.pattern.permute.xlu1 %v6611_v59 }
 0x2c2   :  { %668 = vperm.xlu1 %3641, %v4192_v12  }
 0x2c6   :  { %3642 = vset.pattern.permute.xlu1 %v6609_v61 }
 0x2c7   :  { %706 = vperm.xlu1 %3642, %v4192_v12  }
 0x2cb   :  { %3643 = vset.pattern.permute.xlu1 %v6607_v13 }
 0x301   :  { %v277_v5 = vpop.permute.xlu1 %276 }
 0x305   :  { %v279_v9 = vpop.permute.xlu1 %278 }
 0x306   :  { %v282_v27 = vsel %vm280_vm1, %v279_v9, %v277_v5  ;;  %v281_v30 = vsel %vm280_vm1, %v277_v5, %v279_v9  ;;  %v420_v5 = vmul.f32 %v417_v8, %v4240_v47  ;;  %v295_v9 = vpop.permute.xlu0 %294 }
 0x307   :  { %v4320_v40 = vsel %vm123_vm3, %v282_v27, 0.0  ;;  %v4329_v43 = vsel %vm123_vm3, %v281_v30, 0.0  ;;  %v329_v27 = vmul.f32 %v327_v56, %v4233_v46 }
 0x308   :  { %6751 = vst [vmem:[#allocation26_spill] sm:$0xff] %v4320_v40  ;;  %6752 = vst [vmem:[#allocation27_spill] sm:$0xff] %v4329_v43  ;;  %v384_v56 = vmul.f32 %v4291_v1, %v4329_v43 }
 0x309   :  { %v286_v15 = vpop.permute.xlu1 %285 }
 0x30a   :  { %v305_v38 = vpop.permute.xlu0 %304 }
 0x30d   :  { %v288_v16 = vpop.permute.xlu1 %287 }
 0x30e   :  { %v290_v29 = vsel %vm289_vm2, %v286_v15, %v288_v16  ;;  %v291_v31 = vsel %vm289_vm2, %v288_v16, %v286_v15  ;;  %v411_v16 = vmul.f32 %v409_v62, %v4320_v40 }
 0x30f   :  { %v4324_v41 = vsel %vm124_vm4, %v290_v29, 0.0  ;;  %v4333_v50 = vsel %vm124_vm4, %v291_v31, 0.0  ;;  %v346_v31 = vmul.f32 %v4268_v51, %v4329_v43 }
 0x310   :  { %6753 = vst [vmem:[#allocation28_spill] sm:$0xff] %v4333_v50  ;;  %v352_v2 = vmul.f32 %v4270_v52, %v4324_v41  ;;  %v351_v29 = vmul.f32 %v4270_v52, %v4333_v50  ;;  %v345_v52 = vmul.f32 %v4268_v51, %v4320_v40 }
 0x311   :  { %v268_v33 = vpop.permute.xlu1 %267 }
 0x312   :  { %v354_v51 = vadd.f32 %v352_v2, %v346_v31  ;;  %v353_v36 = vadd.f32 %v351_v29, %v345_v52 }
 0x314   :  { %v362_v52 = vadd.f32 %v360_v34, %v354_v51 }
 0x315   :  { %v270_v15 = vpop.permute.xlu1 %269 }
 0x316   :  { %v272_v8 = vsel %vm271_vm5, %v268_v33, %v270_v15  ;;  %v273_v30 = vsel %vm271_vm5, %v270_v15, %v268_v33  ;;  %v324_v15 = vmul.f32 %v4272_v53, %v4324_v41 }
 0x317   :  { %v4355_v13 = vsel %vm122_vm6, %v273_v30, 0.0  ;;  %v4359_v61 = vsel %vm122_vm6, %v272_v8, 0.0  ;;  %v323_v30 = vmul.f32 %v4272_v53, %v4333_v50  ;;  %v412_v8 = vmul.f32 %v409_v62, %v4329_v43 }
 0x318   :  { %6754 = vst [vmem:[#allocation29_spill] sm:$0xff] %v4355_v13  ;;  %6755 = vst [vmem:[#allocation30_spill] sm:$0xff] %v4359_v61  ;;  %v405_v59 = vmul.f32 %v403_v60, %v4355_v13  ;;  %v406_v33 = vmul.f32 %v403_v60, %v4359_v61  ;;  %v332_v2 = vadd.f32 %v330_v6, %v324_v15 }
 0x319   :  { %v297_v57 = vpop.permute.xlu1 %296  ;;  %v331_v31 = vadd.f32 %v329_v27, %v323_v30  ;;  %v361_v27 = vadd.f32 %v359_v32, %v353_v36 }
 0x31a   :  { %v413_v55 = vadd.f32 %v411_v16, %v405_v59  ;;  %v298_v54 = vsel %vm125_vm7, %v295_v9, %v297_v57  ;;  %v299_v60 = vsel %vm125_vm7, %v297_v57, %v295_v9  ;;  %v414_v28 = vadd.f32 %v412_v8, %v406_v33 }
 0x31b   :  { %v4380_v53 = vsel %vm125_vm7, %v298_v54, 0.0  ;;  %v4384_v62 = vsel %vm125_vm7, %v299_v60, 0.0  ;;  %v383_v59 = vmul.f32 %v4291_v1, %v4320_v40  ;;  %v392_v57 = vadd.f32 %v390_v42, %v384_v56 }
 0x31c   :  { %6756 = vst [vmem:[#allocation31_spill] sm:$0xff] %v4380_v53  ;;  %6757 = vst [vmem:[#allocation32_spill] sm:$0xff] %v4384_v62  ;;  %v368_v16 = vmul.f32 %v4280_v58, %v4384_v62  ;;  %v338_v29 = vmul.f32 %v4287_v63, %v4384_v62  ;;  %v337_v54 = vmul.f32 %v4287_v63, %v4380_v53 }
 0x31d   :  { %v303_v9 = vpop.permute.xlu1 %302  ;;  %v367_v33 = vmul.f32 %v4280_v58, %v4380_v53  ;;  %v421_v8 = vadd.f32 %v419_v4, %v413_v55  ;;  %v422_v42 = vadd.f32 %v420_v5, %v414_v28  ;;  %v313_v28 = vpop.permute.xlu0 %312 }
 0x31e   :  { %v306_v1 = vsel %vm126_vm8, %v303_v9, %v305_v38  ;;  %v307_v6 = vsel %vm126_vm8, %v305_v38, %v303_v9  ;;  %v370_v63 = vadd.f32 %v368_v16, %v362_v52  ;;  %v340_v32 = vadd.f32 %v338_v29, %v332_v2 }
 0x31f   :  { %v4402_v56 = vsel %vm126_vm8, %v306_v1, 0.0  ;;  %v4406_v34 = vsel %vm126_vm8, %v307_v6, 0.0  ;;  %v369_v58 = vadd.f32 %v367_v33, %v361_v27  ;;  %v339_v5 = vadd.f32 %v337_v54, %v331_v31 }
 0x320   :  { %6758 = vst [vmem:[#allocation33_spill] sm:$0xff] %v4402_v56  ;;  %6759 = vst [vmem:[#allocation34_spill] sm:$0xff] %v4406_v34  ;;  %v376_v55 = vmul.f32 %v4289_v0, %v4406_v34  ;;  %v375_v4 = vmul.f32 %v4289_v0, %v4402_v56  ;;  %v428_v36 = vmul.f32 %v4297_v11, %v4406_v34 }
 0x321   :  { %v311_v38 = vpop.permute.xlu1 %310  ;;  %v398_v15 = vmul.f32 %v4301_v17, %v4406_v34  ;;  %v427_v30 = vmul.f32 %v4297_v11, %v4402_v56  ;;  %v397_v11 = vmul.f32 %v4301_v17, %v4402_v56  ;;  %v391_v1 = vadd.f32 %v4316_v35, %v383_v59  ;;  %v439_v17 = vld [vmem:[#allocation12] sm:$0xff] }
 0x322   :  { %v314_v51 = vsel %vm127_vm9, %v311_v38, %v313_v28  ;;  %v315_v60 = vsel %vm127_vm9, %v313_v28, %v311_v38  ;;  %v378_v0 = vadd.f32 %v376_v55, %v370_v63  ;;  %v377_v16 = vadd.f32 %v375_v4, %v369_v58 }
 0x323   :  { %v4424_v9 = vsel %vm127_vm9, %v314_v51, 0.0  ;;  %v4428_v2 = vsel %vm127_vm9, %v315_v60, 0.0  ;;  %v430_v31 = vadd.f32 %v428_v36, %v422_v42  ;;  %v429_v6 = vadd.f32 %v427_v30, %v421_v8 }
 0x324   :  { %6760 = vst [vmem:[#allocation35_spill] sm:$0xff] %v4424_v9  ;;  %6761 = vst [vmem:[#allocation36_spill] sm:$0xff] %v4428_v2  ;;  %v435_v29 = vmul.f32 %v4293_v3, %v4424_v9  ;;  %v436_v52 = vmul.f32 %v4293_v3, %v4428_v2  ;;  %v3521_v54 = vpack.c.bf16 %v378_v0, %v340_v32  ;;  %v440_v3 = vld [vmem:[#allocation12 + $0x8] sm:$0xff]  ;;  %v6643_v35 = vmov 15  }
 0x325   :  { %v3523_v33 = vpack.c.bf16 %v377_v16, %v339_v5  ;;  %v400_v27 = vadd.f32 %v398_v15, %v392_v57  ;;  %v399_v55 = vadd.f32 %v397_v11, %v391_v1  ;;  %3646 = vset.pattern.permute.xlu0 %v6643_v35  ;;  %v4444_v16 = vld [vmem:[#allocation10 + $0x8] sm:$0xff] }
 0x326   :  { %3522 = vmatprep.subr.bf16.mxu1 %v3521_v54  ;;  %v438_v63 = vadd.f32 %v436_v52, %v430_v31  ;;  %v437_v42 = vadd.f32 %v435_v29, %v429_v6 }
 0x327   :  { %3524 = vmatpush1.bf16.msra.mxu1 %v3523_v33 }
 0x328   :  { %v3525_v58 = vpack.c.bf16 %v438_v63, %v400_v27  ;;  %v3527_v4 = vpack.c.bf16 %v437_v42, %v399_v55 }
 0x32a   :  { %3526 = vmatprep.subr.bf16.mxu1 %v3525_v58 }
 0x32b   :  { %3528 = vmatpush1.bf16.msra.mxu1 %v3527_v4 }
 0x32e   :  { %3452 = vmatmul.mubr.msk.f32.vlgmr.msra.gmra.mrb[0].mxu1 %vm443_vm10, %v439_v17 }
 0x32f   :  { %526 = vmatprep.mubr.f32.mxu1 %v6655_v7 }
 0x332   :  { %3453 = vmatmul.mubr.msk.f32.gmra.mrb[2].mxu1 %vm443_vm10, %v440_v3 }
 0x333   :  { %532 = vmatprep.mubr.f32.mxu1 %v6655_v7 }
 0x343   :  { %v250_v59 = vpop.xlane.xlu0 %249 }
 0x344   :  { %v251_v57 = vmul.f32 0.00390625, %v250_v59 }
 0x346   :  { %v252_v8 = vsub.f32 %v4262_v48, %v251_v57  ;;  %v253_v36 = vsub.f32 %v4264_v49, %v251_v57  ;;  %v6653_v48 = vmov 5   ;;  %v4464_v49 = vpop.permute.xlu1 %690 }
 0x348   :  { %v254_v5 = vmul.f32 %v252_v8, %v252_v8  ;;  %v255_v15 = vmul.f32 %v253_v36, %v253_v36 }
 0x34a   :  { %v256_v60 = vadd.f32 %v255_v15, %v254_v5  ;;  %v4466_v31 = vpop.permute.xlu1 %698 }
 0x34e   :  { %v4468_v11 = vpop.permute.xlu1 %662 }
 0x352   :  { %v4470_v29 = vpop.permute.xlu1 %668 }
 0x356   :  { %v4472_v52 = vpop.permute.xlu1 %706 }
 0x401   :  { %v522_v28 = vpop.f32.mrb[0].mxu1 }
 0x402   :  { %v524_v38 = vpop.f32.mrb[1].mxu1 }
 0x403   :  { %v545_v32 = vadd.f32 %v524_v38, %v522_v28 }
 0x405   :  { %546 = vadd.xlane.f32.xlu0 %v545_v32  ;;  %v528_v30 = vpop.f32.mrb[2].mxu1 }
 0x406   :  { %v530_v51 = vpop.f32.mrb[3].mxu1 }
 0x407   :  { %v561_v0 = vadd.f32 %v530_v51, %v528_v30 }
 0x409   :  { %257 = vadd.xlane.f32.xlu0 %v256_v60  ;;  %562 = vadd.xlane.f32.xlu1 %v561_v0  ;;  %v6767_v0 = vmov 22  }
 0x41a   :  { %1016 = vperm.xlu1 %3643, %v4444_v16  }
 0x41e   :  { %3644 = vset.pattern.permute.xlu1 %v6645_v14 }
 0x41f   :  { %1022 = vperm.xlu1 %3644, %v4444_v16   ;;  %714 = vperm.xlu0 %3646, %v4192_v12  }
 0x423   :  { %3645 = vset.pattern.permute.xlu1 %v6653_v48  ;;  %3649 = vset.pattern.permute.xlu0 %v6639_v19 }
 0x424   :  { %676 = vperm.xlu1 %3645, %v4192_v12   ;;  %1000 = vperm.xlu0 %3649, %v4444_v16  }
 0x428   :  { %3647 = vset.pattern.permute.xlu1 %v6641_v21  ;;  %3652 = vset.pattern.permute.xlu0 %v6635_v23 }
 0x429   :  { %1030 = vperm.xlu1 %3647, %v4444_v16   ;;  %1082 = vperm.xlu0 %3652, %v4444_v16  }
 0x42d   :  { %3648 = vset.pattern.permute.xlu1 %v6651_v18  ;;  %3653 = vset.pattern.permute.xlu0 %v6633_v24 }
 0x42e   :  { %994 = vperm.xlu1 %3648, %v4444_v16  }
 0x432   :  { %3650 = vset.pattern.permute.xlu1 %v6637_v20 }
 0x433   :  { %1038 = vperm.xlu1 %3650, %v4444_v16  }
 0x437   :  { %3651 = vset.pattern.permute.xlu1 %v6649_v22 }
 0x492   :  { %v547_v54 = vpop.xlane.xlu0 %546 }
 0x493   :  { %v548_v33 = vmul.f32 0.00390625, %v547_v54  ;;  %v6768_v54 = vmov 23  }
 0x495   :  { %v4474_v1 = vsub.f32 %v522_v28, %v548_v33  ;;  %v4476_v6 = vsub.f32 %v524_v38, %v548_v33  ;;  %v6769_v33 = vmov 12  }
 0x496   :  { %v258_v27 = vpop.xlane.xlu0 %257  ;;  %v563_v63 = vpop.xlane.xlu1 %562 }
 0x497   :  { %v259_v55 = vmul.f32 0.00390625, %v258_v27  ;;  %v564_v42 = vmul.f32 0.00390625, %v563_v63  ;;  %v551_v58 = vmul.f32 %v4474_v1, %v4474_v1  ;;  %v552_v4 = vmul.f32 %v4476_v6, %v4476_v6 }
 0x499   :  { %v260_v17 = vadd.f32 1e-05, %v259_v55  ;;  %v4482_v3 = vsub.f32 %v528_v30, %v564_v42  ;;  %v566_v59 = vsub.f32 %v530_v51, %v564_v42  ;;  %v553_v57 = vadd.f32 %v552_v4, %v551_v58 }
 0x49a   :  { %v4531_v27 = vpop.permute.xlu1 %1016 }
 0x49b   :  { %3743 = vrsqrt.f32 %v260_v17  ;;  %554 = vadd.xlane.f32.xlu1 %v553_v57  ;;  %v567_v28 = vmul.f32 %v4482_v3, %v4482_v3  ;;  %v568_v38 = vmul.f32 %v566_v59, %v566_v59 }
 0x49d   :  { %v569_v32 = vadd.f32 %v568_v38, %v567_v28 }
 0x49e   :  { %v4533_v63 = vpop.permute.xlu1 %1022 }
 0x49f   :  { %570 = vadd.xlane.f32.xlu1 %v569_v32 }
 0x4a5   :  { %v3744_v5 = vpop.eup %3743 }
 0x4a6   :  { %v4486_v15 = vmul.f32 %v3744_v5, %v252_v8  ;;  %v4493_v30 = vmul.f32 %v3744_v5, %v253_v36  ;;  %v6766_v8 = vmov 17   ;;  %v6625_v36 = vmov 11  }
 0x4a8   :  { %6762 = vst [vmem:[#allocation37_spill] sm:$0xff] %v4486_v15  ;;  %v4489_v60 = vmax.f32 %v4486_v15, 0.0  ;;  %6764 = vst [vmem:[#allocation39_spill] sm:$0xff] %v4493_v30  ;;  %v4499_v51 = vmax.f32 %v4493_v30, 0.0 }
 0x4aa   :  { %6763 = vst [vmem:[#allocation38_spill] sm:$0xff] %v4489_v60  ;;  %952 = vrot.lane.b32.xlu0 %v4489_v60, %s4025_s11  ;;  %6765 = vst [vmem:[#allocation40_spill] sm:$0xff] %v4499_v51 }
 0x4ae   :  { %960 = vrot.lane.b32.xlu0 %v4489_v60, %s4028_s15 }
 0x4b0   :  { %1076 = vperm.xlu1 %3651, %v4444_v16  }
 0x4b2   :  { %1008 = vperm.xlu0 %3653, %v4444_v16  }
 0x4b4   :  { %954 = vrot.lane.b32.xlu1 %v4499_v51, %s4025_s11 }
 0x4b5   :  { %3654 = vset.pattern.permute.xlu1 %v6647_v25 }
 0x4b6   :  { %3656 = vset.pattern.permute.xlu0 %v6629_v26 }
 0x4b7   :  { %1054 = vperm.xlu0 %3656, %v4444_v16  }
 0x4b8   :  { %962 = vrot.lane.b32.xlu1 %v4499_v51, %s4028_s15 }
 0x4bb   :  { %944 = vrot.lane.b32.xlu0 %v4489_v60, %s4029_s4 }
 0x4bc   :  { %1046 = vperm.xlu1 %3654, %v4444_v16   ;;  %3659 = vset.pattern.permute.xlu0 %v6627_v39 }
 0x4bf   :  { %968 = vrot.lane.b32.xlu0 %v4489_v60, %s4024_s6 }
 0x4c0   :  { %3655 = vset.pattern.permute.xlu1 %v6631_v37 }
 0x4c1   :  { %1090 = vperm.xlu1 %3655, %v4444_v16  }
 0x4c3   :  { %1068 = vperm.xlu0 %3659, %v4444_v16  }
 0x4c5   :  { %3657 = vset.pattern.permute.xlu1 %v6766_v8 }
 0x4c6   :  { %1060 = vperm.xlu1 %3657, %v4444_v16  }
 0x4c7   :  { %3660 = vset.pattern.permute.xlu0 %v6625_v36 }
 0x4c8   :  { %684 = vperm.xlu0 %3660, %v4192_v12   ;;  %v4535_v12 = vpop.permute.xlu1 %676 }
 0x4ca   :  { %3658 = vset.pattern.permute.xlu1 %v6767_v0 }
 0x4cb   :  { %1098 = vperm.xlu1 %3658, %v4444_v16  }
 0x4cc   :  { %v4537_v55 = vpop.permute.xlu1 %1030 }
 0x4cd   :  { %v1034_v47 = vmul.f32 %v4537_v55, %v4499_v51 }
 0x4cf   :  { %946 = vrot.lane.b32.xlu1 %v4499_v51, %s4029_s4 }
 0x4d0   :  { %3661 = vset.pattern.permute.xlu1 %v6768_v54  ;;  %v4539_v42 = vpop.permute.xlu1 %994 }
 0x4d3   :  { %970 = vrot.lane.b32.xlu1 %v4499_v51, %s4024_s6 }
 0x4d4   :  { %v4541_v58 = vpop.permute.xlu1 %1038 }
 0x4d7   :  { %1106 = vperm.xlu1 %3661, %v4444_v16  }
 0x4db   :  { %3662 = vset.pattern.permute.xlu1 %v6769_v33 }
 0x528   :  { %v555_v4 = vpop.xlane.xlu1 %554 }
 0x529   :  { %v556_v17 = vmul.f32 0.00390625, %v555_v4 }
 0x52b   :  { %v557_v57 = vadd.f32 1e-05, %v556_v17 }
 0x52c   :  { %v571_v28 = vpop.xlane.xlu1 %570 }
 0x52d   :  { %3745 = vrsqrt.f32 %v557_v57  ;;  %v572_v38 = vmul.f32 0.00390625, %v571_v28 }
 0x52f   :  { %v573_v32 = vadd.f32 1e-05, %v572_v38 }
 0x531   :  { %3747 = vrsqrt.f32 %v573_v32 }
 0x537   :  { %v3746_v5 = vpop.eup %3745 }
 0x538   :  { %v559_v36 = vmul.f32 %v3746_v5, %v4474_v1  ;;  %v560_v26 = vmul.f32 %v3746_v5, %v4476_v6 }
 0x53a   :  { %v4544_v39 = vmax.f32 %v559_v36, 0.0  ;;  %v4551_v17 = vmax.f32 %v560_v26, 0.0  ;;  %v4586_v26 = vpop.permute.xlu0 %714 }
 0x53b   :  { %v3748_v37 = vpop.eup %3747 }
 0x53c   :  { %621 = vrot.lane.b32.xlu0 %v4544_v39, %s4024_s6  ;;  %613 = vrot.lane.b32.xlu1 %v4544_v39, %s4028_s15  ;;  %v576_v4 = vmul.f32 %v3748_v37, %v566_v59  ;;  %v575_v1 = vmul.f32 %v3748_v37, %v4482_v3  ;;  %v1077_v37 = vpop.permute.xlu1 %1076 }
 0x53e   :  { %v4553_v57 = vmax.f32 %v576_v4, 0.0  ;;  %v4564_v6 = vmax.f32 %v575_v1, 0.0  ;;  %v1001_v3 = vpop.permute.xlu0 %1000 }
 0x53f   :  { %v1004_v34 = vmul.f32 %v1001_v3, %v4499_v51 }
 0x540   :  { %615 = vrot.lane.b32.xlu1 %v4551_v17, %s4028_s15  ;;  %631 = vrot.lane.b32.xlu0 %v4553_v57, %s4025_s11  ;;  %v955_v59 = vpop.permute.xlu1 %954 }
 0x542   :  { %v1083_v36 = vpop.permute.xlu0 %1082 }
 0x544   :  { %623 = vrot.lane.b32.xlu1 %v4551_v17, %s4024_s6  ;;  %639 = vrot.lane.b32.xlu0 %v4553_v57, %s4028_s15  ;;  %v963_v28 = vpop.permute.xlu1 %962 }
 0x546   :  { %v953_v38 = vpop.permute.xlu0 %952 }
 0x547   :  { %v956_v30 = vsel %vm280_vm1, %v953_v38, %v955_v59  ;;  %v957_v45 = vsel %vm280_vm1, %v955_v59, %v953_v38 }
 0x548   :  { %645 = vrot.lane.b32.xlu0 %v4564_v6, %s4024_s6  ;;  %629 = vrot.lane.b32.xlu1 %v4564_v6, %s4025_s11  ;;  %v4588_v32 = vpop.permute.xlu1 %1046  ;;  %v4622_v61 = vsel %vm123_vm3, %v957_v45, 0.0  ;;  %v1003_v45 = vmul.f32 %v1001_v3, %v4489_v60 }
 0x549   :  { %6772 = vst [vmem:[#allocation43_spill] sm:$0xff] %v4622_v61 }
 0x54a   :  { %v961_v5 = vpop.permute.xlu0 %960 }
 0x54b   :  { %v964_v48 = vsel %vm289_vm2, %v961_v5, %v963_v28  ;;  %v965_v7 = vsel %vm289_vm2, %v963_v28, %v961_v5  ;;  %v4626_v28 = vsel %vm123_vm3, %v956_v30, 0.0  ;;  %v1019_v30 = vmul.f32 %v4531_v27, %v4622_v61 }
 0x54c   :  { %653 = vrot.lane.b32.xlu0 %v4564_v6, %s4026_s1  ;;  %637 = vrot.lane.b32.xlu1 %v4564_v6, %s4028_s15  ;;  %v1091_v1 = vpop.permute.xlu1 %1090  ;;  %v4614_v2 = vsel %vm124_vm4, %v965_v7, 0.0  ;;  %v4618_v9 = vsel %vm124_vm4, %v964_v48, 0.0  ;;  %6773 = vst [vmem:[#allocation44_spill] sm:$0xff] %v4626_v28  ;;  %v1020_v56 = vmul.f32 %v4531_v27, %v4626_v28 }
 0x54d   :  { %6770 = vst [vmem:[#allocation41_spill] sm:$0xff] %v4614_v2  ;;  %6771 = vst [vmem:[#allocation42_spill] sm:$0xff] %v4618_v9  ;;  %v1025_v59 = vmul.f32 %v4533_v63, %v4614_v2  ;;  %v1026_v38 = vmul.f32 %v4533_v63, %v4618_v9  ;;  %v1033_v63 = vmul.f32 %v4537_v55, %v4489_v60 }
 0x54e   :  { %v4590_v4 = vpop.permute.xlu0 %1008  ;;  %v997_v53 = vmul.f32 %v4539_v42, %v4614_v2  ;;  %v998_v62 = vmul.f32 %v4539_v42, %v4618_v9  ;;  %v1085_v42 = vmul.f32 %v1083_v36, %v4622_v61  ;;  %v4672_v55 = vmul.f32 %v4470_v29, %v4551_v17 }
 0x54f   :  { %v702_v9 = vmul.f32 %v4466_v31, %v4553_v57 }
 0x550   :  { %978 = vrot.lane.b32.xlu0 %v4499_v51, %s4026_s1  ;;  %647 = vrot.lane.b32.xlu1 %v4553_v57, %s4024_s6  ;;  %v1061_v23 = vpop.permute.xlu1 %1060  ;;  %v4680_v50 = vadd.f32 %v1004_v34, %v998_v62  ;;  %v701_v34 = vmul.f32 %v4466_v31, %v4564_v6 }
 0x552   :  { %v1055_v24 = vpop.permute.xlu0 %1054 }
 0x553   :  { %v1057_v2 = vmul.f32 %v1055_v24, %v4622_v61  ;;  %v1058_v43 = vmul.f32 %v1055_v24, %v4626_v28 }
 0x554   :  { %986 = vrot.lane.b32.xlu0 %v4499_v51, %s4027_s12  ;;  %655 = vrot.lane.b32.xlu1 %v4553_v57, %s4026_s1  ;;  %v4592_v19 = vpop.permute.xlu1 %1098 }
 0x556   :  { %v945_v20 = vpop.permute.xlu0 %944 }
 0x558   :  { %976 = vrot.lane.b32.xlu1 %v4489_v60, %s4026_s1  ;;  %v947_v35 = vpop.permute.xlu1 %946 }
 0x559   :  { %v948_v48 = vsel %vm271_vm5, %v945_v20, %v947_v35  ;;  %v949_v13 = vsel %vm271_vm5, %v947_v35, %v945_v20  ;;  %v1027_v20 = vadd.f32 %v1025_v59, %v1019_v30  ;;  %v1028_v35 = vadd.f32 %v1026_v38, %v1020_v56 }
 0x55a   :  { %v4594_v21 = vpop.permute.xlu0 %968  ;;  %v4650_v46 = vsel %vm122_vm6, %v949_v13, 0.0  ;;  %v4654_v27 = vsel %vm122_vm6, %v948_v48, 0.0  ;;  %v4663_v56 = vmul.f32 %v4470_v29, %v4544_v39  ;;  %v1063_v13 = vmul.f32 %v1061_v23, %v4489_v60 }
 0x55b   :  { %6774 = vst [vmem:[#allocation45_spill] sm:$0xff] %v4650_v46  ;;  %6775 = vst [vmem:[#allocation46_spill] sm:$0xff] %v4654_v27  ;;  %v1064_v59 = vmul.f32 %v1061_v23, %v4499_v51  ;;  %v1086_v38 = vmul.f32 %v1083_v36, %v4626_v28  ;;  %v4668_v48 = vadd.f32 %v1003_v45, %v997_v53 }
 0x55c   :  { %984 = vrot.lane.b32.xlu1 %v4489_v60, %s4027_s12  ;;  %v4598_v25 = vpop.permute.xlu1 %970  ;;  %v1079_v24 = vmul.f32 %v1077_v37, %v4650_v46  ;;  %v1080_v30 = vmul.f32 %v1077_v37, %v4654_v27  ;;  %v4676_v61 = vadd.f32 %v1033_v63, %v1027_v20  ;;  %v4682_v23 = vadd.f32 %v1034_v47, %v1028_v35 }
 0x55d   :  { %v1093_v53 = vmul.f32 %v1091_v1, %v4489_v60  ;;  %v972_v29 = vsel %vm125_vm7, %v4594_v21, %v4598_v25  ;;  %v1094_v36 = vmul.f32 %v1091_v1, %v4499_v51  ;;  %v4694_v57 = vadd.f32 %v1063_v13, %v1057_v2 }
 0x55e   :  { %v4596_v14 = vpop.permute.xlu0 %1068  ;;  %v4696_v62 = vadd.f32 %v1064_v59, %v1058_v43  ;;  %v1087_v45 = vadd.f32 %v1085_v42, %v1079_v24  ;;  %v1088_v63 = vadd.f32 %v1086_v38, %v1080_v30  ;;  %v973_v2 = vsel %vm125_vm7, %v4598_v25, %v4594_v21 }
 0x55f   :  { %v4710_v43 = vsel %vm125_vm7, %v972_v29, 0.0  ;;  %v4740_v30 = vsel %vm125_vm7, %v973_v2, 0.0 }
 0x560   :  { %v4602_v18 = vpop.permute.xlu1 %1106  ;;  %6776 = vst [vmem:[#allocation47_spill] sm:$0xff] %v4710_v43  ;;  %v4736_v24 = vadd.f32 %v1093_v53, %v1087_v45  ;;  %6777 = vst [vmem:[#allocation48_spill] sm:$0xff] %v4740_v30 }
 0x562   :  { %v4600_v22 = vpop.permute.xlu0 %684 }
 0x5ae   :  { %v622_v44 = vpop.permute.xlu0 %621  ;;  %v614_v15 = vpop.permute.xlu1 %613 }
 0x5b2   :  { %v632_v7 = vpop.permute.xlu0 %631  ;;  %v616_v5 = vpop.permute.xlu1 %615 }
 0x5b3   :  { %v617_v20 = vsel %vm289_vm2, %v614_v15, %v616_v5  ;;  %v618_v35 = vsel %vm289_vm2, %v616_v5, %v614_v15 }
 0x5b4   :  { %v619_v5 = vsel %vm124_vm4, %v618_v35, 0.0  ;;  %v620_v42 = vsel %vm124_vm4, %v617_v20, 0.0 }
 0x5b5   :  { %v665_v53 = vmul.f32 %v4468_v11, %v619_v5  ;;  %v666_v45 = vmul.f32 %v4468_v11, %v620_v42  ;;  %v1011_v42 = vmul.f32 %v4590_v4, %v4710_v43 }
 0x5b6   :  { %v640_v3 = vpop.permute.xlu0 %639  ;;  %v624_v40 = vpop.permute.xlu1 %623 }
 0x5b7   :  { %v626_v15 = vsel %vm125_vm7, %v624_v40, %v622_v44 }
 0x5b8   :  { %v628_v29 = vsel %vm125_vm7, %v626_v15, 0.0 }
 0x5b9   :  { %v680_v11 = vmul.f32 %v4535_v12, %v628_v29 }
 0x5ba   :  { %v630_v39 = vpop.permute.xlu1 %629  ;;  %v646_v47 = vpop.permute.xlu0 %645 }
 0x5bb   :  { %v633_v17 = vsel %vm280_vm1, %v630_v39, %v632_v7  ;;  %v634_v37 = vsel %vm280_vm1, %v632_v7, %v630_v39  ;;  %v625_v7 = vsel %vm125_vm7, %v622_v44, %v624_v40 }
 0x5bc   :  { %v635_v31 = vsel %vm123_vm3, %v634_v37, 0.0  ;;  %v636_v6 = vsel %vm123_vm3, %v633_v17, 0.0  ;;  %v627_v39 = vsel %vm125_vm7, %v625_v7, 0.0 }
 0x5bd   :  { %v687_v44 = vmul.f32 %v4600_v22, %v635_v31  ;;  %v688_v40 = vmul.f32 %v4600_v22, %v636_v6 }
 0x5be   :  { %v638_v1 = vpop.permute.xlu1 %637  ;;  %v654_v17 = vpop.permute.xlu0 %653 }
 0x5bf   :  { %v641_v21 = vsel %vm289_vm2, %v638_v1, %v640_v3  ;;  %v642_v25 = vsel %vm289_vm2, %v640_v3, %v638_v1 }
 0x5c0   :  { %v643_v13 = vsel %vm124_vm4, %v642_v25, 0.0  ;;  %v644_v59 = vsel %vm124_vm4, %v641_v21, 0.0  ;;  %v1096_v21 = vadd.f32 %v1094_v36, %v1088_v63  ;;  %v679_v25 = vmul.f32 %v4535_v12, %v627_v39 }
 0x5c1   :  { %v693_v38 = vmul.f32 %v4464_v49, %v643_v13  ;;  %v694_v3 = vmul.f32 %v4464_v49, %v644_v59  ;;  %v673_v36 = vadd.f32 %v4663_v56, %v665_v53  ;;  %v674_v63 = vadd.f32 %v4672_v55, %v666_v45 }
 0x5c2   :  { %v648_v37 = vpop.permute.xlu1 %647  ;;  %v979_v13 = vpop.permute.xlu0 %978  ;;  %v1012_v55 = vmul.f32 %v4590_v4, %v4740_v30  ;;  %v1013_v4 = vadd.f32 %v1011_v42, %v4668_v48 }
 0x5c3   :  { %v695_v20 = vadd.f32 %v693_v38, %v687_v44  ;;  %v696_v22 = vadd.f32 %v694_v3, %v688_v40  ;;  %v649_v35 = vsel %vm125_vm7, %v646_v47, %v648_v37  ;;  %v650_v49 = vsel %vm125_vm7, %v648_v37, %v646_v47 }
 0x5c4   :  { %v651_v2 = vsel %vm125_vm7, %v649_v35, 0.0  ;;  %v652_v31 = vsel %vm125_vm7, %v650_v49, 0.0  ;;  %v1041_v47 = vmul.f32 %v4541_v58, %v4710_v43  ;;  %v681_v39 = vadd.f32 %v679_v25, %v673_v36 }
 0x5c5   :  { %v703_v6 = vadd.f32 %v701_v34, %v695_v20  ;;  %v704_v1 = vadd.f32 %v702_v9, %v696_v22  ;;  %v709_v7 = vmul.f32 %v4472_v52, %v651_v2  ;;  %v710_v15 = vmul.f32 %v4472_v52, %v652_v31 }
 0x5c6   :  { %v656_v5 = vpop.permute.xlu1 %655  ;;  %v1042_v34 = vmul.f32 %v4541_v58, %v4740_v30  ;;  %v1043_v3 = vadd.f32 %v1041_v47, %v4676_v61  ;;  %v682_v56 = vadd.f32 %v680_v11, %v674_v63  ;;  %v987_v31 = vpop.permute.xlu0 %986 }
 0x5c7   :  { %v657_v9 = vsel %vm126_vm8, %v654_v17, %v656_v5  ;;  %v658_v52 = vsel %vm126_vm8, %v656_v5, %v654_v17  ;;  %v711_v44 = vadd.f32 %v709_v7, %v703_v6  ;;  %v712_v40 = vadd.f32 %v710_v15, %v704_v1  ;;  %v721_v5 = vld [vmem:[#allocation13] sm:$0xff] }
 0x5c8   :  { %v659_v12 = vsel %vm126_vm8, %v657_v9, 0.0  ;;  %v660_v59 = vsel %vm126_vm8, %v658_v52, 0.0  ;;  %v1014_v1 = vadd.f32 %v1012_v55, %v4680_v50 }
 0x5c9   :  { %v717_v58 = vmul.f32 %v4586_v26, %v659_v12  ;;  %v718_v38 = vmul.f32 %v4586_v26, %v660_v59  ;;  %v1044_v26 = vadd.f32 %v1042_v34, %v4682_v23  ;;  %v6782_v59 = vmov 0.0  }
 0x5ca   :  { %v977_v29 = vpop.permute.xlu1 %976 }
 0x5cb   :  { %v719_v17 = vadd.f32 %v717_v58, %v711_v44  ;;  %v980_v37 = vsel %vm126_vm8, %v977_v29, %v979_v13  ;;  %v981_v20 = vsel %vm126_vm8, %v979_v13, %v977_v29  ;;  %v720_v22 = vadd.f32 %v718_v38, %v712_v40  ;;  %v722_v44 = vld [vmem:[#allocation13 + $0x8] sm:$0xff] }
 0x5cc   :  { %v4787_v35 = vsel %vm126_vm8, %v980_v37, 0.0  ;;  %v4791_v61 = vsel %vm126_vm8, %v981_v20, 0.0 }
 0x5cd   :  { %6778 = vst [vmem:[#allocation49_spill] sm:$0xff] %v4787_v35  ;;  %6779 = vst [vmem:[#allocation50_spill] sm:$0xff] %v4791_v61  ;;  %v1101_v49 = vmul.f32 %v4592_v19, %v4787_v35  ;;  %v3529_v53 = vpack.c.bf16 %v720_v22, %v682_v56  ;;  %v3531_v45 = vpack.c.bf16 %v719_v17, %v681_v39 }
 0x5ce   :  { %v1050_v2 = vmul.f32 %v4588_v32, %v4791_v61  ;;  %v985_v6 = vpop.permute.xlu1 %984  ;;  %v1049_v7 = vmul.f32 %v4588_v32, %v4787_v35  ;;  %v1072_v23 = vmul.f32 %v4596_v14, %v4791_v61  ;;  %v1102_v48 = vmul.f32 %v4592_v19, %v4791_v61  ;;  %v6809_v61 = vld [vmem:[#allocation28_spill] sm:$0xff] }
 0x5cf   :  { %v988_v15 = vsel %vm127_vm9, %v985_v6, %v987_v31  ;;  %v989_v47 = vsel %vm127_vm9, %v987_v31, %v985_v6  ;;  %3530 = vmatprep.subr.bf16.mxu0 %v3529_v53  ;;  %v1071_v50 = vmul.f32 %v4596_v14, %v4787_v35  ;;  %v1103_v11 = vadd.f32 %v1101_v49, %v4736_v24 }
 0x5d0   :  { %v1052_v25 = vadd.f32 %v1050_v2, %v1044_v26  ;;  %v4815_v32 = vsel %vm127_vm9, %v988_v15, 0.0  ;;  %v4819_v19 = vsel %vm127_vm9, %v989_v47, 0.0  ;;  %3532 = vmatpush1.bf16.msra.mxu0 %v3531_v45  ;;  %v1051_v42 = vadd.f32 %v1049_v7, %v1043_v3 }
 0x5d1   :  { %6780 = vst [vmem:[#allocation51_spill] sm:$0xff] %v4815_v32  ;;  %6781 = vst [vmem:[#allocation52_spill] sm:$0xff] %v4819_v19  ;;  %v1109_v34 = vmul.f32 %v4602_v18, %v4815_v32  ;;  %v1110_v9 = vmul.f32 %v4602_v18, %v4819_v19  ;;  %v1104_v52 = vadd.f32 %v1102_v48, %v1096_v21  ;;  %v1114_v18 = vld [vmem:[#allocation12 + $0x20] sm:$0xff] }
 0x5d2   :  { %v3533_v14 = vpack.c.bf16 %v1052_v25, %v1014_v1  ;;  %v3535_v24 = vpack.c.bf16 %v1051_v42, %v1013_v4  ;;  %v1074_v36 = vadd.f32 %v1072_v23, %v4696_v62  ;;  %v1073_v12 = vadd.f32 %v1071_v50, %v4694_v57  ;;  %v1115_v62 = vld [vmem:[#allocation12 + $0x28] sm:$0xff] }
 0x5d3   :  { %v1111_v63 = vadd.f32 %v1109_v34, %v1103_v11  ;;  %3456 = vmatmul.mubr.msk.f32.vlgmr.msra.gmra.mrb[4].mxu0 %vm148_vm0, %v721_v5  ;;  %v1112_v13 = vadd.f32 %v1110_v9, %v1104_v52  ;;  %v6789_v25 = vmov 13   ;;  %v6790_v50 = vmov 3   ;;  %v4877_v42 = vld [vmem:[#allocation10 + $0x10] sm:$0xff] }
 0x5d4   :  { %3534 = vmatprep.subr.bf16.mxu0 %v3533_v14  ;;  %799 = vmatprep.mubr.f32.mxu0 %v6782_v59  ;;  %v6791_v11 = vmov 5   ;;  %v6792_v5 = vmov 4   ;;  %v6793_v34 = vmov 0   ;;  %v6794_v9 = vmov 14  }
 0x5d5   :  { %3536 = vmatpush1.bf16.msra.mxu0 %v3535_v24  ;;  %v3537_v40 = vpack.c.bf16 %v1112_v13, %v1074_v36  ;;  %v3539_v58 = vpack.c.bf16 %v1111_v63, %v1073_v12  ;;  %v6795_v14 = vmov 19   ;;  %v6796_v52 = vmov 6  }
 0x5d6   :  { %v6797_v24 = vmov 10   ;;  %v6798_v36 = vmov 7   ;;  %v6799_v63 = vmov 15   ;;  %v6800_v13 = vmov 8  }
 0x5d7   :  { %3457 = vmatmul.mubr.msk.f32.gmra.mrb[6].mxu0 %vm148_vm0, %v722_v44  ;;  %3538 = vmatprep.subr.bf16.mxu0 %v3537_v40  ;;  %v6801_v12 = vmov 1   ;;  %v6802_v44 = vmov 9   ;;  %v6803_v40 = vmov 20  }
 0x5d8   :  { %1194 = vmatprep.mubr.f32.mxu0 %v6782_v59 }
 0x5d9   :  { %3540 = vmatpush1.bf16.msra.mxu0 %v3539_v58  ;;  %v6804_v58 = vmov 2  }
 0x5dc   :  { %3465 = vmatmul.mubr.msk.f32.vlgmr.msra.gmra.mrb[8].mxu0 %vm443_vm10, %v1114_v18  ;;  %v6806_v18 = vmov 16  }
 0x5dd   :  { %1200 = vmatprep.mubr.f32.mxu0 %v6782_v59 }
 0x5e0   :  { %3466 = vmatmul.mubr.msk.f32.gmra.mrb[10].mxu0 %vm443_vm10, %v1115_v62  ;;  %v6807_v62 = vmov 18  }
 0x5e1   :  { %1206 = vmatprep.mubr.f32.mxu0 %v6782_v59 }
 0x6a6   :  { %v4835_v57 = vpop.f32.mrb[4].mxu0 }
 0x6a7   :  { %6783 = vst [vmem:[#allocation53_spill] sm:$0xff] %v4835_v57  ;;  %v4837_v21 = vpop.f32.mrb[5].mxu0 }
 0x6a8   :  { %6784 = vst [vmem:[#allocation54_spill] sm:$0xff] %v4837_v21  ;;  %v4841_v38 = vadd.f32 %v4837_v21, %v4835_v57 }
 0x6aa   :  { %6785 = vst [vmem:[#allocation55_spill] sm:$0xff] %v4841_v38  ;;  %v4843_v3 = vpop.f32.mrb[6].mxu0 }
 0x6ab   :  { %6786 = vst [vmem:[#allocation56_spill] sm:$0xff] %v4843_v3  ;;  %v4845_v39 = vpop.f32.mrb[7].mxu0 }
 0x6ac   :  { %6787 = vst [vmem:[#allocation57_spill] sm:$0xff] %v4845_v39  ;;  %v4849_v29 = vadd.f32 %v4845_v39, %v4843_v3 }
 0x6ae   :  { %6788 = vst [vmem:[#allocation58_spill] sm:$0xff] %v4849_v29 }
 0x6af   :  { %v1196_v56 = vpop.f32.mrb[8].mxu0 }
 0x6b0   :  { %v1198_v55 = vpop.f32.mrb[9].mxu0 }
 0x6b1   :  { %v1219_v17 = vadd.f32 %v1198_v55, %v1196_v56 }
 0x6b3   :  { %1220 = vadd.xlane.f32.xlu0 %v1219_v17  ;;  %v1202_v37 = vpop.f32.mrb[10].mxu0 }
 0x6b4   :  { %v1204_v20 = vpop.f32.mrb[11].mxu0 }
 0x6b5   :  { %v1235_v22 = vadd.f32 %v1204_v20, %v1202_v37 }
 0x6b7   :  { %1236 = vadd.xlane.f32.xlu1 %v1235_v22 }
 0x740   :  { %v1221_v26 = vpop.xlane.xlu0 %1220 }
 0x741   :  { %v1222_v4 = vmul.f32 0.00390625, %v1221_v26 }
 0x743   :  { %v4851_v49 = vsub.f32 %v1196_v56, %v1222_v4  ;;  %v4853_v53 = vsub.f32 %v1198_v55, %v1222_v4 }
 0x744   :  { %v1237_v45 = vpop.xlane.xlu1 %1236 }
 0x745   :  { %v1225_v2 = vmul.f32 %v4851_v49, %v4851_v49  ;;  %v1226_v31 = vmul.f32 %v4853_v53, %v4853_v53  ;;  %v1238_v6 = vmul.f32 0.00390625, %v1237_v45 }
 0x747   :  { %v4859_v1 = vsub.f32 %v1202_v37, %v1238_v6  ;;  %v4861_v7 = vsub.f32 %v1204_v20, %v1238_v6  ;;  %v1227_v23 = vadd.f32 %v1226_v31, %v1225_v2 }
 0x749   :  { %1228 = vadd.xlane.f32.xlu1 %v1227_v23  ;;  %v1241_v48 = vmul.f32 %v4859_v1, %v4859_v1  ;;  %v1242_v15 = vmul.f32 %v4861_v7, %v4861_v7 }
 0x74b   :  { %v1243_v47 = vadd.f32 %v1242_v15, %v1241_v48 }
 0x74d   :  { %1244 = vadd.xlane.f32.xlu0 %v1243_v47 }
 0x75a   :  { %1364 = vperm.xlu1 %3662, %v4444_v16  }
 0x75e   :  { %3663 = vset.pattern.permute.xlu1 %v6789_v25 }
 0x75f   :  { %1372 = vperm.xlu1 %3663, %v4444_v16  }
 0x763   :  { %3664 = vset.pattern.permute.xlu1 %v6790_v50  ;;  %1358 = vperm.xlu0 %3660, %v4444_v16  }
 0x764   :  { %1336 = vperm.xlu1 %3664, %v4444_v16  }
 0x767   :  { %3669 = vset.pattern.permute.xlu0 %v6791_v11 }
 0x768   :  { %3665 = vset.pattern.permute.xlu1 %v6792_v5  ;;  %1350 = vperm.xlu0 %3669, %v4444_v16  }
 0x769   :  { %1342 = vperm.xlu1 %3665, %v4444_v16  }
 0x76c   :  { %3672 = vset.pattern.permute.xlu0 %v6793_v34 }
 0x76d   :  { %3666 = vset.pattern.permute.xlu1 %v6794_v9  ;;  %1621 = vperm.xlu0 %3672, %v4877_v42  }
 0x76e   :  { %1380 = vperm.xlu1 %3666, %v4444_v16  }
 0x771   :  { %3675 = vset.pattern.permute.xlu0 %v6795_v14 }
 0x772   :  { %3667 = vset.pattern.permute.xlu1 %v6796_v52  ;;  %1703 = vperm.xlu0 %3675, %v4877_v42  }
 0x773   :  { %1643 = vperm.xlu1 %3667, %v4877_v42  }
 0x776   :  { %3678 = vset.pattern.permute.xlu0 %v6797_v24 }
 0x777   :  { %3668 = vset.pattern.permute.xlu1 %v6798_v36  ;;  %1673 = vperm.xlu0 %3678, %v4877_v42  }
 0x778   :  { %1649 = vperm.xlu1 %3668, %v4877_v42  }
 0x77b   :  { %3681 = vset.pattern.permute.xlu0 %v6766_v8 }
 0x77c   :  { %3670 = vset.pattern.permute.xlu1 %v6799_v63  ;;  %1687 = vperm.xlu0 %3681, %v4877_v42  }
 0x77d   :  { %1388 = vperm.xlu1 %3670, %v4444_v16   ;;  %v6805_v16 = vmov 21  }
 0x780   :  { %3684 = vset.pattern.permute.xlu0 %v6768_v54 }
 0x781   :  { %3671 = vset.pattern.permute.xlu1 %v6800_v13 }
 0x782   :  { %1657 = vperm.xlu1 %3671, %v4877_v42  }
 0x786   :  { %3673 = vset.pattern.permute.xlu1 %v6801_v12 }
 0x787   :  { %1627 = vperm.xlu1 %3673, %v4877_v42  }
 0x78b   :  { %3674 = vset.pattern.permute.xlu1 %v6802_v44 }
 0x78c   :  { %1665 = vperm.xlu1 %3674, %v4877_v42  }
 0x790   :  { %3676 = vset.pattern.permute.xlu1 %v6803_v40 }
 0x791   :  { %1709 = vperm.xlu1 %3676, %v4877_v42  }
 0x795   :  { %3677 = vset.pattern.permute.xlu1 %v6804_v58 }
 0x796   :  { %1635 = vperm.xlu1 %3677, %v4877_v42  }
 0x79a   :  { %3679 = vset.pattern.permute.xlu1 %v6805_v16  ;;  %v6812_v16 = vld [vmem:[#allocation26_spill] sm:$0xff] }
 0x79b   :  { %1717 = vperm.xlu1 %3679, %v4877_v42  }
 0x79f   :  { %3680 = vset.pattern.permute.xlu1 %v6806_v18 }
 0x7a0   :  { %1681 = vperm.xlu1 %3680, %v4877_v42  }
 0x7a4   :  { %3682 = vset.pattern.permute.xlu1 %v6767_v0 }
 0x7a5   :  { %1725 = vperm.xlu1 %3682, %v4877_v42  }
 0x7a9   :  { %3683 = vset.pattern.permute.xlu1 %v6807_v62  ;;  %v6811_v62 = vld [vmem:[#allocation25_spill] sm:$0xff] }
 0x7d6   :  { %v1229_v56 = vpop.xlane.xlu1 %1228 }
 0x7d7   :  { %v1230_v55 = vmul.f32 0.00390625, %v1229_v56  ;;  %v6808_v56 = vmov 11  }
 0x7d9   :  { %v1231_v17 = vadd.f32 1e-05, %v1230_v55 }
 0x7da   :  { %v1245_v37 = vpop.xlane.xlu0 %1244 }
 0x7db   :  { %3749 = vrsqrt.f32 %v1231_v17  ;;  %v1246_v20 = vmul.f32 0.00390625, %v1245_v37 }
 0x7dd   :  { %v1247_v22 = vadd.f32 1e-05, %v1246_v20 }
 0x7df   :  { %3751 = vrsqrt.f32 %v1247_v22 }
 0x7e5   :  { %v3750_v26 = vpop.eup %3749 }
 0x7e6   :  { %v1233_v4 = vmul.f32 %v3750_v26, %v4851_v49  ;;  %v1234_v45 = vmul.f32 %v3750_v26, %v4853_v53  ;;  %v441_v53 = vld [vmem:[#allocation12 + $0x10] sm:$0xff] }
 0x7e7   :  { %3454 = vmatmul.mubr.msk.f32.gmra.mrb[4].mxu1 %vm443_vm10, %v441_v53 }
 0x7e8   :  { %v1283_v2 = vmax.f32 %v1233_v4, 0.0  ;;  %v1284_v31 = vmax.f32 %v1234_v45, 0.0  ;;  %538 = vmatprep.mubr.f32.mxu1 %v6782_v59 }
 0x7e9   :  { %v3752_v6 = vpop.eup %3751 }
 0x7ea   :  { %1289 = vrot.lane.b32.xlu0 %v1284_v31, %s4028_s15  ;;  %1287 = vrot.lane.b32.xlu1 %v1283_v2, %s4028_s15  ;;  %v1249_v23 = vmul.f32 %v3752_v6, %v4859_v1  ;;  %v1250_v48 = vmul.f32 %v3752_v6, %v4861_v7  ;;  %v442_v1 = vld [vmem:[#allocation12 + $0x18] sm:$0xff]  ;;  %v4939_v7 = vpop.permute.xlu1 %1364 }
 0x7eb   :  { %3455 = vmatmul.mubr.msk.f32.gmra.mrb[6].mxu1 %vm443_vm10, %v442_v1 }
 0x7ec   :  { %v4921_v15 = vmax.f32 %v1249_v23, 0.0  ;;  %v1286_v49 = vmax.f32 %v1250_v48, 0.0  ;;  %1468 = vmatprep.mubr.f32.mxu1 %v6782_v59  ;;  %v1359_v23 = vpop.permute.xlu0 %1358 }
 0x7ee   :  { %1297 = vrot.lane.b32.xlu0 %v1284_v31, %s4024_s6  ;;  %1295 = vrot.lane.b32.xlu1 %v1283_v2, %s4024_s6  ;;  %v1373_v47 = vpop.permute.xlu1 %1372 }
 0x7ef   :  { %v1376_v40 = vmul.f32 %v1373_v47, %v1286_v49 }
 0x7f0   :  { %v4953_v48 = vpop.permute.xlu0 %1350 }
 0x7f2   :  { %1303 = vrot.lane.b32.xlu0 %v4921_v15, %s4025_s11  ;;  %1305 = vrot.lane.b32.xlu1 %v1286_v49, %s4025_s11  ;;  %v4945_v55 = vpop.permute.xlu1 %1336 }
 0x7f4   :  { %v1622_v1 = vpop.permute.xlu0 %1621 }
 0x7f5   :  { %v4980_v54 = vmul.f32 %v1622_v1, %v6809_v61 }
 0x7f6   :  { %1311 = vrot.lane.b32.xlu0 %v4921_v15, %s4028_s15  ;;  %1313 = vrot.lane.b32.xlu1 %v1286_v49, %s4028_s15  ;;  %v1343_v17 = vpop.permute.xlu1 %1342 }
 0x7f7   :  { %v4973_v51 = vmul.f32 %v1343_v17, %v1283_v2  ;;  %v4975_v28 = vmul.f32 %v1343_v17, %v1284_v31  ;;  %v1625_v2 = vmul.f32 %v1622_v1, %v4324_v41  ;;  %v6814_v1 = vld [vmem:[#allocation32_spill] sm:$0xff] }
 0x7f8   :  { %v4959_v3 = vpop.permute.xlu0 %1703 }
 0x7fa   :  { %1321 = vrot.lane.b32.xlu0 %v1286_v49, %s4024_s6  ;;  %1319 = vrot.lane.b32.xlu1 %v4921_v15, %s4024_s6  ;;  %v4947_v37 = vpop.permute.xlu1 %1380 }
 0x7fc   :  { %v4963_v57 = vpop.permute.xlu0 %1673 }
 0x7fe   :  { %1329 = vrot.lane.b32.xlu0 %v1286_v49, %s4026_s1  ;;  %1327 = vrot.lane.b32.xlu1 %v4921_v15, %s4026_s1  ;;  %v1644_v20 = vpop.permute.xlu1 %1643 }
 0x7ff   :  { %v1646_v8 = vmul.f32 %v1644_v20, %v6812_v16 }
 0x800   :  { %v4967_v38 = vpop.permute.xlu0 %1687 }
 0x802   :  { %1733 = vperm.xlu0 %3684, %v4877_v42   ;;  %1695 = vperm.xlu1 %3683, %v4877_v42   ;;  %v1650_v22 = vpop.permute.xlu1 %1649 }
 0x803   :  { %v1653_v43 = vmul.f32 %v1650_v22, %v4324_v41  ;;  %v1652_v30 = vmul.f32 %v1650_v22, %v6809_v61  ;;  %v1375_v61 = vmul.f32 %v1373_v47, %v4921_v15 }
 0x805   :  { %v1654_v14 = vadd.f32 %v1652_v30, %v1646_v8 }
 0x806   :  { %3686 = vset.pattern.permute.xlu0 %v6769_v33  ;;  %3685 = vset.pattern.permute.xlu1 %v6808_v56  ;;  %v4949_v26 = vpop.permute.xlu1 %1388  ;;  %v6810_v56 = vld [vmem:[#allocation27_spill] sm:$0xff] }
 0x807   :  { %v1647_v33 = vmul.f32 %v1644_v20, %v6810_v56  ;;  %v6813_v20 = vld [vmem:[#allocation24_spill] sm:$0xff] }
 0x809   :  { %v1655_v31 = vadd.f32 %v1653_v43, %v1647_v33 }
 0x80a   :  { %v1658_v4 = vpop.permute.xlu1 %1657 }
 0x80b   :  { %v1661_v0 = vmul.f32 %v1658_v4, %v6811_v62  ;;  %v1660_v44 = vmul.f32 %v1658_v4, %v6813_v20 }
 0x80d   :  { %v1663_v12 = vadd.f32 %v1661_v0, %v1655_v31 }
 0x80e   :  { %v1628_v45 = vpop.permute.xlu1 %1627 }
 0x80f   :  { %v1630_v11 = vmul.f32 %v1628_v45, %v6813_v20 }
 0x812   :  { %v4951_v6 = vpop.permute.xlu1 %1665 }
 0x816   :  { %v4955_v53 = vpop.permute.xlu1 %1709 }
 0x81a   :  { %v4957_v39 = vpop.permute.xlu1 %1635 }
 0x81e   :  { %v4961_v21 = vpop.permute.xlu1 %1717 }
 0x822   :  { %v4965_v29 = vpop.permute.xlu1 %1681 }
 0x826   :  { %v4969_v19 = vpop.permute.xlu1 %1725 }
 0x85c   :  { %v1290_v32 = vpop.permute.xlu0 %1289  ;;  %v1288_v27 = vpop.permute.xlu1 %1287 }
 0x85d   :  { %v1291_v17 = vsel %vm289_vm2, %v1288_v27, %v1290_v32  ;;  %v1292_v24 = vsel %vm289_vm2, %v1290_v32, %v1288_v27 }
 0x85e   :  { %v1293_v27 = vsel %vm124_vm4, %v1292_v24, 0.0  ;;  %v1294_v43 = vsel %vm124_vm4, %v1291_v17, 0.0 }
 0x860   :  { %v1298_v46 = vpop.permute.xlu0 %1297  ;;  %v1296_v35 = vpop.permute.xlu1 %1295 }
 0x861   :  { %v1299_v30 = vsel %vm125_vm7, %v1296_v35, %v1298_v46  ;;  %v1300_v32 = vsel %vm125_vm7, %v1298_v46, %v1296_v35  ;;  %v1339_v46 = vmul.f32 %v4945_v55, %v1293_v27  ;;  %v1340_v35 = vmul.f32 %v4945_v55, %v1294_v43 }
 0x864   :  { %v1304_v60 = vpop.permute.xlu0 %1303  ;;  %v1306_v18 = vpop.permute.xlu1 %1305 }
 0x865   :  { %v1307_v58 = vsel %vm280_vm1, %v1304_v60, %v1306_v18  ;;  %v1308_v22 = vsel %vm280_vm1, %v1306_v18, %v1304_v60 }
 0x866   :  { %v1309_v41 = vsel %vm123_vm3, %v1308_v22, 0.0  ;;  %v1310_v60 = vsel %vm123_vm3, %v1307_v58, 0.0  ;;  %v1669_v22 = vmul.f32 %v4951_v6, %v6814_v1 }
 0x867   :  { %v1361_v18 = vmul.f32 %v1359_v23, %v1309_v41  ;;  %v1362_v15 = vmul.f32 %v1359_v23, %v1310_v60 }
 0x868   :  { %v1312_v34 = vpop.permute.xlu0 %1311  ;;  %v1314_v33 = vpop.permute.xlu1 %1313 }
 0x869   :  { %v1315_v8 = vsel %vm289_vm2, %v1312_v34, %v1314_v33  ;;  %v1316_v0 = vsel %vm289_vm2, %v1314_v33, %v1312_v34  ;;  %v1631_v34 = vmul.f32 %v1628_v45, %v6811_v62  ;;  %v1302_v45 = vsel %vm125_vm7, %v1300_v32, 0.0 }
 0x86a   :  { %v1317_v58 = vsel %vm124_vm4, %v1316_v0, 0.0  ;;  %v1318_v24 = vsel %vm124_vm4, %v1315_v8, 0.0  ;;  %v1639_v32 = vmul.f32 %v4957_v39, %v6814_v1 }
 0x86b   :  { %v1367_v49 = vmul.f32 %v4939_v7, %v1317_v58  ;;  %v1368_v47 = vmul.f32 %v4939_v7, %v1318_v24  ;;  %v1301_v7 = vsel %vm125_vm7, %v1299_v30, 0.0  ;;  %v1633_v24 = vadd.f32 %v1631_v34, %v1625_v2 }
 0x86c   :  { %v1322_v4 = vpop.permute.xlu0 %1321  ;;  %v1320_v31 = vpop.permute.xlu1 %1319  ;;  %v1347_v2 = vadd.f32 %v4973_v51, %v1339_v46 }
 0x86d   :  { %v1369_v17 = vadd.f32 %v1367_v49, %v1361_v18  ;;  %v1370_v33 = vadd.f32 %v1368_v47, %v1362_v15  ;;  %v1323_v23 = vsel %vm125_vm7, %v1320_v31, %v1322_v4  ;;  %v1324_v41 = vsel %vm125_vm7, %v1322_v4, %v1320_v31  ;;  %v6815_v18 = vld [vmem:[#allocation31_spill] sm:$0xff]  ;;  %v6816_v31 = vld [vmem:[#allocation34_spill] sm:$0xff] }
 0x86e   :  { %v1325_v60 = vsel %vm125_vm7, %v1323_v23, 0.0  ;;  %v1326_v55 = vsel %vm125_vm7, %v1324_v41, 0.0  ;;  %v1668_v30 = vmul.f32 %v4951_v6, %v6815_v18  ;;  %v1671_v15 = vadd.f32 %v1669_v22, %v1663_v12 }
 0x86f   :  { %v1377_v27 = vadd.f32 %v1375_v61, %v1369_v17  ;;  %v1378_v43 = vadd.f32 %v1376_v40, %v1370_v33  ;;  %v1383_v8 = vmul.f32 %v4947_v37, %v1325_v60  ;;  %v1384_v0 = vmul.f32 %v4947_v37, %v1326_v55 }
 0x870   :  { %v1330_v58 = vpop.permute.xlu0 %1329  ;;  %v1328_v49 = vpop.permute.xlu1 %1327  ;;  %v1353_v47 = vmul.f32 %v4953_v48, %v1301_v7  ;;  %v1354_v4 = vmul.f32 %v4953_v48, %v1302_v45  ;;  %v1348_v61 = vadd.f32 %v4975_v28, %v1340_v35  ;;  %v1677_v17 = vmul.f32 %v4963_v57, %v6816_v31 }
 0x871   :  { %v1331_v40 = vsel %vm126_vm8, %v1328_v49, %v1330_v58  ;;  %v1332_v37 = vsel %vm126_vm8, %v1330_v58, %v1328_v49  ;;  %v1385_v34 = vadd.f32 %v1383_v8, %v1377_v27  ;;  %v1386_v1 = vadd.f32 %v1384_v0, %v1378_v43  ;;  %v6817_v43 = vld [vmem:[#allocation33_spill] sm:$0xff]  ;;  %v1396_v58 = vld [vmem:[#allocation13 + $0x10] sm:$0xff] }
 0x872   :  { %v1333_v12 = vsel %vm126_vm8, %v1331_v40, 0.0  ;;  %v1334_v6 = vsel %vm126_vm8, %v1332_v37, 0.0  ;;  %v1662_v33 = vadd.f32 %v1660_v44, %v1654_v14  ;;  %v1638_v51 = vmul.f32 %v4957_v39, %v6815_v18 }
 0x873   :  { %v1391_v48 = vmul.f32 %v4949_v26, %v1333_v12  ;;  %v1392_v22 = vmul.f32 %v4949_v26, %v1334_v6  ;;  %v1641_v28 = vadd.f32 %v1639_v32, %v1633_v24  ;;  %v1355_v46 = vadd.f32 %v1353_v47, %v1347_v2  ;;  %v6819_v24 = vld [vmem:[#allocation30_spill] sm:$0xff] }
 0x874   :  { %v1356_v23 = vadd.f32 %v1354_v4, %v1348_v61  ;;  %v1632_v7 = vadd.f32 %v1630_v11, %v4980_v54  ;;  %v1670_v45 = vadd.f32 %v1668_v30, %v1662_v33  ;;  %v1679_v27 = vadd.f32 %v1677_v17, %v1671_v15  ;;  %v6818_v54 = vld [vmem:[#allocation29_spill] sm:$0xff] }
 0x875   :  { %v1393_v35 = vadd.f32 %v1391_v48, %v1385_v34  ;;  %v1394_v41 = vadd.f32 %v1392_v22, %v1386_v1  ;;  %v1676_v26 = vmul.f32 %v4963_v57, %v6817_v43  ;;  %v1712_v14 = vmul.f32 %v4955_v53, %v6812_v16  ;;  %v6820_v34 = vld [vmem:[#allocation35_spill] sm:$0xff]  ;;  %v6821_v1 = vld [vmem:[#allocation36_spill] sm:$0xff] }
 0x876   :  { %v1640_v8 = vadd.f32 %v1638_v51, %v1632_v7  ;;  %v1713_v39 = vmul.f32 %v4955_v53, %v6810_v56  ;;  %v3545_v44 = vpack.c.bf16 %v1679_v27, %v1641_v28  ;;  %v1706_v11 = vmul.f32 %v4959_v3, %v6818_v54 }
 0x877   :  { %v3541_v60 = vpack.c.bf16 %v1394_v41, %v1356_v23  ;;  %v3543_v55 = vpack.c.bf16 %v1393_v35, %v1355_v46  ;;  %v1678_v0 = vadd.f32 %v1676_v26, %v1670_v45  ;;  %v1707_v18 = vmul.f32 %v4959_v3, %v6819_v24  ;;  %v1741_v35 = vld [vmem:[#allocation12 + $0x40] sm:$0xff]  ;;  %v1742_v23 = vld [vmem:[#allocation12 + $0x48] sm:$0xff] }
 0x878   :  { %v1720_v57 = vmul.f32 %v4961_v21, %v6813_v20  ;;  %v1721_v30 = vmul.f32 %v4961_v21, %v6811_v62  ;;  %v1714_v53 = vadd.f32 %v1712_v14, %v1706_v11  ;;  %v1728_v49 = vmul.f32 %v4969_v19, %v6817_v43  ;;  %v1397_v21 = vld [vmem:[#allocation13 + $0x18] sm:$0xff] }
 0x879   :  { %3542 = vmatprep.subr.bf16.mxu1 %v3541_v60  ;;  %v3547_v15 = vpack.c.bf16 %v1678_v0, %v1640_v8  ;;  %v1715_v32 = vadd.f32 %v1713_v39, %v1707_v18  ;;  %v1729_v47 = vmul.f32 %v4969_v19, %v6816_v31  ;;  %v1684_v3 = vmul.f32 %v4965_v29, %v6812_v16  ;;  %v5138_v18 = vld [vmem:[#allocation10 + $0x18] sm:$0xff] }
 0x87a   :  { %3544 = vmatpush1.bf16.msra.mxu1 %v3543_v55  ;;  %v1685_v4 = vmul.f32 %v4965_v29, %v6810_v56  ;;  %v1722_v40 = vadd.f32 %v1720_v57, %v1714_v53  ;;  %v1690_v2 = vmul.f32 %v4967_v38, %v6813_v20  ;;  %v1691_v19 = vmul.f32 %v4967_v38, %v6811_v62 }
 0x87b   :  { %3546 = vmatprep.subr.bf16.mxu1 %v3545_v44  ;;  %v1723_v37 = vadd.f32 %v1721_v30, %v1715_v32  ;;  %6830 = vst [vmem:[#allocation33_spill] sm:$0xff] %v5138_v18 }
 0x87c   :  { %v1730_v12 = vadd.f32 %v1728_v49, %v1722_v40  ;;  %v1692_v56 = vadd.f32 %v1690_v2, %v1684_v3  ;;  %v1693_v22 = vadd.f32 %v1691_v19, %v1685_v4 }
 0x87d   :  { %3469 = vmatmul.mubr.msk.f32.vlgmr.msra.gmra.mrb[8].mxu1 %vm148_vm0, %v1396_v58  ;;  %v1731_v6 = vadd.f32 %v1729_v47, %v1723_v37 }
 0x87e   :  { %3548 = vmatpush1.bf16.msra.mxu1 %v3547_v15  ;;  %1474 = vmatprep.mubr.f32.mxu1 %v6782_v59 }
 0x881   :  { %v1734_v61 = vpop.permute.xlu0 %1733  ;;  %v1696_v29 = vpop.permute.xlu1 %1695  ;;  %3470 = vmatmul.mubr.msk.f32.gmra.mrb[10].mxu1 %vm148_vm0, %v1397_v21 }
 0x882   :  { %v1736_v16 = vmul.f32 %v1734_v61, %v6820_v34  ;;  %v1737_v48 = vmul.f32 %v1734_v61, %v6821_v1  ;;  %v1698_v17 = vmul.f32 %v1696_v29, %v6817_v43  ;;  %v1699_v33 = vmul.f32 %v1696_v29, %v6816_v31  ;;  %1821 = vmatprep.mubr.f32.mxu1 %v6782_v59  ;;  %v1116_v61 = vld [vmem:[#allocation12 + $0x30] sm:$0xff] }
 0x883   :  { %3467 = vmatmul.mubr.msk.f32.gmra.mrb[12].mxu0 %vm443_vm10, %v1116_v61  ;;  %v6832_v34 = vmov 1   ;;  %v6834_v1 = vmov 9   ;;  %v6836_v29 = vmov 20   ;;  %v6847_v61 = vld [vmem:[#allocation22_spill] sm:$0xff] }
 0x884   :  { %v1738_v20 = vadd.f32 %v1736_v16, %v1730_v12  ;;  %v1739_v38 = vadd.f32 %v1737_v48, %v1731_v6  ;;  %v1700_v62 = vadd.f32 %v1698_v17, %v1692_v56  ;;  %v1701_v51 = vadd.f32 %v1699_v33, %v1693_v22  ;;  %1212 = vmatprep.mubr.f32.mxu0 %v6782_v59  ;;  %v1117_v12 = vld [vmem:[#allocation12 + $0x38] sm:$0xff] }
 0x885   :  { %v6831_v6 = vmov 5   ;;  %v6833_v16 = vmov 0   ;;  %v6835_v48 = vmov 19   ;;  %v6837_v56 = vmov 10  }
 0x886   :  { %v3549_v28 = vpack.c.bf16 %v1739_v38, %v1701_v51  ;;  %v3551_v46 = vpack.c.bf16 %v1738_v20, %v1700_v62  ;;  %v6839_v22 = vmov 17   ;;  %v6840_v17 = vmov 21  }
 0x887   :  { %3468 = vmatmul.mubr.msk.f32.gmra.mrb[14].mxu0 %vm443_vm10, %v1117_v12  ;;  %v6841_v33 = vmov 23   ;;  %v6842_v20 = vmov 16   ;;  %v6843_v38 = vmov 22   ;;  %v6844_v62 = vmov 18  }
 0x888   :  { %3550 = vmatprep.subr.bf16.mxu1 %v3549_v28  ;;  %2095 = vmatprep.mubr.f32.mxu0 %v6782_v59  ;;  %v6848_v12 = vmov 11  }
 0x889   :  { %3552 = vmatpush1.bf16.msra.mxu1 %v3551_v46 }
 0x88c   :  { %3478 = vmatmul.mubr.msk.f32.vlgmr.msra.gmra.mrb[12].mxu1 %vm443_vm10, %v1741_v35 }
 0x88d   :  { %1827 = vmatprep.mubr.f32.mxu1 %v6782_v59 }
 0x890   :  { %3479 = vmatmul.mubr.msk.f32.gmra.mrb[14].mxu1 %vm443_vm10, %v1742_v23 }
 0x891   :  { %1833 = vmatprep.mubr.f32.mxu1 %v6782_v59 }
 0x8ba   :  { %v5097_v31 = vpop.f32.mrb[4].mxu1 }
 0x8bb   :  { %6822 = vst [vmem:[#allocation28_spill] sm:$0xff] %v5097_v31  ;;  %v5099_v41 = vpop.f32.mrb[5].mxu1 }
 0x8bc   :  { %6823 = vst [vmem:[#allocation27_spill] sm:$0xff] %v5099_v41  ;;  %v5103_v7 = vadd.f32 %v5099_v41, %v5097_v31  ;;  %v6860_v31 = vld [vmem:[#allocation38_spill] sm:$0xff] }
 0x8be   :  { %v5105_v45 = vpop.f32.mrb[6].mxu1 }
 0x8bf   :  { %6824 = vst [vmem:[#allocation25_spill] sm:$0xff] %v5105_v45  ;;  %v5107_v60 = vpop.f32.mrb[7].mxu1 }
 0x8c0   :  { %6825 = vst [vmem:[#allocation26_spill] sm:$0xff] %v5107_v60  ;;  %v5111_v55 = vadd.f32 %v5107_v60, %v5105_v45 }
 0x950   :  { %v5113_v27 = vpop.f32.mrb[8].mxu1 }
 0x951   :  { %6826 = vst [vmem:[#allocation24_spill] sm:$0xff] %v5113_v27  ;;  %v5115_v43 = vpop.f32.mrb[9].mxu1 }
 0x952   :  { %6827 = vst [vmem:[#allocation32_spill] sm:$0xff] %v5115_v43  ;;  %v5119_v26 = vadd.f32 %v5115_v43, %v5113_v27 }
 0x954   :  { %v5121_v8 = vpop.f32.mrb[10].mxu1 }
 0x955   :  { %6828 = vst [vmem:[#allocation31_spill] sm:$0xff] %v5121_v8  ;;  %v5123_v14 = vpop.f32.mrb[11].mxu1 }
 0x956   :  { %6829 = vst [vmem:[#allocation34_spill] sm:$0xff] %v5123_v14  ;;  %v5127_v39 = vadd.f32 %v5123_v14, %v5121_v8 }
 0x95f   :  { %v1823_v44 = vpop.f32.mrb[12].mxu1 }
 0x960   :  { %v1825_v0 = vpop.f32.mrb[13].mxu1 }
 0x961   :  { %v1846_v58 = vadd.f32 %v1825_v0, %v1823_v44 }
 0x963   :  { %1847 = vadd.xlane.f32.xlu0 %v1846_v58  ;;  %v1829_v54 = vpop.f32.mrb[14].mxu1 }
 0x964   :  { %v1831_v11 = vpop.f32.mrb[15].mxu1 }
 0x965   :  { %v1862_v24 = vadd.f32 %v1831_v11, %v1829_v54 }
 0x967   :  { %1863 = vadd.xlane.f32.xlu1 %v1862_v24 }
 0x978   :  { %1985 = vperm.xlu1 %3685, %v4877_v42  }
 0x97c   :  { %3687 = vset.pattern.permute.xlu1 %v6789_v25 }
 0x97d   :  { %1999 = vperm.xlu1 %3687, %v4877_v42  }
 0x981   :  { %3688 = vset.pattern.permute.xlu1 %v6790_v50  ;;  %v6858_v50 = vld [vmem:[#allocation40_spill] sm:$0xff] }
 0x982   :  { %1963 = vperm.xlu1 %3688, %v4877_v42  }
 0x986   :  { %3689 = vset.pattern.permute.xlu1 %v6792_v5  ;;  %v6857_v5 = vld [vmem:[#allocation44_spill] sm:$0xff] }
 0x987   :  { %1969 = vperm.xlu1 %3689, %v4877_v42  }
 0x98b   :  { %3690 = vset.pattern.permute.xlu1 %v6794_v9 }
 0x98c   :  { %2007 = vperm.xlu1 %3690, %v4877_v42  }
 0x990   :  { %3691 = vset.pattern.permute.xlu1 %v6796_v52  ;;  %v6855_v52 = vld [vmem:[#allocation42_spill] sm:$0xff] }
 0x991   :  { %2206 = vperm.xlu1 %3691, %v5138_v18  }
 0x995   :  { %3692 = vset.pattern.permute.xlu1 %v6798_v36 }
 0x996   :  { %2212 = vperm.xlu1 %3692, %v5138_v18  }
 0x99a   :  { %3694 = vset.pattern.permute.xlu1 %v6799_v63 }
 0x9f0   :  { %v1848_v57 = vpop.xlane.xlu0 %1847 }
 0x9f1   :  { %v1849_v30 = vmul.f32 0.00390625, %v1848_v57 }
 0x9f3   :  { %v5145_v15 = vsub.f32 %v1823_v44, %v1849_v30  ;;  %v5147_v53 = vsub.f32 %v1825_v0, %v1849_v30 }
 0x9f4   :  { %v1864_v32 = vpop.xlane.xlu1 %1863 }
 0x9f5   :  { %v1865_v49 = vmul.f32 0.00390625, %v1864_v32  ;;  %v1852_v47 = vmul.f32 %v5145_v15, %v5145_v15  ;;  %v1853_v3 = vmul.f32 %v5147_v53, %v5147_v53 }
 0x9f7   :  { %v5153_v4 = vsub.f32 %v1829_v54, %v1865_v49  ;;  %v5155_v21 = vsub.f32 %v1831_v11, %v1865_v49  ;;  %v1854_v40 = vadd.f32 %v1853_v3, %v1852_v47 }
 0x9f8   :  { %v5195_v51 = vpop.permute.xlu1 %1985 }
 0x9f9   :  { %v1868_v37 = vmul.f32 %v5153_v4, %v5153_v4  ;;  %v1869_v2 = vmul.f32 %v5155_v21, %v5155_v21  ;;  %1855 = vadd.xlane.f32.xlu0 %v1854_v40 }
 0x9fb   :  { %v1870_v19 = vadd.f32 %v1869_v2, %v1868_v37 }
 0x9fc   :  { %v5197_v28 = vpop.permute.xlu1 %1999 }
 0x9fd   :  { %1871 = vadd.xlane.f32.xlu1 %v1870_v19 }
 0xa01   :  { %v5199_v46 = vpop.permute.xlu1 %1963 }
 0xa06   :  { %v5201_v35 = vpop.permute.xlu1 %1969 }
 0xa0b   :  { %v5203_v23 = vpop.permute.xlu1 %2007 }
 0xa0e   :  { %2015 = vperm.xlu1 %3694, %v4877_v42  }
 0xa0f   :  { %1991 = vperm.xlu0 %3686, %v4877_v42  }
 0xa10   :  { %v5205_v44 = vpop.permute.xlu1 %2206 }
 0xa11   :  { %v2210_v63 = vmul.f32 %v5205_v44, %v6857_v5 }
 0xa12   :  { %3695 = vset.pattern.permute.xlu1 %v6800_v13 }
 0xa13   :  { %3693 = vset.pattern.permute.xlu0 %v6831_v6  ;;  %2220 = vperm.xlu1 %3695, %v5138_v18  }
 0xa14   :  { %1977 = vperm.xlu0 %3693, %v4877_v42   ;;  %v6838_v42 = vmov 2  }
 0xa15   :  { %v5207_v0 = vpop.permute.xlu1 %2212 }
 0xa17   :  { %3697 = vset.pattern.permute.xlu1 %v6832_v34  ;;  %v6856_v34 = vld [vmem:[#allocation41_spill] sm:$0xff] }
 0xa18   :  { %3696 = vset.pattern.permute.xlu0 %v6833_v16  ;;  %2190 = vperm.xlu1 %3697, %v5138_v18   ;;  %v2215_v9 = vmul.f32 %v5207_v0, %v6856_v34 }
 0xa19   :  { %2184 = vperm.xlu0 %3696, %v5138_v18  }
 0xa1c   :  { %3698 = vset.pattern.permute.xlu1 %v6834_v1 }
 0xa1d   :  { %3699 = vset.pattern.permute.xlu0 %v6835_v48  ;;  %2228 = vperm.xlu1 %3698, %v5138_v18  }
 0xa1e   :  { %2266 = vperm.xlu0 %3699, %v5138_v18  }
 0xa21   :  { %3700 = vset.pattern.permute.xlu1 %v6836_v29  ;;  %v2216_v29 = vmul.f32 %v5207_v0, %v6855_v52 }
 0xa22   :  { %3702 = vset.pattern.permute.xlu0 %v6837_v56  ;;  %2272 = vperm.xlu1 %3700, %v5138_v18  }
 0xa23   :  { %2236 = vperm.xlu0 %3702, %v5138_v18   ;;  %v2218_v45 = vadd.f32 %v2216_v29, %v2210_v63 }
 0xa26   :  { %3701 = vset.pattern.permute.xlu1 %v6838_v42 }
 0xa27   :  { %3705 = vset.pattern.permute.xlu0 %v6839_v22  ;;  %2198 = vperm.xlu1 %3701, %v5138_v18  }
 0xa28   :  { %2250 = vperm.xlu0 %3705, %v5138_v18  }
 0xa2b   :  { %3703 = vset.pattern.permute.xlu1 %v6840_v17 }
 0xa2c   :  { %2280 = vperm.xlu1 %3703, %v5138_v18   ;;  %3708 = vset.pattern.permute.xlu0 %v6841_v33 }
 0xa30   :  { %3704 = vset.pattern.permute.xlu1 %v6842_v20 }
 0xa31   :  { %2244 = vperm.xlu1 %3704, %v5138_v18  }
 0xa35   :  { %3706 = vset.pattern.permute.xlu1 %v6843_v38 }
 0xa36   :  { %2288 = vperm.xlu1 %3706, %v5138_v18  }
 0xa3a   :  { %3707 = vset.pattern.permute.xlu1 %v6844_v62 }
 0xa86   :  { %v1856_v58 = vpop.xlane.xlu0 %1855 }
 0xa87   :  { %v1857_v54 = vmul.f32 0.00390625, %v1856_v58  ;;  %v6849_v58 = vld [vmem:[#allocation23_spill] sm:$0xff] }
 0xa89   :  { %v1858_v11 = vadd.f32 1e-05, %v1857_v54  ;;  %v6850_v54 = vld [vmem:[#allocation39_spill] sm:$0xff] }
 0xa8a   :  { %v1872_v24 = vpop.xlane.xlu1 %1871 }
 0xa8b   :  { %3753 = vrsqrt.f32 %v1858_v11  ;;  %v1873_v57 = vmul.f32 0.00390625, %v1872_v24  ;;  %v5267_v24 = vpop.f32.mrb[12].mxu0 }
 0xa8c   :  { %6851 = vst [vmem:[#allocation29_spill] sm:$0xff] %v5267_v24 }
 0xa8d   :  { %v1874_v30 = vadd.f32 1e-05, %v1873_v57 }
 0xa8e   :  { %v5265_v11 = vpop.permute.xlu1 %2015 }
 0xa8f   :  { %3755 = vrsqrt.f32 %v1874_v30  ;;  %v5269_v30 = vpop.f32.mrb[13].mxu0 }
 0xa90   :  { %6852 = vst [vmem:[#allocation30_spill] sm:$0xff] %v5269_v30 }
 0xa92   :  { %v2221_v57 = vpop.permute.xlu1 %2220 }
 0xa93   :  { %v2224_v25 = vmul.f32 %v2221_v57, %v6858_v50  ;;  %v5325_v43 = vmul.f32 %v2221_v57, %v6860_v31 }
 0xa95   :  { %v3754_v32 = vpop.eup %3753 }
 0xa96   :  { %v1861_v49 = vmul.f32 %v3754_v32, %v5147_v53  ;;  %v1860_v47 = vmul.f32 %v3754_v32, %v5145_v15  ;;  %v5273_v32 = vadd.f32 %v5269_v30, %v5267_v24 }
 0xa98   :  { %v5211_v3 = vmax.f32 %v1861_v49, 0.0  ;;  %v5213_v40 = vmax.f32 %v1860_v47, 0.0  ;;  %v5275_v49 = vpop.f32.mrb[14].mxu0 }
 0xa99   :  { %v3756_v37 = vpop.eup %3755  ;;  %6853 = vst [vmem:[#allocation35_spill] sm:$0xff] %v5275_v49  ;;  %v5277_v47 = vpop.f32.mrb[15].mxu0 }
 0xa9a   :  { %1916 = vrot.lane.b32.xlu0 %v5211_v3, %s4028_s15  ;;  %1914 = vrot.lane.b32.xlu1 %v5213_v40, %s4028_s15  ;;  %v1876_v2 = vmul.f32 %v3756_v37, %v5153_v4  ;;  %v1877_v53 = vmul.f32 %v3756_v37, %v5155_v21  ;;  %v6845_v4 = vld [vmem:[#allocation37_spill] sm:$0xff]  ;;  %v6846_v21 = vmov 12   ;;  %6854 = vst [vmem:[#allocation36_spill] sm:$0xff] %v5277_v47 }
 0xa9b   :  { %v5281_v37 = vadd.f32 %v5277_v47, %v5275_v49 }
 0xa9c   :  { %v5224_v15 = vmax.f32 %v1876_v2, 0.0  ;;  %v5231_v19 = vmax.f32 %v1877_v53, 0.0  ;;  %v2191_v2 = vpop.permute.xlu1 %2190  ;;  %v1992_v53 = vpop.permute.xlu0 %1991 }
 0xa9d   :  { %v2194_v49 = vmul.f32 %v2191_v2, %v6858_v50  ;;  %v5328_v63 = vmul.f32 %v2191_v2, %v6860_v31 }
 0xa9e   :  { %1924 = vrot.lane.b32.xlu0 %v5211_v3, %s4024_s6  ;;  %1922 = vrot.lane.b32.xlu1 %v5213_v40, %s4024_s6 }
 0xaa0   :  { %v5285_v33 = vpop.permute.xlu0 %1977 }
 0xaa2   :  { %1938 = vrot.lane.b32.xlu0 %v5224_v15, %s4028_s15  ;;  %1930 = vrot.lane.b32.xlu1 %v5224_v15, %s4025_s11 }
 0xaa4   :  { %v2185_v38 = vpop.permute.xlu0 %2184 }
 0xaa5   :  { %v2188_v30 = vmul.f32 %v2185_v38, %v6855_v52  ;;  %v2226_v52 = vadd.f32 %v2224_v25, %v2218_v45  ;;  %v5331_v29 = vmul.f32 %v2185_v38, %v6856_v34 }
 0xaa6   :  { %1948 = vrot.lane.b32.xlu0 %v5231_v19, %s4024_s6  ;;  %1932 = vrot.lane.b32.xlu1 %v5231_v19, %s4025_s11 }
 0xaa7   :  { %v2196_v27 = vadd.f32 %v2194_v49, %v2188_v30 }
 0xaa8   :  { %v5291_v62 = vpop.permute.xlu0 %2266 }
 0xaaa   :  { %1956 = vrot.lane.b32.xlu0 %v5231_v19, %s4026_s1  ;;  %1940 = vrot.lane.b32.xlu1 %v5231_v19, %s4028_s15 }
 0xaac   :  { %v5295_v20 = vpop.permute.xlu0 %2236 }
 0xaae   :  { %2296 = vperm.xlu0 %3708, %v5138_v18   ;;  %1946 = vrot.lane.b32.xlu1 %v5224_v15, %s4024_s6 }
 0xab0   :  { %v5299_v42 = vpop.permute.xlu0 %2250 }
 0xab2   :  { %1513 = vrot.lane.b32.xlu0 %v6845_v4, %s4028_s15  ;;  %1954 = vrot.lane.b32.xlu1 %v5224_v15, %s4026_s1 }
 0xab3   :  { %3710 = vset.pattern.permute.xlu0 %v6846_v21  ;;  %v5283_v21 = vpop.permute.xlu1 %2228 }
 0xab6   :  { %844 = vrot.lane.b32.xlu0 %v6847_v61, %s4024_s6  ;;  %2258 = vperm.xlu1 %3707, %v5138_v18   ;;  %v6859_v18 = vld [vmem:[#allocation43_spill] sm:$0xff] }
 0xab7   :  { %v2209_v47 = vmul.f32 %v5205_v44, %v6859_v18 }
 0xab9   :  { %v5318_v8 = vadd.f32 %v2215_v9, %v2209_v47  ;;  %v1972_v9 = vmul.f32 %v5201_v35, %v5213_v40 }
 0xaba   :  { %1519 = vrot.lane.b32.xlu0 %v6845_v4, %s4024_s6  ;;  %838 = vrot.lane.b32.xlu1 %v6847_v61, %s4028_s15 }
 0xabb   :  { %3709 = vset.pattern.permute.xlu1 %v6848_v12  ;;  %v5287_v12 = vpop.permute.xlu1 %2272 }
 0xabe   :  { %840 = vrot.lane.b32.xlu1 %v6849_v58, %s4028_s15 }
 0xabf   :  { %v5289_v22 = vpop.permute.xlu1 %2198 }
 0xac2   :  { %1515 = vrot.lane.b32.xlu1 %v6850_v54, %s4028_s15 }
 0xac3   :  { %v5293_v17 = vpop.permute.xlu1 %2280 }
 0xac6   :  { %846 = vrot.lane.b32.xlu1 %v6849_v58, %s4024_s6 }
 0xac7   :  { %v5297_v56 = vpop.permute.xlu1 %2244 }
 0xaca   :  { %1521 = vrot.lane.b32.xlu1 %v6850_v54, %s4024_s6 }
 0xacb   :  { %v5301_v48 = vpop.permute.xlu1 %2288 }
 0xb0c   :  { %v1917_v1 = vpop.permute.xlu0 %1916  ;;  %v1915_v16 = vpop.permute.xlu1 %1914 }
 0xb0d   :  { %v1918_v41 = vsel %vm289_vm2, %v1915_v16, %v1917_v1  ;;  %v1919_v44 = vsel %vm289_vm2, %v1917_v1, %v1915_v16 }
 0xb0e   :  { %v1920_v25 = vsel %vm124_vm4, %v1919_v44, 0.0  ;;  %v1921_v45 = vsel %vm124_vm4, %v1918_v41, 0.0 }
 0xb10   :  { %v1923_v13 = vpop.permute.xlu1 %1922  ;;  %v1925_v6 = vpop.permute.xlu0 %1924 }
 0xb11   :  { %v1926_v38 = vsel %vm125_vm7, %v1923_v13, %v1925_v6  ;;  %v1927_v40 = vsel %vm125_vm7, %v1925_v6, %v1923_v13  ;;  %v2002_v13 = vmul.f32 %v5197_v28, %v5224_v15  ;;  %v2003_v6 = vmul.f32 %v5197_v28, %v5231_v19 }
 0xb14   :  { %v1931_v36 = vpop.permute.xlu1 %1930  ;;  %v1939_v24 = vpop.permute.xlu0 %1938 }
 0xb18   :  { %v1933_v60 = vpop.permute.xlu1 %1932 }
 0xb19   :  { %v1934_v14 = vsel %vm280_vm1, %v1931_v36, %v1933_v60  ;;  %v1935_v0 = vsel %vm280_vm1, %v1933_v60, %v1931_v36 }
 0xb1a   :  { %v1936_v36 = vsel %vm123_vm3, %v1935_v0, 0.0  ;;  %v1937_v60 = vsel %vm123_vm3, %v1934_v14, 0.0  ;;  %v1949_v14 = vpop.permute.xlu0 %1948  ;;  %v1967_v0 = vmul.f32 %v5199_v46, %v1921_v45 }
 0xb1b   :  { %v1988_v41 = vmul.f32 %v5195_v51, %v1936_v36  ;;  %v1989_v49 = vmul.f32 %v5195_v51, %v1937_v60 }
 0xb1c   :  { %v1941_v16 = vpop.permute.xlu1 %1940 }
 0xb1d   :  { %v1942_v34 = vsel %vm289_vm2, %v1939_v24, %v1941_v16  ;;  %v1943_v1 = vsel %vm289_vm2, %v1941_v16, %v1939_v24  ;;  %v1966_v24 = vmul.f32 %v5199_v46, %v1920_v25  ;;  %v1929_v46 = vsel %vm125_vm7, %v1927_v40, 0.0 }
 0xb1e   :  { %v1944_v57 = vsel %vm124_vm4, %v1943_v1, 0.0  ;;  %v1945_v30 = vsel %vm124_vm4, %v1942_v34, 0.0  ;;  %v6861_v34 = vld [vmem:[#allocation48_spill] sm:$0xff] }
 0xb1f   :  { %v1994_v47 = vmul.f32 %v1992_v53, %v1944_v57  ;;  %v1995_v2 = vmul.f32 %v1992_v53, %v1945_v30  ;;  %v1928_v53 = vsel %vm125_vm7, %v1926_v38, 0.0  ;;  %v6862_v57 = vld [vmem:[#allocation50_spill] sm:$0xff]  ;;  %v2202_v40 = vmul.f32 %v5289_v22, %v6861_v34 }
 0xb20   :  { %v1947_v44 = vpop.permute.xlu1 %1946  ;;  %v2240_v38 = vmul.f32 %v5295_v20, %v6862_v57  ;;  %v1973_v30 = vmul.f32 %v5201_v35, %v5211_v3 }
 0xb21   :  { %v1996_v16 = vadd.f32 %v1994_v47, %v1988_v41  ;;  %v1997_v1 = vadd.f32 %v1995_v2, %v1989_v49  ;;  %v1950_v36 = vsel %vm125_vm7, %v1947_v44, %v1949_v14  ;;  %v1951_v51 = vsel %vm125_vm7, %v1949_v14, %v1947_v44  ;;  %v1957_v41 = vpop.permute.xlu0 %1956 }
 0xb22   :  { %v1952_v15 = vsel %vm125_vm7, %v1950_v36, 0.0  ;;  %v1953_v28 = vsel %vm125_vm7, %v1951_v51, 0.0  ;;  %v2232_v14 = vmul.f32 %v5283_v21, %v6861_v34  ;;  %v1980_v47 = vmul.f32 %v5285_v33, %v1928_v53  ;;  %v6863_v51 = vld [vmem:[#allocation47_spill] sm:$0xff] }
 0xb23   :  { %v2004_v19 = vadd.f32 %v2002_v13, %v1996_v16  ;;  %v2005_v60 = vadd.f32 %v2003_v6, %v1997_v1  ;;  %v2010_v25 = vmul.f32 %v5203_v23, %v1952_v15  ;;  %v2011_v45 = vmul.f32 %v5203_v23, %v1953_v28 }
 0xb24   :  { %v1955_v49 = vpop.permute.xlu1 %1954  ;;  %v1981_v2 = vmul.f32 %v5285_v33, %v1929_v46  ;;  %v1974_v6 = vadd.f32 %v1972_v9, %v1966_v24  ;;  %v1975_v44 = vadd.f32 %v1973_v30, %v1967_v0  ;;  %v2231_v53 = vmul.f32 %v5283_v21, %v6863_v51 }
 0xb25   :  { %v1958_v23 = vsel %vm126_vm8, %v1955_v49, %v1957_v41  ;;  %v1959_v13 = vsel %vm126_vm8, %v1957_v41, %v1955_v49  ;;  %v2012_v3 = vadd.f32 %v2010_v25, %v2004_v19  ;;  %v2013_v1 = vadd.f32 %v2011_v45, %v2005_v60  ;;  %v6864_v25 = vld [vmem:[#allocation49_spill] sm:$0xff] }
 0xb26   :  { %v1960_v16 = vsel %vm126_vm8, %v1958_v23, 0.0  ;;  %v1961_v35 = vsel %vm126_vm8, %v1959_v13, 0.0  ;;  %v2234_v46 = vadd.f32 %v2232_v14, %v2226_v52  ;;  %v2201_v9 = vmul.f32 %v5289_v22, %v6863_v51 }
 0xb27   :  { %v2018_v36 = vmul.f32 %v5265_v11, %v1960_v16  ;;  %v2019_v33 = vmul.f32 %v5265_v11, %v1961_v35  ;;  %v2204_v24 = vadd.f32 %v2202_v40, %v2196_v27  ;;  %v1982_v0 = vadd.f32 %v1980_v47, %v1974_v6 }
 0xb28   :  { %v1983_v28 = vadd.f32 %v1981_v2, %v1975_v44  ;;  %v2225_v19 = vadd.f32 %v5325_v43, %v5318_v8  ;;  %v2195_v60 = vadd.f32 %v5328_v63, %v5331_v29  ;;  %v2239_v11 = vmul.f32 %v5295_v20, %v6864_v25  ;;  %v2023_v8 = vld [vmem:[#allocation13 + $0x20] sm:$0xff]  ;;  %v6865_v63 = vld [vmem:[#allocation45_spill] sm:$0xff] }
 0xb29   :  { %v2020_v15 = vadd.f32 %v2018_v36, %v2012_v3  ;;  %v2021_v34 = vadd.f32 %v2019_v33, %v2013_v1  ;;  %v2242_v45 = vadd.f32 %v2240_v38, %v2234_v46  ;;  %v2275_v27 = vmul.f32 %v5287_v12, %v6859_v18  ;;  %v6866_v38 = vld [vmem:[#allocation46_spill] sm:$0xff]  ;;  %v6867_v3 = vld [vmem:[#allocation51_spill] sm:$0xff]  ;;  %v6868_v36 = vld [vmem:[#allocation52_spill] sm:$0xff] }
 0xb2a   :  { %v2233_v14 = vadd.f32 %v2231_v53, %v2225_v19  ;;  %v2203_v30 = vadd.f32 %v2201_v9, %v2195_v60  ;;  %v2276_v40 = vmul.f32 %v5287_v12, %v6857_v5  ;;  %v2269_v29 = vmul.f32 %v5291_v62, %v6865_v63 }
 0xb2b   :  { %v3553_v21 = vpack.c.bf16 %v2021_v34, %v1983_v28  ;;  %v3555_v52 = vpack.c.bf16 %v2020_v15, %v1982_v0  ;;  %v3557_v22 = vpack.c.bf16 %v2242_v45, %v2204_v24  ;;  %v2283_v20 = vmul.f32 %v5293_v17, %v6860_v31 }
 0xb2c   :  { %v2241_v43 = vadd.f32 %v2239_v11, %v2233_v14  ;;  %v2270_v41 = vmul.f32 %v5291_v62, %v6866_v38  ;;  %v2284_v49 = vmul.f32 %v5293_v17, %v6858_v50  ;;  %v2277_v2 = vadd.f32 %v2275_v27, %v2269_v29 }
 0xb2d   :  { %3554 = vmatprep.subr.bf16.mxu0 %v3553_v21  ;;  %v2247_v12 = vmul.f32 %v5297_v56, %v6859_v18  ;;  %v2248_v23 = vmul.f32 %v5297_v56, %v6857_v5  ;;  %v2291_v13 = vmul.f32 %v5301_v48, %v6864_v25  ;;  %v2297_v6 = vpop.permute.xlu0 %2296  ;;  %v2292_v62 = vmul.f32 %v5301_v48, %v6862_v57  ;;  %v2024_v18 = vld [vmem:[#allocation13 + $0x28] sm:$0xff] }
 0xb2e   :  { %3556 = vmatpush1.bf16.msra.mxu0 %v3555_v52  ;;  %v3559_v47 = vpack.c.bf16 %v2241_v43, %v2203_v30  ;;  %v2278_v44 = vadd.f32 %v2276_v40, %v2270_v41  ;;  %v3448_v17 = vsel %vm124_vm4, 1.0, %v6782_v59  ;;  %v2253_v5 = vmul.f32 %v5299_v42, %v6860_v31  ;;  %v2305_v40 = vld [vmem:[#allocation12 + $0x68] sm:$0xff] }
 0xb2f   :  { %3558 = vmatprep.subr.bf16.mxu0 %v3557_v22  ;;  %v2254_v56 = vmul.f32 %v5299_v42, %v6858_v50  ;;  %v2285_v16 = vadd.f32 %v2283_v20, %v2277_v2  ;;  %v2299_v1 = vmul.f32 %v2297_v6, %v6867_v3  ;;  %v2300_v48 = vmul.f32 %v2297_v6, %v6868_v36 }
 0xb30   :  { %v2286_v35 = vadd.f32 %v2284_v49, %v2278_v44  ;;  %v2255_v33 = vadd.f32 %v2253_v5, %v2247_v12  ;;  %v130_v9 = vadd.f32 1.0, %v3448_v17  ;;  %v3449_v50 = vsel %vm125_vm7, 1.0, %v6782_v59 }
 0xb31   :  { %3482 = vmatmul.mubr.msk.f32.vlgmr.msra.gmra.mrb[16].mxu0 %vm148_vm0, %v2023_v8  ;;  %v2256_v51 = vadd.f32 %v2254_v56, %v2248_v23  ;;  %v2293_v53 = vadd.f32 %v2291_v13, %v2285_v16  ;;  %v1514_v21 = vpop.permute.xlu0 %1513 }
 0xb32   :  { %3560 = vmatpush1.bf16.msra.mxu0 %v3559_v47  ;;  %2101 = vmatprep.mubr.f32.mxu0 %v6782_v59  ;;  %v2294_v24 = vadd.f32 %v2292_v62, %v2286_v35  ;;  %v133_v60 = vadd.f32 %v3449_v50, %v130_v9 }
 0xb33   :  { %v2301_v42 = vadd.f32 %v2299_v1, %v2293_v53 }
 0xb34   :  { %v2302_v15 = vadd.f32 %v2300_v48, %v2294_v24  ;;  %3757 = vrcp.f32 %v133_v60 }
 0xb35   :  { %v2259_v46 = vpop.permute.xlu1 %2258  ;;  %3483 = vmatmul.mubr.msk.f32.gmra.mrb[18].mxu0 %vm148_vm0, %v2024_v18  ;;  %v845_v20 = vpop.permute.xlu0 %844 }
 0xb36   :  { %v2261_v0 = vmul.f32 %v2259_v46, %v6864_v25  ;;  %v2262_v31 = vmul.f32 %v2259_v46, %v6862_v57  ;;  %2384 = vmatprep.mubr.f32.mxu0 %v6782_v59  ;;  %v2304_v57 = vld [vmem:[#allocation12 + $0x60] sm:$0xff] }
 0xb38   :  { %v2263_v28 = vadd.f32 %v2261_v0, %v2255_v33  ;;  %v2264_v34 = vadd.f32 %v2262_v31, %v2256_v51 }
 0xb39   :  { %v839_v19 = vpop.permute.xlu1 %838  ;;  %v1520_v48 = vpop.permute.xlu0 %1519 }
 0xb3a   :  { %v3561_v11 = vpack.c.bf16 %v2302_v15, %v2264_v34  ;;  %v3563_v45 = vpack.c.bf16 %v2301_v42, %v2263_v28 }
 0xb3c   :  { %3562 = vmatprep.subr.bf16.mxu0 %v3561_v11 }
 0xb3d   :  { %3564 = vmatpush1.bf16.msra.mxu0 %v3563_v45  ;;  %v841_v25 = vpop.permute.xlu1 %840 }
 0xb3e   :  { %v842_v52 = vsel %vm289_vm2, %v839_v19, %v841_v25  ;;  %v843_v14 = vsel %vm289_vm2, %v841_v25, %v839_v19  ;;  %v5481_v17 = vpop.eup %3757 }
 0xb3f   :  { %v850_v30 = vsel %vm124_vm4, %v843_v14, -inf  ;;  %v851_v27 = vsel %vm124_vm4, %v842_v52, -inf  ;;  %v874_v43 = vsel %vm124_vm4, %v843_v14, 0.0  ;;  %v875_v8 = vsel %vm124_vm4, %v842_v52, 0.0  ;;  %6869 = vst [vmem:[#allocation37_spill] sm:$0xff] %v5481_v17 }
 0xb40   :  { %3491 = vmatmul.mubr.msk.f32.vlgmr.msra.gmra.mrb[20].mxu0 %vm443_vm10, %v2304_v57  ;;  %v854_v38 = vmax.f32 %v850_v30, %v6847_v61  ;;  %v855_v41 = vmax.f32 %v851_v27, %v6849_v58  ;;  %v878_v49 = vadd.f32 %v874_v43, %v6847_v61  ;;  %v879_v47 = vadd.f32 %v875_v8, %v6849_v58  ;;  %v6870_v27 = vld [vmem:[#allocation55_spill] sm:$0xff] }
 0xb41   :  { %v1516_v22 = vpop.permute.xlu1 %1515  ;;  %2390 = vmatprep.mubr.f32.mxu0 %v6782_v59 }
 0xb42   :  { %v1517_v63 = vsel %vm289_vm2, %v1514_v21, %v1516_v22  ;;  %v1518_v29 = vsel %vm289_vm2, %v1516_v22, %v1514_v21  ;;  %v6871_v22 = vld [vmem:[#allocation58_spill] sm:$0xff] }
 0xb43   :  { %v1525_v2 = vsel %vm124_vm4, %v1518_v29, -inf  ;;  %v1526_v12 = vsel %vm124_vm4, %v1517_v63, -inf  ;;  %v1549_v13 = vsel %vm124_vm4, %v1518_v29, 0.0  ;;  %v1550_v6 = vsel %vm124_vm4, %v1517_v63, 0.0 }
 0xb44   :  { %3492 = vmatmul.mubr.msk.f32.gmra.mrb[22].mxu0 %vm443_vm10, %v2305_v40  ;;  %v1529_v35 = vmax.f32 %v1525_v2, %v6845_v4  ;;  %v1530_v33 = vmax.f32 %v1526_v12, %v6850_v54  ;;  %v1553_v51 = vadd.f32 %v1549_v13, %v6845_v4  ;;  %v1554_v53 = vadd.f32 %v1550_v6, %v6850_v54 }
 0xb45   :  { %v847_v23 = vpop.permute.xlu1 %846  ;;  %2396 = vmatprep.mubr.f32.mxu0 %v6782_v59 }
 0xb46   :  { %v848_v44 = vsel %vm125_vm7, %v845_v20, %v847_v23  ;;  %v849_v62 = vsel %vm125_vm7, %v847_v23, %v845_v20 }
 0xb47   :  { %v852_v18 = vsel %vm125_vm7, %v848_v44, -inf  ;;  %v853_v5 = vsel %vm125_vm7, %v849_v62, -inf  ;;  %v876_v56 = vsel %vm125_vm7, %v848_v44, 0.0  ;;  %v877_v16 = vsel %vm125_vm7, %v849_v62, 0.0 }
 0xb48   :  { %v856_v3 = vmax.f32 %v854_v38, %v852_v18  ;;  %v857_v1 = vmax.f32 %v855_v41, %v853_v5  ;;  %v880_v36 = vadd.f32 %v878_v49, %v876_v56  ;;  %v881_v46 = vadd.f32 %v879_v47, %v877_v16  ;;  %v6872_v18 = vld [vmem:[#allocation53_spill] sm:$0xff]  ;;  %v6873_v56 = vld [vmem:[#allocation54_spill] sm:$0xff] }
 0xb49   :  { %v1522_v9 = vpop.permute.xlu1 %1521 }
 0xb4a   :  { %v1523_v24 = vsel %vm125_vm7, %v1520_v48, %v1522_v9  ;;  %v1524_v0 = vsel %vm125_vm7, %v1522_v9, %v1520_v48  ;;  %v858_v31 = vadd.f32 %v857_v1, %v856_v3  ;;  %v882_v50 = vmul.f32 %v5481_v17, %v880_v36 }
 0xb4b   :  { %v1527_v42 = vsel %vm125_vm7, %v1523_v24, -inf  ;;  %v1528_v15 = vsel %vm125_vm7, %v1524_v0, -inf  ;;  %v1551_v28 = vsel %vm125_vm7, %v1523_v24, 0.0  ;;  %v1552_v34 = vsel %vm125_vm7, %v1524_v0, 0.0 }
 0xb4c   :  { %v1531_v19 = vmax.f32 %v1529_v35, %v1527_v42  ;;  %v1532_v60 = vmax.f32 %v1530_v33, %v1528_v15  ;;  %v1555_v11 = vadd.f32 %v1553_v51, %v1551_v28  ;;  %v1556_v45 = vadd.f32 %v1554_v53, %v1552_v34  ;;  %859 = vadd.xlane.f32.xlu0 %v858_v31  ;;  %v6874_v31 = vld [vmem:[#allocation56_spill] sm:$0xff]  ;;  %v6875_v42 = vld [vmem:[#allocation57_spill] sm:$0xff] }
 0xb4d   :  { %v883_v21 = vmul.f32 %v5481_v17, %v881_v46  ;;  %v6876_v34 = vld [vmem:[#allocation24_spill] sm:$0xff] }
 0xb4e   :  { %v1533_v25 = vadd.f32 %v1532_v60, %v1531_v19  ;;  %v1557_v52 = vmul.f32 %v5481_v17, %v1555_v11  ;;  %v1558_v14 = vmul.f32 %v5481_v17, %v1556_v45 }
 0xb4f   :  { %v884_v57 = vadd.f32 %v883_v21, %v882_v50 }
 0xb50   :  { %1534 = vadd.xlane.f32.xlu1 %v1533_v25  ;;  %v1559_v30 = vadd.f32 %v1558_v14, %v1557_v52 }
 0xb51   :  { %885 = vadd.xlane.f32.xlu0 %v884_v57 }
 0xb54   :  { %807 = vadd.xlane.f32.xlu1 %v6870_v27 }
 0xb55   :  { %1560 = vadd.xlane.f32.xlu0 %v1559_v30 }
 0xb58   :  { %823 = vadd.xlane.f32.xlu1 %v6871_v22 }
 0xb59   :  { %1482 = vadd.xlane.f32.xlu0 %v5119_v26 }
 0xb5c   :  { %578 = vadd.xlane.f32.xlu1 %v5103_v7 }
 0xb5d   :  { %1498 = vadd.xlane.f32.xlu0 %v5127_v39 }
 0xb60   :  { %594 = vadd.xlane.f32.xlu1 %v5111_v55 }
 0xb61   :  { %1252 = vadd.xlane.f32.xlu0 %v5273_v32 }
 0xb65   :  { %1268 = vadd.xlane.f32.xlu0 %v5281_v37 }
 0xbd9   :  { %v860_v40 = vpop.xlane.xlu0 %859 }
 0xbda   :  { %v861_v43 = vmul.f32 0.00390625, %v860_v40  ;;  %v6878_v40 = vld [vmem:[#allocation28_spill] sm:$0xff] }
 0xbdc   :  { %v5519_v8 = vsub.f32 %v856_v3, %v861_v43  ;;  %v5521_v63 = vsub.f32 %v857_v1, %v861_v43 }
 0xbdd   :  { %v1535_v29 = vpop.xlane.xlu1 %1534 }
 0xbde   :  { %v864_v26 = vmul.f32 %v5519_v8, %v5519_v8  ;;  %v865_v7 = vmul.f32 %v5521_v63, %v5521_v63  ;;  %v886_v39 = vpop.xlane.xlu0 %885  ;;  %v1536_v20 = vmul.f32 0.00390625, %v1535_v29  ;;  %v6879_v29 = vld [vmem:[#allocation27_spill] sm:$0xff] }
 0xbdf   :  { %v887_v55 = vmul.f32 0.00390625, %v886_v39  ;;  %v6880_v39 = vld [vmem:[#allocation31_spill] sm:$0xff] }
 0xbe0   :  { %v5527_v38 = vsub.f32 %v1531_v19, %v1536_v20  ;;  %v5529_v32 = vsub.f32 %v1532_v60, %v1536_v20  ;;  %v866_v37 = vadd.f32 %v865_v7, %v864_v26  ;;  %v6877_v60 = vld [vmem:[#allocation32_spill] sm:$0xff] }
 0xbe1   :  { %v5531_v41 = vsub.f32 %v882_v50, %v887_v55  ;;  %v5533_v49 = vsub.f32 %v883_v21, %v887_v55  ;;  %v808_v47 = vpop.xlane.xlu1 %807  ;;  %v6881_v55 = vld [vmem:[#allocation34_spill] sm:$0xff] }
 0xbe2   :  { %v1539_v2 = vmul.f32 %v5527_v38, %v5527_v38  ;;  %v1540_v12 = vmul.f32 %v5529_v32, %v5529_v32  ;;  %v1561_v23 = vpop.xlane.xlu0 %1560  ;;  %v809_v13 = vmul.f32 0.00390625, %v808_v47  ;;  %867 = vadd.xlane.f32.xlu1 %v866_v37 }
 0xbe3   :  { %v890_v6 = vmul.f32 %v5531_v41, %v5531_v41  ;;  %v891_v44 = vmul.f32 %v5533_v49, %v5533_v49  ;;  %v1562_v62 = vmul.f32 0.00390625, %v1561_v23 }
 0xbe4   :  { %v5544_v5 = vsub.f32 %v6872_v18, %v809_v13  ;;  %v5547_v16 = vsub.f32 %v6873_v56, %v809_v13  ;;  %v1541_v35 = vadd.f32 %v1540_v12, %v1539_v2  ;;  %v6882_v56 = vld [vmem:[#allocation25_spill] sm:$0xff] }
 0xbe5   :  { %v5549_v3 = vsub.f32 %v1557_v52, %v1562_v62  ;;  %v5551_v1 = vsub.f32 %v1558_v14, %v1562_v62  ;;  %v824_v36 = vpop.xlane.xlu1 %823  ;;  %v892_v48 = vadd.f32 %v891_v44, %v890_v6 }
 0xbe6   :  { %v812_v33 = vmul.f32 %v5544_v5, %v5544_v5  ;;  %v813_v51 = vmul.f32 %v5547_v16, %v5547_v16  ;;  %v1483_v53 = vpop.xlane.xlu0 %1482  ;;  %v825_v46 = vmul.f32 0.00390625, %v824_v36  ;;  %1542 = vadd.xlane.f32.xlu0 %v1541_v35  ;;  %v6883_v36 = vld [vmem:[#allocation26_spill] sm:$0xff] }
 0xbe7   :  { %v1565_v9 = vmul.f32 %v5549_v3, %v5549_v3  ;;  %v1566_v24 = vmul.f32 %v5551_v1, %v5551_v1  ;;  %v1484_v0 = vmul.f32 0.00390625, %v1483_v53  ;;  %893 = vadd.xlane.f32.xlu1 %v892_v48 }
 0xbe8   :  { %v5562_v50 = vsub.f32 %v6874_v31, %v825_v46  ;;  %v5565_v15 = vsub.f32 %v6875_v42, %v825_v46  ;;  %v814_v28 = vadd.f32 %v813_v51, %v812_v33  ;;  %v6884_v51 = vld [vmem:[#allocation29_spill] sm:$0xff]  ;;  %v6885_v46 = vld [vmem:[#allocation30_spill] sm:$0xff] }
 0xbe9   :  { %v5568_v19 = vsub.f32 %v6876_v34, %v1484_v0  ;;  %v5571_v11 = vsub.f32 %v6877_v60, %v1484_v0  ;;  %v579_v45 = vpop.xlane.xlu1 %578  ;;  %v1567_v21 = vadd.f32 %v1566_v24, %v1565_v9 }
 0xbea   :  { %v828_v25 = vmul.f32 %v5562_v50, %v5562_v50  ;;  %v829_v57 = vmul.f32 %v5565_v15, %v5565_v15  ;;  %v580_v52 = vmul.f32 0.00390625, %v579_v45  ;;  %v1499_v14 = vpop.xlane.xlu0 %1498 }
 0xbeb   :  { %v1487_v30 = vmul.f32 %v5568_v19, %v5568_v19  ;;  %v1488_v27 = vmul.f32 %v5571_v11, %v5571_v11  ;;  %v1500_v22 = vmul.f32 0.00390625, %v1499_v14  ;;  %1568 = vadd.xlane.f32.xlu0 %v1567_v21  ;;  %815 = vadd.xlane.f32.xlu1 %v814_v28  ;;  %v6886_v21 = vld [vmem:[#allocation35_spill] sm:$0xff] }
 0xbec   :  { %v5582_v43 = vsub.f32 %v6878_v40, %v580_v52  ;;  %v5585_v26 = vsub.f32 %v6879_v29, %v580_v52  ;;  %v830_v7 = vadd.f32 %v829_v57, %v828_v25  ;;  %v6887_v57 = vld [vmem:[#allocation36_spill] sm:$0xff] }
 0xbed   :  { %v5588_v20 = vsub.f32 %v6880_v39, %v1500_v22  ;;  %v5591_v37 = vsub.f32 %v6881_v55, %v1500_v22  ;;  %v595_v47 = vpop.xlane.xlu1 %594  ;;  %v1489_v2 = vadd.f32 %v1488_v27, %v1487_v30  ;;  %v6891_v39 = vld [vmem:[#allocation33_spill] sm:$0xff] }
 0xbee   :  { %v583_v12 = vmul.f32 %v5582_v43, %v5582_v43  ;;  %v584_v23 = vmul.f32 %v5585_v26, %v5585_v26  ;;  %v1253_v13 = vpop.xlane.xlu0 %1252  ;;  %v596_v6 = vmul.f32 0.00390625, %v595_v47 }
 0xbef   :  { %v1503_v44 = vmul.f32 %v5588_v20, %v5588_v20  ;;  %v1504_v62 = vmul.f32 %v5591_v37, %v5591_v37  ;;  %v1254_v18 = vmul.f32 0.00390625, %v1253_v13  ;;  %1490 = vadd.xlane.f32.xlu0 %v1489_v2  ;;  %831 = vadd.xlane.f32.xlu1 %v830_v7 }
 0xbf0   :  { %v5602_v35 = vsub.f32 %v6882_v56, %v596_v6  ;;  %v5605_v48 = vsub.f32 %v6883_v36, %v596_v6  ;;  %v585_v33 = vadd.f32 %v584_v23, %v583_v12  ;;  %v6895_v12 = vmov 13  }
 0xbf1   :  { %v5608_v53 = vsub.f32 %v6884_v51, %v1254_v18  ;;  %v5611_v9 = vsub.f32 %v6885_v46, %v1254_v18  ;;  %v1505_v24 = vadd.f32 %v1504_v62, %v1503_v44  ;;  %v6896_v23 = vmov 3   ;;  %v5670_v46 = vld [vmem:[#allocation10 + $0x20] sm:$0xff] }
 0xbf2   :  { %v599_v0 = vmul.f32 %v5602_v35, %v5602_v35  ;;  %v600_v31 = vmul.f32 %v5605_v48, %v5605_v48  ;;  %v1269_v42 = vpop.xlane.xlu0 %1268  ;;  %v6897_v62 = vmov 15   ;;  %v6898_v18 = vmov 4  }
 0xbf3   :  { %v1257_v28 = vmul.f32 %v5608_v53, %v5608_v53  ;;  %v1258_v34 = vmul.f32 %v5611_v9, %v5611_v9  ;;  %v1270_v60 = vmul.f32 0.00390625, %v1269_v42  ;;  %1506 = vadd.xlane.f32.xlu0 %v1505_v24  ;;  %586 = vadd.xlane.f32.xlu1 %v585_v33  ;;  %v6899_v51 = vmov 14  }
 0xbf4   :  { %v601_v45 = vadd.f32 %v600_v31, %v599_v0  ;;  %v6900_v24 = vmov 1   ;;  %v6901_v0 = vmov 20   ;;  %v6902_v31 = vmov 6  }
 0xbf5   :  { %v5622_v25 = vsub.f32 %v6886_v21, %v1270_v60  ;;  %v5625_v52 = vsub.f32 %v6887_v57, %v1270_v60  ;;  %v1259_v14 = vadd.f32 %v1258_v34, %v1257_v28  ;;  %v6903_v42 = vmov 7  }
 0xbf6   :  { %v6904_v28 = vmov 5   ;;  %v6905_v34 = vmov 8   ;;  %v6906_v60 = vmov 0   ;;  %v6908_v21 = vmov 19  }
 0xbf7   :  { %v1273_v30 = vmul.f32 %v5622_v25, %v5622_v25  ;;  %v1274_v27 = vmul.f32 %v5625_v52, %v5625_v52  ;;  %1260 = vadd.xlane.f32.xlu0 %v1259_v14  ;;  %602 = vadd.xlane.f32.xlu1 %v601_v45  ;;  %v6907_v45 = vmov 9  }
 0xbf9   :  { %v1275_v22 = vadd.f32 %v1274_v27, %v1273_v30 }
 0xbfb   :  { %1276 = vadd.xlane.f32.xlu0 %v1275_v22 }
 0xc04   :  { %v5631_v40 = vpop.f32.mrb[16].mxu0 }
 0xc05   :  { %6888 = vst [vmem:[#allocation22_spill] sm:$0xff] %v5631_v40  ;;  %v5633_v29 = vpop.f32.mrb[17].mxu0 }
 0xc06   :  { %6889 = vst [vmem:[#allocation23_spill] sm:$0xff] %v5633_v29  ;;  %v5637_v7 = vadd.f32 %v5633_v29, %v5631_v40 }
 0xc08   :  { %6890 = vst [vmem:[#allocation39_spill] sm:$0xff] %v5637_v7  ;;  %2548 = vperm.xlu1 %3709, %v6891_v39   ;;  %v5640_v55 = vpop.f32.mrb[18].mxu0  ;;  %v2704_v7 = vstv %s5701_s22  ;;  %s6566_s22 = sld [smem:[#allocation2 + $0x207]] }
 0xc09   :  { %6892 = vst [vmem:[#allocation42_spill] sm:$0xff] %v5640_v55  ;;  %v5642_v47 = vpop.f32.mrb[19].mxu0 }
 0xc0a   :  { %6893 = vst [vmem:[#allocation41_spill] sm:$0xff] %v5642_v47  ;;  %v5646_v2 = vadd.f32 %v5642_v47, %v5640_v55  ;;  %v2708_v47 = vstv %s5695_s19  ;;  %s6557_s19 = sld [smem:[#allocation2 + $0x204]] }
 0xc0c   :  { %6894 = vst [vmem:[#allocation44_spill] sm:$0xff] %v5646_v2  ;;  %3711 = vset.pattern.permute.xlu1 %v6895_v12  ;;  %v1576_v2 = vstv %s5699_s21  ;;  %s6563_s21 = sld [smem:[#allocation2 + $0x206]] }
 0xc0d   :  { %2562 = vperm.xlu1 %3711, %v6891_v39  }
 0xc11   :  { %2554 = vperm.xlu0 %3710, %v6891_v39   ;;  %3712 = vset.pattern.permute.xlu1 %v6896_v23 }
 0xc12   :  { %2526 = vperm.xlu1 %3712, %v6891_v39  }
 0xc13   :  { %v5653_v13 = vpop.f32.mrb[20].mxu0 }
 0xc14   :  { %v5655_v6 = vpop.f32.mrb[21].mxu0 }
 0xc15   :  { %v2409_v44 = vadd.f32 %v5655_v6, %v5653_v13  ;;  %3718 = vset.pattern.permute.xlu0 %v6897_v62  ;;  %v1592_v62 = vstv %s5746_s25 }
 0xc16   :  { %3713 = vset.pattern.permute.xlu1 %v6898_v18 }
 0xc17   :  { %2532 = vperm.xlu1 %3713, %v6891_v39   ;;  %v5662_v56 = vpop.f32.mrb[22].mxu0 }
 0xc18   :  { %v5664_v36 = vpop.f32.mrb[23].mxu0 }
 0xc19   :  { %v2425_v33 = vadd.f32 %v5664_v36, %v5662_v56 }
 0xc1b   :  { %3714 = vset.pattern.permute.xlu1 %v6899_v51 }
 0xc30   :  { %2410 = vadd.xlane.f32.xlu0 %v2409_v44 }
 0xc3b   :  { %2426 = vadd.xlane.f32.xlu1 %v2425_v33 }
 0xc46   :  { %2578 = vperm.xlu0 %3718, %v6891_v39  }
 0xc4a   :  { %3721 = vset.pattern.permute.xlu0 %v6900_v24 }
 0xc4b   :  { %2805 = vperm.xlu0 %3721, %v5670_v46  }
 0xc4c   :  { %2570 = vperm.xlu1 %3714, %v6891_v39  }
 0xc4f   :  { %3724 = vset.pattern.permute.xlu0 %v6901_v0 }
 0xc50   :  { %3715 = vset.pattern.permute.xlu1 %v6902_v31 }
 0xc51   :  { %2821 = vperm.xlu1 %3715, %v5670_v46  }
 0xc55   :  { %3716 = vset.pattern.permute.xlu1 %v6903_v42 }
 0xc56   :  { %2827 = vperm.xlu1 %3716, %v5670_v46  }
 0xc5a   :  { %3717 = vset.pattern.permute.xlu1 %v6904_v28  ;;  %v2706_v28 = vmul.f32 %v2704_v7, %v6850_v54 }
 0xc5b   :  { %2540 = vperm.xlu1 %3717, %v6891_v39  }
 0xc5f   :  { %3719 = vset.pattern.permute.xlu1 %v6905_v34 }
 0xc60   :  { %2835 = vperm.xlu1 %3719, %v5670_v46  }
 0xc64   :  { %3720 = vset.pattern.permute.xlu1 %v6906_v60 }
 0xc65   :  { %2799 = vperm.xlu1 %3720, %v5670_v46  }
 0xc69   :  { %3722 = vset.pattern.permute.xlu1 %v6907_v45 }
 0xc6a   :  { %2843 = vperm.xlu1 %3722, %v5670_v46  }
 0xc6e   :  { %3723 = vset.pattern.permute.xlu1 %v6908_v21 }
 0xc6f   :  { %v868_v57 = vpop.xlane.xlu1 %867 }
 0xc70   :  { %v869_v14 = vmul.f32 0.00390625, %v868_v57 }
 0xc72   :  { %v870_v30 = vadd.f32 1e-05, %v869_v14 }
 0xc73   :  { %v1543_v27 = vpop.xlane.xlu0 %1542 }
 0xc74   :  { %3759 = vrsqrt.f32 %v870_v30  ;;  %v1544_v22 = vmul.f32 0.00390625, %v1543_v27  ;;  %v894_v39 = vpop.xlane.xlu1 %893  ;;  %v901_v30 = vstv %s5689_s27  ;;  %v2141_v27 = vstv %s5691_s16  ;;  %s3511_s27 = sld [smem:[#allocation2 + $0x201]]  ;;  %s3510_s16 = sld [smem:[#allocation2 + $0x203]] }
 0xc75   :  { %v895_v44 = vmul.f32 0.00390625, %v894_v39  ;;  %v2145_v39 = vstv %s5693_s18  ;;  %s6555_s18 = sld [smem:[#allocation2 + $0x202]] }
 0xc76   :  { %v1545_v33 = vadd.f32 1e-05, %v1544_v22 }
 0xc77   :  { %v896_v24 = vadd.f32 1e-05, %v895_v44 }
 0xc78   :  { %3761 = vrsqrt.f32 %v1545_v33  ;;  %v1569_v0 = vpop.xlane.xlu0 %1568  ;;  %v816_v31 = vpop.xlane.xlu1 %815 }
 0xc79   :  { %3763 = vrsqrt.f32 %v896_v24  ;;  %v1570_v42 = vmul.f32 0.00390625, %v1569_v0  ;;  %v817_v60 = vmul.f32 0.00390625, %v816_v31  ;;  %v5713_v31 = vmul.f32 %v901_v30, %v6847_v61 }
 0xc7b   :  { %v1571_v34 = vadd.f32 1e-05, %v1570_v42  ;;  %v818_v24 = vadd.f32 1e-05, %v817_v60  ;;  %v2142_v42 = vmul.f32 %v2141_v27, %v6847_v61  ;;  %v2151_v61 = vstv %s5697_s20  ;;  %s6561_s20 = sld [smem:[#allocation2 + $0x205]] }
 0xc7c   :  { %v1491_v45 = vpop.xlane.xlu0 %1490  ;;  %v832_v21 = vpop.xlane.xlu1 %831 }
 0xc7d   :  { %3765 = vrsqrt.f32 %v1571_v34  ;;  %v1492_v57 = vmul.f32 0.00390625, %v1491_v45  ;;  %v833_v22 = vmul.f32 0.00390625, %v832_v21 }
 0xc7e   :  { %v3760_v14 = vpop.eup %3759  ;;  %3767 = vrsqrt.f32 %v818_v24 }
 0xc7f   :  { %v5707_v44 = vmul.f32 %v3760_v14, %v5519_v8  ;;  %v5710_v33 = vmul.f32 %v3760_v14, %v5521_v63  ;;  %v1493_v34 = vadd.f32 1e-05, %v1492_v57  ;;  %v2143_v8 = vmul.f32 %v2141_v27, %v6849_v58 }
 0xc80   :  { %v1507_v0 = vpop.xlane.xlu0 %1506  ;;  %v834_v60 = vadd.f32 1e-05, %v833_v22  ;;  %v587_v57 = vpop.xlane.xlu1 %586  ;;  %v5736_v22 = vmul.f32 %v901_v30, %v6849_v58 }
 0xc81   :  { %v2146_v21 = vmul.f32 %v2145_v39, %v5707_v44  ;;  %v2147_v63 = vmul.f32 %v2145_v39, %v5710_v33  ;;  %v1508_v55 = vmul.f32 0.00390625, %v1507_v0  ;;  %3769 = vrsqrt.f32 %v1493_v34 }
 0xc82   :  { %v3762_v45 = vpop.eup %3761  ;;  %3771 = vrsqrt.f32 %v834_v60  ;;  %v1578_v34 = vmul.f32 %v1576_v2, %v6850_v54  ;;  %v2714_v60 = vstv %s5716_s23  ;;  %v1586_v54 = vstv %s5742_s0  ;;  %s4038_s23 = smov [#allocation15]  }
 0xc83   :  { %v3764_v14 = vpop.eup %3763  ;;  %v1547_v29 = vmul.f32 %v3762_v45, %v5527_v38  ;;  %v1548_v40 = vmul.f32 %v3762_v45, %v5529_v32  ;;  %v2148_v38 = vadd.f32 %v2146_v21, %v2142_v42  ;;  %v2149_v24 = vadd.f32 %v2147_v63, %v2143_v8 }
 0xc84   :  { %v5730_v27 = vmul.f32 %v3764_v14, %v5531_v41  ;;  %v5733_v17 = vmul.f32 %v3764_v14, %v5533_v49  ;;  %v1261_v39 = vpop.xlane.xlu0 %1260  ;;  %v588_v32 = vmul.f32 0.00390625, %v587_v57  ;;  %v1509_v0 = vadd.f32 1e-05, %v1508_v55 }
 0xc85   :  { %v2709_v58 = vmul.f32 %v2708_v47, %v1547_v29  ;;  %v1577_v42 = vmul.f32 %v1576_v2, %v6845_v4  ;;  %v2705_v45 = vmul.f32 %v2704_v7, %v6845_v4  ;;  %v2710_v8 = vmul.f32 %v2708_v47, %v1548_v40 }
 0xc86   :  { %v2152_v49 = vmul.f32 %v2151_v61, %v5730_v27  ;;  %v2153_v30 = vmul.f32 %v2151_v61, %v5733_v17  ;;  %v1262_v14 = vmul.f32 0.00390625, %v1261_v39  ;;  %v603_v61 = vpop.xlane.xlu1 %602  ;;  %v905_v57 = vstv %s5718_s24  ;;  %s3432_s24 = sshll.u32 %s4038_s23, 4  ;;  %s3433_s24 = int_to_ptr.vmem [resolvable:$true] %s3432_s24 }
 0xc87   :  { %v3766_v41 = vpop.eup %3765  ;;  %v1580_v4 = vstv %s5723_s3  ;;  %v2711_v47 = vadd.f32 %v2709_v58, %v2705_v45  ;;  %3773 = vrsqrt.f32 %v1509_v0  ;;  %v923_v0 = vstv %s5750_s26  ;;  %s3964_s3 = scalar_lea.vmem %s3433_s24, 512  ;;  %p3969_p10 = scmp.lt.s32.totalorder %s3433_s24, %s3433_s24 }
 0xc88   :  { %v5757_v21 = vadd.f32 %v2152_v49, %v2148_v38  ;;  %v5759_v63 = vadd.f32 %v2153_v30, %v2149_v24  ;;  %v1573_v55 = vmul.f32 %v3766_v41, %v5549_v3  ;;  %v1574_v51 = vmul.f32 %v3766_v41, %v5551_v1  ;;  %v1277_v2 = vpop.xlane.xlu0 %1276  ;;  %p3965_p9 = scmp.ne.s32.totalorder %s3433_s24, %s3964_s3  ;;  %p3970_p11 = scmp.lt.s32.totalorder %s3964_s3, %s3964_s3 }
 0xc89   :  { %v589_v38 = vadd.f32 1e-05, %v588_v32  ;;  %v2712_v24 = vadd.f32 %v2710_v8, %v2706_v28  ;;  %v604_v30 = vmul.f32 0.00390625, %v603_v61  ;;  %v1263_v7 = vadd.f32 1e-05, %v1262_v14 }
 0xc8a   :  { %6909 = vst [vmem:[#allocation40_spill] sm:$0xff] %v5757_v21  ;;  %6910 = vst [vmem:[#allocation43_spill] sm:$0xff] %v5759_v63  ;;  %v2715_v39 = vmul.f32 %v2714_v60, %v1573_v55  ;;  %v2716_v49 = vmul.f32 %v2714_v60, %v1574_v51  ;;  %v3768_v63 = vpop.eup %3767  ;;  %v911_v21 = vstv %s5740_s17  ;;  %v1278_v3 = vmul.f32 0.00390625, %v1277_v2  ;;  %p3971_p12 = por %p3970_p11, %p3969_p10 }
 0xc8b   :  { %v917_v41 = vstv %s5744_s2  ;;  %v3770_v58 = vpop.eup %3769  ;;  %v906_v32 = vmul.f32 %v905_v57, %v5707_v44  ;;  %v907_v28 = vmul.f32 %v905_v57, %v5710_v33  ;;  %v1598_v45 = vstv %s5752_s28 }
 0xc8c   :  { %v5769_v18 = vadd.f32 %v2715_v39, %v2711_v47  ;;  %v5771_v1 = vadd.f32 %v2716_v49, %v2712_v24  ;;  %v3772_v8 = vpop.eup %3771  ;;  %v1581_v60 = vmul.f32 %v1580_v4, %v1547_v29  ;;  %v1582_v61 = vmul.f32 %v1580_v4, %v1548_v40  ;;  %p3972_p13 = pnand %p3971_p12, %p3965_p9 }
 0xc8d   :  { %3775 = vrsqrt.f32 %v589_v38  ;;  %v605_v23 = vadd.f32 1e-05, %v604_v30  ;;  %v820_v14 = vmul.f32 %v3768_v63, %v5544_v5  ;;  %v821_v2 = vmul.f32 %v3768_v63, %v5547_v16 }
 0xc8e   :  { %3777 = vrsqrt.f32 %v1263_v7  ;;  %v1279_v47 = vadd.f32 1e-05, %v1278_v3  ;;  %v912_v44 = vmul.f32 %v911_v21, %v5730_v27  ;;  %v1495_v33 = vmul.f32 %v3770_v58, %v5568_v19 }
 0xc8f   :  { %v1496_v57 = vmul.f32 %v3770_v58, %v5571_v11  ;;  %3779 = vrsqrt.f32 %v605_v23  ;;  %v913_v5 = vmul.f32 %v911_v21, %v5733_v17  ;;  %v836_v16 = vmul.f32 %v3772_v8, %v5562_v50 }
 0xc90   :  { %v837_v40 = vmul.f32 %v3772_v8, %v5565_v15  ;;  %3781 = vrsqrt.f32 %v1279_v47  ;;  %v908_v29 = vadd.f32 %v906_v32, %v5713_v31  ;;  %v909_v27 = vadd.f32 %v907_v28, %v5736_v22 }
 0xc91   :  { %v1587_v63 = vmul.f32 %v1586_v54, %v1573_v55  ;;  %v1588_v19 = vmul.f32 %v1586_v54, %v1574_v51  ;;  %v3774_v4 = vpop.eup %3773  ;;  %v1583_v11 = vadd.f32 %v1581_v60, %v1577_v42  ;;  %v1584_v38 = vadd.f32 %v1582_v61, %v1578_v34 }
 0xc92   :  { %v918_v24 = vmul.f32 %v917_v41, %v820_v14  ;;  %v919_v23 = vmul.f32 %v917_v41, %v821_v2  ;;  %v1593_v39 = vmul.f32 %v1592_v62, %v1495_v33  ;;  %v1594_v17 = vmul.f32 %v1592_v62, %v1496_v57 }
 0xc93   :  { %v1511_v50 = vmul.f32 %v3774_v4, %v5588_v20  ;;  %v1512_v15 = vmul.f32 %v3774_v4, %v5591_v37  ;;  %v914_v21 = vadd.f32 %v912_v44, %v908_v29  ;;  %v915_v31 = vadd.f32 %v913_v5, %v909_v27 }
 0xc94   :  { %v924_v22 = vmul.f32 %v923_v0, %v836_v16  ;;  %v925_v55 = vmul.f32 %v923_v0, %v837_v40  ;;  %v1589_v51 = vadd.f32 %v1587_v63, %v1583_v11  ;;  %v1590_v49 = vadd.f32 %v1588_v19, %v1584_v38 }
 0xc95   :  { %v1599_v42 = vmul.f32 %v1598_v45, %v1511_v50  ;;  %v1600_v34 = vmul.f32 %v1598_v45, %v1512_v15  ;;  %v920_v30 = vadd.f32 %v918_v24, %v914_v21  ;;  %v921_v54 = vadd.f32 %v919_v23, %v915_v31  ;;  %v5821_v50 = vpop.permute.xlu0 %2554 }
 0xc96   :  { %v929_v7 = vstv %s5781_s29  ;;  %v1604_v3 = vstv %s5783_s30  ;;  %v1595_v62 = vadd.f32 %v1593_v39, %v1589_v51  ;;  %v1596_v58 = vadd.f32 %v1594_v17, %v1590_v49 }
 0xc97   :  { %v3776_v41 = vpop.eup %3775  ;;  %v935_v20 = vstv %s5788_s8  ;;  %v1610_v32 = vstv %s5790_s9  ;;  %v926_v28 = vadd.f32 %v924_v22, %v920_v30  ;;  %v927_v8 = vadd.f32 %v925_v55, %v921_v54 }
 0xc98   :  { %v3778_v37 = vpop.eup %3777  ;;  %v591_v60 = vmul.f32 %v3776_v41, %v5582_v43  ;;  %v592_v0 = vmul.f32 %v3776_v41, %v5585_v26  ;;  %v1601_v14 = vadd.f32 %v1599_v42, %v1595_v62  ;;  %v1602_v2 = vadd.f32 %v1600_v34, %v1596_v58 }
 0xc99   :  { %v3780_v61 = vpop.eup %3779  ;;  %v1265_v45 = vmul.f32 %v3778_v37, %v5608_v53  ;;  %v1266_v47 = vmul.f32 %v3778_v37, %v5611_v9  ;;  %v6911_v58 = vmov 2   ;;  %v6915_v37 = vmov 18  }
 0xc9a   :  { %v3782_v44 = vpop.eup %3781  ;;  %v930_v33 = vmul.f32 %v929_v7, %v591_v60  ;;  %v931_v57 = vmul.f32 %v929_v7, %v592_v0  ;;  %v607_v5 = vmul.f32 %v3780_v61, %v5602_v35  ;;  %v608_v16 = vmul.f32 %v3780_v61, %v5605_v48 }
 0xc9b   :  { %v1605_v40 = vmul.f32 %v1604_v3, %v1265_v45  ;;  %v1606_v29 = vmul.f32 %v1604_v3, %v1266_v47  ;;  %v1281_v43 = vmul.f32 %v3782_v44, %v5622_v25  ;;  %v1282_v26 = vmul.f32 %v3782_v44, %v5625_v52  ;;  %v5817_v25 = vpop.permute.xlu1 %2548 }
 0xc9c   :  { %v932_v27 = vadd.f32 %v930_v33, %v926_v28  ;;  %v933_v63 = vadd.f32 %v931_v57, %v927_v8  ;;  %v936_v19 = vmul.f32 %v935_v20, %v607_v5  ;;  %v937_v4 = vmul.f32 %v935_v20, %v608_v16 }
 0xc9d   :  { %v1607_v53 = vadd.f32 %v1605_v40, %v1601_v14  ;;  %v1608_v11 = vadd.f32 %v1606_v29, %v1602_v2  ;;  %v1611_v9 = vmul.f32 %v1610_v32, %v1281_v43  ;;  %v1612_v38 = vmul.f32 %v1610_v32, %v1282_v26 }
 0xc9e   :  { %v938_v24 = vadd.f32 %v936_v19, %v932_v27  ;;  %v939_v23 = vadd.f32 %v937_v4, %v933_v63  ;;  %v6913_v20 = vmov 16   ;;  %v6914_v32 = vmov 21  }
 0xc9f   :  { %v1613_v39 = vadd.f32 %v1611_v9, %v1607_v53  ;;  %v1614_v35 = vadd.f32 %v1612_v38, %v1608_v11  ;;  %v5819_v52 = vpop.permute.xlu1 %2562  ;;  %v6916_v28 = vmov 17   ;;  %v6917_v8 = vmov 22  }
 0xca0   :  { %v6918_v60 = vmov 11   ;;  %v6919_v0 = vmov 23   ;;  %v6920_v61 = vmov 12  }
 0xca1   :  { %v5811_v17 = vadd.f32 %v1613_v39, %v938_v24  ;;  %v5813_v48 = vadd.f32 %v1614_v35, %v939_v23  ;;  %v1743_v35 = vld [vmem:[#allocation12 + $0x50] sm:$0xff] }
 0xca2   :  { %3480 = vmatmul.mubr.msk.f32.gmra.mrb[16].mxu1 %vm443_vm10, %v1743_v35 }
 0xca3   :  { %3422 = vst [vmem:[#allocation15] sm:$0xff] %v5811_v17  ;;  %3424 = vst [vmem:[#allocation15 + $0x10] sm:$0xff] %v5813_v48  ;;  %v5823_v21 = vpop.permute.xlu1 %2526  ;;  %v5845_v62 = vmax.f32 %v5811_v17, 0.0  ;;  %1839 = vmatprep.mubr.f32.mxu1 %v6782_v59 }
 0xca7   :  { %v5835_v42 = vpop.permute.xlu1 %2532 }
 0xcbd   :  { %v2411_v15 = vpop.xlane.xlu0 %2410 }
 0xcbe   :  { %v2412_v31 = vmul.f32 0.00390625, %v2411_v15  ;;  %v1744_v15 = vld [vmem:[#allocation12 + $0x58] sm:$0xff] }
 0xcbf   :  { %3481 = vmatmul.mubr.msk.f32.gmra.mrb[18].mxu1 %vm443_vm10, %v1744_v15 }
 0xcc0   :  { %v5826_v22 = vsub.f32 %v5653_v13, %v2412_v31  ;;  %v5829_v55 = vsub.f32 %v5655_v6, %v2412_v31  ;;  %2658 = vmatprep.mubr.f32.mxu1 %v6782_v59 }
 0xcc2   :  { %v2415_v51 = vmul.f32 %v5826_v22, %v5826_v22  ;;  %v2416_v49 = vmul.f32 %v5829_v55, %v5829_v55 }
 0xcc4   :  { %v2417_v34 = vadd.f32 %v2416_v49, %v2415_v51 }
 0xcc5   :  { %v5891_v47 = vpop.permute.xlu0 %2578 }
 0xcc6   :  { %2418 = vadd.xlane.f32.xlu0 %v2417_v34 }
 0xcc8   :  { %v2427_v30 = vpop.xlane.xlu1 %2426 }
 0xcc9   :  { %v2428_v54 = vmul.f32 0.00390625, %v2427_v30 }
 0xcca   :  { %v5895_v33 = vpop.permute.xlu0 %2805 }
 0xccb   :  { %v5838_v7 = vsub.f32 %v5662_v56, %v2428_v54  ;;  %v2430_v13 = vsub.f32 %v5664_v36, %v2428_v54  ;;  %v5852_v56 = vmax.f32 %v5813_v48, 0.0  ;;  %v6912_v36 = vmov 10  }
 0xccc   :  { %v5885_v14 = vpop.permute.xlu1 %2570 }
 0xccd   :  { %v2431_v6 = vmul.f32 %v5838_v7, %v5838_v7  ;;  %v2432_v3 = vmul.f32 %v2430_v13, %v2430_v13 }
 0xccf   :  { %v2433_v41 = vadd.f32 %v2432_v3, %v2431_v6 }
 0xcd0   :  { %v5887_v2 = vpop.permute.xlu1 %2821 }
 0xcd1   :  { %2434 = vadd.xlane.f32.xlu1 %v2433_v41 }
 0xcd5   :  { %v5889_v45 = vpop.permute.xlu1 %2827 }
 0xcda   :  { %v5893_v44 = vpop.permute.xlu1 %2540 }
 0xcdc   :  { %2887 = vperm.xlu0 %3724, %v5670_v46  }
 0xcdf   :  { %v5897_v57 = vpop.permute.xlu1 %2835 }
 0xce0   :  { %2757 = vrot.lane.b32.xlu0 %v5845_v62, %s4025_s11 }
 0xce1   :  { %3725 = vset.pattern.permute.xlu0 %v6911_v58 }
 0xce2   :  { %2881 = vperm.xlu1 %3723, %v5670_v46  }
 0xce4   :  { %2765 = vrot.lane.b32.xlu0 %v5845_v62, %s4028_s15  ;;  %v5899_v16 = vpop.permute.xlu1 %2799 }
 0xce6   :  { %2759 = vrot.lane.b32.xlu1 %v5852_v56, %s4025_s11 }
 0xce7   :  { %3726 = vset.pattern.permute.xlu1 %v6912_v36 }
 0xce8   :  { %2813 = vperm.xlu0 %3725, %v5670_v46  }
 0xce9   :  { %v5901_v29 = vpop.permute.xlu1 %2843 }
 0xcea   :  { %2767 = vrot.lane.b32.xlu1 %v5852_v56, %s4028_s15 }
 0xcec   :  { %3728 = vset.pattern.permute.xlu0 %v6913_v20 }
 0xced   :  { %2859 = vperm.xlu0 %3728, %v5670_v46  }
 0xcee   :  { %2851 = vperm.xlu1 %3726, %v5670_v46  }
 0xcf1   :  { %2749 = vrot.lane.b32.xlu0 %v5845_v62, %s4029_s4 }
 0xcf2   :  { %3727 = vset.pattern.permute.xlu1 %v6914_v32  ;;  %3731 = vset.pattern.permute.xlu0 %v6915_v37 }
 0xcf3   :  { %2895 = vperm.xlu1 %3727, %v5670_v46  }
 0xcf5   :  { %2773 = vrot.lane.b32.xlu0 %v5845_v62, %s4024_s6 }
 0xcf7   :  { %3729 = vset.pattern.permute.xlu1 %v6916_v28 }
 0xcf8   :  { %2865 = vperm.xlu1 %3729, %v5670_v46  }
 0xcf9   :  { %2873 = vperm.xlu0 %3731, %v5670_v46  }
 0xcfc   :  { %3730 = vset.pattern.permute.xlu1 %v6917_v8 }
 0xcfd   :  { %2903 = vperm.xlu1 %3730, %v5670_v46   ;;  %3733 = vset.pattern.permute.xlu0 %v6918_v60 }
 0xd01   :  { %2751 = vrot.lane.b32.xlu1 %v5852_v56, %s4029_s4  ;;  %s6533_s4 = sld [smem:[#allocation2 + $0x187]] }
 0xd02   :  { %3732 = vset.pattern.permute.xlu1 %v6919_v0 }
 0xd05   :  { %2775 = vrot.lane.b32.xlu1 %v5852_v56, %s4024_s6 }
 0xd09   :  { %2911 = vperm.xlu1 %3732, %v5670_v46  }
 0xd0d   :  { %3734 = vset.pattern.permute.xlu1 %v6920_v61 }
 0xd53   :  { %v2419_v5 = vpop.xlane.xlu0 %2418 }
 0xd54   :  { %v2420_v46 = vmul.f32 0.00390625, %v2419_v5 }
 0xd56   :  { %v2421_v40 = vadd.f32 1e-05, %v2420_v46 }
 0xd58   :  { %3783 = vrsqrt.f32 %v2421_v40 }
 0xd5b   :  { %v2888_v49 = vpop.permute.xlu0 %2887 }
 0xd5e   :  { %v2435_v43 = vpop.xlane.xlu1 %2434 }
 0xd5f   :  { %v2436_v26 = vmul.f32 0.00390625, %v2435_v43  ;;  %v2758_v30 = vpop.permute.xlu0 %2757 }
 0xd61   :  { %v2437_v27 = vadd.f32 1e-05, %v2436_v26 }
 0xd62   :  { %v3784_v63 = vpop.eup %3783  ;;  %v2882_v31 = vpop.permute.xlu1 %2881 }
 0xd63   :  { %3785 = vrsqrt.f32 %v2437_v27  ;;  %v2423_v19 = vmul.f32 %v3784_v63, %v5826_v22  ;;  %v2424_v53 = vmul.f32 %v3784_v63, %v5829_v55 }
 0xd65   :  { %v5904_v4 = vmax.f32 %v2423_v19, 0.0  ;;  %v5911_v11 = vmax.f32 %v2424_v53, 0.0 }
 0xd66   :  { %v2760_v22 = vpop.permute.xlu1 %2759 }
 0xd67   :  { %2485 = vrot.lane.b32.xlu0 %v5904_v4, %s4024_s6  ;;  %2477 = vrot.lane.b32.xlu1 %v5904_v4, %s4028_s15  ;;  %v2761_v8 = vsel %vm280_vm1, %v2758_v30, %v2760_v22  ;;  %v2762_v60 = vsel %vm280_vm1, %v2760_v22, %v2758_v30 }
 0xd68   :  { %v2763_v40 = vsel %vm123_vm3, %v2762_v60, 0.0  ;;  %v2764_v43 = vsel %vm123_vm3, %v2761_v8, 0.0 }
 0xd69   :  { %v2891_v8 = vmul.f32 %v2888_v49, %v2764_v43 }
 0xd6a   :  { %v2768_v55 = vpop.permute.xlu1 %2767 }
 0xd6b   :  { %2479 = vrot.lane.b32.xlu1 %v5911_v11, %s4028_s15 }
 0xd6d   :  { %v3786_v9 = vpop.eup %3785 }
 0xd6e   :  { %v2440_v38 = vmul.f32 %v3786_v9, %v2430_v13  ;;  %v2439_v24 = vmul.f32 %v3786_v9, %v5838_v7  ;;  %v5950_v51 = vpop.permute.xlu1 %2851  ;;  %v2766_v7 = vpop.permute.xlu0 %2765  ;;  %v2824_v9 = vmul.f32 %v5887_v2, %v2763_v40 }
 0xd6f   :  { %2487 = vrot.lane.b32.xlu1 %v5911_v11, %s4024_s6  ;;  %v2769_v37 = vsel %vm289_vm2, %v2766_v7, %v2768_v55  ;;  %v2770_v28 = vsel %vm289_vm2, %v2768_v55, %v2766_v7 }
 0xd70   :  { %v5918_v23 = vmax.f32 %v2440_v38, 0.0  ;;  %v5920_v39 = vmax.f32 %v2439_v24, 0.0  ;;  %v2771_v61 = vsel %vm124_vm4, %v2770_v28, 0.0  ;;  %v2772_v5 = vsel %vm124_vm4, %v2769_v37, 0.0 }
 0xd71   :  { %v2830_v26 = vmul.f32 %v5889_v45, %v2771_v61  ;;  %v2831_v27 = vmul.f32 %v5889_v45, %v2772_v5  ;;  %v2825_v38 = vmul.f32 %v5887_v2, %v2764_v43  ;;  %v2808_v24 = vmul.f32 %v5895_v33, %v5845_v62 }
 0xd72   :  { %2495 = vrot.lane.b32.xlu0 %v5918_v23, %s4025_s11  ;;  %v2896_v34 = vpop.permute.xlu1 %2895  ;;  %v5954_v6 = vpop.permute.xlu0 %2813  ;;  %v2802_v35 = vmul.f32 %v5899_v16, %v2771_v61  ;;  %v2803_v15 = vmul.f32 %v5899_v16, %v2772_v5  ;;  %v2809_v2 = vmul.f32 %v5895_v33, %v5852_v56  ;;  %v2839_v37 = vmul.f32 %v5897_v57, %v5852_v56 }
 0xd73   :  { %2493 = vrot.lane.b32.xlu1 %v5920_v39, %s4025_s11  ;;  %v2832_v45 = vadd.f32 %v2830_v26, %v2824_v9  ;;  %v2833_v55 = vadd.f32 %v2831_v27, %v2825_v38  ;;  %v6000_v16 = vmul.f32 %v5835_v42, %v5904_v4  ;;  %v2890_v28 = vmul.f32 %v2888_v49, %v2763_v40 }
 0xd74   :  { %v6006_v61 = vmul.f32 %v5835_v42, %v5911_v11  ;;  %v2565_v38 = vmul.f32 %v5819_v52, %v5920_v39 }
 0xd75   :  { %v6015_v9 = vadd.f32 %v2839_v37, %v2833_v55 }
 0xd76   :  { %2503 = vrot.lane.b32.xlu0 %v5918_v23, %s4028_s15  ;;  %v2860_v41 = vpop.permute.xlu0 %2859 }
 0xd77   :  { %2501 = vrot.lane.b32.xlu1 %v5920_v39, %s4028_s15  ;;  %v2866_v54 = vpop.permute.xlu1 %2865  ;;  %v6002_v60 = vmul.f32 %v2860_v41, %v2763_v40  ;;  %v2863_v5 = vmul.f32 %v2860_v41, %v2764_v43  ;;  %v2898_v41 = vmul.f32 %v2896_v34, %v5845_v62  ;;  %v2899_v43 = vmul.f32 %v2896_v34, %v5852_v56 }
 0xd78   :  { %v2869_v33 = vmul.f32 %v2866_v54, %v5852_v56 }
 0xd7a   :  { %2509 = vrot.lane.b32.xlu0 %v5920_v39, %s4024_s6  ;;  %v2750_v36 = vpop.permute.xlu0 %2749 }
 0xd7b   :  { %2511 = vrot.lane.b32.xlu1 %v5918_v23, %s4024_s6 }
 0xd7c   :  { %v5952_v13 = vpop.permute.xlu1 %2903 }
 0xd7e   :  { %2517 = vrot.lane.b32.xlu0 %v5920_v39, %s4026_s1  ;;  %v2774_v32 = vpop.permute.xlu0 %2773 }
 0xd7f   :  { %2519 = vrot.lane.b32.xlu1 %v5918_v23, %s4026_s1 }
 0xd80   :  { %v2752_v3 = vpop.permute.xlu1 %2751 }
 0xd81   :  { %v2753_v19 = vsel %vm271_vm5, %v2750_v36, %v2752_v3  ;;  %v2754_v53 = vsel %vm271_vm5, %v2752_v3, %v2750_v36  ;;  %v2838_v36 = vmul.f32 %v5897_v57, %v5845_v62  ;;  %v6011_v57 = vadd.f32 %v2809_v2, %v2803_v15 }
 0xd82   :  { %2783 = vrot.lane.b32.xlu0 %v5852_v56, %s4026_s1  ;;  %v5970_v46 = vpop.permute.xlu0 %2873  ;;  %v2755_v30 = vsel %vm122_vm6, %v2754_v53, 0.0  ;;  %v2756_v7 = vsel %vm122_vm6, %v2753_v19, 0.0  ;;  %v6009_v53 = vadd.f32 %v2808_v24, %v2802_v35  ;;  %v2566_v24 = vmul.f32 %v5819_v52, %v5918_v23 }
 0xd83   :  { %2781 = vrot.lane.b32.xlu1 %v5845_v62, %s4026_s1  ;;  %v2884_v26 = vmul.f32 %v2882_v31, %v2755_v30  ;;  %v2885_v27 = vmul.f32 %v2882_v31, %v2756_v7  ;;  %v6013_v4 = vadd.f32 %v2838_v36, %v2832_v45  ;;  %v6032_v35 = vmul.f32 %v2866_v54, %v5845_v62 }
 0xd84   :  { %v2776_v58 = vpop.permute.xlu1 %2775 }
 0xd85   :  { %v2777_v40 = vsel %vm125_vm7, %v2774_v32, %v2776_v58  ;;  %v2778_v42 = vsel %vm125_vm7, %v2776_v58, %v2774_v32  ;;  %v6034_v58 = vadd.f32 %v2869_v33, %v2863_v5  ;;  %v2892_v32 = vadd.f32 %v2890_v28, %v2884_v26 }
 0xd86   :  { %2791 = vrot.lane.b32.xlu0 %v5852_v56, %s4027_s12  ;;  %v2893_v15 = vadd.f32 %v2891_v8, %v2885_v27  ;;  %v2779_v55 = vsel %vm125_vm7, %v2777_v40, 0.0  ;;  %v2780_v56 = vsel %vm125_vm7, %v2778_v42, 0.0 }
 0xd87   :  { %2789 = vrot.lane.b32.xlu1 %v5845_v62, %s4027_s12  ;;  %v6064_v33 = vadd.f32 %v2898_v41, %v2892_v32  ;;  %s6520_s12 = sld [smem:[#allocation2 + $0x185]] }
 0xd88   :  { %v5956_v20 = vpop.permute.xlu1 %2911  ;;  %v6066_v26 = vadd.f32 %v2899_v43, %v2893_v15 }
 0xdd9   :  { %v2478_v0 = vpop.permute.xlu1 %2477  ;;  %v2486_v22 = vpop.permute.xlu0 %2485 }
 0xddd   :  { %v2480_v63 = vpop.permute.xlu1 %2479 }
 0xdde   :  { %v2481_v62 = vsel %vm289_vm2, %v2478_v0, %v2480_v63  ;;  %v2482_v34 = vsel %vm289_vm2, %v2480_v63, %v2478_v0 }
 0xde1   :  { %v2488_v3 = vpop.permute.xlu1 %2487 }
 0xde2   :  { %v2489_v7 = vsel %vm125_vm7, %v2486_v22, %v2488_v3  ;;  %v2490_v2 = vsel %vm125_vm7, %v2488_v3, %v2486_v22  ;;  %v2483_v22 = vsel %vm124_vm4, %v2482_v34, 0.0  ;;  %v2484_v3 = vsel %vm124_vm4, %v2481_v62, 0.0 }
 0xde3   :  { %v2491_v40 = vsel %vm125_vm7, %v2489_v7, 0.0  ;;  %v2492_v42 = vsel %vm125_vm7, %v2490_v2, 0.0  ;;  %v2530_v62 = vmul.f32 %v5823_v21, %v2484_v3 }
 0xde4   :  { %v2496_v19 = vpop.permute.xlu0 %2495  ;;  %v2544_v7 = vmul.f32 %v5893_v44, %v2492_v42 }
 0xde5   :  { %v2494_v49 = vpop.permute.xlu1 %2493 }
 0xde6   :  { %v2497_v11 = vsel %vm280_vm1, %v2494_v49, %v2496_v19  ;;  %v2498_v31 = vsel %vm280_vm1, %v2496_v19, %v2494_v49 }
 0xde7   :  { %v2499_v39 = vsel %vm123_vm3, %v2498_v31, 0.0  ;;  %v2500_v52 = vsel %vm123_vm3, %v2497_v11, 0.0 }
 0xde8   :  { %v2504_v45 = vpop.permute.xlu0 %2503  ;;  %v2551_v0 = vmul.f32 %v5817_v25, %v2499_v39  ;;  %v2552_v63 = vmul.f32 %v5817_v25, %v2500_v52  ;;  %v2816_v39 = vmul.f32 %v5954_v6, %v2779_v55  ;;  %v2817_v52 = vmul.f32 %v5954_v6, %v2780_v56 }
 0xde9   :  { %v2502_v23 = vpop.permute.xlu1 %2501 }
 0xdea   :  { %v2505_v54 = vsel %vm289_vm2, %v2502_v23, %v2504_v45  ;;  %v2506_v30 = vsel %vm289_vm2, %v2504_v45, %v2502_v23  ;;  %v2529_v23 = vmul.f32 %v5823_v21, %v2483_v22 }
 0xdeb   :  { %v2507_v36 = vsel %vm124_vm4, %v2506_v30, 0.0  ;;  %v2508_v37 = vsel %vm124_vm4, %v2505_v54, 0.0  ;;  %v2846_v54 = vmul.f32 %v5901_v29, %v2779_v55  ;;  %v2847_v30 = vmul.f32 %v5901_v29, %v2780_v56 }
 0xdec   :  { %v2557_v28 = vmul.f32 %v5821_v50, %v2507_v36  ;;  %v2558_v8 = vmul.f32 %v5821_v50, %v2508_v37  ;;  %v2510_v5 = vpop.permute.xlu0 %2509  ;;  %v2818_v37 = vadd.f32 %v2816_v39, %v6009_v53 }
 0xded   :  { %v2512_v27 = vpop.permute.xlu1 %2511 }
 0xdee   :  { %v2559_v19 = vadd.f32 %v2557_v28, %v2551_v0  ;;  %v2560_v49 = vadd.f32 %v2558_v8, %v2552_v63  ;;  %v2513_v25 = vsel %vm125_vm7, %v2510_v5, %v2512_v27  ;;  %v2514_v50 = vsel %vm125_vm7, %v2512_v27, %v2510_v5 }
 0xdef   :  { %v2515_v11 = vsel %vm125_vm7, %v2513_v25, 0.0  ;;  %v2516_v31 = vsel %vm125_vm7, %v2514_v50, 0.0  ;;  %v2819_v0 = vadd.f32 %v2817_v52, %v6011_v57  ;;  %v2537_v63 = vadd.f32 %v6000_v16, %v2529_v23  ;;  %v2586_v23 = vld [vmem:[#allocation13 + $0x30] sm:$0xff] }
 0xdf0   :  { %v2567_v41 = vadd.f32 %v2565_v38, %v2559_v19  ;;  %v2568_v43 = vadd.f32 %v2566_v24, %v2560_v49  ;;  %v2573_v32 = vmul.f32 %v5885_v14, %v2515_v11  ;;  %v2574_v15 = vmul.f32 %v5885_v14, %v2516_v31  ;;  %v2518_v45 = vpop.permute.xlu0 %2517 }
 0xdf1   :  { %v2520_v34 = vpop.permute.xlu1 %2519  ;;  %v2543_v24 = vmul.f32 %v5893_v44, %v2491_v40  ;;  %v2538_v44 = vadd.f32 %v6006_v61, %v2530_v62  ;;  %v2848_v16 = vadd.f32 %v2846_v54, %v6013_v4  ;;  %v2849_v61 = vadd.f32 %v2847_v30, %v6015_v9 }
 0xdf2   :  { %v2521_v38 = vsel %vm126_vm8, %v2518_v45, %v2520_v34  ;;  %v2522_v14 = vsel %vm126_vm8, %v2520_v34, %v2518_v45  ;;  %v2575_v2 = vadd.f32 %v2573_v32, %v2567_v41  ;;  %v2576_v55 = vadd.f32 %v2574_v15, %v2568_v43 }
 0xdf3   :  { %v2523_v6 = vsel %vm126_vm8, %v2521_v38, 0.0  ;;  %v2524_v21 = vsel %vm126_vm8, %v2522_v14, 0.0  ;;  %v2545_v27 = vadd.f32 %v2543_v24, %v2537_v63 }
 0xdf4   :  { %v2581_v29 = vmul.f32 %v5891_v47, %v2523_v6  ;;  %v2582_v56 = vmul.f32 %v5891_v47, %v2524_v21  ;;  %v2784_v36 = vpop.permute.xlu0 %2783  ;;  %v2546_v47 = vadd.f32 %v2544_v7, %v2538_v44 }
 0xdf5   :  { %v2782_v28 = vpop.permute.xlu1 %2781 }
 0xdf6   :  { %v2583_v8 = vadd.f32 %v2581_v29, %v2575_v2  ;;  %v2584_v5 = vadd.f32 %v2582_v56, %v2576_v55  ;;  %v2785_v22 = vsel %vm126_vm8, %v2782_v28, %v2784_v36  ;;  %v2786_v3 = vsel %vm126_vm8, %v2784_v36, %v2782_v28 }
 0xdf7   :  { %v2787_v53 = vsel %vm126_vm8, %v2785_v22, 0.0  ;;  %v2788_v57 = vsel %vm126_vm8, %v2786_v3, 0.0 }
 0xdf8   :  { %v2854_v19 = vmul.f32 %v5950_v51, %v2787_v53  ;;  %v2855_v49 = vmul.f32 %v5950_v51, %v2788_v57  ;;  %v2792_v25 = vpop.permute.xlu0 %2791  ;;  %v2906_v50 = vmul.f32 %v5952_v13, %v2787_v53  ;;  %v2907_v40 = vmul.f32 %v5952_v13, %v2788_v57 }
 0xdf9   :  { %v2790_v42 = vpop.permute.xlu1 %2789  ;;  %v3565_v11 = vpack.c.bf16 %v2584_v5, %v2546_v47  ;;  %v3567_v31 = vpack.c.bf16 %v2583_v8, %v2545_v27  ;;  %v2877_v43 = vmul.f32 %v5970_v46, %v2788_v57  ;;  %v2876_v32 = vmul.f32 %v5970_v46, %v2787_v53  ;;  %v2306_v27 = vld [vmem:[#allocation12 + $0x70] sm:$0xff] }
 0xdfa   :  { %v2856_v41 = vadd.f32 %v2854_v19, %v2848_v16  ;;  %v2793_v4 = vsel %vm127_vm9, %v2790_v42, %v2792_v25  ;;  %v2794_v9 = vsel %vm127_vm9, %v2792_v25, %v2790_v42  ;;  %v2908_v51 = vadd.f32 %v2906_v50, %v6064_v33  ;;  %v2921_v47 = vld [vmem:[#allocation12 + $0x90] sm:$0xff]  ;;  %3493 = vmatmul.mubr.msk.f32.gmra.mrb[24].mxu0 %vm443_vm10, %v2306_v27  ;;  %v6926_v27 = vld [vmem:[#allocation39_spill] sm:$0xff] }
 0xdfb   :  { %v2795_v15 = vsel %vm127_vm9, %v2793_v4, 0.0  ;;  %v2796_v13 = vsel %vm127_vm9, %v2794_v9, 0.0  ;;  %3566 = vmatprep.subr.bf16.mxu1 %v3565_v11  ;;  %v2909_v45 = vadd.f32 %v2907_v40, %v6066_v26  ;;  %v2857_v62 = vadd.f32 %v2855_v49, %v2849_v61  ;;  %v2587_v26 = vld [vmem:[#allocation13 + $0x38] sm:$0xff]  ;;  %2402 = vmatprep.mubr.f32.mxu0 %v6782_v59 }
 0xdfc   :  { %v2914_v39 = vmul.f32 %v5956_v20, %v2795_v15  ;;  %v2915_v52 = vmul.f32 %v5956_v20, %v2796_v13  ;;  %3568 = vmatpush1.bf16.msra.mxu1 %v3567_v31  ;;  %v2870_v46 = vadd.f32 %v6032_v35, %v6002_v60  ;;  %v3571_v33 = vpack.c.bf16 %v2856_v41, %v2818_v37  ;;  %v2919_v60 = vld [vmem:[#allocation12 + $0x80] sm:$0xff]  ;;  %v2920_v35 = vld [vmem:[#allocation12 + $0x88] sm:$0xff]  ;;  %v3819_v4 = vld [vmem:[#allocation10 + $0x20] sm:$0xff] }
 0xdfd   :  { %v3569_v30 = vpack.c.bf16 %v2857_v62, %v2819_v0  ;;  %v2879_v38 = vadd.f32 %v2877_v43, %v6034_v58  ;;  %v6147_v58 = vpop.f32.mrb[16].mxu1  ;;  %v6921_v9 = vmov 3   ;;  %v6924_v15 = vmov 14  }
 0xdfe   :  { %v2916_v34 = vadd.f32 %v2914_v39, %v2908_v51  ;;  %v2917_v54 = vadd.f32 %v2915_v52, %v2909_v45  ;;  %v2878_v14 = vadd.f32 %v2876_v32, %v2870_v46  ;;  %v6149_v7 = vpop.f32.mrb[17].mxu1  ;;  %v6922_v32 = vmov 15   ;;  %v2307_v45 = vld [vmem:[#allocation12 + $0x78] sm:$0xff] }
 0xdff   :  { %3495 = vmatmul.mubr.msk.f32.vlgmr.msra.gmra.mrb[20].mxu1 %vm148_vm0, %v2586_v23  ;;  %3570 = vmatprep.subr.bf16.mxu1 %v3569_v30  ;;  %v6153_v6 = vadd.f32 %v6149_v7, %v6147_v58  ;;  %v6155_v21 = vpop.f32.mrb[18].mxu1  ;;  %v6923_v51 = vmov 4   ;;  %v6925_v13 = vmov 5  }
 0xe00   :  { %2664 = vmatprep.mubr.f32.mxu1 %v6782_v59  ;;  %v3573_v20 = vpack.c.bf16 %v2917_v54, %v2879_v38  ;;  %3572 = vmatpush1.bf16.msra.mxu1 %v3571_v33  ;;  %v3575_v24 = vpack.c.bf16 %v2916_v34, %v2878_v14  ;;  %v6157_v2 = vpop.f32.mrb[19].mxu1 }
 0xe01   :  { %v6161_v55 = vadd.f32 %v6157_v2, %v6155_v21  ;;  %3494 = vmatmul.mubr.msk.f32.gmra.mrb[26].mxu0 %vm443_vm10, %v2307_v45 }
 0xe02   :  { %3574 = vmatprep.subr.bf16.mxu1 %v3573_v20  ;;  %3273 = vmatprep.mubr.f32.mxu0 %v6782_v59 }
 0xe03   :  { %3496 = vmatmul.mubr.msk.f32.gmra.mrb[22].mxu1 %vm148_vm0, %v2587_v26 }
 0xe04   :  { %2999 = vmatprep.mubr.f32.mxu1 %v6782_v59  ;;  %3576 = vmatpush1.bf16.msra.mxu1 %v3575_v24 }
 0xe07   :  { %3504 = vmatmul.mubr.msk.f32.vlgmr.msra.gmra.mrb[24].mxu1 %vm443_vm10, %v2919_v60 }
 0xe08   :  { %3005 = vmatprep.mubr.f32.mxu1 %v6782_v59 }
 0xe0b   :  { %3505 = vmatmul.mubr.msk.f32.gmra.mrb[26].mxu1 %vm443_vm10, %v2920_v35  ;;  %v2922_v35 = vld [vmem:[#allocation12 + $0x98] sm:$0xff] }
 0xe0c   :  { %3011 = vmatprep.mubr.f32.mxu1 %v6782_v59 }
 0xe0f   :  { %3506 = vmatmul.mubr.msk.f32.gmra.mrb[28].mxu1 %vm443_vm10, %v2921_v47  ;;  %v6927_v47 = vld [vmem:[#allocation44_spill] sm:$0xff] }
 0xe10   :  { %3017 = vmatprep.mubr.f32.mxu1 %v6782_v59 }
 0xe13   :  { %3507 = vmatmul.mubr.msk.f32.gmra.mrb[30].mxu1 %vm443_vm10, %v2922_v35 }
 0xed2   :  { %v6163_v29 = vpop.f32.mrb[20].mxu1 }
 0xed3   :  { %v6165_v56 = vpop.f32.mrb[21].mxu1 }
 0xed4   :  { %v6169_v36 = vadd.f32 %v6165_v56, %v6163_v29 }
 0xed6   :  { %v6171_v37 = vpop.f32.mrb[22].mxu1 }
 0xed7   :  { %v6173_v0 = vpop.f32.mrb[23].mxu1 }
 0xed8   :  { %v6177_v63 = vadd.f32 %v6173_v0, %v6171_v37 }
 0xeda   :  { %v3001_v44 = vpop.f32.mrb[24].mxu1 }
 0xedb   :  { %v3003_v28 = vpop.f32.mrb[25].mxu1 }
 0xedc   :  { %v3024_v8 = vadd.f32 %v3003_v28, %v3001_v44 }
 0xede   :  { %3025 = vadd.xlane.f32.xlu0 %v3024_v8  ;;  %v3007_v5 = vpop.f32.mrb[26].mxu1 }
 0xedf   :  { %v3009_v22 = vpop.f32.mrb[27].mxu1 }
 0xee0   :  { %v3040_v3 = vadd.f32 %v3009_v22, %v3007_v5 }
 0xee2   :  { %3041 = vadd.xlane.f32.xlu1 %v3040_v3 }
 0xf6b   :  { %v3026_v53 = vpop.xlane.xlu0 %3025 }
 0xf6c   :  { %v3027_v57 = vmul.f32 0.00390625, %v3026_v53 }
 0xf6e   :  { %v3028_v16 = vsub.f32 %v3001_v44, %v3027_v57  ;;  %v3029_v61 = vsub.f32 %v3003_v28, %v3027_v57  ;;  %v6229_v44 = vpop.f32.mrb[24].mxu0 }
 0xf6f   :  { %v3042_v19 = vpop.xlane.xlu1 %3041  ;;  %v6234_v28 = vpop.f32.mrb[25].mxu0 }
 0xf70   :  { %v3030_v49 = vmul.f32 %v3028_v16, %v3028_v16  ;;  %v3031_v25 = vmul.f32 %v3029_v61, %v3029_v61  ;;  %v3043_v50 = vmul.f32 0.00390625, %v3042_v19  ;;  %v6238_v8 = vadd.f32 %v6234_v28, %v6229_v44 }
 0xf72   :  { %v3044_v40 = vsub.f32 %v3007_v5, %v3043_v50  ;;  %v3045_v42 = vsub.f32 %v3009_v22, %v3043_v50  ;;  %v3032_v11 = vadd.f32 %v3031_v25, %v3030_v49  ;;  %v6240_v5 = vpop.f32.mrb[28].mxu1 }
 0xf73   :  { %v6242_v22 = vpop.f32.mrb[29].mxu1 }
 0xf74   :  { %v3046_v31 = vmul.f32 %v3044_v40, %v3044_v40  ;;  %v3047_v41 = vmul.f32 %v3045_v42, %v3045_v42  ;;  %3033 = vadd.xlane.f32.xlu1 %v3032_v11  ;;  %v6246_v3 = vadd.f32 %v6242_v22, %v6240_v5 }
 0xf76   :  { %v3048_v43 = vadd.f32 %v3047_v41, %v3046_v31 }
 0xf78   :  { %3049 = vadd.xlane.f32.xlu0 %v3048_v43 }
 0xf85   :  { %3169 = vperm.xlu1 %3734, %v3819_v4  }
 0xf89   :  { %3735 = vset.pattern.permute.xlu1 %v6895_v12 }
 0xf8a   :  { %3177 = vperm.xlu1 %3735, %v3819_v4  }
 0xf8e   :  { %3736 = vset.pattern.permute.xlu1 %v6921_v9  ;;  %3163 = vperm.xlu0 %3733, %v3819_v4  }
 0xf8f   :  { %3141 = vperm.xlu1 %3736, %v3819_v4  }
 0xf92   :  { %3740 = vset.pattern.permute.xlu0 %v6922_v32 }
 0xf93   :  { %3737 = vset.pattern.permute.xlu1 %v6923_v51  ;;  %3193 = vperm.xlu0 %3740, %v3819_v4  }
 0xf94   :  { %3147 = vperm.xlu1 %3737, %v3819_v4  }
 0xf98   :  { %3738 = vset.pattern.permute.xlu1 %v6924_v15 }
 0xf99   :  { %3185 = vperm.xlu1 %3738, %v3819_v4  }
 0xf9d   :  { %3739 = vset.pattern.permute.xlu1 %v6925_v13 }
 0xf9e   :  { %3155 = vperm.xlu1 %3739, %v3819_v4  }
0x1001   :  { %v3034_v12 = vpop.xlane.xlu1 %3033 }
0x1002   :  { %v3035_v39 = vmul.f32 0.00390625, %v3034_v12 }
0x1004   :  { %v3036_v52 = vadd.f32 1e-05, %v3035_v39 }
0x1005   :  { %v3050_v23 = vpop.xlane.xlu0 %3049  ;;  %v3170_v53 = vpop.permute.xlu1 %3169 }
0x1006   :  { %3787 = vrsqrt.f32 %v3036_v52  ;;  %v3051_v62 = vmul.f32 0.00390625, %v3050_v23 }
0x1008   :  { %v3052_v46 = vadd.f32 1e-05, %v3051_v62 }
0x1009   :  { %v3178_v57 = vpop.permute.xlu1 %3177 }
0x100a   :  { %3789 = vrsqrt.f32 %v3052_v46 }
0x1010   :  { %v3788_v33 = vpop.eup %3787 }
0x1011   :  { %v3038_v34 = vmul.f32 %v3788_v33, %v3028_v16  ;;  %v3039_v38 = vmul.f32 %v3788_v33, %v3029_v61  ;;  %v3142_v16 = vpop.permute.xlu1 %3141  ;;  %v6252_v61 = vpop.f32.mrb[26].mxu0 }
0x1012   :  { %v6254_v19 = vpop.f32.mrb[27].mxu0 }
0x1013   :  { %v6191_v54 = vmax.f32 %v3038_v34, 0.0  ;;  %v6199_v24 = vmax.f32 %v3039_v38, 0.0  ;;  %v2457_v49 = vadd.f32 %v6254_v19, %v6252_v61 }
0x1014   :  { %v3790_v30 = vpop.eup %3789 }
0x1015   :  { %v3055_v14 = vmul.f32 %v3790_v30, %v3045_v42  ;;  %3100 = vrot.lane.b32.xlu0 %v6191_v54, %s4024_s6  ;;  %3092 = vrot.lane.b32.xlu1 %v6191_v54, %s4028_s15  ;;  %v3054_v26 = vmul.f32 %v3790_v30, %v3044_v40  ;;  %v3148_v25 = vpop.permute.xlu1 %3147 }
0x1017   :  { %v6197_v20 = vmax.f32 %v3055_v14, 0.0  ;;  %v6205_v60 = vmax.f32 %v3054_v26, 0.0 }
0x1019   :  { %3118 = vrot.lane.b32.xlu0 %v6197_v20, %s4028_s15  ;;  %3094 = vrot.lane.b32.xlu1 %v6199_v24, %s4028_s15  ;;  %v3186_v50 = vpop.permute.xlu1 %3185 }
0x101d   :  { %3124 = vrot.lane.b32.xlu0 %v6205_v60, %s4024_s6  ;;  %3102 = vrot.lane.b32.xlu1 %v6199_v24, %s4024_s6  ;;  %v3156_v40 = vpop.permute.xlu1 %3155 }
0x1021   :  { %3132 = vrot.lane.b32.xlu0 %v6205_v60, %s4026_s1  ;;  %3108 = vrot.lane.b32.xlu1 %v6205_v60, %s4025_s11 }
0x1025   :  { %3318 = vrot.lane.b32.xlu0 %v5811_v17, %s4028_s15  ;;  %3110 = vrot.lane.b32.xlu1 %v6197_v20, %s4025_s11  ;;  %s6513_s11 = sld [smem:[#allocation2 + $0x106]] }
0x1029   :  { %3324 = vrot.lane.b32.xlu0 %v5811_v17, %s4024_s6  ;;  %3116 = vrot.lane.b32.xlu1 %v6205_v60, %s4028_s15 }
0x102d   :  { %3126 = vrot.lane.b32.xlu1 %v6197_v20, %s4024_s6 }
0x1031   :  { %3134 = vrot.lane.b32.xlu1 %v6197_v20, %s4026_s1  ;;  %s6515_s1 = sld [smem:[#allocation2 + $0x186]] }
0x1035   :  { %3320 = vrot.lane.b32.xlu1 %v5813_v48, %s4028_s15  ;;  %s6522_s15 = sld [smem:[#allocation2 + $0x107]] }
0x1039   :  { %3326 = vrot.lane.b32.xlu1 %v5813_v48, %s4024_s6  ;;  %s6511_s6 = sld [smem:[#allocation2 + $0x105]] }
0x1048   :  { %1879 = vadd.xlane.f32.xlu0 %v6153_v6  ;;  %v3164_v6 = vpop.permute.xlu0 %3163 }
0x104c   :  { %2109 = vadd.xlane.f32.xlu0 %v6926_v27  ;;  %v3194_v42 = vpop.permute.xlu0 %3193 }
0x1050   :  { %2672 = vadd.xlane.f32.xlu0 %v6169_v36 }
0x1054   :  { %2125 = vadd.xlane.f32.xlu0 %v6927_v47 }
0x1058   :  { %2458 = vadd.xlane.f32.xlu0 %v2457_v49  ;;  %v3180_v49 = vmul.f32 %v3178_v57, %v6205_v60 }
0x1087   :  { %v3093_v11 = vpop.permute.xlu1 %3092  ;;  %v3101_v31 = vpop.permute.xlu0 %3100 }
0x108b   :  { %v3095_v36 = vpop.permute.xlu1 %3094  ;;  %v3119_v43 = vpop.permute.xlu0 %3118 }
0x108c   :  { %v3096_v13 = vsel %vm289_vm2, %v3093_v11, %v3095_v36  ;;  %v3097_v45 = vsel %vm289_vm2, %v3095_v36, %v3093_v11  ;;  %v3181_v11 = vmul.f32 %v3178_v57, %v6197_v20 }
0x108d   :  { %v3098_v34 = vsel %vm124_vm4, %v3097_v45, 0.0  ;;  %v3099_v30 = vsel %vm124_vm4, %v3096_v13, 0.0 }
0x108e   :  { %v3145_v60 = vmul.f32 %v3142_v16, %v3099_v30 }
0x108f   :  { %v3103_v41 = vpop.permute.xlu1 %3102  ;;  %v3125_v15 = vpop.permute.xlu0 %3124 }
0x1090   :  { %v3104_v23 = vsel %vm125_vm7, %v3101_v31, %v3103_v41  ;;  %v3105_v62 = vsel %vm125_vm7, %v3103_v41, %v3101_v31 }
0x1091   :  { %v3106_v36 = vsel %vm125_vm7, %v3104_v23, 0.0  ;;  %v3107_v31 = vsel %vm125_vm7, %v3105_v62, 0.0 }
0x1092   :  { %v3158_v23 = vmul.f32 %v3156_v40, %v3106_v36  ;;  %v3159_v62 = vmul.f32 %v3156_v40, %v3107_v31 }
0x1093   :  { %v3109_v4 = vpop.permute.xlu1 %3108  ;;  %v3133_v41 = vpop.permute.xlu0 %3132 }
0x1097   :  { %v3111_v9 = vpop.permute.xlu1 %3110  ;;  %v3319_v30 = vpop.permute.xlu0 %3318 }
0x1098   :  { %v3112_v32 = vsel %vm280_vm1, %v3109_v4, %v3111_v9  ;;  %v3113_v51 = vsel %vm280_vm1, %v3111_v9, %v3109_v4 }
0x1099   :  { %v3114_v12 = vsel %vm123_vm3, %v3113_v51, 0.0  ;;  %v3115_v39 = vsel %vm123_vm3, %v3112_v32, 0.0 }
0x109a   :  { %v3166_v26 = vmul.f32 %v3164_v6, %v3114_v12  ;;  %v3167_v35 = vmul.f32 %v3164_v6, %v3115_v39  ;;  %v3144_v6 = vmul.f32 %v3142_v16, %v3098_v34  ;;  %v3150_v39 = vmul.f32 %v3148_v25, %v6191_v54 }
0x109b   :  { %v3117_v52 = vpop.permute.xlu1 %3116 }
0x109c   :  { %v3120_v46 = vsel %vm289_vm2, %v3117_v52, %v3119_v43  ;;  %v3121_v33 = vsel %vm289_vm2, %v3119_v43, %v3117_v52  ;;  %v3151_v52 = vmul.f32 %v3148_v25, %v6199_v24 }
0x109d   :  { %v3122_v38 = vsel %vm124_vm4, %v3121_v33, 0.0  ;;  %v3123_v14 = vsel %vm124_vm4, %v3120_v46, 0.0  ;;  %v3152_v33 = vadd.f32 %v3150_v39, %v3144_v6 }
0x109e   :  { %v3172_v27 = vmul.f32 %v3170_v53, %v3122_v38  ;;  %v3173_v47 = vmul.f32 %v3170_v53, %v3123_v14  ;;  %v3153_v34 = vadd.f32 %v3151_v52, %v3145_v60 }
0x109f   :  { %v3127_v43 = vpop.permute.xlu1 %3126  ;;  %v3160_v14 = vadd.f32 %v3158_v23, %v3152_v33 }
0x10a0   :  { %v3174_v4 = vadd.f32 %v3172_v27, %v3166_v26  ;;  %v3175_v9 = vadd.f32 %v3173_v47, %v3167_v35  ;;  %v3128_v32 = vsel %vm125_vm7, %v3125_v15, %v3127_v43  ;;  %v3129_v53 = vsel %vm125_vm7, %v3127_v43, %v3125_v15  ;;  %v3325_v43 = vpop.permute.xlu0 %3324 }
0x10a1   :  { %v3130_v20 = vsel %vm125_vm7, %v3128_v32, 0.0  ;;  %v3131_v57 = vsel %vm125_vm7, %v3129_v53, 0.0  ;;  %v3161_v26 = vadd.f32 %v3159_v62, %v3153_v34  ;;  %v3201_v62 = vld [vmem:[#allocation13 + $0x40] sm:$0xff] }
0x10a2   :  { %v3182_v51 = vadd.f32 %v3180_v49, %v3174_v4  ;;  %v3183_v13 = vadd.f32 %v3181_v11, %v3175_v9  ;;  %v3188_v45 = vmul.f32 %v3186_v50, %v3130_v20  ;;  %v3189_v12 = vmul.f32 %v3186_v50, %v3131_v57 }
0x10a3   :  { %v3135_v46 = vpop.permute.xlu1 %3134 }
0x10a4   :  { %v3136_v16 = vsel %vm126_vm8, %v3133_v41, %v3135_v46  ;;  %v3137_v15 = vsel %vm126_vm8, %v3135_v46, %v3133_v41  ;;  %v3190_v50 = vadd.f32 %v3188_v45, %v3182_v51  ;;  %v3191_v24 = vadd.f32 %v3189_v12, %v3183_v13  ;;  %v6928_v46 = vld [vmem:[#allocation37_spill] sm:$0xff] }
0x10a5   :  { %v3138_v38 = vsel %vm126_vm8, %v3136_v16, 0.0  ;;  %v3139_v54 = vsel %vm126_vm8, %v3137_v15, 0.0 }
0x10a6   :  { %v3196_v25 = vmul.f32 %v3194_v42, %v3138_v38  ;;  %v3197_v40 = vmul.f32 %v3194_v42, %v3139_v54 }
0x10a7   :  { %v3321_v35 = vpop.permute.xlu1 %3320 }
0x10a8   :  { %v3198_v27 = vadd.f32 %v3196_v25, %v3190_v50  ;;  %v3199_v47 = vadd.f32 %v3197_v40, %v3191_v24  ;;  %v3322_v49 = vsel %vm289_vm2, %v3319_v30, %v3321_v35  ;;  %v3323_v11 = vsel %vm289_vm2, %v3321_v35, %v3319_v30  ;;  %v6929_v25 = vld [vmem:[#allocation22_spill] sm:$0xff]  ;;  %v6379_v35 = vpop.f32.mrb[30].mxu1 }
0x10a9   :  { %v3330_v36 = vsel %vm124_vm4, %v3323_v11, -inf  ;;  %v3331_v31 = vsel %vm124_vm4, %v3322_v49, -inf  ;;  %v3354_v42 = vsel %vm124_vm4, %v3323_v11, 0.0  ;;  %v3355_v41 = vsel %vm124_vm4, %v3322_v49, 0.0 }
0x10aa   :  { %v3334_v4 = vmax.f32 %v3330_v36, %v5811_v17  ;;  %v3335_v9 = vmax.f32 %v3331_v31, %v5813_v48  ;;  %v3577_v53 = vpack.c.bf16 %v3199_v47, %v3161_v26  ;;  %v3579_v6 = vpack.c.bf16 %v3198_v27, %v3160_v14  ;;  %v6381_v27 = vpop.f32.mrb[31].mxu1 }
0x10ab   :  { %v3327_v32 = vpop.permute.xlu1 %3326  ;;  %v3358_v60 = vadd.f32 %v3354_v42, %v5811_v17  ;;  %v3359_v20 = vadd.f32 %v3355_v41, %v5813_v48  ;;  %v3072_v47 = vadd.f32 %v6381_v27, %v6379_v35 }
0x10ac   :  { %v3328_v57 = vsel %vm125_vm7, %v3325_v43, %v3327_v32  ;;  %v3329_v51 = vsel %vm125_vm7, %v3327_v32, %v3325_v43  ;;  %3578 = vmatprep.subr.bf16.mxu0 %v3577_v53 }
0x10ad   :  { %v3332_v13 = vsel %vm125_vm7, %v3328_v57, -inf  ;;  %v3333_v45 = vsel %vm125_vm7, %v3329_v51, -inf  ;;  %v3356_v12 = vsel %vm125_vm7, %v3328_v57, 0.0  ;;  %v3357_v17 = vsel %vm125_vm7, %v3329_v51, 0.0  ;;  %3580 = vmatpush1.bf16.msra.mxu0 %v3579_v6 }
0x10ae   :  { %v6338_v48 = vmax.f32 %v3334_v4, %v3332_v13  ;;  %v6340_v39 = vmax.f32 %v3335_v9, %v3333_v45  ;;  %v3360_v52 = vadd.f32 %v3358_v60, %v3356_v12  ;;  %v3361_v23 = vadd.f32 %v3359_v20, %v3357_v17 }
0x10b0   :  { %v6343_v16 = vmul.f32 %v6928_v46, %v3360_v52  ;;  %v6346_v15 = vmul.f32 %v6928_v46, %v3361_v23  ;;  %v3338_v33 = vadd.f32 %v6340_v39, %v6338_v48  ;;  %3508 = vmatmul.mubr.msk.f32.vlgmr.msra.gmra.mrb[28].mxu0 %vm148_vm0, %v3201_v62 }
0x10b1   :  { %3279 = vmatprep.mubr.f32.mxu0 %v6782_v59 }
0x10b2   :  { %3339 = vadd.xlane.f32.xlu1 %v3338_v33  ;;  %v3364_v34 = vadd.f32 %v6346_v15, %v6343_v16 }
0x10b4   :  { %3509 = vmatmul.mubr.msk.f32.gmra.mrb[30].mxu0 %vm148_vm0, %v3202_v10 }
0x10b6   :  { %3365 = vadd.xlane.f32.xlu1 %v3364_v34 }
0x10ba   :  { %2688 = vadd.xlane.f32.xlu1 %v6177_v63 }
0x10be   :  { %2442 = vadd.xlane.f32.xlu1 %v6238_v8 }
0x10c2   :  { %1895 = vadd.xlane.f32.xlu1 %v6161_v55 }
0x10c6   :  { %3057 = vadd.xlane.f32.xlu1 %v6246_v3  ;;  %v6930_v3 = vld [vmem:[#allocation23_spill] sm:$0xff] }
0x10d5   :  { %v1880_v30 = vpop.xlane.xlu0 %1879 }
0x10d6   :  { %v1881_v38 = vmul.f32 0.00390625, %v1880_v30 }
0x10d8   :  { %v6360_v54 = vsub.f32 %v6147_v58, %v1881_v38  ;;  %v6363_v59 = vsub.f32 %v6149_v7, %v1881_v38 }
0x10d9   :  { %v2110_v50 = vpop.xlane.xlu0 %2109 }
0x10da   :  { %v1884_v24 = vmul.f32 %v6360_v54, %v6360_v54  ;;  %v1885_v63 = vmul.f32 %v6363_v59, %v6363_v59  ;;  %v2111_v8 = vmul.f32 0.00390625, %v2110_v50 }
0x10dc   :  { %v6370_v55 = vsub.f32 %v6929_v25, %v2111_v8  ;;  %v6373_v40 = vsub.f32 %v6930_v3, %v2111_v8  ;;  %v1886_v14 = vadd.f32 %v1885_v63, %v1884_v24  ;;  %v6931_v8 = vld [vmem:[#allocation42_spill] sm:$0xff]  ;;  %v6932_v3 = vld [vmem:[#allocation41_spill] sm:$0xff] }
0x10dd   :  { %v2673_v36 = vpop.xlane.xlu0 %2672 }
0x10de   :  { %v2114_v58 = vmul.f32 %v6370_v55, %v6370_v55  ;;  %v2115_v7 = vmul.f32 %v6373_v40, %v6373_v40  ;;  %1887 = vadd.xlane.f32.xlu1 %v1886_v14  ;;  %v2674_v41 = vmul.f32 0.00390625, %v2673_v36 }
0x10e0   :  { %v2116_v26 = vadd.f32 %v2115_v7, %v2114_v58  ;;  %v6396_v53 = vsub.f32 %v6163_v29, %v2674_v41  ;;  %v6399_v6 = vsub.f32 %v6165_v56, %v2674_v41 }
0x10e1   :  { %v2126_v33 = vpop.xlane.xlu0 %2125 }
0x10e2   :  { %2117 = vadd.xlane.f32.xlu1 %v2116_v26  ;;  %v2677_v29 = vmul.f32 %v6396_v53, %v6396_v53  ;;  %v2678_v56 = vmul.f32 %v6399_v6, %v6399_v6  ;;  %v2127_v30 = vmul.f32 0.00390625, %v2126_v33 }
0x10e4   :  { %v2679_v12 = vadd.f32 %v2678_v56, %v2677_v29  ;;  %v6432_v25 = vsub.f32 %v6931_v8, %v2127_v30  ;;  %v6435_v14 = vsub.f32 %v6932_v3, %v2127_v30 }
0x10e5   :  { %v2459_v63 = vpop.xlane.xlu0 %2458 }
0x10e6   :  { %v2131_v26 = vmul.f32 %v6435_v14, %v6435_v14 }
0x113f   :  { %v6385_v49 = vpop.xlane.xlu1 %3339 }
0x1143   :  { %v6387_v11 = vpop.xlane.xlu1 %3365 }
0x1147   :  { %v2689_v31 = vpop.xlane.xlu1 %2688 }
0x1148   :  { %v2690_v42 = vmul.f32 0.00390625, %v2689_v31 }
0x114a   :  { %v6390_v43 = vsub.f32 %v6171_v37, %v2690_v42  ;;  %v6393_v4 = vsub.f32 %v6173_v0, %v2690_v42 }
0x114b   :  { %v2443_v9 = vpop.xlane.xlu1 %2442 }
0x114c   :  { %v2444_v32 = vmul.f32 0.00390625, %v2443_v9 }
0x114e   :  { %v6402_v60 = vsub.f32 %v6229_v44, %v2444_v32  ;;  %v6405_v20 = vsub.f32 %v6234_v28, %v2444_v32  ;;  %v2693_v32 = vmul.f32 %v6390_v43, %v6390_v43 }
0x114f   :  { %v1896_v57 = vpop.xlane.xlu1 %1895 }
0x1150   :  { %v2447_v37 = vmul.f32 %v6402_v60, %v6402_v60  ;;  %v2448_v0 = vmul.f32 %v6405_v20, %v6405_v20  ;;  %v1897_v10 = vmul.f32 0.00390625, %v1896_v57 }
0x1152   :  { %v2449_v51 = vadd.f32 %v2448_v0, %v2447_v37  ;;  %v6426_v38 = vsub.f32 %v6155_v21, %v1897_v10  ;;  %v6429_v50 = vsub.f32 %v6157_v2, %v1897_v10  ;;  %v2460_v21 = vmul.f32 0.00390625, %v2459_v63 }
0x1153   :  { %v3058_v13 = vpop.xlane.xlu1 %3057  ;;  %v2130_v2 = vmul.f32 %v6432_v25, %v6432_v25  ;;  %v3341_v0 = vmul.f32 0.00390625, %v6385_v49  ;;  %v3367_v63 = vmul.f32 0.00390625, %v6387_v11 }
0x1154   :  { %v3059_v44 = vmul.f32 0.00390625, %v3058_v13  ;;  %2450 = vadd.xlane.f32.xlu1 %v2449_v51  ;;  %v1900_v58 = vmul.f32 %v6426_v38, %v6426_v38  ;;  %v1901_v7 = vmul.f32 %v6429_v50, %v6429_v50  ;;  %v6446_v36 = vsub.f32 %v6252_v61, %v2460_v21 }
0x1155   :  { %v6449_v31 = vsub.f32 %v6254_v19, %v2460_v21  ;;  %v2132_v9 = vadd.f32 %v2131_v26, %v2130_v2  ;;  %v2694_v61 = vmul.f32 %v6393_v4, %v6393_v4  ;;  %v6461_v13 = vsub.f32 %v6338_v48, %v3341_v0 }
0x1156   :  { %v6416_v28 = vsub.f32 %v6240_v5, %v3059_v44  ;;  %v6419_v45 = vsub.f32 %v6242_v22, %v3059_v44  ;;  %v1902_v42 = vadd.f32 %v1901_v7, %v1900_v58  ;;  %v2463_v41 = vmul.f32 %v6446_v36, %v6446_v36 }
0x1157   :  { %v2695_v19 = vadd.f32 %v2694_v61, %v2693_v32  ;;  %v6464_v44 = vsub.f32 %v6340_v39, %v3341_v0  ;;  %v3344_v10 = vmul.f32 %v6461_v13, %v6461_v13 }
0x1158   :  { %v3062_v17 = vmul.f32 %v6416_v28, %v6416_v28  ;;  %v3063_v52 = vmul.f32 %v6419_v45, %v6419_v45  ;;  %2680 = vadd.xlane.f32.xlu1 %v2679_v12 }
0x1159   :  { %v3345_v48 = vmul.f32 %v6464_v44, %v6464_v44 }
0x115a   :  { %v3064_v23 = vadd.f32 %v3063_v52, %v3062_v17 }
0x115b   :  { %v3346_v3 = vadd.f32 %v3345_v48, %v3344_v10 }
0x115c   :  { %3065 = vadd.xlane.f32.xlu1 %v3064_v23 }
0x116b   :  { %v1888_v37 = vpop.xlane.xlu1 %1887 }
0x116c   :  { %v1889_v8 = vmul.f32 0.00390625, %v1888_v37 }
0x116f   :  { %v2118_v29 = vpop.xlane.xlu1 %2117 }
0x1183   :  { %v3275_v62 = vpop.f32.mrb[28].mxu0 }
0x1184   :  { %v3277_v46 = vpop.f32.mrb[29].mxu0 }
0x1185   :  { %v3286_v34 = vadd.f32 %v3277_v46, %v3275_v62 }
0x1187   :  { %3287 = vadd.xlane.f32.xlu0 %v3286_v34  ;;  %v3281_v5 = vpop.f32.mrb[30].mxu0 }
0x1188   :  { %v3283_v22 = vpop.f32.mrb[31].mxu0 }
0x1189   :  { %v3302_v24 = vadd.f32 %v3283_v22, %v3281_v5 }
0x118b   :  { %3303 = vadd.xlane.f32.xlu0 %v3302_v24 }
0x118f   :  { %3073 = vadd.xlane.f32.xlu0 %v3072_v47  ;;  %v2464_v47 = vmul.f32 %v6449_v31, %v6449_v31 }
0x1191   :  { %v2465_v57 = vadd.f32 %v2464_v47, %v2463_v41 }
0x1193   :  { %1903 = vadd.xlane.f32.xlu0 %v1902_v42 }
0x1197   :  { %2133 = vadd.xlane.f32.xlu0 %v2132_v9 }
0x119b   :  { %2466 = vadd.xlane.f32.xlu0 %v2465_v57 }
0x119f   :  { %2696 = vadd.xlane.f32.xlu0 %v2695_v19 }
0x11e1   :  { %v2451_v12 = vpop.xlane.xlu1 %2450 }
0x11e2   :  { %v2452_v37 = vmul.f32 0.00390625, %v2451_v12 }
0x11e5   :  { %v2681_v24 = vpop.xlane.xlu1 %2680 }
0x11e6   :  { %v2682_v26 = vmul.f32 0.00390625, %v2681_v24 }
0x11e8   :  { %v2683_v61 = vadd.f32 1e-05, %v2682_v26 }
0x1214   :  { %v3288_v56 = vpop.xlane.xlu0 %3287 }
0x1215   :  { %v3289_v51 = vmul.f32 0.00390625, %v3288_v56 }
0x1217   :  { %v6466_v17 = vsub.f32 %v3275_v62, %v3289_v51  ;;  %v6468_v52 = vsub.f32 %v3277_v46, %v3289_v51  ;;  %v2119_v62 = vmul.f32 0.00390625, %v2118_v29 }
0x1218   :  { %v3304_v23 = vpop.xlane.xlu0 %3303 }
0x1219   :  { %v3292_v33 = vmul.f32 %v6466_v17, %v6466_v17  ;;  %v3293_v49 = vmul.f32 %v6468_v52, %v6468_v52  ;;  %v3305_v39 = vmul.f32 0.00390625, %v3304_v23  ;;  %v2120_v41 = vadd.f32 1e-05, %v2119_v62 }
0x121b   :  { %v3294_v34 = vadd.f32 %v3293_v49, %v3292_v33  ;;  %v6479_v58 = vsub.f32 %v3281_v5, %v3305_v39  ;;  %v6481_v7 = vsub.f32 %v3283_v22, %v3305_v39  ;;  %v6494_v5 = vsub.f32 %v6343_v16, %v3367_v63 }
0x121c   :  { %v3074_v30 = vpop.xlane.xlu0 %3073  ;;  %v6497_v22 = vsub.f32 %v6346_v15, %v3367_v63  ;;  %3791 = vrsqrt.f32 %v2120_v41  ;;  %v2453_v33 = vadd.f32 1e-05, %v2452_v37  ;;  %v2720_v41 = vstv %s6509_s10 }
0x121d   :  { %v3075_v46 = vmul.f32 0.00390625, %v3074_v30  ;;  %3295 = vadd.xlane.f32.xlu1 %v3294_v34  ;;  %v3309_v9 = vmul.f32 %v6481_v7, %v6481_v7  ;;  %v3370_v16 = vmul.f32 %v6494_v5, %v6494_v5 }
0x121e   :  { %v3371_v15 = vmul.f32 %v6497_v22, %v6497_v22 }
0x121f   :  { %v6484_v21 = vsub.f32 %v6379_v35, %v3075_v46  ;;  %v6487_v2 = vsub.f32 %v6381_v27, %v3075_v46  ;;  %v1890_v35 = vadd.f32 1e-05, %v1889_v8  ;;  %v3308_v27 = vmul.f32 %v6479_v58, %v6479_v58 }
0x1220   :  { %v1904_v42 = vpop.xlane.xlu0 %1903  ;;  %v3372_v10 = vadd.f32 %v3371_v15, %v3370_v16  ;;  %v2732_v16 = vstv %s6515_s1  ;;  %v6933_v15 = vld [vmem:[#allocation40_spill] sm:$0xff] }
0x1221   :  { %v3078_v47 = vmul.f32 %v6484_v21, %v6484_v21  ;;  %v3079_v11 = vmul.f32 %v6487_v2, %v6487_v2  ;;  %3347 = vadd.xlane.f32.xlu1 %v3346_v3  ;;  %3793 = vrsqrt.f32 %v1890_v35  ;;  %v1905_v0 = vmul.f32 0.00390625, %v1904_v42 }
0x1222   :  { %v3310_v56 = vadd.f32 %v3309_v9, %v3308_v27  ;;  %3795 = vrsqrt.f32 %v2683_v61  ;;  %v2157_v3 = vstv %s6507_s5 }
0x1223   :  { %v3080_v32 = vadd.f32 %v3079_v11, %v3078_v47  ;;  %v1906_v49 = vadd.f32 1e-05, %v1905_v0 }
0x1224   :  { %v2134_v57 = vpop.xlane.xlu0 %2133 }
0x1225   :  { %v2135_v19 = vmul.f32 0.00390625, %v2134_v57  ;;  %3081 = vadd.xlane.f32.xlu0 %v3080_v32  ;;  %v2169_v32 = vstv %s6513_s11 }
0x1226   :  { %v3792_v34 = vpop.eup %3791 }
0x1227   :  { %v2136_v29 = vadd.f32 1e-05, %v2135_v19  ;;  %v2122_v46 = vmul.f32 %v3792_v34, %v6370_v55  ;;  %v2123_v63 = vmul.f32 %v3792_v34, %v6373_v40  ;;  %v2163_v55 = vstv %s6511_s6 }
0x1228   :  { %v2467_v51 = vpop.xlane.xlu0 %2466 }
0x1229   :  { %3797 = vrsqrt.f32 %v2136_v29  ;;  %v2468_v23 = vmul.f32 0.00390625, %v2467_v51  ;;  %3311 = vadd.xlane.f32.xlu0 %v3310_v56  ;;  %v2158_v27 = vmul.f32 %v2157_v3, %v2122_v46  ;;  %v2159_v9 = vmul.f32 %v2157_v3, %v2123_v63 }
0x122a   :  { %3799 = vrsqrt.f32 %v2453_v33  ;;  %v2726_v33 = vstv %s6520_s12  ;;  %v2738_v3 = vstv %s6533_s4 }
0x122b   :  { %v2469_v48 = vadd.f32 1e-05, %v2468_v23  ;;  %3801 = vrsqrt.f32 %v1906_v49  ;;  %v3794_v62 = vpop.eup %3793  ;;  %v2160_v37 = vadd.f32 %v2158_v27, %v6933_v15  ;;  %v2175_v49 = vstv %s6522_s15 }
0x122c   :  { %v2697_v39 = vpop.xlane.xlu0 %2696  ;;  %v3796_v24 = vpop.eup %3795  ;;  %v1892_v35 = vmul.f32 %v3794_v62, %v6360_v54  ;;  %v1893_v40 = vmul.f32 %v3794_v62, %v6363_v59  ;;  %v6934_v54 = vld [vmem:[#allocation43_spill] sm:$0xff] }
0x122d   :  { %v2698_v12 = vmul.f32 0.00390625, %v2697_v39  ;;  %3373 = vadd.xlane.f32.xlu0 %v3372_v10  ;;  %3803 = vrsqrt.f32 %v2469_v48  ;;  %v2685_v47 = vmul.f32 %v3796_v24, %v6396_v53  ;;  %v2686_v11 = vmul.f32 %v3796_v24, %v6399_v6 }
0x122e   :  { %v2161_v0 = vadd.f32 %v2159_v9, %v6934_v54  ;;  %v2170_v59 = vmul.f32 %v2169_v32, %v1892_v35  ;;  %v2171_v29 = vmul.f32 %v2169_v32, %v1893_v40  ;;  %v3066_v9 = vpop.xlane.xlu1 %3065 }
0x122f   :  { %v2699_v30 = vadd.f32 1e-05, %v2698_v12  ;;  %v2721_v19 = vmul.f32 %v2720_v41, %v2685_v47  ;;  %v2722_v53 = vmul.f32 %v2720_v41, %v2686_v11 }
0x1231   :  { %3805 = vrsqrt.f32 %v2699_v30  ;;  %v2723_v62 = vadd.f32 %v2721_v19, %v5769_v18  ;;  %v2724_v24 = vadd.f32 %v2722_v53, %v5771_v1 }
0x1233   :  { %v3798_v8 = vpop.eup %3797 }
0x1234   :  { %v2138_v26 = vmul.f32 %v3798_v8, %v6432_v25  ;;  %v2139_v42 = vmul.f32 %v3798_v8, %v6435_v14  ;;  %v3800_v25 = vpop.eup %3799 }
0x1235   :  { %v3802_v57 = vpop.eup %3801  ;;  %v2455_v51 = vmul.f32 %v3800_v25, %v6402_v60  ;;  %v2456_v23 = vmul.f32 %v3800_v25, %v6405_v20 }
0x1236   :  { %v2164_v14 = vmul.f32 %v2163_v55, %v2138_v26  ;;  %v2165_v61 = vmul.f32 %v2163_v55, %v2139_v42  ;;  %v1908_v34 = vmul.f32 %v3802_v57, %v6426_v38  ;;  %v1909_v30 = vmul.f32 %v3802_v57, %v6429_v50 }
0x1237   :  { %v3804_v6 = vpop.eup %3803  ;;  %v2733_v8 = vmul.f32 %v2732_v16, %v2455_v51 }
0x1238   :  { %v2166_v39 = vadd.f32 %v2164_v14, %v2160_v37  ;;  %v2167_v12 = vadd.f32 %v2165_v61, %v2161_v0  ;;  %v2471_v60 = vmul.f32 %v3804_v6, %v6446_v36  ;;  %v2472_v20 = vmul.f32 %v3804_v6, %v6449_v31 }
0x1239   :  { %v2176_v38 = vmul.f32 %v2175_v49, %v1908_v34  ;;  %v2177_v47 = vmul.f32 %v2175_v49, %v1909_v30  ;;  %v3067_v6 = vmul.f32 0.00390625, %v3066_v9 }
0x123a   :  { %v2173_v26 = vadd.f32 %v2171_v29, %v2167_v12  ;;  %v2739_v18 = vmul.f32 %v2738_v3, %v2471_v60  ;;  %v2740_v55 = vmul.f32 %v2738_v3, %v2472_v20  ;;  %v3821_v20 = vld [vmem:[#allocation15 + $0x10] sm:$0xff] }
0x123b   :  { %v3806_v56 = vpop.eup %3805  ;;  %v3068_v29 = vadd.f32 1e-05, %v3067_v6 }
0x123c   :  { %v2701_v10 = vmul.f32 %v3806_v56, %v6390_v43  ;;  %v2702_v48 = vmul.f32 %v3806_v56, %v6393_v4  ;;  %v2734_v43 = vmul.f32 %v2732_v16, %v2456_v23  ;;  %v2172_v4 = vadd.f32 %v2170_v59, %v2166_v39 }
0x123d   :  { %v2179_v35 = vadd.f32 %v2177_v47, %v2173_v26 }
0x123e   :  { %v2727_v46 = vmul.f32 %v2726_v33, %v2701_v10  ;;  %v2728_v63 = vmul.f32 %v2726_v33, %v2702_v48  ;;  %v2178_v1 = vadd.f32 %v2176_v38, %v2172_v4  ;;  %v3385_v10 = vstv %s3511_s27 }
0x123f   :  { %v3381_v48 = vstv %s3510_s16  ;;  %v3397_v4 = vstv %s6557_s19 }
0x1240   :  { %v2729_v42 = vadd.f32 %v2727_v46, %v2723_v62  ;;  %v2730_v41 = vadd.f32 %v2728_v63, %v2724_v24  ;;  %v3820_v24 = vld [vmem:[#allocation15] sm:$0xff]  ;;  %v3383_v46 = vmul.f32 %v3821_v20, %v3381_v48  ;;  %v3391_v63 = vstv %s6555_s18 }
0x1241   :  { %v3382_v60 = vmul.f32 %v3820_v24, %v3381_v48 }
0x1242   :  { %v2735_v50 = vadd.f32 %v2733_v8, %v2729_v42  ;;  %v2736_v11 = vadd.f32 %v2734_v43, %v2730_v41 }
0x1244   :  { %v2741_v36 = vadd.f32 %v2739_v18, %v2735_v50  ;;  %v2742_v40 = vadd.f32 %v2740_v55, %v2736_v11  ;;  %v3403_v18 = vstv %s6561_s20 }
0x1246   :  { %v6551_v31 = vadd.f32 %v2741_v36, %v2178_v1  ;;  %v6553_v27 = vadd.f32 %v2742_v40, %v2179_v35  ;;  %v3409_v40 = vstv %s6563_s21 }
0x12aa   :  { %v3296_v32 = vpop.xlane.xlu1 %3295 }
0x12ab   :  { %v3297_v19 = vmul.f32 0.00390625, %v3296_v32 }
0x12ad   :  { %v3298_v15 = vadd.f32 1e-05, %v3297_v19 }
0x12ae   :  { %v3348_v25 = vpop.xlane.xlu1 %3347 }
0x12af   :  { %v3349_v14 = vmul.f32 0.00390625, %v3348_v25  ;;  %v3415_v25 = vstv %s6566_s22 }
0x12b1   :  { %v3350_v61 = vadd.f32 1e-05, %v3349_v14 }
0x12b2   :  { %v3082_v57 = vpop.xlane.xlu0 %3081 }
0x12b3   :  { %3807 = vrsqrt.f32 %v3350_v61  ;;  %v3083_v37 = vmul.f32 0.00390625, %v3082_v57 }
0x12b4   :  { %3809 = vrsqrt.f32 %v3298_v15 }
0x12b5   :  { %v3084_v51 = vadd.f32 1e-05, %v3083_v37 }
0x12b6   :  { %v3312_v53 = vpop.xlane.xlu0 %3311 }
0x12b7   :  { %v3313_v16 = vmul.f32 0.00390625, %v3312_v53 }
0x12b9   :  { %v3314_v54 = vadd.f32 1e-05, %v3313_v16 }
0x12ba   :  { %v3374_v0 = vpop.xlane.xlu0 %3373 }
0x12bb   :  { %v3375_v59 = vmul.f32 0.00390625, %v3374_v0  ;;  %3811 = vrsqrt.f32 %v3314_v54 }
0x12bd   :  { %v3376_v56 = vadd.f32 1e-05, %v3375_v59  ;;  %v3808_v23 = vpop.eup %3807 }
0x12be   :  { %v3352_v33 = vmul.f32 %v3808_v23, %v6461_v13  ;;  %v3353_v49 = vmul.f32 %v3808_v23, %v6464_v44  ;;  %v3810_v39 = vpop.eup %3809 }
0x12bf   :  { %3813 = vrsqrt.f32 %v3376_v56  ;;  %v3300_v44 = vmul.f32 %v3810_v39, %v6466_v17  ;;  %v3301_v8 = vmul.f32 %v3810_v39, %v6468_v52 }
0x12c0   :  { %3815 = vrsqrt.f32 %v3068_v29  ;;  %v3386_v12 = vmul.f32 %v3385_v10, %v3352_v33  ;;  %v3387_v34 = vmul.f32 %v3385_v10, %v3353_v49 }
0x12c1   :  { %3817 = vrsqrt.f32 %v3084_v51  ;;  %v3399_v55 = vmul.f32 %v3397_v4, %v3301_v8 }
0x12c2   :  { %v3388_v26 = vadd.f32 %v3386_v12, %v3382_v60  ;;  %v3389_v42 = vadd.f32 %v3387_v34, %v3383_v46 }
0x12c5   :  { %v3812_v30 = vpop.eup %3811 }
0x12c6   :  { %v3316_v38 = vmul.f32 %v3812_v30, %v6479_v58  ;;  %v3317_v47 = vmul.f32 %v3812_v30, %v6481_v7 }
0x12c8   :  { %v3404_v7 = vmul.f32 %v3403_v18, %v3316_v38  ;;  %v3405_v32 = vmul.f32 %v3403_v18, %v3317_v47 }
0x12c9   :  { %v3814_v62 = vpop.eup %3813 }
0x12ca   :  { %v3816_v13 = vpop.eup %3815  ;;  %v3378_v43 = vmul.f32 %v3814_v62, %v6494_v5  ;;  %v3379_v3 = vmul.f32 %v3814_v62, %v6497_v22  ;;  %v3398_v5 = vmul.f32 %v3397_v4, %v3300_v44 }
0x12cb   :  { %v3818_v41 = vpop.eup %3817  ;;  %v3070_v17 = vmul.f32 %v3816_v13, %v6416_v28  ;;  %v3071_v52 = vmul.f32 %v3816_v13, %v6419_v45 }
0x12cc   :  { %v3392_v50 = vmul.f32 %v3391_v63, %v3378_v43  ;;  %v3393_v11 = vmul.f32 %v3391_v63, %v3379_v3  ;;  %v3086_v35 = vmul.f32 %v3818_v41, %v6484_v21  ;;  %v3087_v36 = vmul.f32 %v3818_v41, %v6487_v2 }
0x12cd   :  { %v3410_v28 = vmul.f32 %v3409_v40, %v3070_v17  ;;  %v3411_v57 = vmul.f32 %v3409_v40, %v3071_v52 }
0x12ce   :  { %v3394_v22 = vadd.f32 %v3392_v50, %v3388_v26  ;;  %v3395_v1 = vadd.f32 %v3393_v11, %v3389_v42  ;;  %v3416_v53 = vmul.f32 %v3415_v25, %v3086_v35  ;;  %v3417_v16 = vmul.f32 %v3415_v25, %v3087_v36 }
0x12d0   :  { %v3400_v58 = vadd.f32 %v3398_v5, %v3394_v22  ;;  %v3401_v9 = vadd.f32 %v3399_v55, %v3395_v1 }
0x12d2   :  { %v3406_v14 = vadd.f32 %v3404_v7, %v3400_v58  ;;  %v3407_v61 = vadd.f32 %v3405_v32, %v3401_v9 }
0x12d4   :  { %v3412_v45 = vadd.f32 %v3410_v28, %v3406_v14  ;;  %v3413_v19 = vadd.f32 %v3411_v57, %v3407_v61 }
0x12d6   :  { %v3418_v6 = vadd.f32 %v3416_v53, %v3412_v45  ;;  %v3419_v21 = vadd.f32 %v3417_v16, %v3413_v19 }
0x12d8   :  { %v3420_v2 = vadd.f32 %v3418_v6, %v6551_v31  ;;  %v3421_v15 = vadd.f32 %v3419_v21, %v6553_v27 }
0x12da   :  { %3425 = vst [vmem:[#allocation15 + $0x8] sm:$0xff] %v3420_v2  ;;  %3426 = vst [vmem:[#allocation15 + $0x18] sm:$0xff] %v3421_v15 }
0x12db   :  { %3975 = shalt.err (!%p3972_p13)
}
0x12dc   :  { %s3976_s2 = scalar_lea.hbm %s6606_s7, 512 }
0x12dd   :  { %p3977_p0 = scmp.ne.s32.totalorder %s6606_s7, %s3976_s2  ;;  %p3980_p1 = scmp.lt.u32.totalorder %s3976_s2, %s6606_s7 }
0x12df   :  { %p3982_p2 = pnand %p3980_p1, %p3977_p0 }
0x12e1   :  { %3985 = shalt.err (!%p3982_p2)
}
0x12e2   :  { %3438 = dma.vmem_to_hbm [thread:$0]  %s3433_s24, 512, %s6606_s7, [#allocation4], %s4000_s13, %s4000_s13, %s4001_s14  }
0x12e3   :  { %3996 = dma.done.wait [#allocation4], 512  }
0x12e4   :  { %3997 = vsyncadd [#allocation4], 4294966784 }
0x12e5   :  { %3442 = vsyncpa [#allocation3], 1 }
0x12e6   :  { %3443 = vsyncpa [#allocation8], 1 }
0x12e7   :  { %3444 = vsyncpa [#allocation11], 1 }
0x12e8   :  { %3445 = vsyncpa [#allocation14], 1 }
0x12e9   :  { %3446 = vsyncpa [#allocation4], 1 }
0x12ea   :  { %3447 = vsyncpa [#allocation5], 1 }

</bundles_post_ra>
